<compile_context>
chip_gen: v7x
topology: tpu7x:2x2x1
jax: 0.10.0
libtpu: 0.0.40
codegen_flags: <defaults>
</compile_context>

<pallas_src>
import numpy as np

import jax
import jax.numpy as jnp
from jax.experimental import pallas as pl
from jax.experimental.pallas import tpu as pltpu


_BN_EPS = 1e-5

# Sub-pixel phase tap table: kernel tap ky(phase, d) = phase + 4 - 2*d for
# d in {0,1,2}; the (undilated, 1-padded) input row used with tap d is p + d.
_KTAP = np.array([[4, 2, 0], [5, 3, 1]], dtype=np.int32)


def _code_perm():
    """Column permutation for the Linear weight: torch view(B, 64, 4, 4)
    flattens (c, h, w)-major; we want (h, w, c)-major so the scatter into the
    conv1 input buffer is a plain contiguous slice copy."""
    j = np.arange(4 * 4 * 64)
    h = j // 256
    w = (j // 64) % 4
    c = j % 64
    return c * 16 + h * 4 + w


# ----------------------------------------------------------------------
# One-time weight packing (hoisted out of the forward path)
# ----------------------------------------------------------------------
def _toeplitz_pack(w_torch, spatial_in):
    """ConvTranspose2d weight (Ci, Co, 6, 6) -> 3 row-tap Toeplitz matrices
    (3, (spatial_in+2)*Ci, 2*(2*spatial_in)*Co); rows (xx, ci), cols (py, x, co)."""
    ci, co = int(w_torch.shape[0]), int(w_torch.shape[1])
    x_out = 2 * spatial_in
    kt = jnp.asarray(_KTAP)
    # (ci, co, py, d, px, e) per-phase 3x3 taps
    wp = w_torch[:, :, kt, :][:, :, :, :, kt]
    px_idx = jnp.asarray(np.arange(x_out) % 2)
    wx = wp[:, :, :, :, px_idx, :]                        # (ci, co, py, d, x, e)
    e_i = np.arange(3)[:, None, None]
    xx_i = np.arange(spatial_in + 2)[None, :, None]
    q_i = (np.arange(x_out) // 2)[None, None, :]
    sel = jnp.asarray((xx_i == q_i + e_i).astype(np.float32))   # (e, xx, x)
    t = jnp.einsum("abq,cuydqa->dbcyqu", sel, wx)         # (d, xx, ci, py, x, co)
    return t.reshape(3, (spatial_in + 2) * ci, 2 * x_out * co).astype(jnp.float32)


def prepare_params(params):
    """Pack raw (torch-layout) parameters into the matrices the fused kernel
    consumes.  Run once; the forward path does no weight repacking."""
    perm = jnp.asarray(_code_perm())
    return {
        "wcode": params["code_w"][:, perm].astype(jnp.float32),   # (N_latent, 1024)
        "bcode": params["code_b"][:, perm].astype(jnp.float32),   # (1, 1024)
        "t1": _toeplitz_pack(params["conv1_w"], 4),               # (3, 384, 512)
        "b1": jnp.tile(params["conv1_b"], (1, 2 * 8)),            # (1, 512)
        "t2": _toeplitz_pack(params["conv2_w"], 8),               # (3, 320, 512)
        "b2": jnp.tile(params["conv2_b"], (1, 2 * 16)),           # (1, 512)
        "t3": _toeplitz_pack(params["conv3_w"], 16),              # (3, 288, 64)
        "b3": jnp.tile(params["conv3_b"], (1, 2 * 32)),           # (1, 64)
    }


# ----------------------------------------------------------------------
# In-kernel helpers
# ----------------------------------------------------------------------
def _group_mean_bcast(row, n_ch, inv_count):
    """row: (1, n_cols) per-column sums.  Returns (1, n_cols) where column j
    holds inv_count * (sum over columns j' with j' % n_ch == j % n_ch), i.e.
    the per-channel statistic already broadcast back over the (py, x) column
    groups.  Log-step lane rotations run on the XLU slot."""
    n_cols = row.shape[-1]
    shift = n_cols // 2
    while shift >= n_ch:
        row = row + pltpu.roll(row, shift, axis=1)
        shift //= 2
    return row * inv_count


def _deconv(a_ref, t_ref, b_row, rows_in, n_ch, batch, bn_relu):
    """One ConvTranspose2d(k=6, s=2, p=2) layer in row-Toeplitz form.

    a_ref : (batch*rows_in, (x_in+2)*ci) zero-padded input activation,
            rows (b, yy), cols (xx, ci) with ci minor.
    t_ref : (3, (x_in+2)*ci, 2*x_out*co) packed row-tap Toeplitz weights,
            cols (py, x, co) with co minor.
    Returns (batch*rows_in - 2, 2*x_out*co).  Row i is output row (b, p) with
    b = i // rows_in, p = i % rows_in, valid when p < rows_in - 2; the two
    leftover rows per image are junk computed from pad rows and never read."""
    total = batch * rows_in - 2
    acc = jnp.dot(a_ref[0:total, :], t_ref[0], preferred_element_type=jnp.float32)
    acc = acc + jnp.dot(a_ref[1:1 + total, :], t_ref[1],
                        preferred_element_type=jnp.float32)
    acc = acc + jnp.dot(a_ref[2:2 + total, :], t_ref[2],
                        preferred_element_type=jnp.float32)
    acc = acc + b_row

    if bn_relu:
        n_cols = acc.shape[-1]
        groups = n_cols // n_ch
        valid_h = rows_in - 2
        inv_count = 1.0 / float(batch * valid_h * groups)
        rid = jax.lax.broadcasted_iota(jnp.int32, (total, 1), 0)
        mask = ((rid % rows_in) < valid_h).astype(jnp.float32)
        # BatchNorm2d (train mode): per-channel batch statistics over
        # (N, H, W) == valid rows x all (py, x) column groups; biased variance.
        mu = _group_mean_bcast(jnp.sum(acc * mask, axis=0, keepdims=True),
                               n_ch, inv_count)
        cen = acc - mu
        var = _group_mean_bcast(jnp.sum(cen * cen * mask, axis=0, keepdims=True),
                                n_ch, inv_count)
        acc = jnp.maximum(cen * jax.lax.rsqrt(var + _BN_EPS), 0.0)
    return acc


# ----------------------------------------------------------------------
# Fused forward kernel (single gridless pallas_call, all VMEM resident)
# ----------------------------------------------------------------------
def _make_fused_kernel(batch):
    def kernel(codes_ref, wcode_ref, bcode_ref,
               t1_ref, b1_ref, t2_ref, b2_ref, t3_ref, b3_ref,
               out_ref, a0_ref, a1_ref, a2_ref):
        # Zero the padded activation buffers (borders must stay zero).
        a0_ref[...] = jnp.zeros_like(a0_ref)
        a1_ref[...] = jnp.zeros_like(a1_ref)
        a2_ref[...] = jnp.zeros_like(a2_ref)

        # ---- code: Linear(N_latent -> 1024); columns pre-permuted to (h, w, c)
        r0 = jnp.dot(codes_ref[...], wcode_ref[...],
                     preferred_element_type=jnp.float32) + bcode_ref[...]
        # Scatter rows (b, h) into the padded 4x4x64 buffer (cols (xx, ci)).
        for b in range(batch):
            for h in range(4):
                dst = b * 6 + 1 + h
                a0_ref[dst:dst + 1, 64:320] = r0[b:b + 1, h * 256:(h + 1) * 256]

        # ---- conv1 + BN + ReLU : 4x4x64 -> 8x8x32
        r1 = _deconv(a0_ref, t1_ref, b1_ref[...], rows_in=6, n_ch=32,
                     batch=batch, bn_relu=True)
        # Phase de-interleave: row (b, h), col block py -> padded row 1+2h+py.
        for b in range(batch):
            for h in range(4):
                src = b * 6 + h
                for py in range(2):
                    dst = b * 10 + 1 + 2 * h + py
                    a1_ref[dst:dst + 1, 32:288] = \
                        r1[src:src + 1, py * 256:(py + 1) * 256]

        # ---- conv2 + BN + ReLU : 8x8x32 -> 16x16x16
        r2 = _deconv(a1_ref, t2_ref, b2_ref[...], rows_in=10, n_ch=16,
                     batch=batch, bn_relu=True)
        for b in range(batch):
            for p in range(8):
                src = b * 10 + p
                for py in range(2):
                    dst = b * 18 + 1 + 2 * p + py
                    a2_ref[dst:dst + 1, 16:272] = \
                        r2[src:src + 1, py * 256:(py + 1) * 256]

        # ---- conv3 + Sigmoid : 16x16x16 -> 32x32x1
        r3 = _deconv(a2_ref, t3_ref, b3_ref[...], rows_in=18, n_ch=1,
                     batch=batch, bn_relu=False)
        # Numerically-stable logistic on the EUP.
        r3 = 0.5 * (jnp.tanh(0.5 * r3) + 1.0)
        # Output rows (b, p), cols (py, x): reshapes to (B, 1, 32, 32) for free.
        for b in range(batch):
            out_ref[b * 16:(b + 1) * 16, :] = r3[b * 18:b * 18 + 16, :]

    return kernel


def _fused_decoder_call(codes, packed):
    batch = codes.shape[0]
    out = pl.pallas_call(
        _make_fused_kernel(batch),
        out_shape=jax.ShapeDtypeStruct((batch * 16, 64), jnp.float32),
        in_specs=[pl.BlockSpec(memory_space=pltpu.MemorySpace.VMEM)] * 9,
        out_specs=pl.BlockSpec(memory_space=pltpu.MemorySpace.VMEM),
        scratch_shapes=[
            pltpu.VMEM((batch * 6, 6 * 64), jnp.float32),     # padded 4x4x64
            pltpu.VMEM((batch * 10, 10 * 32), jnp.float32),   # padded 8x8x32
            pltpu.VMEM((batch * 18, 18 * 16), jnp.float32),   # padded 16x16x16
        ],
        compiler_params=pltpu.CompilerParams(vmem_limit_bytes=32 * 1024 * 1024),
    )(codes.astype(jnp.float32), packed["wcode"], packed["bcode"],
      packed["t1"], packed["b1"], packed["t2"], packed["b2"],
      packed["t3"], packed["b3"])
    # Rows (b, p), cols (py, x): pure row-major bitcast to NCHW (B, 1, 32, 32).
    return out.reshape(batch, 1, 32, 32)


learned_decoder_forward = jax.jit(_fused_decoder_call)


# ----------------------------------------------------------------------
# Parameters (deterministic init, mirroring torch: N(0, 0.001), bias = 0)
# ----------------------------------------------------------------------
def init_params(key, n_latent):
    rep = 4 * 4 * 64
    k_code, k1, k2, k3 = jax.random.split(key, 4)
    return {
        "code_w": 0.001 * jax.random.normal(k_code, (n_latent, rep), jnp.float32),
        "code_b": jnp.zeros((1, rep), jnp.float32),
        "conv1_w": 0.001 * jax.random.normal(k1, (64, 32, 6, 6), jnp.float32),
        "conv1_b": jnp.zeros((1, 32), jnp.float32),
        "conv2_w": 0.001 * jax.random.normal(k2, (32, 16, 6, 6), jnp.float32),
        "conv2_b": jnp.zeros((1, 16), jnp.float32),
        "conv3_w": 0.001 * jax.random.normal(k3, (16, 1, 6, 6), jnp.float32),
        "conv3_b": jnp.zeros((1, 1), jnp.float32),
    }


if __name__ == "__main__":
    key = jax.random.PRNGKey(0)
    k_params, k_codes = jax.random.split(key)

    N_LATENT = 8
    BATCH = 2

    params = init_params(k_params, N_LATENT)
    packed = prepare_params(params)          # one-time weight packing (hoisted)
    codes = jax.random.normal(k_codes, (BATCH, N_LATENT), jnp.float32)

    out = learned_decoder_forward(codes, packed)
    out = jax.block_until_ready(out)

    assert out.shape == (BATCH, 1, 32, 32), out.shape
    assert bool(jnp.all(jnp.isfinite(out)))
    assert bool(jnp.all((out >= 0.0) & (out <= 1.0)))   # sigmoid output range
    print("KERNEL_OK")
</pallas_src>

<mosaic_0001>
module attributes {stable_mosaic.version = 11 : i64} {
  func.func @kernel(%arg0: memref<2x8xf32, #tpu.memory_space<vmem>>, %arg1: memref<8x1024xf32, #tpu.memory_space<vmem>>, %arg2: memref<1x1024xf32, #tpu.memory_space<vmem>>, %arg3: memref<3x384x512xf32, #tpu.memory_space<vmem>>, %arg4: memref<1x512xf32, #tpu.memory_space<vmem>>, %arg5: memref<3x320x512xf32, #tpu.memory_space<vmem>>, %arg6: memref<1x512xf32, #tpu.memory_space<vmem>>, %arg7: memref<3x288x64xf32, #tpu.memory_space<vmem>>, %arg8: memref<1x64xf32, #tpu.memory_space<vmem>>, %arg9: memref<32x64xf32, #tpu.memory_space<vmem>>, %arg10: memref<12x384xf32, #tpu.memory_space<vmem>>, %arg11: memref<20x320xf32, #tpu.memory_space<vmem>>, %arg12: memref<36x288xf32, #tpu.memory_space<vmem>>) attributes {dimension_semantics = [], scalar_prefetch = 0 : i64, scratch_operands = 3 : i64, tpu.core_type = #tpu.core_type<tc>} {
    %cst = arith.constant 0.000000e+00 : f32
    %0 = vector.broadcast %cst : f32 to vector<12x384xf32>
    %c0 = arith.constant 0 : index
    %c0_0 = arith.constant 0 : index
    %1 = vector.load %arg10[%c0, %c0_0] : memref<12x384xf32, #tpu.memory_space<vmem>>, vector<12x384xf32>
    tpu.vector_store %arg10[%c0, %c0_0], %0 {strides = array<i32>} : memref<12x384xf32, #tpu.memory_space<vmem>>, vector<12x384xf32>,
    %cst_1 = arith.constant 0.000000e+00 : f32
    %2 = vector.broadcast %cst_1 : f32 to vector<20x320xf32>
    %c0_2 = arith.constant 0 : index
    %c0_3 = arith.constant 0 : index
    %3 = vector.load %arg11[%c0_2, %c0_3] : memref<20x320xf32, #tpu.memory_space<vmem>>, vector<20x320xf32>
    tpu.vector_store %arg11[%c0_2, %c0_3], %2 {strides = array<i32>} : memref<20x320xf32, #tpu.memory_space<vmem>>, vector<20x320xf32>,
    %cst_4 = arith.constant 0.000000e+00 : f32
    %4 = vector.broadcast %cst_4 : f32 to vector<36x288xf32>
    %c0_5 = arith.constant 0 : index
    %c0_6 = arith.constant 0 : index
    %5 = vector.load %arg12[%c0_5, %c0_6] : memref<36x288xf32, #tpu.memory_space<vmem>>, vector<36x288xf32>
    tpu.vector_store %arg12[%c0_5, %c0_6], %4 {strides = array<i32>} : memref<36x288xf32, #tpu.memory_space<vmem>>, vector<36x288xf32>,
    %c0_7 = arith.constant 0 : index
    %c0_8 = arith.constant 0 : index
    %6 = vector.load %arg0[%c0_7, %c0_8] : memref<2x8xf32, #tpu.memory_space<vmem>>, vector<2x8xf32>
    %c0_9 = arith.constant 0 : index
    %c0_10 = arith.constant 0 : index
    %7 = vector.load %arg1[%c0_9, %c0_10] : memref<8x1024xf32, #tpu.memory_space<vmem>>, vector<8x1024xf32>
    %cst_11 = arith.constant dense<0.000000e+00> : vector<2x1024xf32>
    %8 = tpu.matmul %6, %7, %cst_11 {dimension_numbers = #tpu.dot_dimension_numbers<[1], [0], [0], [1], [0, 0, 1, 1], [], []>} : vector<2x8xf32>, vector<8x1024xf32>, vector<2x1024xf32> -> vector<2x1024xf32>
    %c0_12 = arith.constant 0 : index
    %c0_13 = arith.constant 0 : index
    %9 = vector.load %arg2[%c0_12, %c0_13] : memref<1x1024xf32, #tpu.memory_space<vmem>>, vector<1x1024xf32>
    %10 = vector.broadcast %9 : vector<1x1024xf32> to vector<2x1024xf32>
    %11 = arith.addf %8, %10 : vector<2x1024xf32>
    %12 = vector.extract_strided_slice %11 {offsets = [0, 0], sizes = [1, 256], strides = [1, 1]} : vector<2x1024xf32> to vector<1x256xf32>
    %c1 = arith.constant 1 : index
    %c64 = arith.constant 64 : index
    %13 = vector.load %arg10[%c1, %c64] : memref<12x384xf32, #tpu.memory_space<vmem>>, vector<1x256xf32>
    tpu.vector_store %arg10[%c1, %c64], %12 {strides = array<i32>} : memref<12x384xf32, #tpu.memory_space<vmem>>, vector<1x256xf32>,
    %14 = vector.extract_strided_slice %11 {offsets = [0, 256], sizes = [1, 256], strides = [1, 1]} : vector<2x1024xf32> to vector<1x256xf32>
    %c2 = arith.constant 2 : index
    %c64_14 = arith.constant 64 : index
    %15 = vector.load %arg10[%c2, %c64_14] : memref<12x384xf32, #tpu.memory_space<vmem>>, vector<1x256xf32>
    tpu.vector_store %arg10[%c2, %c64_14], %14 {strides = array<i32>} : memref<12x384xf32, #tpu.memory_space<vmem>>, vector<1x256xf32>,
    %16 = vector.extract_strided_slice %11 {offsets = [0, 512], sizes = [1, 256], strides = [1, 1]} : vector<2x1024xf32> to vector<1x256xf32>
    %c3 = arith.constant 3 : index
    %c64_15 = arith.constant 64 : index
    %17 = vector.load %arg10[%c3, %c64_15] : memref<12x384xf32, #tpu.memory_space<vmem>>, vector<1x256xf32>
    tpu.vector_store %arg10[%c3, %c64_15], %16 {strides = array<i32>} : memref<12x384xf32, #tpu.memory_space<vmem>>, vector<1x256xf32>,
    %18 = vector.extract_strided_slice %11 {offsets = [0, 768], sizes = [1, 256], strides = [1, 1]} : vector<2x1024xf32> to vector<1x256xf32>
    %c4 = arith.constant 4 : index
    %c64_16 = arith.constant 64 : index
    %19 = vector.load %arg10[%c4, %c64_16] : memref<12x384xf32, #tpu.memory_space<vmem>>, vector<1x256xf32>
    tpu.vector_store %arg10[%c4, %c64_16], %18 {strides = array<i32>} : memref<12x384xf32, #tpu.memory_space<vmem>>, vector<1x256xf32>,
    %20 = vector.extract_strided_slice %11 {offsets = [1, 0], sizes = [1, 256], strides = [1, 1]} : vector<2x1024xf32> to vector<1x256xf32>
    %c7 = arith.constant 7 : index
    %c64_17 = arith.constant 64 : index
    %21 = vector.load %arg10[%c7, %c64_17] : memref<12x384xf32, #tpu.memory_space<vmem>>, vector<1x256xf32>
    tpu.vector_store %arg10[%c7, %c64_17], %20 {strides = array<i32>} : memref<12x384xf32, #tpu.memory_space<vmem>>, vector<1x256xf32>,
    %22 = vector.extract_strided_slice %11 {offsets = [1, 256], sizes = [1, 256], strides = [1, 1]} : vector<2x1024xf32> to vector<1x256xf32>
    %c8 = arith.constant 8 : index
    %c64_18 = arith.constant 64 : index
    %23 = vector.load %arg10[%c8, %c64_18] : memref<12x384xf32, #tpu.memory_space<vmem>>, vector<1x256xf32>
    tpu.vector_store %arg10[%c8, %c64_18], %22 {strides = array<i32>} : memref<12x384xf32, #tpu.memory_space<vmem>>, vector<1x256xf32>,
    %24 = vector.extract_strided_slice %11 {offsets = [1, 512], sizes = [1, 256], strides = [1, 1]} : vector<2x1024xf32> to vector<1x256xf32>
    %c9 = arith.constant 9 : index
    %c64_19 = arith.constant 64 : index
    %25 = vector.load %arg10[%c9, %c64_19] : memref<12x384xf32, #tpu.memory_space<vmem>>, vector<1x256xf32>
    tpu.vector_store %arg10[%c9, %c64_19], %24 {strides = array<i32>} : memref<12x384xf32, #tpu.memory_space<vmem>>, vector<1x256xf32>,
    %26 = vector.extract_strided_slice %11 {offsets = [1, 768], sizes = [1, 256], strides = [1, 1]} : vector<2x1024xf32> to vector<1x256xf32>
    %c10 = arith.constant 10 : index
    %c64_20 = arith.constant 64 : index
    %27 = vector.load %arg10[%c10, %c64_20] : memref<12x384xf32, #tpu.memory_space<vmem>>, vector<1x256xf32>
    tpu.vector_store %arg10[%c10, %c64_20], %26 {strides = array<i32>} : memref<12x384xf32, #tpu.memory_space<vmem>>, vector<1x256xf32>,
    %c0_21 = arith.constant 0 : index
    %c0_22 = arith.constant 0 : index
    %28 = vector.load %arg4[%c0_21, %c0_22] : memref<1x512xf32, #tpu.memory_space<vmem>>, vector<1x512xf32>
    %c0_23 = arith.constant 0 : index
    %c0_24 = arith.constant 0 : index
    %29 = vector.load %arg10[%c0_23, %c0_24] : memref<12x384xf32, #tpu.memory_space<vmem>>, vector<10x384xf32>
    %c0_25 = arith.constant 0 : index
    %c0_26 = arith.constant 0 : index
    %c0_27 = arith.constant 0 : index
    %30 = vector.load %arg3[%c0_25, %c0_26, %c0_27] : memref<3x384x512xf32, #tpu.memory_space<vmem>>, vector<1x384x512xf32>
    %31 = vector.shape_cast %30 : vector<1x384x512xf32> to vector<384x512xf32>
    %cst_28 = arith.constant dense<0.000000e+00> : vector<10x512xf32>
    %32 = tpu.matmul %29, %31, %cst_28 {dimension_numbers = #tpu.dot_dimension_numbers<[1], [0], [0], [1], [0, 0, 1, 1], [], []>} : vector<10x384xf32>, vector<384x512xf32>, vector<10x512xf32> -> vector<10x512xf32>
    %c1_29 = arith.constant 1 : index
    %c0_30 = arith.constant 0 : index
    %33 = vector.load %arg10[%c1_29, %c0_30] : memref<12x384xf32, #tpu.memory_space<vmem>>, vector<10x384xf32>
    %c1_31 = arith.constant 1 : index
    %c0_32 = arith.constant 0 : index
    %c0_33 = arith.constant 0 : index
    %34 = vector.load %arg3[%c1_31, %c0_32, %c0_33] : memref<3x384x512xf32, #tpu.memory_space<vmem>>, vector<1x384x512xf32>
    %35 = vector.shape_cast %34 : vector<1x384x512xf32> to vector<384x512xf32>
    %cst_34 = arith.constant dense<0.000000e+00> : vector<10x512xf32>
    %36 = tpu.matmul %33, %35, %cst_34 {dimension_numbers = #tpu.dot_dimension_numbers<[1], [0], [0], [1], [0, 0, 1, 1], [], []>} : vector<10x384xf32>, vector<384x512xf32>, vector<10x512xf32> -> vector<10x512xf32>
    %37 = arith.addf %32, %36 : vector<10x512xf32>
    %c2_35 = arith.constant 2 : index
    %c0_36 = arith.constant 0 : index
    %38 = vector.load %arg10[%c2_35, %c0_36] : memref<12x384xf32, #tpu.memory_space<vmem>>, vector<10x384xf32>
    %c2_37 = arith.constant 2 : index
    %c0_38 = arith.constant 0 : index
    %c0_39 = arith.constant 0 : index
    %39 = vector.load %arg3[%c2_37, %c0_38, %c0_39] : memref<3x384x512xf32, #tpu.memory_space<vmem>>, vector<1x384x512xf32>
    %40 = vector.shape_cast %39 : vector<1x384x512xf32> to vector<384x512xf32>
    %cst_40 = arith.constant dense<0.000000e+00> : vector<10x512xf32>
    %41 = tpu.matmul %38, %40, %cst_40 {dimension_numbers = #tpu.dot_dimension_numbers<[1], [0], [0], [1], [0, 0, 1, 1], [], []>} : vector<10x384xf32>, vector<384x512xf32>, vector<10x512xf32> -> vector<10x512xf32>
    %42 = arith.addf %37, %41 : vector<10x512xf32>
    %43 = vector.broadcast %28 : vector<1x512xf32> to vector<10x512xf32>
    %44 = arith.addf %42, %43 : vector<10x512xf32>
    %45 = tpu.iota {dimensions = array<i32: 0>} : vector<10x1xi32>
    %c6_i32 = arith.constant 6 : i32
    %c0_i32 = arith.constant 0 : i32
    %46 = arith.cmpi eq, %c6_i32, %c0_i32 : i32
    %c1_i32 = arith.constant 1 : i32
    %47 = arith.select %46, %c1_i32, %c6_i32 : i32
    %48 = vector.broadcast %47 : i32 to vector<10x1xi32>
    %49 = arith.remsi %45, %48 : vector<10x1xi32>
    %c0_i32_41 = arith.constant 0 : i32
    %50 = vector.broadcast %c0_i32_41 : i32 to vector<10x1xi32>
    %51 = arith.cmpi ne, %49, %50 : vector<10x1xi32>
    %c0_i32_42 = arith.constant 0 : i32
    %52 = vector.broadcast %c0_i32_42 : i32 to vector<10x1xi32>
    %53 = arith.cmpi slt, %49, %52 : vector<10x1xi32>
    %c0_i32_43 = arith.constant 0 : i32
    %54 = arith.cmpi slt, %47, %c0_i32_43 : i32
    %55 = vector.broadcast %54 : i1 to vector<10x1xi1>
    %56 = vector.broadcast %55 : vector<10x1xi1> to vector<10x1xi1>
    %57 = arith.xori %53, %56 : vector<10x1xi1>
    %58 = arith.andi %57, %51 : vector<10x1xi1>
    %59 = vector.broadcast %47 : i32 to vector<10x1xi32>
    %60 = arith.addi %49, %59 : vector<10x1xi32>
    %61 = arith.select %58, %60, %49 : vector<10x1xi1>, vector<10x1xi32>
    %c4_i32 = arith.constant 4 : i32
    %62 = vector.broadcast %c4_i32 : i32 to vector<10x1xi32>
    %63 = arith.cmpi slt, %61, %62 : vector<10x1xi32>
    %64 = arith.extui %63 : vector<10x1xi1> to vector<10x1xi32>
    %65 = arith.sitofp %64 : vector<10x1xi32> to vector<10x1xf32>
    %66 = vector.broadcast %65 : vector<10x1xf32> to vector<10x512xf32>
    %67 = arith.mulf %44, %66 : vector<10x512xf32>
    %cst_44 = arith.constant dense<0.000000e+00> : vector<512xf32>
    %68 = vector.multi_reduction <add>, %67, %cst_44 [0] : vector<10x512xf32> to vector<512xf32>
    %69 = vector.shape_cast %68 : vector<512xf32> to vector<1x512xf32>
    %c256_i32 = arith.constant 256 : i32
    %70 = tpu.dynamic_rotate %69 by %c256_i32 dim 1 : vector<1x512xf32>, i32 -> vector<1x512xf32>
    %71 = arith.addf %69, %70 : vector<1x512xf32>
    %c128_i32 = arith.constant 128 : i32
    %72 = tpu.dynamic_rotate %71 by %c128_i32 dim 1 : vector<1x512xf32>, i32 -> vector<1x512xf32>
    %73 = arith.addf %71, %72 : vector<1x512xf32>
    %c64_i32 = arith.constant 64 : i32
    %74 = tpu.dynamic_rotate %73 by %c64_i32 dim 1 : vector<1x512xf32>, i32 -> vector<1x512xf32>
    %75 = arith.addf %73, %74 : vector<1x512xf32>
    %c32_i32 = arith.constant 32 : i32
    %76 = tpu.dynamic_rotate %75 by %c32_i32 dim 1 : vector<1x512xf32>, i32 -> vector<1x512xf32>
    %77 = arith.addf %75, %76 : vector<1x512xf32>
    %cst_45 = arith.constant 7.812500e-03 : f32
    %78 = vector.broadcast %cst_45 : f32 to vector<1x512xf32>
    %79 = arith.mulf %77, %78 : vector<1x512xf32>
    %80 = vector.broadcast %79 : vector<1x512xf32> to vector<10x512xf32>
    %81 = arith.subf %44, %80 : vector<10x512xf32>
    %82 = arith.mulf %81, %81 : vector<10x512xf32>
    %83 = vector.broadcast %65 : vector<10x1xf32> to vector<10x512xf32>
    %84 = arith.mulf %82, %83 : vector<10x512xf32>
    %cst_46 = arith.constant dense<0.000000e+00> : vector<512xf32>
    %85 = vector.multi_reduction <add>, %84, %cst_46 [0] : vector<10x512xf32> to vector<512xf32>
    %86 = vector.shape_cast %85 : vector<512xf32> to vector<1x512xf32>
    %c256_i32_47 = arith.constant 256 : i32
    %87 = tpu.dynamic_rotate %86 by %c256_i32_47 dim 1 : vector<1x512xf32>, i32 -> vector<1x512xf32>
    %88 = arith.addf %86, %87 : vector<1x512xf32>
    %c128_i32_48 = arith.constant 128 : i32
    %89 = tpu.dynamic_rotate %88 by %c128_i32_48 dim 1 : vector<1x512xf32>, i32 -> vector<1x512xf32>
    %90 = arith.addf %88, %89 : vector<1x512xf32>
    %c64_i32_49 = arith.constant 64 : i32
    %91 = tpu.dynamic_rotate %90 by %c64_i32_49 dim 1 : vector<1x512xf32>, i32 -> vector<1x512xf32>
    %92 = arith.addf %90, %91 : vector<1x512xf32>
    %c32_i32_50 = arith.constant 32 : i32
    %93 = tpu.dynamic_rotate %92 by %c32_i32_50 dim 1 : vector<1x512xf32>, i32 -> vector<1x512xf32>
    %94 = arith.addf %92, %93 : vector<1x512xf32>
    %cst_51 = arith.constant 7.812500e-03 : f32
    %95 = vector.broadcast %cst_51 : f32 to vector<1x512xf32>
    %96 = arith.mulf %94, %95 : vector<1x512xf32>
    %cst_52 = arith.constant 9.99999974E-6 : f32
    %97 = vector.broadcast %cst_52 : f32 to vector<1x512xf32>
    %98 = arith.addf %96, %97 : vector<1x512xf32>
    %99 = math.rsqrt %98 : vector<1x512xf32>
    %100 = vector.broadcast %99 : vector<1x512xf32> to vector<10x512xf32>
    %101 = arith.mulf %81, %100 : vector<10x512xf32>
    %cst_53 = arith.constant 0.000000e+00 : f32
    %102 = vector.broadcast %cst_53 : f32 to vector<10x512xf32>
    %103 = arith.maximumf %101, %102 : vector<10x512xf32>
    %104 = vector.extract_strided_slice %103 {offsets = [0, 0], sizes = [1, 256], strides = [1, 1]} : vector<10x512xf32> to vector<1x256xf32>
    %c1_54 = arith.constant 1 : index
    %c32 = arith.constant 32 : index
    %105 = vector.load %arg11[%c1_54, %c32] : memref<20x320xf32, #tpu.memory_space<vmem>>, vector<1x256xf32>
    tpu.vector_store %arg11[%c1_54, %c32], %104 {strides = array<i32>} : memref<20x320xf32, #tpu.memory_space<vmem>>, vector<1x256xf32>,
    %106 = vector.extract_strided_slice %103 {offsets = [0, 256], sizes = [1, 256], strides = [1, 1]} : vector<10x512xf32> to vector<1x256xf32>
    %c2_55 = arith.constant 2 : index
    %c32_56 = arith.constant 32 : index
    %107 = vector.load %arg11[%c2_55, %c32_56] : memref<20x320xf32, #tpu.memory_space<vmem>>, vector<1x256xf32>
    tpu.vector_store %arg11[%c2_55, %c32_56], %106 {strides = array<i32>} : memref<20x320xf32, #tpu.memory_space<vmem>>, vector<1x256xf32>,
    %108 = vector.extract_strided_slice %103 {offsets = [1, 0], sizes = [1, 256], strides = [1, 1]} : vector<10x512xf32> to vector<1x256xf32>
    %c3_57 = arith.constant 3 : index
    %c32_58 = arith.constant 32 : index
    %109 = vector.load %arg11[%c3_57, %c32_58] : memref<20x320xf32, #tpu.memory_space<vmem>>, vector<1x256xf32>
    tpu.vector_store %arg11[%c3_57, %c32_58], %108 {strides = array<i32>} : memref<20x320xf32, #tpu.memory_space<vmem>>, vector<1x256xf32>,
    %110 = vector.extract_strided_slice %103 {offsets = [1, 256], sizes = [1, 256], strides = [1, 1]} : vector<10x512xf32> to vector<1x256xf32>
    %c4_59 = arith.constant 4 : index
    %c32_60 = arith.constant 32 : index
    %111 = vector.load %arg11[%c4_59, %c32_60] : memref<20x320xf32, #tpu.memory_space<vmem>>, vector<1x256xf32>
    tpu.vector_store %arg11[%c4_59, %c32_60], %110 {strides = array<i32>} : memref<20x320xf32, #tpu.memory_space<vmem>>, vector<1x256xf32>,
    %112 = vector.extract_strided_slice %103 {offsets = [2, 0], sizes = [1, 256], strides = [1, 1]} : vector<10x512xf32> to vector<1x256xf32>
    %c5 = arith.constant 5 : index
    %c32_61 = arith.constant 32 : index
    %113 = vector.load %arg11[%c5, %c32_61] : memref<20x320xf32, #tpu.memory_space<vmem>>, vector<1x256xf32>
    tpu.vector_store %arg11[%c5, %c32_61], %112 {strides = array<i32>} : memref<20x320xf32, #tpu.memory_space<vmem>>, vector<1x256xf32>,
    %114 = vector.extract_strided_slice %103 {offsets = [2, 256], sizes = [1, 256], strides = [1, 1]} : vector<10x512xf32> to vector<1x256xf32>
    %c6 = arith.constant 6 : index
    %c32_62 = arith.constant 32 : index
    %115 = vector.load %arg11[%c6, %c32_62] : memref<20x320xf32, #tpu.memory_space<vmem>>, vector<1x256xf32>
    tpu.vector_store %arg11[%c6, %c32_62], %114 {strides = array<i32>} : memref<20x320xf32, #tpu.memory_space<vmem>>, vector<1x256xf32>,
    %116 = vector.extract_strided_slice %103 {offsets = [3, 0], sizes = [1, 256], strides = [1, 1]} : vector<10x512xf32> to vector<1x256xf32>
    %c7_63 = arith.constant 7 : index
    %c32_64 = arith.constant 32 : index
    %117 = vector.load %arg11[%c7_63, %c32_64] : memref<20x320xf32, #tpu.memory_space<vmem>>, vector<1x256xf32>
    tpu.vector_store %arg11[%c7_63, %c32_64], %116 {strides = array<i32>} : memref<20x320xf32, #tpu.memory_space<vmem>>, vector<1x256xf32>,
    %118 = vector.extract_strided_slice %103 {offsets = [3, 256], sizes = [1, 256], strides = [1, 1]} : vector<10x512xf32> to vector<1x256xf32>
    %c8_65 = arith.constant 8 : index
    %c32_66 = arith.constant 32 : index
    %119 = vector.load %arg11[%c8_65, %c32_66] : memref<20x320xf32, #tpu.memory_space<vmem>>, vector<1x256xf32>
    tpu.vector_store %arg11[%c8_65, %c32_66], %118 {strides = array<i32>} : memref<20x320xf32, #tpu.memory_space<vmem>>, vector<1x256xf32>,
    %120 = vector.extract_strided_slice %103 {offsets = [6, 0], sizes = [1, 256], strides = [1, 1]} : vector<10x512xf32> to vector<1x256xf32>
    %c11 = arith.constant 11 : index
    %c32_67 = arith.constant 32 : index
    %121 = vector.load %arg11[%c11, %c32_67] : memref<20x320xf32, #tpu.memory_space<vmem>>, vector<1x256xf32>
    tpu.vector_store %arg11[%c11, %c32_67], %120 {strides = array<i32>} : memref<20x320xf32, #tpu.memory_space<vmem>>, vector<1x256xf32>,
    %122 = vector.extract_strided_slice %103 {offsets = [6, 256], sizes = [1, 256], strides = [1, 1]} : vector<10x512xf32> to vector<1x256xf32>
    %c12 = arith.constant 12 : index
    %c32_68 = arith.constant 32 : index
    %123 = vector.load %arg11[%c12, %c32_68] : memref<20x320xf32, #tpu.memory_space<vmem>>, vector<1x256xf32>
    tpu.vector_store %arg11[%c12, %c32_68], %122 {strides = array<i32>} : memref<20x320xf32, #tpu.memory_space<vmem>>, vector<1x256xf32>,
    %124 = vector.extract_strided_slice %103 {offsets = [7, 0], sizes = [1, 256], strides = [1, 1]} : vector<10x512xf32> to vector<1x256xf32>
    %c13 = arith.constant 13 : index
    %c32_69 = arith.constant 32 : index
    %125 = vector.load %arg11[%c13, %c32_69] : memref<20x320xf32, #tpu.memory_space<vmem>>, vector<1x256xf32>
    tpu.vector_store %arg11[%c13, %c32_69], %124 {strides = array<i32>} : memref<20x320xf32, #tpu.memory_space<vmem>>, vector<1x256xf32>,
    %126 = vector.extract_strided_slice %103 {offsets = [7, 256], sizes = [1, 256], strides = [1, 1]} : vector<10x512xf32> to vector<1x256xf32>
    %c14 = arith.constant 14 : index
    %c32_70 = arith.constant 32 : index
    %127 = vector.load %arg11[%c14, %c32_70] : memref<20x320xf32, #tpu.memory_space<vmem>>, vector<1x256xf32>
    tpu.vector_store %arg11[%c14, %c32_70], %126 {strides = array<i32>} : memref<20x320xf32, #tpu.memory_space<vmem>>, vector<1x256xf32>,
    %128 = vector.extract_strided_slice %103 {offsets = [8, 0], sizes = [1, 256], strides = [1, 1]} : vector<10x512xf32> to vector<1x256xf32>
    %c15 = arith.constant 15 : index
    %c32_71 = arith.constant 32 : index
    %129 = vector.load %arg11[%c15, %c32_71] : memref<20x320xf32, #tpu.memory_space<vmem>>, vector<1x256xf32>
    tpu.vector_store %arg11[%c15, %c32_71], %128 {strides = array<i32>} : memref<20x320xf32, #tpu.memory_space<vmem>>, vector<1x256xf32>,
    %130 = vector.extract_strided_slice %103 {offsets = [8, 256], sizes = [1, 256], strides = [1, 1]} : vector<10x512xf32> to vector<1x256xf32>
    %c16 = arith.constant 16 : index
    %c32_72 = arith.constant 32 : index
    %131 = vector.load %arg11[%c16, %c32_72] : memref<20x320xf32, #tpu.memory_space<vmem>>, vector<1x256xf32>
    tpu.vector_store %arg11[%c16, %c32_72], %130 {strides = array<i32>} : memref<20x320xf32, #tpu.memory_space<vmem>>, vector<1x256xf32>,
    %132 = vector.extract_strided_slice %103 {offsets = [9, 0], sizes = [1, 256], strides = [1, 1]} : vector<10x512xf32> to vector<1x256xf32>
    %c17 = arith.constant 17 : index
    %c32_73 = arith.constant 32 : index
    %133 = vector.load %arg11[%c17, %c32_73] : memref<20x320xf32, #tpu.memory_space<vmem>>, vector<1x256xf32>
    tpu.vector_store %arg11[%c17, %c32_73], %132 {strides = array<i32>} : memref<20x320xf32, #tpu.memory_space<vmem>>, vector<1x256xf32>,
    %134 = vector.extract_strided_slice %103 {offsets = [9, 256], sizes = [1, 256], strides = [1, 1]} : vector<10x512xf32> to vector<1x256xf32>
    %c18 = arith.constant 18 : index
    %c32_74 = arith.constant 32 : index
    %135 = vector.load %arg11[%c18, %c32_74] : memref<20x320xf32, #tpu.memory_space<vmem>>, vector<1x256xf32>
    tpu.vector_store %arg11[%c18, %c32_74], %134 {strides = array<i32>} : memref<20x320xf32, #tpu.memory_space<vmem>>, vector<1x256xf32>,
    %c0_75 = arith.constant 0 : index
    %c0_76 = arith.constant 0 : index
    %136 = vector.load %arg6[%c0_75, %c0_76] : memref<1x512xf32, #tpu.memory_space<vmem>>, vector<1x512xf32>
    %c0_77 = arith.constant 0 : index
    %c0_78 = arith.constant 0 : index
    %137 = vector.load %arg11[%c0_77, %c0_78] : memref<20x320xf32, #tpu.memory_space<vmem>>, vector<18x320xf32>
    %c0_79 = arith.constant 0 : index
    %c0_80 = arith.constant 0 : index
    %c0_81 = arith.constant 0 : index
    %138 = vector.load %arg5[%c0_79, %c0_80, %c0_81] : memref<3x320x512xf32, #tpu.memory_space<vmem>>, vector<1x320x512xf32>
    %139 = vector.shape_cast %138 : vector<1x320x512xf32> to vector<320x512xf32>
    %cst_82 = arith.constant dense<0.000000e+00> : vector<18x512xf32>
    %140 = tpu.matmul %137, %139, %cst_82 {dimension_numbers = #tpu.dot_dimension_numbers<[1], [0], [0], [1], [0, 0, 1, 1], [], []>} : vector<18x320xf32>, vector<320x512xf32>, vector<18x512xf32> -> vector<18x512xf32>
    %c1_83 = arith.constant 1 : index
    %c0_84 = arith.constant 0 : index
    %141 = vector.load %arg11[%c1_83, %c0_84] : memref<20x320xf32, #tpu.memory_space<vmem>>, vector<18x320xf32>
    %c1_85 = arith.constant 1 : index
    %c0_86 = arith.constant 0 : index
    %c0_87 = arith.constant 0 : index
    %142 = vector.load %arg5[%c1_85, %c0_86, %c0_87] : memref<3x320x512xf32, #tpu.memory_space<vmem>>, vector<1x320x512xf32>
    %143 = vector.shape_cast %142 : vector<1x320x512xf32> to vector<320x512xf32>
    %cst_88 = arith.constant dense<0.000000e+00> : vector<18x512xf32>
    %144 = tpu.matmul %141, %143, %cst_88 {dimension_numbers = #tpu.dot_dimension_numbers<[1], [0], [0], [1], [0, 0, 1, 1], [], []>} : vector<18x320xf32>, vector<320x512xf32>, vector<18x512xf32> -> vector<18x512xf32>
    %145 = arith.addf %140, %144 : vector<18x512xf32>
    %c2_89 = arith.constant 2 : index
    %c0_90 = arith.constant 0 : index
    %146 = vector.load %arg11[%c2_89, %c0_90] : memref<20x320xf32, #tpu.memory_space<vmem>>, vector<18x320xf32>
    %c2_91 = arith.constant 2 : index
    %c0_92 = arith.constant 0 : index
    %c0_93 = arith.constant 0 : index
    %147 = vector.load %arg5[%c2_91, %c0_92, %c0_93] : memref<3x320x512xf32, #tpu.memory_space<vmem>>, vector<1x320x512xf32>
    %148 = vector.shape_cast %147 : vector<1x320x512xf32> to vector<320x512xf32>
    %cst_94 = arith.constant dense<0.000000e+00> : vector<18x512xf32>
    %149 = tpu.matmul %146, %148, %cst_94 {dimension_numbers = #tpu.dot_dimension_numbers<[1], [0], [0], [1], [0, 0, 1, 1], [], []>} : vector<18x320xf32>, vector<320x512xf32>, vector<18x512xf32> -> vector<18x512xf32>
    %150 = arith.addf %145, %149 : vector<18x512xf32>
    %151 = vector.broadcast %136 : vector<1x512xf32> to vector<18x512xf32>
    %152 = arith.addf %150, %151 : vector<18x512xf32>
    %153 = tpu.iota {dimensions = array<i32: 0>} : vector<18x1xi32>
    %c10_i32 = arith.constant 10 : i32
    %c0_i32_95 = arith.constant 0 : i32
    %154 = arith.cmpi eq, %c10_i32, %c0_i32_95 : i32
    %c1_i32_96 = arith.constant 1 : i32
    %155 = arith.select %154, %c1_i32_96, %c10_i32 : i32
    %156 = vector.broadcast %155 : i32 to vector<18x1xi32>
    %157 = arith.remsi %153, %156 : vector<18x1xi32>
    %c0_i32_97 = arith.constant 0 : i32
    %158 = vector.broadcast %c0_i32_97 : i32 to vector<18x1xi32>
    %159 = arith.cmpi ne, %157, %158 : vector<18x1xi32>
    %c0_i32_98 = arith.constant 0 : i32
    %160 = vector.broadcast %c0_i32_98 : i32 to vector<18x1xi32>
    %161 = arith.cmpi slt, %157, %160 : vector<18x1xi32>
    %c0_i32_99 = arith.constant 0 : i32
    %162 = arith.cmpi slt, %155, %c0_i32_99 : i32
    %163 = vector.broadcast %162 : i1 to vector<18x1xi1>
    %164 = vector.broadcast %163 : vector<18x1xi1> to vector<18x1xi1>
    %165 = arith.xori %161, %164 : vector<18x1xi1>
    %166 = arith.andi %165, %159 : vector<18x1xi1>
    %167 = vector.broadcast %155 : i32 to vector<18x1xi32>
    %168 = arith.addi %157, %167 : vector<18x1xi32>
    %169 = arith.select %166, %168, %157 : vector<18x1xi1>, vector<18x1xi32>
    %c8_i32 = arith.constant 8 : i32
    %170 = vector.broadcast %c8_i32 : i32 to vector<18x1xi32>
    %171 = arith.cmpi slt, %169, %170 : vector<18x1xi32>
    %172 = arith.extui %171 : vector<18x1xi1> to vector<18x1xi32>
    %173 = arith.sitofp %172 : vector<18x1xi32> to vector<18x1xf32>
    %174 = vector.broadcast %173 : vector<18x1xf32> to vector<18x512xf32>
    %175 = arith.mulf %152, %174 : vector<18x512xf32>
    %cst_100 = arith.constant dense<0.000000e+00> : vector<512xf32>
    %176 = vector.multi_reduction <add>, %175, %cst_100 [0] : vector<18x512xf32> to vector<512xf32>
    %177 = vector.shape_cast %176 : vector<512xf32> to vector<1x512xf32>
    %c256_i32_101 = arith.constant 256 : i32
    %178 = tpu.dynamic_rotate %177 by %c256_i32_101 dim 1 : vector<1x512xf32>, i32 -> vector<1x512xf32>
    %179 = arith.addf %177, %178 : vector<1x512xf32>
    %c128_i32_102 = arith.constant 128 : i32
    %180 = tpu.dynamic_rotate %179 by %c128_i32_102 dim 1 : vector<1x512xf32>, i32 -> vector<1x512xf32>
    %181 = arith.addf %179, %180 : vector<1x512xf32>
    %c64_i32_103 = arith.constant 64 : i32
    %182 = tpu.dynamic_rotate %181 by %c64_i32_103 dim 1 : vector<1x512xf32>, i32 -> vector<1x512xf32>
    %183 = arith.addf %181, %182 : vector<1x512xf32>
    %c32_i32_104 = arith.constant 32 : i32
    %184 = tpu.dynamic_rotate %183 by %c32_i32_104 dim 1 : vector<1x512xf32>, i32 -> vector<1x512xf32>
    %185 = arith.addf %183, %184 : vector<1x512xf32>
    %c16_i32 = arith.constant 16 : i32
    %186 = tpu.dynamic_rotate %185 by %c16_i32 dim 1 : vector<1x512xf32>, i32 -> vector<1x512xf32>
    %187 = arith.addf %185, %186 : vector<1x512xf32>
    %cst_105 = arith.constant 0.001953125 : f32
    %188 = vector.broadcast %cst_105 : f32 to vector<1x512xf32>
    %189 = arith.mulf %187, %188 : vector<1x512xf32>
    %190 = vector.broadcast %189 : vector<1x512xf32> to vector<18x512xf32>
    %191 = arith.subf %152, %190 : vector<18x512xf32>
    %192 = arith.mulf %191, %191 : vector<18x512xf32>
    %193 = vector.broadcast %173 : vector<18x1xf32> to vector<18x512xf32>
    %194 = arith.mulf %192, %193 : vector<18x512xf32>
    %cst_106 = arith.constant dense<0.000000e+00> : vector<512xf32>
    %195 = vector.multi_reduction <add>, %194, %cst_106 [0] : vector<18x512xf32> to vector<512xf32>
    %196 = vector.shape_cast %195 : vector<512xf32> to vector<1x512xf32>
    %c256_i32_107 = arith.constant 256 : i32
    %197 = tpu.dynamic_rotate %196 by %c256_i32_107 dim 1 : vector<1x512xf32>, i32 -> vector<1x512xf32>
    %198 = arith.addf %196, %197 : vector<1x512xf32>
    %c128_i32_108 = arith.constant 128 : i32
    %199 = tpu.dynamic_rotate %198 by %c128_i32_108 dim 1 : vector<1x512xf32>, i32 -> vector<1x512xf32>
    %200 = arith.addf %198, %199 : vector<1x512xf32>
    %c64_i32_109 = arith.constant 64 : i32
    %201 = tpu.dynamic_rotate %200 by %c64_i32_109 dim 1 : vector<1x512xf32>, i32 -> vector<1x512xf32>
    %202 = arith.addf %200, %201 : vector<1x512xf32>
    %c32_i32_110 = arith.constant 32 : i32
    %203 = tpu.dynamic_rotate %202 by %c32_i32_110 dim 1 : vector<1x512xf32>, i32 -> vector<1x512xf32>
    %204 = arith.addf %202, %203 : vector<1x512xf32>
    %c16_i32_111 = arith.constant 16 : i32
    %205 = tpu.dynamic_rotate %204 by %c16_i32_111 dim 1 : vector<1x512xf32>, i32 -> vector<1x512xf32>
    %206 = arith.addf %204, %205 : vector<1x512xf32>
    %cst_112 = arith.constant 0.001953125 : f32
    %207 = vector.broadcast %cst_112 : f32 to vector<1x512xf32>
    %208 = arith.mulf %206, %207 : vector<1x512xf32>
    %cst_113 = arith.constant 9.99999974E-6 : f32
    %209 = vector.broadcast %cst_113 : f32 to vector<1x512xf32>
    %210 = arith.addf %208, %209 : vector<1x512xf32>
    %211 = math.rsqrt %210 : vector<1x512xf32>
    %212 = vector.broadcast %211 : vector<1x512xf32> to vector<18x512xf32>
    %213 = arith.mulf %191, %212 : vector<18x512xf32>
    %cst_114 = arith.constant 0.000000e+00 : f32
    %214 = vector.broadcast %cst_114 : f32 to vector<18x512xf32>
    %215 = arith.maximumf %213, %214 : vector<18x512xf32>
    %216 = vector.extract_strided_slice %215 {offsets = [0, 0], sizes = [1, 256], strides = [1, 1]} : vector<18x512xf32> to vector<1x256xf32>
    %c1_115 = arith.constant 1 : index
    %c16_116 = arith.constant 16 : index
    %217 = vector.load %arg12[%c1_115, %c16_116] : memref<36x288xf32, #tpu.memory_space<vmem>>, vector<1x256xf32>
    tpu.vector_store %arg12[%c1_115, %c16_116], %216 {strides = array<i32>} : memref<36x288xf32, #tpu.memory_space<vmem>>, vector<1x256xf32>,
    %218 = vector.extract_strided_slice %215 {offsets = [0, 256], sizes = [1, 256], strides = [1, 1]} : vector<18x512xf32> to vector<1x256xf32>
    %c2_117 = arith.constant 2 : index
    %c16_118 = arith.constant 16 : index
    %219 = vector.load %arg12[%c2_117, %c16_118] : memref<36x288xf32, #tpu.memory_space<vmem>>, vector<1x256xf32>
    tpu.vector_store %arg12[%c2_117, %c16_118], %218 {strides = array<i32>} : memref<36x288xf32, #tpu.memory_space<vmem>>, vector<1x256xf32>,
    %220 = vector.extract_strided_slice %215 {offsets = [1, 0], sizes = [1, 256], strides = [1, 1]} : vector<18x512xf32> to vector<1x256xf32>
    %c3_119 = arith.constant 3 : index
    %c16_120 = arith.constant 16 : index
    %221 = vector.load %arg12[%c3_119, %c16_120] : memref<36x288xf32, #tpu.memory_space<vmem>>, vector<1x256xf32>
    tpu.vector_store %arg12[%c3_119, %c16_120], %220 {strides = array<i32>} : memref<36x288xf32, #tpu.memory_space<vmem>>, vector<1x256xf32>,
    %222 = vector.extract_strided_slice %215 {offsets = [1, 256], sizes = [1, 256], strides = [1, 1]} : vector<18x512xf32> to vector<1x256xf32>
    %c4_121 = arith.constant 4 : index
    %c16_122 = arith.constant 16 : index
    %223 = vector.load %arg12[%c4_121, %c16_122] : memref<36x288xf32, #tpu.memory_space<vmem>>, vector<1x256xf32>
    tpu.vector_store %arg12[%c4_121, %c16_122], %222 {strides = array<i32>} : memref<36x288xf32, #tpu.memory_space<vmem>>, vector<1x256xf32>,
    %224 = vector.extract_strided_slice %215 {offsets = [2, 0], sizes = [1, 256], strides = [1, 1]} : vector<18x512xf32> to vector<1x256xf32>
    %c5_123 = arith.constant 5 : index
    %c16_124 = arith.constant 16 : index
    %225 = vector.load %arg12[%c5_123, %c16_124] : memref<36x288xf32, #tpu.memory_space<vmem>>, vector<1x256xf32>
    tpu.vector_store %arg12[%c5_123, %c16_124], %224 {strides = array<i32>} : memref<36x288xf32, #tpu.memory_space<vmem>>, vector<1x256xf32>,
    %226 = vector.extract_strided_slice %215 {offsets = [2, 256], sizes = [1, 256], strides = [1, 1]} : vector<18x512xf32> to vector<1x256xf32>
    %c6_125 = arith.constant 6 : index
    %c16_126 = arith.constant 16 : index
    %227 = vector.load %arg12[%c6_125, %c16_126] : memref<36x288xf32, #tpu.memory_space<vmem>>, vector<1x256xf32>
    tpu.vector_store %arg12[%c6_125, %c16_126], %226 {strides = array<i32>} : memref<36x288xf32, #tpu.memory_space<vmem>>, vector<1x256xf32>,
    %228 = vector.extract_strided_slice %215 {offsets = [3, 0], sizes = [1, 256], strides = [1, 1]} : vector<18x512xf32> to vector<1x256xf32>
    %c7_127 = arith.constant 7 : index
    %c16_128 = arith.constant 16 : index
    %229 = vector.load %arg12[%c7_127, %c16_128] : memref<36x288xf32, #tpu.memory_space<vmem>>, vector<1x256xf32>
    tpu.vector_store %arg12[%c7_127, %c16_128], %228 {strides = array<i32>} : memref<36x288xf32, #tpu.memory_space<vmem>>, vector<1x256xf32>,
    %230 = vector.extract_strided_slice %215 {offsets = [3, 256], sizes = [1, 256], strides = [1, 1]} : vector<18x512xf32> to vector<1x256xf32>
    %c8_129 = arith.constant 8 : index
    %c16_130 = arith.constant 16 : index
    %231 = vector.load %arg12[%c8_129, %c16_130] : memref<36x288xf32, #tpu.memory_space<vmem>>, vector<1x256xf32>
    tpu.vector_store %arg12[%c8_129, %c16_130], %230 {strides = array<i32>} : memref<36x288xf32, #tpu.memory_space<vmem>>, vector<1x256xf32>,
    %232 = vector.extract_strided_slice %215 {offsets = [4, 0], sizes = [1, 256], strides = [1, 1]} : vector<18x512xf32> to vector<1x256xf32>
    %c9_131 = arith.constant 9 : index
    %c16_132 = arith.constant 16 : index
    %233 = vector.load %arg12[%c9_131, %c16_132] : memref<36x288xf32, #tpu.memory_space<vmem>>, vector<1x256xf32>
    tpu.vector_store %arg12[%c9_131, %c16_132], %232 {strides = array<i32>} : memref<36x288xf32, #tpu.memory_space<vmem>>, vector<1x256xf32>,
    %234 = vector.extract_strided_slice %215 {offsets = [4, 256], sizes = [1, 256], strides = [1, 1]} : vector<18x512xf32> to vector<1x256xf32>
    %c10_133 = arith.constant 10 : index
    %c16_134 = arith.constant 16 : index
    %235 = vector.load %arg12[%c10_133, %c16_134] : memref<36x288xf32, #tpu.memory_space<vmem>>, vector<1x256xf32>
    tpu.vector_store %arg12[%c10_133, %c16_134], %234 {strides = array<i32>} : memref<36x288xf32, #tpu.memory_space<vmem>>, vector<1x256xf32>,
    %236 = vector.extract_strided_slice %215 {offsets = [5, 0], sizes = [1, 256], strides = [1, 1]} : vector<18x512xf32> to vector<1x256xf32>
    %c11_135 = arith.constant 11 : index
    %c16_136 = arith.constant 16 : index
    %237 = vector.load %arg12[%c11_135, %c16_136] : memref<36x288xf32, #tpu.memory_space<vmem>>, vector<1x256xf32>
    tpu.vector_store %arg12[%c11_135, %c16_136], %236 {strides = array<i32>} : memref<36x288xf32, #tpu.memory_space<vmem>>, vector<1x256xf32>,
    %238 = vector.extract_strided_slice %215 {offsets = [5, 256], sizes = [1, 256], strides = [1, 1]} : vector<18x512xf32> to vector<1x256xf32>
    %c12_137 = arith.constant 12 : index
    %c16_138 = arith.constant 16 : index
    %239 = vector.load %arg12[%c12_137, %c16_138] : memref<36x288xf32, #tpu.memory_space<vmem>>, vector<1x256xf32>
    tpu.vector_store %arg12[%c12_137, %c16_138], %238 {strides = array<i32>} : memref<36x288xf32, #tpu.memory_space<vmem>>, vector<1x256xf32>,
    %240 = vector.extract_strided_slice %215 {offsets = [6, 0], sizes = [1, 256], strides = [1, 1]} : vector<18x512xf32> to vector<1x256xf32>
    %c13_139 = arith.constant 13 : index
    %c16_140 = arith.constant 16 : index
    %241 = vector.load %arg12[%c13_139, %c16_140] : memref<36x288xf32, #tpu.memory_space<vmem>>, vector<1x256xf32>
    tpu.vector_store %arg12[%c13_139, %c16_140], %240 {strides = array<i32>} : memref<36x288xf32, #tpu.memory_space<vmem>>, vector<1x256xf32>,
    %242 = vector.extract_strided_slice %215 {offsets = [6, 256], sizes = [1, 256], strides = [1, 1]} : vector<18x512xf32> to vector<1x256xf32>
    %c14_141 = arith.constant 14 : index
    %c16_142 = arith.constant 16 : index
    %243 = vector.load %arg12[%c14_141, %c16_142] : memref<36x288xf32, #tpu.memory_space<vmem>>, vector<1x256xf32>
    tpu.vector_store %arg12[%c14_141, %c16_142], %242 {strides = array<i32>} : memref<36x288xf32, #tpu.memory_space<vmem>>, vector<1x256xf32>,
    %244 = vector.extract_strided_slice %215 {offsets = [7, 0], sizes = [1, 256], strides = [1, 1]} : vector<18x512xf32> to vector<1x256xf32>
    %c15_143 = arith.constant 15 : index
    %c16_144 = arith.constant 16 : index
    %245 = vector.load %arg12[%c15_143, %c16_144] : memref<36x288xf32, #tpu.memory_space<vmem>>, vector<1x256xf32>
    tpu.vector_store %arg12[%c15_143, %c16_144], %244 {strides = array<i32>} : memref<36x288xf32, #tpu.memory_space<vmem>>, vector<1x256xf32>,
    %246 = vector.extract_strided_slice %215 {offsets = [7, 256], sizes = [1, 256], strides = [1, 1]} : vector<18x512xf32> to vector<1x256xf32>
    %c16_145 = arith.constant 16 : index
    %c16_146 = arith.constant 16 : index
    %247 = vector.load %arg12[%c16_145, %c16_146] : memref<36x288xf32, #tpu.memory_space<vmem>>, vector<1x256xf32>
    tpu.vector_store %arg12[%c16_145, %c16_146], %246 {strides = array<i32>} : memref<36x288xf32, #tpu.memory_space<vmem>>, vector<1x256xf32>,
    %248 = vector.extract_strided_slice %215 {offsets = [10, 0], sizes = [1, 256], strides = [1, 1]} : vector<18x512xf32> to vector<1x256xf32>
    %c19 = arith.constant 19 : index
    %c16_147 = arith.constant 16 : index
    %249 = vector.load %arg12[%c19, %c16_147] : memref<36x288xf32, #tpu.memory_space<vmem>>, vector<1x256xf32>
    tpu.vector_store %arg12[%c19, %c16_147], %248 {strides = array<i32>} : memref<36x288xf32, #tpu.memory_space<vmem>>, vector<1x256xf32>,
    %250 = vector.extract_strided_slice %215 {offsets = [10, 256], sizes = [1, 256], strides = [1, 1]} : vector<18x512xf32> to vector<1x256xf32>
    %c20 = arith.constant 20 : index
    %c16_148 = arith.constant 16 : index
    %251 = vector.load %arg12[%c20, %c16_148] : memref<36x288xf32, #tpu.memory_space<vmem>>, vector<1x256xf32>
    tpu.vector_store %arg12[%c20, %c16_148], %250 {strides = array<i32>} : memref<36x288xf32, #tpu.memory_space<vmem>>, vector<1x256xf32>,
    %252 = vector.extract_strided_slice %215 {offsets = [11, 0], sizes = [1, 256], strides = [1, 1]} : vector<18x512xf32> to vector<1x256xf32>
    %c21 = arith.constant 21 : index
    %c16_149 = arith.constant 16 : index
    %253 = vector.load %arg12[%c21, %c16_149] : memref<36x288xf32, #tpu.memory_space<vmem>>, vector<1x256xf32>
    tpu.vector_store %arg12[%c21, %c16_149], %252 {strides = array<i32>} : memref<36x288xf32, #tpu.memory_space<vmem>>, vector<1x256xf32>,
    %254 = vector.extract_strided_slice %215 {offsets = [11, 256], sizes = [1, 256], strides = [1, 1]} : vector<18x512xf32> to vector<1x256xf32>
    %c22 = arith.constant 22 : index
    %c16_150 = arith.constant 16 : index
    %255 = vector.load %arg12[%c22, %c16_150] : memref<36x288xf32, #tpu.memory_space<vmem>>, vector<1x256xf32>
    tpu.vector_store %arg12[%c22, %c16_150], %254 {strides = array<i32>} : memref<36x288xf32, #tpu.memory_space<vmem>>, vector<1x256xf32>,
    %256 = vector.extract_strided_slice %215 {offsets = [12, 0], sizes = [1, 256], strides = [1, 1]} : vector<18x512xf32> to vector<1x256xf32>
    %c23 = arith.constant 23 : index
    %c16_151 = arith.constant 16 : index
    %257 = vector.load %arg12[%c23, %c16_151] : memref<36x288xf32, #tpu.memory_space<vmem>>, vector<1x256xf32>
    tpu.vector_store %arg12[%c23, %c16_151], %256 {strides = array<i32>} : memref<36x288xf32, #tpu.memory_space<vmem>>, vector<1x256xf32>,
    %258 = vector.extract_strided_slice %215 {offsets = [12, 256], sizes = [1, 256], strides = [1, 1]} : vector<18x512xf32> to vector<1x256xf32>
    %c24 = arith.constant 24 : index
    %c16_152 = arith.constant 16 : index
    %259 = vector.load %arg12[%c24, %c16_152] : memref<36x288xf32, #tpu.memory_space<vmem>>, vector<1x256xf32>
    tpu.vector_store %arg12[%c24, %c16_152], %258 {strides = array<i32>} : memref<36x288xf32, #tpu.memory_space<vmem>>, vector<1x256xf32>,
    %260 = vector.extract_strided_slice %215 {offsets = [13, 0], sizes = [1, 256], strides = [1, 1]} : vector<18x512xf32> to vector<1x256xf32>
    %c25 = arith.constant 25 : index
    %c16_153 = arith.constant 16 : index
    %261 = vector.load %arg12[%c25, %c16_153] : memref<36x288xf32, #tpu.memory_space<vmem>>, vector<1x256xf32>
    tpu.vector_store %arg12[%c25, %c16_153], %260 {strides = array<i32>} : memref<36x288xf32, #tpu.memory_space<vmem>>, vector<1x256xf32>,
    %262 = vector.extract_strided_slice %215 {offsets = [13, 256], sizes = [1, 256], strides = [1, 1]} : vector<18x512xf32> to vector<1x256xf32>
    %c26 = arith.constant 26 : index
    %c16_154 = arith.constant 16 : index
    %263 = vector.load %arg12[%c26, %c16_154] : memref<36x288xf32, #tpu.memory_space<vmem>>, vector<1x256xf32>
    tpu.vector_store %arg12[%c26, %c16_154], %262 {strides = array<i32>} : memref<36x288xf32, #tpu.memory_space<vmem>>, vector<1x256xf32>,
    %264 = vector.extract_strided_slice %215 {offsets = [14, 0], sizes = [1, 256], strides = [1, 1]} : vector<18x512xf32> to vector<1x256xf32>
    %c27 = arith.constant 27 : index
    %c16_155 = arith.constant 16 : index
    %265 = vector.load %arg12[%c27, %c16_155] : memref<36x288xf32, #tpu.memory_space<vmem>>, vector<1x256xf32>
    tpu.vector_store %arg12[%c27, %c16_155], %264 {strides = array<i32>} : memref<36x288xf32, #tpu.memory_space<vmem>>, vector<1x256xf32>,
    %266 = vector.extract_strided_slice %215 {offsets = [14, 256], sizes = [1, 256], strides = [1, 1]} : vector<18x512xf32> to vector<1x256xf32>
    %c28 = arith.constant 28 : index
    %c16_156 = arith.constant 16 : index
    %267 = vector.load %arg12[%c28, %c16_156] : memref<36x288xf32, #tpu.memory_space<vmem>>, vector<1x256xf32>
    tpu.vector_store %arg12[%c28, %c16_156], %266 {strides = array<i32>} : memref<36x288xf32, #tpu.memory_space<vmem>>, vector<1x256xf32>,
    %268 = vector.extract_strided_slice %215 {offsets = [15, 0], sizes = [1, 256], strides = [1, 1]} : vector<18x512xf32> to vector<1x256xf32>
    %c29 = arith.constant 29 : index
    %c16_157 = arith.constant 16 : index
    %269 = vector.load %arg12[%c29, %c16_157] : memref<36x288xf32, #tpu.memory_space<vmem>>, vector<1x256xf32>
    tpu.vector_store %arg12[%c29, %c16_157], %268 {strides = array<i32>} : memref<36x288xf32, #tpu.memory_space<vmem>>, vector<1x256xf32>,
    %270 = vector.extract_strided_slice %215 {offsets = [15, 256], sizes = [1, 256], strides = [1, 1]} : vector<18x512xf32> to vector<1x256xf32>
    %c30 = arith.constant 30 : index
    %c16_158 = arith.constant 16 : index
    %271 = vector.load %arg12[%c30, %c16_158] : memref<36x288xf32, #tpu.memory_space<vmem>>, vector<1x256xf32>
    tpu.vector_store %arg12[%c30, %c16_158], %270 {strides = array<i32>} : memref<36x288xf32, #tpu.memory_space<vmem>>, vector<1x256xf32>,
    %272 = vector.extract_strided_slice %215 {offsets = [16, 0], sizes = [1, 256], strides = [1, 1]} : vector<18x512xf32> to vector<1x256xf32>
    %c31 = arith.constant 31 : index
    %c16_159 = arith.constant 16 : index
    %273 = vector.load %arg12[%c31, %c16_159] : memref<36x288xf32, #tpu.memory_space<vmem>>, vector<1x256xf32>
    tpu.vector_store %arg12[%c31, %c16_159], %272 {strides = array<i32>} : memref<36x288xf32, #tpu.memory_space<vmem>>, vector<1x256xf32>,
    %274 = vector.extract_strided_slice %215 {offsets = [16, 256], sizes = [1, 256], strides = [1, 1]} : vector<18x512xf32> to vector<1x256xf32>
    %c32_160 = arith.constant 32 : index
    %c16_161 = arith.constant 16 : index
    %275 = vector.load %arg12[%c32_160, %c16_161] : memref<36x288xf32, #tpu.memory_space<vmem>>, vector<1x256xf32>
    tpu.vector_store %arg12[%c32_160, %c16_161], %274 {strides = array<i32>} : memref<36x288xf32, #tpu.memory_space<vmem>>, vector<1x256xf32>,
    %276 = vector.extract_strided_slice %215 {offsets = [17, 0], sizes = [1, 256], strides = [1, 1]} : vector<18x512xf32> to vector<1x256xf32>
    %c33 = arith.constant 33 : index
    %c16_162 = arith.constant 16 : index
    %277 = vector.load %arg12[%c33, %c16_162] : memref<36x288xf32, #tpu.memory_space<vmem>>, vector<1x256xf32>
    tpu.vector_store %arg12[%c33, %c16_162], %276 {strides = array<i32>} : memref<36x288xf32, #tpu.memory_space<vmem>>, vector<1x256xf32>,
    %278 = vector.extract_strided_slice %215 {offsets = [17, 256], sizes = [1, 256], strides = [1, 1]} : vector<18x512xf32> to vector<1x256xf32>
    %c34 = arith.constant 34 : index
    %c16_163 = arith.constant 16 : index
    %279 = vector.load %arg12[%c34, %c16_163] : memref<36x288xf32, #tpu.memory_space<vmem>>, vector<1x256xf32>
    tpu.vector_store %arg12[%c34, %c16_163], %278 {strides = array<i32>} : memref<36x288xf32, #tpu.memory_space<vmem>>, vector<1x256xf32>,
    %c0_164 = arith.constant 0 : index
    %c0_165 = arith.constant 0 : index
    %280 = vector.load %arg8[%c0_164, %c0_165] : memref<1x64xf32, #tpu.memory_space<vmem>>, vector<1x64xf32>
    %c0_166 = arith.constant 0 : index
    %c0_167 = arith.constant 0 : index
    %281 = vector.load %arg12[%c0_166, %c0_167] : memref<36x288xf32, #tpu.memory_space<vmem>>, vector<34x288xf32>
    %c0_168 = arith.constant 0 : index
    %c0_169 = arith.constant 0 : index
    %c0_170 = arith.constant 0 : index
    %282 = vector.load %arg7[%c0_168, %c0_169, %c0_170] : memref<3x288x64xf32, #tpu.memory_space<vmem>>, vector<1x288x64xf32>
    %283 = vector.shape_cast %282 : vector<1x288x64xf32> to vector<288x64xf32>
    %cst_171 = arith.constant dense<0.000000e+00> : vector<34x64xf32>
    %284 = tpu.matmul %281, %283, %cst_171 {dimension_numbers = #tpu.dot_dimension_numbers<[1], [0], [0], [1], [0, 0, 1, 1], [], []>} : vector<34x288xf32>, vector<288x64xf32>, vector<34x64xf32> -> vector<34x64xf32>
    %c1_172 = arith.constant 1 : index
    %c0_173 = arith.constant 0 : index
    %285 = vector.load %arg12[%c1_172, %c0_173] : memref<36x288xf32, #tpu.memory_space<vmem>>, vector<34x288xf32>
    %c1_174 = arith.constant 1 : index
    %c0_175 = arith.constant 0 : index
    %c0_176 = arith.constant 0 : index
    %286 = vector.load %arg7[%c1_174, %c0_175, %c0_176] : memref<3x288x64xf32, #tpu.memory_space<vmem>>, vector<1x288x64xf32>
    %287 = vector.shape_cast %286 : vector<1x288x64xf32> to vector<288x64xf32>
    %cst_177 = arith.constant dense<0.000000e+00> : vector<34x64xf32>
    %288 = tpu.matmul %285, %287, %cst_177 {dimension_numbers = #tpu.dot_dimension_numbers<[1], [0], [0], [1], [0, 0, 1, 1], [], []>} : vector<34x288xf32>, vector<288x64xf32>, vector<34x64xf32> -> vector<34x64xf32>
    %289 = arith.addf %284, %288 : vector<34x64xf32>
    %c2_178 = arith.constant 2 : index
    %c0_179 = arith.constant 0 : index
    %290 = vector.load %arg12[%c2_178, %c0_179] : memref<36x288xf32, #tpu.memory_space<vmem>>, vector<34x288xf32>
    %c2_180 = arith.constant 2 : index
    %c0_181 = arith.constant 0 : index
    %c0_182 = arith.constant 0 : index
    %291 = vector.load %arg7[%c2_180, %c0_181, %c0_182] : memref<3x288x64xf32, #tpu.memory_space<vmem>>, vector<1x288x64xf32>
    %292 = vector.shape_cast %291 : vector<1x288x64xf32> to vector<288x64xf32>
    %cst_183 = arith.constant dense<0.000000e+00> : vector<34x64xf32>
    %293 = tpu.matmul %290, %292, %cst_183 {dimension_numbers = #tpu.dot_dimension_numbers<[1], [0], [0], [1], [0, 0, 1, 1], [], []>} : vector<34x288xf32>, vector<288x64xf32>, vector<34x64xf32> -> vector<34x64xf32>
    %294 = arith.addf %289, %293 : vector<34x64xf32>
    %295 = vector.broadcast %280 : vector<1x64xf32> to vector<34x64xf32>
    %296 = arith.addf %294, %295 : vector<34x64xf32>
    %cst_184 = arith.constant 5.000000e-01 : f32
    %297 = vector.broadcast %cst_184 : f32 to vector<34x64xf32>
    %298 = arith.mulf %297, %296 : vector<34x64xf32>
    %299 = math.tanh %298 : vector<34x64xf32>
    %cst_185 = arith.constant 1.000000e+00 : f32
    %300 = vector.broadcast %cst_185 : f32 to vector<34x64xf32>
    %301 = arith.addf %299, %300 : vector<34x64xf32>
    %cst_186 = arith.constant 5.000000e-01 : f32
    %302 = vector.broadcast %cst_186 : f32 to vector<34x64xf32>
    %303 = arith.mulf %302, %301 : vector<34x64xf32>
    %304 = vector.extract_strided_slice %303 {offsets = [0, 0], sizes = [16, 64], strides = [1, 1]} : vector<34x64xf32> to vector<16x64xf32>
    %c0_187 = arith.constant 0 : index
    %c0_188 = arith.constant 0 : index
    %305 = vector.load %arg9[%c0_187, %c0_188] : memref<32x64xf32, #tpu.memory_space<vmem>>, vector<16x64xf32>
    tpu.vector_store %arg9[%c0_187, %c0_188], %304 {strides = array<i32>} : memref<32x64xf32, #tpu.memory_space<vmem>>, vector<16x64xf32>,
    %306 = vector.extract_strided_slice %303 {offsets = [18, 0], sizes = [16, 64], strides = [1, 1]} : vector<34x64xf32> to vector<16x64xf32>
    %c16_189 = arith.constant 16 : index
    %c0_190 = arith.constant 0 : index
    %307 = vector.load %arg9[%c16_189, %c0_190] : memref<32x64xf32, #tpu.memory_space<vmem>>, vector<16x64xf32>
    tpu.vector_store %arg9[%c16_189, %c0_190], %306 {strides = array<i32>} : memref<32x64xf32, #tpu.memory_space<vmem>>, vector<16x64xf32>,
    return
  }
}

</mosaic_0001>

<bundles_post_ra>
// kernel: _fused_decoder_call.1
= control target key start
LH: loop header
LB: loop body
LE: loop exit
PB: predicated region body
PF: predicated region fallthrough
CT: control target
= control target key end

     0   :  { %14 = vsyncpa [#allocation6], 0  ;;  %s9349_s0 = inlined_call_operand.hbm [shape: f32[2,8], index: 0, kind: input, shape index: {}]   ;;  %s9350_s1 = inlined_call_operand.hbm [shape: f32[8,1024], index: 1, kind: input, shape index: {}]   ;;  %s9351_s2 = inlined_call_operand.hbm [shape: f32[1,1024], index: 2, kind: input, shape index: {}]   ;;  %s9352_s3 = inlined_call_operand.hbm [shape: f32[3,384,512], index: 3, kind: input, shape index: {}]   ;;  %s9353_s4 = inlined_call_operand.hbm [shape: f32[1,512], index: 4, kind: input, shape index: {}]   ;;  %s9354_s5 = inlined_call_operand.hbm [shape: f32[3,320,512], index: 5, kind: input, shape index: {}]   ;;  %s9355_s6 = inlined_call_operand.hbm [shape: f32[1,512], index: 6, kind: input, shape index: {}]   ;;  %s9356_s7 = inlined_call_operand.vmem [shape: f32[3,288,64], index: 7, kind: input, shape index: {}]   ;;  %s9357_s8 = inlined_call_operand.hbm [shape: f32[1,64], index: 8, kind: input, shape index: {}]   ;;  %s9358_s9 = inlined_call_operand.vmem [shape: f32[32,64], index: 9, kind: output, shape index: {}]  }
   0x1   :  { %15 = vsyncpa [#allocation8], 0 }
   0x2   :  { %16 = vsyncpa [#allocation11], 0 }
   0x3   :  { %17 = vsyncpa [#allocation14], 0 }
   0x4   :  { %18 = vsyncpa [#allocation17], 0  ;;  %s7832_s30 = smov [#allocation7]   ;;  %s7833_s11 = smov [#allocation10]  }
   0x5   :  { %s35_s10 = sshll.u32 %s7832_s30, 4  ;;  %s54_s12 = sshll.u32 %s7833_s11, 4  ;;  %s36_s10 = int_to_ptr.vmem [resolvable:$true] %s35_s10  ;;  %s7898_s12 = int_to_ptr.vmem [resolvable:$true] %s54_s12 }
   0x6   :  { %s7646_s15 = scalar_lea.hbm %s9350_s1, 1024 }
   0x7   :  { %p7647_p0 = scmp.ne.s32.totalorder %s9350_s1, %s7646_s15  ;;  %p7650_p1 = scmp.lt.u32.totalorder %s7646_s15, %s9350_s1 }
   0x9   :  { %p7652_p2 = pnand %p7650_p1, %p7647_p0 }
   0xb   :  { %7655 = shalt.err (!%p7652_p2)
}
   0xc   :  { %s7656_s20 = scalar_lea.vmem %s36_s10, 1024  ;;  %p7661_p4 = scmp.lt.s32.totalorder %s36_s10, %s36_s10 }
   0xd   :  { %p7657_p3 = scmp.ne.s32.totalorder %s36_s10, %s7656_s20  ;;  %p7662_p5 = scmp.lt.s32.totalorder %s7656_s20, %s7656_s20 }
   0xf   :  { %p7663_p6 = por %p7662_p5, %p7661_p4 }
  0x11   :  { %p7664_p7 = pnand %p7663_p6, %p7657_p3 }
  0x13   :  { %7667 = shalt.err (!%p7664_p7)
}
  0x14   :  { %38 = dma.hbm_to_vmem [thread:$0]  %s9350_s1, 1024, %s36_s10, [#allocation8]  }
  0x15   :  { %s7668_s25 = scalar_lea.hbm %s9352_s3, 73728 }
  0x16   :  { %p7669_p8 = scmp.ne.s32.totalorder %s9352_s3, %s7668_s25  ;;  %p7672_p9 = scmp.lt.u32.totalorder %s7668_s25, %s9352_s3 }
  0x18   :  { %p7674_p10 = pnand %p7672_p9, %p7669_p8 }
  0x1a   :  { %7677 = shalt.err (!%p7674_p10)
}
  0x1b   :  { %s7678_s30 = scalar_lea.vmem %s7898_s12, 73728  ;;  %p7683_p12 = scmp.lt.s32.totalorder %s7898_s12, %s7898_s12 }
  0x1c   :  { %p7679_p11 = scmp.ne.s32.totalorder %s7898_s12, %s7678_s30  ;;  %p7684_p13 = scmp.lt.s32.totalorder %s7678_s30, %s7678_s30 }
  0x1e   :  { %p7685_p0 = por %p7684_p13, %p7683_p12 }
  0x20   :  { %p7686_p1 = pnand %p7685_p0, %p7679_p11 }
  0x22   :  { %7689 = shalt.err (!%p7686_p1)
}
  0x23   :  { %s7834_s1 = smov 512   ;;  %s7835_s10 = smov 32  }
  0x24   :  { %60 = dma.hbm_to_vmem [thread:$0]  %s9352_s3, 73728, %s7898_s12, [#allocation11], %s7834_s1, %s7834_s1, %s7835_s10  }
  0x25   :  { %s7836_s14 = smov [#allocation13]   ;;  %s7837_s16 = smov [#allocation5]  }
  0x26   :  { %s76_s15 = sshll.u32 %s7836_s14, 4  ;;  %s25_s17 = sshll.u32 %s7837_s16, 4  ;;  %s77_s15 = int_to_ptr.vmem [resolvable:$true] %s76_s15  ;;  %s26_s17 = int_to_ptr.vmem [resolvable:$true] %s25_s17 }
  0x27   :  { %s7690_s20 = scalar_lea.hbm %s9354_s5, 61440 }
  0x28   :  { %p7691_p2 = scmp.ne.s32.totalorder %s9354_s5, %s7690_s20  ;;  %p7694_p3 = scmp.lt.u32.totalorder %s7690_s20, %s9354_s5 }
  0x2a   :  { %p7696_p4 = pnand %p7694_p3, %p7691_p2 }
  0x2c   :  { %7699 = shalt.err (!%p7696_p4)
}
  0x2d   :  { %s7700_s3 = scalar_lea.vmem %s77_s15, 61440  ;;  %p7705_p6 = scmp.lt.s32.totalorder %s77_s15, %s77_s15 }
  0x2e   :  { %p7701_p5 = scmp.ne.s32.totalorder %s77_s15, %s7700_s3  ;;  %p7706_p7 = scmp.lt.s32.totalorder %s7700_s3, %s7700_s3 }
  0x30   :  { %p7707_p8 = por %p7706_p7, %p7705_p6 }
  0x32   :  { %p7708_p9 = pnand %p7707_p8, %p7701_p5 }
  0x34   :  { %7711 = shalt.err (!%p7708_p9)
}
  0x35   :  { %82 = dma.hbm_to_vmem [thread:$0]  %s9354_s5, 61440, %s77_s15, [#allocation14], %s7834_s1, %s7834_s1, %s7835_s10  }
  0x36   :  { %s7712_s28 = scalar_lea.hbm %s9349_s0, 32 }
  0x37   :  { %p7713_p10 = scmp.ne.s32.totalorder %s9349_s0, %s7712_s28  ;;  %p7716_p11 = scmp.lt.u32.totalorder %s7712_s28, %s9349_s0 }
  0x39   :  { %p7718_p12 = pnand %p7716_p11, %p7713_p10 }
  0x3b   :  { %7721 = shalt.err (!%p7718_p12)
}
  0x3c   :  { %s7722_s14 = scalar_lea.vmem %s26_s17, 32  ;;  %p7727_p0 = scmp.lt.s32.totalorder %s26_s17, %s26_s17 }
  0x3d   :  { %p7723_p13 = scmp.ne.s32.totalorder %s26_s17, %s7722_s14  ;;  %p7728_p1 = scmp.lt.s32.totalorder %s7722_s14, %s7722_s14 }
  0x3f   :  { %p7729_p2 = por %p7728_p1, %p7727_p0 }
  0x41   :  { %p7730_p3 = pnand %p7729_p2, %p7723_p13 }
  0x43   :  { %7733 = shalt.err (!%p7730_p3)
}
  0x44   :  { %28 = dma.hbm_to_vmem [thread:$0]  %s9349_s0, 32, %s26_s17, [#allocation6]  }
  0x45   :  { %s7838_s15 = smov [#allocation9]   ;;  %s7839_s18 = smov [#allocation12]  }
  0x46   :  { %s45_s16 = sshll.u32 %s7838_s15, 4  ;;  %s67_s19 = sshll.u32 %s7839_s18, 4  ;;  %s46_s16 = int_to_ptr.vmem [resolvable:$true] %s45_s16  ;;  %s68_s19 = int_to_ptr.vmem [resolvable:$true] %s67_s19 }
  0x47   :  { %s7734_s22 = scalar_lea.hbm %s9351_s2, 128 }
  0x48   :  { %p7735_p4 = scmp.ne.s32.totalorder %s9351_s2, %s7734_s22  ;;  %p7738_p5 = scmp.lt.u32.totalorder %s7734_s22, %s9351_s2 }
  0x4a   :  { %p7740_p6 = pnand %p7738_p5, %p7735_p4 }
  0x4c   :  { %7743 = shalt.err (!%p7740_p6)
}
  0x4d   :  { %s7744_s0 = scalar_lea.vmem %s46_s16, 128  ;;  %p7749_p8 = scmp.lt.s32.totalorder %s46_s16, %s46_s16 }
  0x4e   :  { %p7745_p7 = scmp.ne.s32.totalorder %s46_s16, %s7744_s0  ;;  %p7750_p9 = scmp.lt.s32.totalorder %s7744_s0, %s7744_s0 }
  0x50   :  { %p7751_p10 = por %p7750_p9, %p7749_p8 }
  0x52   :  { %p7752_p11 = pnand %p7751_p10, %p7745_p7 }
  0x54   :  { %7755 = shalt.err (!%p7752_p11)
}
  0x55   :  { %48 = dma.hbm_to_vmem [thread:$0]  %s9351_s2, 128, %s46_s16, [#allocation8]  }
  0x56   :  { %s7756_s28 = scalar_lea.hbm %s9353_s4, 64 }
  0x57   :  { %p7757_p12 = scmp.ne.s32.totalorder %s9353_s4, %s7756_s28  ;;  %p7760_p13 = scmp.lt.u32.totalorder %s7756_s28, %s9353_s4 }
  0x59   :  { %p7762_p0 = pnand %p7760_p13, %p7757_p12 }
  0x5b   :  { %7765 = shalt.err (!%p7762_p0)
}
  0x5c   :  { %s7766_s14 = scalar_lea.vmem %s68_s19, 64  ;;  %p7771_p2 = scmp.lt.s32.totalorder %s68_s19, %s68_s19 }
  0x5d   :  { %p7767_p1 = scmp.ne.s32.totalorder %s68_s19, %s7766_s14  ;;  %p7772_p3 = scmp.lt.s32.totalorder %s7766_s14, %s7766_s14 }
  0x5f   :  { %p7773_p4 = por %p7772_p3, %p7771_p2 }
  0x61   :  { %p7774_p5 = pnand %p7773_p4, %p7767_p1 }
  0x63   :  { %7777 = shalt.err (!%p7774_p5)
}
  0x64   :  { %70 = dma.hbm_to_vmem [thread:$0]  %s9353_s4, 64, %s68_s19, [#allocation11]  }
  0x65   :  { %s7840_s1 = smov [#allocation15]   ;;  %s7841_s16 = smov [#allocation16]  }
  0x66   :  { %s89_s15 = sshll.u32 %s7840_s1, 4  ;;  %s101_s18 = sshll.u32 %s7841_s16, 4  ;;  %s90_s15 = int_to_ptr.vmem [resolvable:$true] %s89_s15  ;;  %s102_s18 = int_to_ptr.vmem [resolvable:$true] %s101_s18 }
  0x67   :  { %s7778_s22 = scalar_lea.hbm %s9355_s6, 64 }
  0x68   :  { %p7779_p6 = scmp.ne.s32.totalorder %s9355_s6, %s7778_s22  ;;  %p7782_p7 = scmp.lt.u32.totalorder %s7778_s22, %s9355_s6 }
  0x6a   :  { %p7784_p8 = pnand %p7782_p7, %p7779_p6 }
  0x6c   :  { %7787 = shalt.err (!%p7784_p8)
}
  0x6d   :  { %s7788_s4 = scalar_lea.vmem %s90_s15, 64  ;;  %p7793_p10 = scmp.lt.s32.totalorder %s90_s15, %s90_s15 }
  0x6e   :  { %p7789_p9 = scmp.ne.s32.totalorder %s90_s15, %s7788_s4  ;;  %p7794_p11 = scmp.lt.s32.totalorder %s7788_s4, %s7788_s4 }
  0x70   :  { %p7795_p12 = por %p7794_p11, %p7793_p10 }
  0x72   :  { %p7796_p13 = pnand %p7795_p12, %p7789_p9 }
  0x74   :  { %7799 = shalt.err (!%p7796_p13)
}
  0x75   :  { %92 = dma.hbm_to_vmem [thread:$0]  %s9355_s6, 64, %s90_s15, [#allocation14]  }
  0x76   :  { %s7800_s26 = scalar_lea.hbm %s9357_s8, 16 }
  0x77   :  { %p7801_p0 = scmp.ne.s32.totalorder %s9357_s8, %s7800_s26  ;;  %p7804_p1 = scmp.lt.u32.totalorder %s7800_s26, %s9357_s8 }
  0x79   :  { %p7806_p2 = pnand %p7804_p1, %p7801_p0 }
  0x7b   :  { %7809 = shalt.err (!%p7806_p2)
}
  0x7c   :  { %s7810_s11 = scalar_lea.vmem %s102_s18, 16  ;;  %s7814_s13 = scalar_lea.vmem %s102_s18, 32 }
  0x7d   :  { %p7811_p3 = scmp.ne.s32.totalorder %s102_s18, %s7810_s11  ;;  %p7815_p4 = scmp.lt.s32.totalorder %s102_s18, %s102_s18 }
  0x7e   :  { %p7816_p5 = scmp.lt.s32.totalorder %s7814_s13, %s7810_s11 }
  0x80   :  { %p7817_p6 = por %p7816_p5, %p7815_p4 }
  0x82   :  { %p7818_p7 = pnand %p7817_p6, %p7811_p3 }
  0x84   :  { %7821 = shalt.err (!%p7818_p7)
}
  0x85   :  { %104 = dma.hbm_to_vmem [thread:$0]  %s9357_s8, 16, %s102_s18, [#allocation17]  }
  0x86   :  { %7822 = dma.done.wait [#allocation6], 32  }
  0x87   :  { %7823 = vsyncadd [#allocation6], 4294967264 }
  0x88   :  { %7824 = dma.done.wait [#allocation8], 1152  }
  0x89   :  { %7825 = vsyncadd [#allocation8], 4294966144 }
  0x8a   :  { %7826 = dma.done.wait [#allocation11], 73792  }
  0x8b   :  { %7827 = vsyncadd [#allocation11], 4294893504 }
  0x8c   :  { %7828 = dma.done.wait [#allocation14], 61504  }
  0x8d   :  { %7829 = vsyncadd [#allocation14], 4294905792 }
  0x8e   :  { %7830 = dma.done.wait [#allocation17], 16  }
  0x8f   :  { %7831 = vsyncadd [#allocation17], 4294967280  ;;  %v7842_v0 = vmov 0.0   ;;  %v165_v1 = vld [vmem:[#allocation7 + $0x8] sm:$0xff]  ;;  %v167_v2 = vld [vmem:[#allocation7 + $0x18] sm:$0xff]  ;;  %vm214_vm0 = vcmask 64512  }
  0x90   :  { %282 = vmatprep.mubr.f32.mxu0 %v7842_v0  ;;  %129 = vst [vmem:[#allocation2] sm:$0xff] %v7842_v0  ;;  %130 = vst [vmem:[#allocation2 + $0x8] sm:$0xff] %v7842_v0  ;;  %353 = vmatprep.mubr.f32.mxu1 %v7842_v0  ;;  %v164_v3 = vld [vmem:[#allocation7] sm:$0xff]  ;;  %v166_v4 = vld [vmem:[#allocation7 + $0x10] sm:$0xff]  ;;  %vm137_vm1 = vcmask 523264   ;;  %s7844_s8 = smov 64  }
  0x91   :  { %131 = vst [vmem:[#allocation2 + $0x10] sm:$0xff] %v7842_v0  ;;  %132 = vst [vmem:[#allocation2 + $0x18] sm:$0xf] %v7842_v0  ;;  %218 = vmatprep.subr.mxu0 %v165_v1  ;;  %289 = vmatprep.subr.mxu1 %v167_v2  ;;  %v163_v5 = vld [vmem:[#allocation5] sm:$0x3]  ;;  %v169_v6 = vld [vmem:[#allocation7 + $0x28] sm:$0xff] }
  0x92   :  { %133 = vst [vmem:[#allocation2 + $0x20] sm:$0xf] %v7842_v0  ;;  %134 = vst [vmem:[#allocation2 + $0x28] sm:$0xf] %v7842_v0  ;;  %219 = vmatpush1.msra.mxu0 %v164_v3  ;;  %290 = vmatpush1.msra.mxu1 %v166_v4  ;;  %v168_v7 = vld [vmem:[#allocation7 + $0x20] sm:$0xff]  ;;  %v171_v8 = vld [vmem:[#allocation7 + $0x38] sm:$0xff] }
  0x93   :  { %135 = vst [vmem:[#allocation3] sm:$0xff] %v7842_v0  ;;  %136 = vst [vmem:[#allocation3 + $0x8] sm:$0xff] %v7842_v0  ;;  %5978 = vmatmul.mubr.msk.f32.vlgmr.msra.gmra.mrb[0].mxu0 %vm214_vm0, %v163_v5  ;;  %5979 = vmatmul.mubr.msk.f32.vlgmr.msra.gmra.mrb[0].mxu1 %vm214_vm0, %v163_v5  ;;  %v170_v9 = vld [vmem:[#allocation7 + $0x30] sm:$0xff]  ;;  %v879_v12 = vld [vmem:[#allocation10 + $0x618] sm:$0xff]  ;;  %vm1074_vm5 = vcmask 1046528   ;;  %vm1911_vm6 = vcmask 1045504  }
  0x94   :  { %139 = vst [vmem:[#allocation3 + $0x18] sm:$0xff] %v7842_v0  ;;  %140 = vst [vmem:[#allocation3 + $0x20] sm:$0xff] %v7842_v0  ;;  %360 = vmatprep.subr.mxu0 %v169_v6  ;;  %424 = vmatprep.mubr.f32.mxu0 %v7842_v0  ;;  %v877_v10 = vld [vmem:[#allocation10 + $0x608] sm:$0xff]  ;;  %v883_v14 = vld [vmem:[#allocation10 + $0x638] sm:$0xff]  ;;  %vm2321_vm15 = vcmask 1041408   ;;  %s7845_s2 = smov 16  }
  0x95   :  { %142 = vst [vmem:[#allocation3 + $0x30] sm:$0xf] %v7842_v0  ;;  %143 = vst [vmem:[#allocation3 + $0x38] sm:$0xf] %v7842_v0  ;;  %361 = vmatpush1.msra.mxu0 %v168_v7  ;;  %431 = vmatprep.subr.mxu1 %v171_v8  ;;  %v881_v11 = vld [vmem:[#allocation10 + $0x628] sm:$0xff]  ;;  %v876_v15 = vld [vmem:[#allocation10 + $0x600] sm:$0xff]  ;;  %v6426_v17 = vpack.c.bf16 %v883_v14, %v879_v12 }
  0x96   :  { %146 = vst [vmem:[#allocation4] sm:$0xff] %v7842_v0  ;;  %147 = vst [vmem:[#allocation4 + $0x8] sm:$0xff] %v7842_v0  ;;  %432 = vmatpush1.msra.mxu1 %v170_v9  ;;  %495 = vmatprep.mubr.f32.mxu1 %v7842_v0  ;;  %v6330_v13 = vpack.c.bf16 %v881_v11, %v877_v10  ;;  %v880_v16 = vld [vmem:[#allocation10 + $0x620] sm:$0xff]  ;;  %v878_v19 = vld [vmem:[#allocation10 + $0x610] sm:$0xff] }
  0x97   :  { %150 = vst [vmem:[#allocation4 + $0x18] sm:$0xff] %v7842_v0  ;;  %151 = vst [vmem:[#allocation4 + $0x20] sm:$0xff] %v7842_v0  ;;  %5980 = vmatmul.mubr.msk.f32.vlgmr.msra.gmra.mrb[2].mxu0 %vm214_vm0, %v163_v5  ;;  %5981 = vmatmul.mubr.msk.f32.vlgmr.msra.gmra.mrb[2].mxu1 %vm214_vm0, %v163_v5  ;;  %v6332_v18 = vpack.c.bf16 %v880_v16, %v876_v15  ;;  %v882_v20 = vld [vmem:[#allocation10 + $0x630] sm:$0xff]  ;;  %v885_v21 = vld [vmem:[#allocation10 + $0x648] sm:$0xff]  ;;  %vm148_vm0 = vcmask 261120  }
  0x98   :  { %153 = vst [vmem:[#allocation4 + $0x30] sm:$0xff] %v7842_v0  ;;  %154 = vst [vmem:[#allocation4 + $0x38] sm:$0xff] %v7842_v0  ;;  %6331 = vmatprep.subr.bf16.mxu0 %v6330_v13  ;;  %v6428_v22 = vpack.c.bf16 %v882_v20, %v878_v19  ;;  %v889_v23 = vld [vmem:[#allocation10 + $0x668] sm:$0xff]  ;;  %v887_v24 = vld [vmem:[#allocation10 + $0x658] sm:$0xff]  ;;  %6427 = vmatprep.subr.bf16.mxu1 %v6426_v17 }
  0x99   :  { %156 = vst [vmem:[#allocation4 + $0x48] sm:$0xff] %v7842_v0  ;;  %157 = vst [vmem:[#allocation4 + $0x50] sm:$0xff] %v7842_v0  ;;  %v891_v25 = vld [vmem:[#allocation10 + $0x678] sm:$0xff]  ;;  %6333 = vmatpush1.bf16.msra.mxu0 %v6332_v18  ;;  %v6334_v26 = vpack.c.bf16 %v889_v23, %v885_v21  ;;  %v884_v28 = vld [vmem:[#allocation10 + $0x640] sm:$0xff] }
  0x9a   :  { %159 = vst [vmem:[#allocation4 + $0x60] sm:$0xf] %v7842_v0  ;;  %160 = vst [vmem:[#allocation4 + $0x68] sm:$0xf] %v7842_v0  ;;  %v6430_v27 = vpack.c.bf16 %v891_v25, %v887_v24  ;;  %v888_v29 = vld [vmem:[#allocation10 + $0x660] sm:$0xff]  ;;  %v886_v30 = vld [vmem:[#allocation10 + $0x650] sm:$0xff]  ;;  %6429 = vmatpush1.bf16.msra.mxu1 %v6428_v22 }
  0x9b   :  { %138 = vst.msk [vmem:[#allocation3 + $0x10] sm:$0xff] %vm137_vm1, %v7842_v0  ;;  %141 = vst.msk [vmem:[#allocation3 + $0x28] sm:$0xff] %vm137_vm1, %v7842_v0  ;;  %v6336_v31 = vpack.c.bf16 %v888_v29, %v884_v28  ;;  %v890_v32 = vld [vmem:[#allocation10 + $0x670] sm:$0xff]  ;;  %v893_v33 = vld [vmem:[#allocation10 + $0x688] sm:$0xff]  ;;  %6335 = vmatprep.subr.bf16.mxu0 %v6334_v26 }
  0x9c   :  { %v897_v34 = vld [vmem:[#allocation10 + $0x6a8] sm:$0xff]  ;;  %6431 = vmatprep.subr.bf16.mxu1 %v6430_v27  ;;  %v6432_v35 = vpack.c.bf16 %v890_v32, %v886_v30  ;;  %v895_v37 = vld [vmem:[#allocation10 + $0x698] sm:$0xff]  ;;  %v892_v39 = vld [vmem:[#allocation10 + $0x680] sm:$0xff] }
  0x9d   :  { %v6338_v36 = vpack.c.bf16 %v897_v34, %v893_v33  ;;  %v899_v38 = vld [vmem:[#allocation10 + $0x6b8] sm:$0xff]  ;;  %v896_v41 = vld [vmem:[#allocation10 + $0x6a0] sm:$0xff]  ;;  %v894_v42 = vld [vmem:[#allocation10 + $0x690] sm:$0xff]  ;;  %6337 = vmatpush1.bf16.msra.mxu0 %v6336_v31 }
  0x9e   :  { %v6434_v40 = vpack.c.bf16 %v899_v38, %v895_v37  ;;  %v898_v43 = vld [vmem:[#allocation10 + $0x6b0] sm:$0xff]  ;;  %v6340_v44 = vpack.c.bf16 %v896_v41, %v892_v39  ;;  %v901_v45 = vld [vmem:[#allocation10 + $0x6c8] sm:$0xff]  ;;  %v903_v47 = vld [vmem:[#allocation10 + $0x6d8] sm:$0xff]  ;;  %6433 = vmatpush1.bf16.msra.mxu1 %v6432_v35 }
  0x9f   :  { %v905_v46 = vld [vmem:[#allocation10 + $0x6e8] sm:$0xff]  ;;  %6339 = vmatprep.subr.bf16.mxu0 %v6338_v36  ;;  %v6436_v48 = vpack.c.bf16 %v898_v43, %v894_v42  ;;  %v907_v50 = vld [vmem:[#allocation10 + $0x6f8] sm:$0xff]  ;;  %v900_v51 = vld [vmem:[#allocation10 + $0x6c0] sm:$0xff] }
  0xa0   :  { %v6342_v49 = vpack.c.bf16 %v905_v46, %v901_v45  ;;  %v904_v52 = vld [vmem:[#allocation10 + $0x6e0] sm:$0xff]  ;;  %6435 = vmatprep.subr.bf16.mxu1 %v6434_v40  ;;  %v6438_v53 = vpack.c.bf16 %v907_v50, %v903_v47  ;;  %v902_v54 = vld [vmem:[#allocation10 + $0x6d0] sm:$0xff]  ;;  %v909_v56 = vld [vmem:[#allocation10 + $0x708] sm:$0xff] }
  0xa1   :  { %v906_v55 = vld [vmem:[#allocation10 + $0x6f0] sm:$0xff]  ;;  %v913_v57 = vld [vmem:[#allocation10 + $0x728] sm:$0xff]  ;;  %v911_v58 = vld [vmem:[#allocation10 + $0x718] sm:$0xff]  ;;  %6341 = vmatpush1.bf16.msra.mxu0 %v6340_v44  ;;  %v6344_v60 = vpack.c.bf16 %v904_v52, %v900_v51 }
  0xa2   :  { %v915_v59 = vld [vmem:[#allocation10 + $0x738] sm:$0xff]  ;;  %6437 = vmatpush1.bf16.msra.mxu1 %v6436_v48  ;;  %6343 = vmatprep.subr.bf16.mxu0 %v6342_v49  ;;  %v6440_v61 = vpack.c.bf16 %v906_v55, %v902_v54  ;;  %v6346_v62 = vpack.c.bf16 %v913_v57, %v909_v56  ;;  %v908_v63 = vld [vmem:[#allocation10 + $0x700] sm:$0xff]  ;;  %v910_v2 = vld [vmem:[#allocation10 + $0x710] sm:$0xff]  ;;  %v174_v55 = vlaneseq  ;;  %v7843_v57 = vmov 1966171168  }
  0xa3   :  { %v912_v1 = vld [vmem:[#allocation10 + $0x720] sm:$0xff]  ;;  %6439 = vmatprep.subr.bf16.mxu1 %v6438_v53  ;;  %v6442_v3 = vpack.c.bf16 %v915_v59, %v911_v58  ;;  %v914_v4 = vld [vmem:[#allocation10 + $0x730] sm:$0xff]  ;;  %v917_v5 = vld [vmem:[#allocation10 + $0x748] sm:$0xff]  ;;  %v506_v58 = vunpack.c.l.s4 %v7843_v57 }
  0xa4   :  { %v921_v6 = vld [vmem:[#allocation10 + $0x768] sm:$0xff]  ;;  %v919_v7 = vld [vmem:[#allocation10 + $0x758] sm:$0xff]  ;;  %v6348_v9 = vpack.c.bf16 %v912_v1, %v908_v63  ;;  %v6444_v10 = vpack.c.bf16 %v914_v4, %v910_v2  ;;  %v916_v12 = vld [vmem:[#allocation10 + $0x740] sm:$0xff]  ;;  %v8038_v56 = vshrl.u32 %v174_v55, 7  ;;  %vm525_vm2 = vcmp.ge.s32.totalorder %v174_v55, 64 }
  0xa5   :  { %v923_v8 = vld [vmem:[#allocation10 + $0x778] sm:$0xff]  ;;  %6345 = vmatpush1.bf16.msra.mxu0 %v6344_v60  ;;  %v6350_v11 = vpack.c.bf16 %v921_v6, %v917_v5  ;;  %v920_v13 = vld [vmem:[#allocation10 + $0x760] sm:$0xff]  ;;  %v918_v14 = vld [vmem:[#allocation10 + $0x750] sm:$0xff]  ;;  %v507_v1 = vunpack.c.0.s8 %v506_v58  ;;  %vm526_vm3 = vcmp.lt.s32.totalorder %v174_v55, 320 }
  0xa6   :  { %6441 = vmatpush1.bf16.msra.mxu1 %v6440_v61  ;;  %6347 = vmatprep.subr.bf16.mxu0 %v6346_v62  ;;  %v6446_v15 = vpack.c.bf16 %v923_v8, %v919_v7  ;;  %v922_v16 = vld [vmem:[#allocation10 + $0x770] sm:$0xff]  ;;  %v925_v17 = vld [vmem:[#allocation10 + $0x788] sm:$0xff]  ;;  %v927_v19 = vld [vmem:[#allocation10 + $0x798] sm:$0xff]  ;;  %v6352_v21 = vpack.c.bf16 %v920_v13, %v916_v12  ;;  %v8041_v59 = vsub.s32 0, %v8038_v56  ;;  %v8044_v60 = vsub.s32 2, %v8038_v56 }
  0xa7   :  { %6443 = vmatprep.subr.bf16.mxu1 %v6442_v3  ;;  %v929_v18 = vld [vmem:[#allocation10 + $0x7a8] sm:$0xff]  ;;  %v931_v20 = vld [vmem:[#allocation10 + $0x7b8] sm:$0xff]  ;;  %v6448_v22 = vpack.c.bf16 %v922_v16, %v918_v14  ;;  %v924_v24 = vld [vmem:[#allocation10 + $0x780] sm:$0xff]  ;;  %v8047_v62 = vsub.s32 1, %v8038_v56  ;;  %v8050_v63 = vsub.s32 3, %v8038_v56  ;;  %v192_v2 = vsub.s32 4, %v8038_v56 }
  0xa8   :  { %v6354_v23 = vpack.c.bf16 %v929_v18, %v925_v17  ;;  %v928_v25 = vld [vmem:[#allocation10 + $0x7a0] sm:$0xff]  ;;  %v926_v26 = vld [vmem:[#allocation10 + $0x790] sm:$0xff]  ;;  %v6450_v27 = vpack.c.bf16 %v931_v20, %v927_v19  ;;  %v933_v29 = vld [vmem:[#allocation10 + $0x7c8] sm:$0xff]  ;;  %v196_v6 = vsub.s32 5, %v8038_v56  ;;  %v200_v7 = vsub.s32 6, %v8038_v56 }
  0xa9   :  { %6349 = vmatpush1.bf16.msra.mxu0 %v6348_v9  ;;  %v930_v28 = vld [vmem:[#allocation10 + $0x7b0] sm:$0xff]  ;;  %v937_v30 = vld [vmem:[#allocation10 + $0x7e8] sm:$0xff]  ;;  %v935_v31 = vld [vmem:[#allocation10 + $0x7d8] sm:$0xff]  ;;  %v6356_v33 = vpack.c.bf16 %v928_v25, %v924_v24  ;;  %v204_v20 = vsub.s32 7, %v8038_v56 }
  0xaa   :  { %6445 = vmatpush1.bf16.msra.mxu1 %v6444_v10  ;;  %6351 = vmatprep.subr.bf16.mxu0 %v6350_v11  ;;  %v939_v32 = vld [vmem:[#allocation10 + $0x7f8] sm:$0xff]  ;;  %v6452_v34 = vpack.c.bf16 %v930_v28, %v926_v26  ;;  %v6358_v35 = vpack.c.bf16 %v937_v30, %v933_v29  ;;  %v932_v36 = vld [vmem:[#allocation10 + $0x7c0] sm:$0xff]  ;;  %v934_v38 = vld [vmem:[#allocation10 + $0x7d0] sm:$0xff] }
  0xab   :  { %6447 = vmatprep.subr.bf16.mxu1 %v6446_v15  ;;  %v936_v37 = vld [vmem:[#allocation10 + $0x7e0] sm:$0xff]  ;;  %v6454_v39 = vpack.c.bf16 %v939_v32, %v935_v31  ;;  %v938_v40 = vld [vmem:[#allocation10 + $0x7f0] sm:$0xff]  ;;  %v941_v41 = vld [vmem:[#allocation10 + $0x808] sm:$0xff] }
  0xac   :  { %v945_v42 = vld [vmem:[#allocation10 + $0x828] sm:$0xff]  ;;  %v943_v43 = vld [vmem:[#allocation10 + $0x818] sm:$0xff]  ;;  %v6360_v45 = vpack.c.bf16 %v936_v37, %v932_v36  ;;  %v6456_v46 = vpack.c.bf16 %v938_v40, %v934_v38  ;;  %v940_v48 = vld [vmem:[#allocation10 + $0x800] sm:$0xff] }
  0xad   :  { %6353 = vmatpush1.bf16.msra.mxu0 %v6352_v21  ;;  %v947_v44 = vld [vmem:[#allocation10 + $0x838] sm:$0xff]  ;;  %v6362_v47 = vpack.c.bf16 %v945_v42, %v941_v41  ;;  %v944_v49 = vld [vmem:[#allocation10 + $0x820] sm:$0xff]  ;;  %v942_v51 = vld [vmem:[#allocation10 + $0x810] sm:$0xff] }
  0xae   :  { %6449 = vmatpush1.bf16.msra.mxu1 %v6448_v22  ;;  %6355 = vmatprep.subr.bf16.mxu0 %v6354_v23  ;;  %v6458_v50 = vpack.c.bf16 %v947_v44, %v943_v43  ;;  %v946_v52 = vld [vmem:[#allocation10 + $0x830] sm:$0xff]  ;;  %v6364_v53 = vpack.c.bf16 %v944_v49, %v940_v48  ;;  %v172_v61 = vld [vmem:[#allocation9] sm:$0xff]  ;;  %v949_v3 = vld [vmem:[#allocation10 + $0x848] sm:$0xff]  ;;  %v8061_v22 = vsub.s32 %v507_v1, %v8038_v56 }
  0xaf   :  { %6451 = vmatprep.subr.bf16.mxu1 %v6450_v27  ;;  %v6460_v54 = vpack.c.bf16 %v946_v52, %v942_v51  ;;  %v953_v4 = vld [vmem:[#allocation10 + $0x868] sm:$0xff]  ;;  %v951_v5 = vld [vmem:[#allocation10 + $0x858] sm:$0xff]  ;;  %v950_v10 = vld [vmem:[#allocation10 + $0x850] sm:$0xff]  ;;  %v177_v12 = vrot.slane %v172_v61, %v8041_v59  ;;  %v185_v13 = vrot.slane %v172_v61, %v8044_v60  ;;  %v181_v18 = vrot.slane %v172_v61, %v8047_v62 }
  0xb0   :  { %v6366_v8 = vpack.c.bf16 %v953_v4, %v949_v3  ;;  %v955_v9 = vld [vmem:[#allocation10 + $0x878] sm:$0xff]  ;;  %v954_v11 = vld [vmem:[#allocation10 + $0x870] sm:$0xff]  ;;  %v948_v16 = vld [vmem:[#allocation10 + $0x840] sm:$0xff]  ;;  %v189_v19 = vrot.slane %v172_v61, %v8050_v63  ;;  %v193_v23 = vrot.slane %v172_v61, %v192_v2  ;;  %v197_v29 = vrot.slane %v172_v61, %v196_v6 }
  0xb1   :  { %6357 = vmatpush1.bf16.msra.mxu0 %v6356_v33  ;;  %v6462_v14 = vpack.c.bf16 %v955_v9, %v951_v5  ;;  %v6464_v15 = vpack.c.bf16 %v954_v11, %v950_v10  ;;  %v952_v17 = vld [vmem:[#allocation10 + $0x860] sm:$0xff]  ;;  %v957_v24 = vld [vmem:[#allocation10 + $0x888] sm:$0xff]  ;;  %v959_v26 = vld [vmem:[#allocation10 + $0x898] sm:$0xff]  ;;  %v201_v30 = vrot.slane %v172_v61, %v200_v7 }
  0xb2   :  { %6453 = vmatpush1.bf16.msra.mxu1 %v6452_v34  ;;  %6359 = vmatprep.subr.bf16.mxu0 %v6358_v35  ;;  %v6368_v21 = vpack.c.bf16 %v952_v17, %v948_v16  ;;  %v961_v25 = vld [vmem:[#allocation10 + $0x8a8] sm:$0xff]  ;;  %v963_v32 = vld [vmem:[#allocation10 + $0x8b8] sm:$0xff]  ;;  %v956_v33 = vld [vmem:[#allocation10 + $0x880] sm:$0xff] }
  0xb3   :  { %6455 = vmatprep.subr.bf16.mxu1 %v6454_v39  ;;  %v6370_v31 = vpack.c.bf16 %v961_v25, %v957_v24  ;;  %v960_v34 = vld [vmem:[#allocation10 + $0x8a0] sm:$0xff]  ;;  %v6466_v39 = vpack.c.bf16 %v963_v32, %v959_v26  ;;  %v958_v41 = vld [vmem:[#allocation10 + $0x890] sm:$0xff]  ;;  %v969_v48 = vld [vmem:[#allocation10 + $0x8e8] sm:$0xff] }
  0xb4   :  { %v6372_v40 = vpack.c.bf16 %v960_v34, %v956_v33  ;;  %v962_v42 = vld [vmem:[#allocation10 + $0x8b0] sm:$0xff]  ;;  %v967_v49 = vld [vmem:[#allocation10 + $0x8d8] sm:$0xff]  ;;  %v964_v58 = vld [vmem:[#allocation10 + $0x8c0] sm:$0xff] }
  0xb5   :  { %6361 = vmatpush1.bf16.msra.mxu0 %v6360_v45  ;;  %v205_v45 = vrot.slane %v172_v61, %v204_v20  ;;  %v971_v57 = vld [vmem:[#allocation10 + $0x8f8] sm:$0xff]  ;;  %v968_v1 = vld [vmem:[#allocation10 + $0x8e0] sm:$0xff]  ;;  %v966_v7 = vld [vmem:[#allocation10 + $0x8d0] sm:$0xff] }
  0xb6   :  { %6457 = vmatpush1.bf16.msra.mxu1 %v6456_v46  ;;  %6363 = vmatprep.subr.bf16.mxu0 %v6362_v47  ;;  %v6468_v46 = vpack.c.bf16 %v962_v42, %v958_v41  ;;  %v965_v47 = vld [vmem:[#allocation10 + $0x8c8] sm:$0xff]  ;;  %v6470_v5 = vpack.c.bf16 %v971_v57, %v967_v49  ;;  %v6376_v6 = vpack.c.bf16 %v968_v1, %v964_v58  ;;  %v975_v16 = vld [vmem:[#allocation10 + $0x918] sm:$0xff]  ;;  %v980_v41 = vld [vmem:[#allocation10 + $0x940] sm:$0xff] }
  0xb7   :  { %6459 = vmatprep.subr.bf16.mxu1 %v6458_v50  ;;  %v979_v20 = vld [vmem:[#allocation10 + $0x938] sm:$0xff]  ;;  %v981_v33 = vld [vmem:[#allocation10 + $0x948] sm:$0xff]  ;;  %v984_v42 = vld [vmem:[#allocation10 + $0x960] sm:$0xff] }
  0xb8   :  { %v6474_v26 = vpack.c.bf16 %v979_v20, %v975_v16  ;;  %v985_v34 = vld [vmem:[#allocation10 + $0x968] sm:$0xff]  ;;  %v995_v57 = vld [vmem:[#allocation10 + $0x9b8] sm:$0xff]  ;;  %v988_v58 = vld [vmem:[#allocation10 + $0x980] sm:$0xff] }
  0xb9   :  { %6365 = vmatpush1.bf16.msra.mxu0 %v6364_v53  ;;  %v989_v49 = vld [vmem:[#allocation10 + $0x988] sm:$0xff]  ;;  %v992_v1 = vld [vmem:[#allocation10 + $0x9a0] sm:$0xff]  ;;  %v998_v16 = vld [vmem:[#allocation10 + $0x9d0] sm:$0xff] }
  0xba   :  { %6461 = vmatpush1.bf16.msra.mxu1 %v6460_v54  ;;  %6367 = vmatprep.subr.bf16.mxu0 %v6366_v8  ;;  %v6374_v54 = vpack.c.bf16 %v969_v48, %v965_v47  ;;  %v970_v8 = vld [vmem:[#allocation10 + $0x8f0] sm:$0xff]  ;;  %vm8085_vm4 = vmand %vm525_vm2, %vm526_vm3  ;;  %vm144_vm2 = vcmask 519168   ;;  %vm2480_vm3 = vcmp.ge.s32.totalorder %v174_v55, 32 }
  0xbb   :  { %6463 = vmatprep.subr.bf16.mxu1 %v6462_v14  ;;  %v973_v14 = vld [vmem:[#allocation10 + $0x908] sm:$0xff]  ;;  %v986_v47 = vld [vmem:[#allocation10 + $0x970] sm:$0xff] }
  0xbd   :  { %6369 = vmatpush1.bf16.msra.mxu0 %v6368_v21  ;;  %v972_v21 = vld [vmem:[#allocation10 + $0x900] sm:$0xff] }
  0xbe   :  { %6465 = vmatpush1.bf16.msra.mxu1 %v6464_v15  ;;  %6371 = vmatprep.subr.bf16.mxu0 %v6370_v31  ;;  %v977_v15 = vld [vmem:[#allocation10 + $0x928] sm:$0xff] }
  0xbf   :  { %6467 = vmatprep.subr.bf16.mxu1 %v6466_v39  ;;  %v6378_v25 = vpack.c.bf16 %v977_v15, %v973_v14  ;;  %v996_v14 = vld [vmem:[#allocation10 + $0x9c0] sm:$0xff] }
  0xc0   :  { %v1000_v15 = vld [vmem:[#allocation10 + $0x9e0] sm:$0xff] }
  0xc1   :  { %6373 = vmatpush1.bf16.msra.mxu0 %v6372_v40  ;;  %v987_v40 = vld [vmem:[#allocation10 + $0x978] sm:$0xff] }
  0xc2   :  { %6469 = vmatpush1.bf16.msra.mxu1 %v6468_v46  ;;  %6375 = vmatprep.subr.bf16.mxu0 %v6374_v54  ;;  %v982_v46 = vld [vmem:[#allocation10 + $0x950] sm:$0xff] }
  0xc3   :  { %6471 = vmatprep.subr.bf16.mxu1 %v6470_v5  ;;  %v6480_v48 = vpack.c.bf16 %v986_v47, %v982_v46  ;;  %v994_v5 = vld [vmem:[#allocation10 + $0x9b0] sm:$0xff] }
  0xc5   :  { %6377 = vmatpush1.bf16.msra.mxu0 %v6376_v6  ;;  %v997_v6 = vld [vmem:[#allocation10 + $0x9c8] sm:$0xff] }
  0xc6   :  { %6379 = vmatprep.subr.bf16.mxu0 %v6378_v25  ;;  %v1007_v25 = vld [vmem:[#allocation10 + $0xa18] sm:$0xff] }
 0x166   :  { %v284_v27 = vpop.f32.mrb[0].mxu0  ;;  %v355_v28 = vpop.f32.mrb[0].mxu1 }
 0x167   :  { %v285_v35 = vadd.f32 %v284_v27, %v177_v12  ;;  %v356_v36 = vadd.f32 %v355_v28, %v185_v13  ;;  %v286_v37 = vpop.f32.mrb[1].mxu0  ;;  %v357_v38 = vpop.f32.mrb[1].mxu1  ;;  %v6472_v13 = vpack.c.bf16 %v970_v8, %v966_v7  ;;  %v974_v27 = vld [vmem:[#allocation10 + $0x910] sm:$0xff]  ;;  %v1001_v8 = vld [vmem:[#allocation10 + $0x9e8] sm:$0xff] }
 0x168   :  { %v287_v43 = vadd.f32 %v286_v37, %v181_v18  ;;  %v358_v44 = vadd.f32 %v357_v38, %v189_v19  ;;  %v978_v28 = vld [vmem:[#allocation10 + $0x930] sm:$0xff] }
 0x169   :  { %6473 = vmatpush1.bf16.msra.mxu1 %v6472_v13  ;;  %v6476_v32 = vpack.c.bf16 %v978_v28, %v974_v27  ;;  %v1011_v27 = vld [vmem:[#allocation10 + $0xa38] sm:$0xff] }
 0x16a   :  { %v504_v50 = vcombine.low %v285_v35, %v287_v43  ;;  %v533_v51 = vcombine.low %v356_v36, %v358_v44  ;;  %v426_v52 = vpop.f32.mrb[2].mxu0  ;;  %v497_v53 = vpop.f32.mrb[2].mxu1  ;;  %6475 = vmatprep.subr.bf16.mxu1 %v6474_v26  ;;  %v983_v35 = vld [vmem:[#allocation10 + $0x958] sm:$0xff]  ;;  %v6382_v43 = vpack.c.bf16 %v985_v34, %v981_v33  ;;  %v6490_v28 = vpack.c.bf16 %v1011_v27, %v1007_v25  ;;  %v1025_v25 = vld [vmem:[#allocation10 + $0xaa8] sm:$0xff] }
 0x16b   :  { %v427_v2 = vadd.f32 %v426_v52, %v193_v23  ;;  %v428_v3 = vpop.f32.mrb[3].mxu0  ;;  %v498_v4 = vadd.f32 %v497_v53, %v201_v30  ;;  %v499_v61 = vpop.f32.mrb[3].mxu1  ;;  %v976_v23 = vld [vmem:[#allocation10 + $0x920] sm:$0xff]  ;;  %v6478_v44 = vpack.c.bf16 %v987_v40, %v983_v35  ;;  %v1027_v27 = vld [vmem:[#allocation10 + $0xab8] sm:$0xff] }
 0x16c   :  { %v540_v9 = vrot.slane %v533_v51, %v8061_v22  ;;  %v429_v10 = vadd.f32 %v428_v3, %v197_v29  ;;  %v500_v11 = vadd.f32 %v499_v61, %v205_v45  ;;  %v511_v12 = vrot.slane %v504_v50, %v8061_v22  ;;  %v993_v50 = vld [vmem:[#allocation10 + $0x9a8] sm:$0xff]  ;;  %v991_v51 = vld [vmem:[#allocation10 + $0x998] sm:$0xff]  ;;  %v990_v61 = vld [vmem:[#allocation10 + $0x990] sm:$0xff] }
 0x16d   :  { %v6380_v30 = vpack.c.bf16 %v976_v23, %v972_v21  ;;  %6477 = vmatpush1.bf16.msra.mxu1 %v6476_v32  ;;  %v6384_v45 = vpack.c.bf16 %v984_v42, %v980_v41  ;;  %v6386_v54 = vpack.c.bf16 %v993_v50, %v989_v49  ;;  %v6482_v3 = vpack.c.bf16 %v995_v57, %v991_v51  ;;  %v1005_v23 = vld [vmem:[#allocation10 + $0xa08] sm:$0xff] }
 0x16e   :  { %v558_v17 = vcombine.low %v427_v2, %v429_v10  ;;  %v583_v18 = vcombine.low %v498_v4, %v500_v11  ;;  %v518_v19 = vrot.slane %v511_v12, %v8061_v22  ;;  %v622_v24 = vcombine.high %v540_v9, %v540_v9  ;;  %6479 = vmatprep.subr.bf16.mxu1 %v6478_v44  ;;  %v1003_v10 = vld [vmem:[#allocation10 + $0x9f8] sm:$0xff] }
 0x16f   :  { %v606_v37 = vcombine.high %v511_v12, %v511_v12  ;;  %v547_v38 = vrot.slane %v540_v9, %v8061_v22  ;;  %6381 = vmatpush1.bf16.msra.mxu0 %v6380_v30  ;;  %v6388_v4 = vpack.c.bf16 %v992_v1, %v988_v58  ;;  %v6484_v7 = vpack.c.bf16 %v994_v5, %v990_v61  ;;  %v999_v9 = vld [vmem:[#allocation10 + $0x9d8] sm:$0xff]  ;;  %v1008_v1 = vld [vmem:[#allocation10 + $0xa20] sm:$0xff] }
 0x170   :  { %v565_v29 = vrot.slane %v558_v17, %v8061_v22  ;;  %519 = vrot.lane.b32.xlu0 %v518_v19, %s7844_s8  ;;  %v629_v31 = vrot.slane %v622_v24, %v8061_v22  ;;  %v590_v36 = vrot.slane %v583_v18, %v8061_v22  ;;  %6383 = vmatprep.subr.bf16.mxu0 %v6382_v43  ;;  %v1002_v19 = vld [vmem:[#allocation10 + $0x9f0] sm:$0xff]  ;;  %v1009_v24 = vld [vmem:[#allocation10 + $0xa28] sm:$0xff]  ;;  %v1020_v30 = vld [vmem:[#allocation10 + $0xa80] sm:$0xff] }
 0x171   :  { %v613_v52 = vrot.slane %v606_v37, %v8061_v22  ;;  %6481 = vmatpush1.bf16.msra.mxu1 %v6480_v48  ;;  %v6390_v12 = vpack.c.bf16 %v1001_v8, %v997_v6  ;;  %v6486_v13 = vpack.c.bf16 %v1003_v10, %v999_v9  ;;  %v6392_v18 = vpack.c.bf16 %v1000_v15, %v996_v14  ;;  %v1017_v6 = vld [vmem:[#allocation10 + $0xa68] sm:$0xff]  ;;  %v1012_v15 = vld [vmem:[#allocation10 + $0xa40] sm:$0xff] }
 0x172   :  { %v572_v39 = vrot.slane %v565_v29, %v8061_v22  ;;  %630 = vrot.lane.b32.xlu1 %v629_v31, %s7844_s8  ;;  %v638_v53 = vcombine.high %v565_v29, %v565_v29  ;;  %v597_v2 = vrot.slane %v590_v36, %v8061_v22  ;;  %v654_v11 = vcombine.high %v590_v36, %v590_v36 }
 0x173   :  { %6385 = vmatpush1.bf16.msra.mxu0 %v6384_v45  ;;  %6483 = vmatprep.subr.bf16.mxu1 %v6482_v3  ;;  %v6488_v20 = vpack.c.bf16 %v1002_v19, %v998_v16  ;;  %v6394_v26 = vpack.c.bf16 %v1009_v24, %v1005_v23  ;;  %v1010_v3 = vld [vmem:[#allocation10 + $0xa30] sm:$0xff]  ;;  %v1016_v16 = vld [vmem:[#allocation10 + $0xa60] sm:$0xff] }
 0x174   :  { %548 = vrot.lane.b32.xlu0 %v547_v38, %s7844_s8  ;;  %6387 = vmatprep.subr.bf16.mxu0 %v6386_v54  ;;  %v645_v17 = vrot.slane %v638_v53, %v8061_v22  ;;  %v661_v21 = vrot.slane %v654_v11, %v8061_v22  ;;  %v1004_v54 = vld [vmem:[#allocation10 + $0xa00] sm:$0xff]  ;;  %v1015_v11 = vld [vmem:[#allocation10 + $0xa58] sm:$0xff]  ;;  %v1014_v19 = vld [vmem:[#allocation10 + $0xa50] sm:$0xff] }
 0x175   :  { %6485 = vmatpush1.bf16.msra.mxu1 %v6484_v7 }
 0x176   :  { %573 = vrot.lane.b32.xlu1 %v572_v39, %s7844_s8  ;;  %6487 = vmatprep.subr.bf16.mxu1 %v6486_v13  ;;  %v6396_v13 = vpack.c.bf16 %v1008_v1, %v1004_v54  ;;  %v1036_v54 = vld [vmem:[#allocation10 + $0xb00] sm:$0xff] }
 0x177   :  { %6389 = vmatpush1.bf16.msra.mxu0 %v6388_v4  ;;  %v1013_v4 = vld [vmem:[#allocation10 + $0xa48] sm:$0xff] }
 0x178   :  { %614 = vrot.lane.b32.xlu0 %v613_v52, %s7844_s8  ;;  %6391 = vmatprep.subr.bf16.mxu0 %v6390_v12  ;;  %v1019_v12 = vld [vmem:[#allocation10 + $0xa78] sm:$0xff]  ;;  %v6398_v23 = vpack.c.bf16 %v1017_v6, %v1013_v4  ;;  %v1045_v4 = vld [vmem:[#allocation10 + $0xb48] sm:$0xff] }
 0x179   :  { %6489 = vmatpush1.bf16.msra.mxu1 %v6488_v20  ;;  %v1018_v20 = vld [vmem:[#allocation10 + $0xa70] sm:$0xff]  ;;  %v6494_v24 = vpack.c.bf16 %v1019_v12, %v1015_v11  ;;  %v1051_v6 = vld [vmem:[#allocation10 + $0xb78] sm:$0xff] }
 0x17a   :  { %598 = vrot.lane.b32.xlu1 %v597_v2, %s7844_s8  ;;  %6491 = vmatprep.subr.bf16.mxu1 %v6490_v28  ;;  %v1006_v2 = vld [vmem:[#allocation10 + $0xa10] sm:$0xff]  ;;  %v6400_v28 = vpack.c.bf16 %v1016_v16, %v1012_v15  ;;  %v1057_v15 = vld [vmem:[#allocation10 + $0xba8] sm:$0xff]  ;;  %v1055_v16 = vld [vmem:[#allocation10 + $0xb98] sm:$0xff] }
 0x17b   :  { %6393 = vmatpush1.bf16.msra.mxu0 %v6392_v18  ;;  %v6492_v14 = vpack.c.bf16 %v1010_v3, %v1006_v2  ;;  %v1038_v2 = vld [vmem:[#allocation10 + $0xb10] sm:$0xff] }
 0x17c   :  { %646 = vrot.lane.b32.xlu0 %v645_v17, %s7844_s8  ;;  %6395 = vmatprep.subr.bf16.mxu0 %v6394_v26  ;;  %v1023_v26 = vld [vmem:[#allocation10 + $0xa98] sm:$0xff]  ;;  %v1042_v3 = vld [vmem:[#allocation10 + $0xb30] sm:$0xff] }
 0x17d   :  { %v1046_v12 = vld [vmem:[#allocation10 + $0xb50] sm:$0xff] }
 0x17e   :  { %662 = vrot.lane.b32.xlu1 %v661_v21, %s7844_s8  ;;  %v1021_v21 = vld [vmem:[#allocation10 + $0xa88] sm:$0xff] }
 0x1e2   :  { %v520_v29 = vpop.permute.xlu0 %519 }
 0x1e3   :  { %v521_v31 = vrot.slane %v520_v29, 7 }
 0x1e4   :  { %v631_v33 = vpop.permute.xlu1 %630 }
 0x1e5   :  { %v522_v32 = vsel %vm137_vm1, %v521_v31, %v520_v29  ;;  %v632_v34 = vrot.slane %v631_v33, 7  ;;  %v6496_v29 = vpack.c.bf16 %v1018_v20, %v1014_v19  ;;  %v1024_v31 = vld [vmem:[#allocation10 + $0xaa0] sm:$0xff] }
 0x1e6   :  { %529 = vst.msk [vmem:[#allocation2 + $0x1] ss:$8 sm:$0x7] %vm8085_vm4, %v522_v32  ;;  %v549_v35 = vpop.permute.xlu0 %548  ;;  %v6402_v32 = vpack.c.bf16 %v1025_v25, %v1021_v21  ;;  %v1052_v20 = vld [vmem:[#allocation10 + $0xb80] sm:$0xff]  ;;  %v1054_v25 = vld [vmem:[#allocation10 + $0xb90] sm:$0xff] }
 0x1e7   :  { %v550_v36 = vrot.slane %v549_v35, 7  ;;  %v633_v37 = vsel %vm137_vm1, %v632_v34, %v631_v33  ;;  %v6498_v33 = vpack.c.bf16 %v1027_v27, %v1023_v26  ;;  %v1022_v34 = vld [vmem:[#allocation10 + $0xa90] sm:$0xff]  ;;  %v1056_v21 = vld [vmem:[#allocation10 + $0xba0] sm:$0xff]  ;;  %v1061_v27 = vld [vmem:[#allocation10 + $0xbc8] sm:$0xff] }
 0x1e8   :  { %636 = vst.msk [vmem:[#allocation2 + $0x18] ss:$8 sm:$0x7] %vm8085_vm4, %v633_v37  ;;  %v574_v39 = vpop.permute.xlu1 %573  ;;  %v1033_v37 = vld [vmem:[#allocation10 + $0xae8] sm:$0xff]  ;;  %v1058_v26 = vld [vmem:[#allocation10 + $0xbb0] sm:$0xff] }
 0x1e9   :  { %v551_v38 = vsel %vm137_vm1, %v550_v36, %v549_v35  ;;  %v575_v40 = vrot.slane %v574_v39, 7  ;;  %v1026_v35 = vld [vmem:[#allocation10 + $0xab0] sm:$0xff]  ;;  %v1029_v36 = vld [vmem:[#allocation10 + $0xac8] sm:$0xff] }
 0x1ea   :  { %554 = vst.msk [vmem:[#allocation2 + $0x2] ss:$8 sm:$0x7] %vm8085_vm4, %v551_v38  ;;  %v615_v41 = vpop.permute.xlu0 %614  ;;  %v1031_v38 = vld [vmem:[#allocation10 + $0xad8] sm:$0xff] }
 0x1eb   :  { %v616_v42 = vrot.slane %v615_v41, 7  ;;  %v576_v43 = vsel %vm137_vm1, %v575_v40, %v574_v39  ;;  %v1035_v39 = vld [vmem:[#allocation10 + $0xaf8] sm:$0xff]  ;;  %v6404_v40 = vpack.c.bf16 %v1024_v31, %v1020_v30  ;;  %v6420_v31 = vpack.c.bf16 %v1056_v21, %v1052_v20 }
 0x1ec   :  { %579 = vst.msk [vmem:[#allocation2 + $0x3] ss:$8 sm:$0x7] %vm8085_vm4, %v576_v43  ;;  %v599_v45 = vpop.permute.xlu1 %598  ;;  %v1032_v43 = vld [vmem:[#allocation10 + $0xae0] sm:$0xff]  ;;  %v1067_v30 = vld [vmem:[#allocation10 + $0xbf8] sm:$0xff] }
 0x1ed   :  { %v617_v44 = vsel %vm137_vm1, %v616_v42, %v615_v41  ;;  %v600_v46 = vrot.slane %v599_v45, 7  ;;  %v6500_v41 = vpack.c.bf16 %v1026_v35, %v1022_v34  ;;  %v1028_v42 = vld [vmem:[#allocation10 + $0xac0] sm:$0xff] }
 0x1ee   :  { %620 = vst.msk [vmem:[#allocation2 + $0x7] ss:$8 sm:$0x7] %vm8085_vm4, %v617_v44  ;;  %v647_v47 = vpop.permute.xlu0 %646  ;;  %v6406_v44 = vpack.c.bf16 %v1033_v37, %v1029_v36  ;;  %v1064_v34 = vld [vmem:[#allocation10 + $0xbe0] sm:$0xff]  ;;  %v1062_v37 = vld [vmem:[#allocation10 + $0xbd0] sm:$0xff] }
 0x1ef   :  { %v648_v48 = vrot.slane %v647_v47, 7  ;;  %v601_v49 = vsel %vm137_vm1, %v600_v46, %v599_v45  ;;  %v6502_v45 = vpack.c.bf16 %v1035_v39, %v1031_v38  ;;  %v1030_v46 = vld [vmem:[#allocation10 + $0xad0] sm:$0xff]  ;;  %v678_v39 = vld [vmem:[#allocation10 + $0x8] sm:$0xff] }
 0x1f0   :  { %604 = vst.msk [vmem:[#allocation2 + $0x4] ss:$8 sm:$0x7] %vm8085_vm4, %v601_v49  ;;  %v663_v51 = vpop.permute.xlu1 %662  ;;  %v1041_v49 = vld [vmem:[#allocation10 + $0xb28] sm:$0xff]  ;;  %v1066_v38 = vld [vmem:[#allocation10 + $0xbf0] sm:$0xff] }
 0x1f1   :  { %v649_v50 = vsel %vm137_vm1, %v648_v48, %v647_v47  ;;  %v664_v52 = vrot.slane %v663_v51, 7  ;;  %v1034_v47 = vld [vmem:[#allocation10 + $0xaf0] sm:$0xff]  ;;  %v1037_v48 = vld [vmem:[#allocation10 + $0xb08] sm:$0xff] }
 0x1f2   :  { %652 = vst.msk [vmem:[#allocation2 + $0x19] ss:$8 sm:$0x7] %vm8085_vm4, %v649_v50  ;;  %v1039_v50 = vld [vmem:[#allocation10 + $0xb18] sm:$0xff] }
 0x1f3   :  { %v665_v53 = vsel %vm137_vm1, %v664_v52, %v663_v51  ;;  %v1043_v51 = vld [vmem:[#allocation10 + $0xb38] sm:$0xff]  ;;  %v6408_v52 = vpack.c.bf16 %v1032_v43, %v1028_v42 }
 0x1f4   :  { %668 = vst.msk [vmem:[#allocation2 + $0x1a] ss:$8 sm:$0x7] %vm8085_vm4, %v665_v53  ;;  %v6504_v53 = vpack.c.bf16 %v1034_v47, %v1030_v46  ;;  %v6506_v1 = vpack.c.bf16 %v1043_v51, %v1039_v50  ;;  %v684_v42 = vld [vmem:[#allocation10 + $0x38] sm:$0xff]  ;;  %v677_v46 = vld [vmem:[#allocation10] sm:$0xff]  ;;  %v679_v51 = vld [vmem:[#allocation10 + $0x10] sm:$0xff] }
 0x1f5   :  { %v681_v47 = vld [vmem:[#allocation10 + $0x20] sm:$0xff]  ;;  %vm2481_vm4 = vcmp.lt.s32.totalorder %v174_v55, 288 }
 0x1f7   :  { %v870_v57 = vld [vmem:[#allocation2 + $0x8] sm:$0xfe]  ;;  %v869_v58 = vld [vmem:[#allocation2] sm:$0xfe] }
 0x1f8   :  { %v1078_v7 = vrot.slane %v870_v57, 1  ;;  %v1075_v9 = vrot.slane %v869_v58, 1  ;;  %v1040_v57 = vld [vmem:[#allocation10 + $0xb20] sm:$0xff]  ;;  %v6410_v58 = vpack.c.bf16 %v1041_v49, %v1037_v48  ;;  %v871_v48 = vld [vmem:[#allocation2 + $0x10] sm:$0xfe] }
 0x1fb   :  { %v873_v61 = vld [vmem:[#allocation2 + $0x20] sm:$0x7]  ;;  %v872_v5 = vld [vmem:[#allocation2 + $0x18] sm:$0x7]  ;;  %v874_v43 = vld [vmem:[#allocation2 + $0x28] sm:$0x7] }
 0x1fc   :  { %v1079_v8 = vrot.slane %v873_v61, 1  ;;  %v1076_v10 = vrot.slane %v872_v5, 1  ;;  %v1049_v61 = vld [vmem:[#allocation10 + $0xb68] sm:$0xff]  ;;  %v1047_v5 = vld [vmem:[#allocation10 + $0xb58] sm:$0xff] }
 0x1fd   :  { %v6510_v11 = vpack.c.bf16 %v1051_v6, %v1047_v5  ;;  %v689_v5 = vld [vmem:[#allocation10 + $0x60] sm:$0xff] }
 0x1fe   :  { %v1080_v17 = vsel %vm1074_vm5, %v1078_v7, %v1079_v8  ;;  %v1077_v18 = vsel %vm1074_vm5, %v1075_v9, %v1076_v10  ;;  %v6412_v7 = vpack.c.bf16 %v1040_v57, %v1036_v54  ;;  %v1048_v9 = vld [vmem:[#allocation10 + $0xb60] sm:$0xff]  ;;  %v686_v54 = vld [vmem:[#allocation10 + $0x48] sm:$0xff] }
 0x1ff   :  { %1154 = vmatprep.mubr.f32.mxu0 %v1080_v17  ;;  %1308 = vmatprep.mubr.f32.mxu1 %v1080_v17  ;;  %v1059_v17 = vld [vmem:[#allocation10 + $0xbb8] sm:$0xff]  ;;  %v690_v57 = vld [vmem:[#allocation10 + $0x68] sm:$0xff] }
 0x200   :  { %1155 = vmatmul.mubr.f32.vlgmr.msra.gmra.mrb[4].mxu0 %v1077_v18  ;;  %1309 = vmatmul.mubr.f32.vlgmr.msra.gmra.mrb[4].mxu1 %v1077_v18 }
 0x201   :  { %6397 = vmatpush1.bf16.msra.mxu0 %v6396_v13  ;;  %6493 = vmatpush1.bf16.msra.mxu1 %v6492_v14  ;;  %v1050_v13 = vld [vmem:[#allocation10 + $0xb70] sm:$0xff]  ;;  %v1053_v14 = vld [vmem:[#allocation10 + $0xb88] sm:$0xff] }
 0x202   :  { %1160 = vmatprep.mubr.f32.mxu0 %v1079_v8  ;;  %1314 = vmatprep.mubr.f32.mxu1 %v1079_v8  ;;  %v1044_v8 = vld [vmem:[#allocation10 + $0xb40] sm:$0xff]  ;;  %v6512_v19 = vpack.c.bf16 %v1050_v13, %v1046_v12  ;;  %v696_v12 = vld [vmem:[#allocation10 + $0x98] sm:$0xff] }
 0x203   :  { %6399 = vmatprep.subr.bf16.mxu0 %v6398_v23  ;;  %6495 = vmatprep.subr.bf16.mxu1 %v6494_v24  ;;  %v6416_v18 = vpack.c.bf16 %v1048_v9, %v1044_v8  ;;  %v6418_v23 = vpack.c.bf16 %v1057_v15, %v1053_v14  ;;  %v6514_v24 = vpack.c.bf16 %v1059_v17, %v1055_v16  ;;  %v687_v8 = vld [vmem:[#allocation10 + $0x50] sm:$0xff]  ;;  %v700_v13 = vld [vmem:[#allocation10 + $0xb8] sm:$0xff]  ;;  %v693_v17 = vld [vmem:[#allocation10 + $0x80] sm:$0xff] }
 0x204   :  { %1161 = vmatmul.mubr.f32.gmra.mrb[6].mxu0 %v1076_v10  ;;  %1315 = vmatmul.mubr.f32.gmra.mrb[6].mxu1 %v1076_v10  ;;  %v6414_v10 = vpack.c.bf16 %v1049_v61, %v1045_v4  ;;  %v685_v61 = vld [vmem:[#allocation10 + $0x40] sm:$0xff]  ;;  %v691_v9 = vld [vmem:[#allocation10 + $0x70] sm:$0xff]  ;;  %v6626_v21 = vpack.c.bf16 %v700_v13, %v696_v12 }
 0x205   :  { %6401 = vmatpush1.bf16.msra.mxu0 %v6400_v28  ;;  %6497 = vmatpush1.bf16.msra.mxu1 %v6496_v29  ;;  %v1065_v28 = vld [vmem:[#allocation10 + $0xbe8] sm:$0xff]  ;;  %v1063_v29 = vld [vmem:[#allocation10 + $0xbd8] sm:$0xff]  ;;  %v6528_v14 = vpack.c.bf16 %v689_v5, %v685_v61  ;;  %v6624_v16 = vpack.c.bf16 %v691_v9, %v687_v8  ;;  %v727_v12 = vld [vmem:[#allocation10 + $0x190] sm:$0xff] }
 0x206   :  { %6403 = vmatprep.subr.bf16.mxu0 %v6402_v32  ;;  %6499 = vmatprep.subr.bf16.mxu1 %v6498_v33  ;;  %v6516_v32 = vpack.c.bf16 %v1058_v26, %v1054_v25  ;;  %v1060_v33 = vld [vmem:[#allocation10 + $0xbc0] sm:$0xff]  ;;  %v6422_v35 = vpack.c.bf16 %v1065_v28, %v1061_v27  ;;  %v6518_v36 = vpack.c.bf16 %v1067_v30, %v1063_v29  ;;  %v8118_v15 = vld [vmem:[#allocation3] sm:$0xff]  ;;  %v706_v25 = vld [vmem:[#allocation10 + $0xe8] sm:$0xff] }
 0x207   :  { %1231 = vmatprep.mubr.f32.mxu0 %v7842_v0  ;;  %1385 = vmatprep.mubr.f32.mxu1 %v7842_v0  ;;  %v6508_v0 = vpack.c.bf16 %v1042_v3, %v1038_v2  ;;  %v1081_v2 = vrot.slane %v871_v48, 1  ;;  %v6524_v3 = vpack.c.bf16 %v681_v47, %v677_v46  ;;  %v672_v26 = vld [vmem:[#allocation2 + $0x8] sm:$0xff]  ;;  %v704_v27 = vld [vmem:[#allocation10 + $0xd8] sm:$0xff] }
 0x208   :  { %v708_v28 = vld [vmem:[#allocation10 + $0xf8] sm:$0xff]  ;;  %v711_v46 = vld [vmem:[#allocation10 + $0x110] sm:$0xff]  ;;  %v726_v61 = vld [vmem:[#allocation10 + $0x188] sm:$0xff] }
 0x209   :  { %6405 = vmatpush1.bf16.msra.mxu0 %v6404_v40  ;;  %6501 = vmatpush1.bf16.msra.mxu1 %v6500_v41  ;;  %v682_v40 = vld [vmem:[#allocation10 + $0x28] sm:$0xff]  ;;  %v680_v41 = vld [vmem:[#allocation10 + $0x18] sm:$0xff]  ;;  %v715_v48 = vld [vmem:[#allocation10 + $0x130] sm:$0xff] }
 0x20a   :  { %6407 = vmatprep.subr.bf16.mxu0 %v6406_v44  ;;  %6503 = vmatprep.subr.bf16.mxu1 %v6502_v45  ;;  %v6424_v44 = vpack.c.bf16 %v1064_v34, %v1060_v33  ;;  %v6520_v45 = vpack.c.bf16 %v1066_v38, %v1062_v37  ;;  %v6522_v49 = vpack.c.bf16 %v682_v40, %v678_v39  ;;  %v705_v33 = vld [vmem:[#allocation10 + $0xe0] sm:$0xff]  ;;  %v703_v34 = vld [vmem:[#allocation10 + $0xd0] sm:$0xff]  ;;  %v710_v37 = vld [vmem:[#allocation10 + $0x108] sm:$0xff] }
 0x20b   :  { %v6618_v50 = vpack.c.bf16 %v684_v42, %v680_v41  ;;  %v714_v38 = vld [vmem:[#allocation10 + $0x128] sm:$0xff]  ;;  %v712_v39 = vld [vmem:[#allocation10 + $0x118] sm:$0xff] }
 0x20c   :  { %v716_v40 = vld [vmem:[#allocation10 + $0x138] sm:$0xff]  ;;  %v730_v5 = vld [vmem:[#allocation10 + $0x1a8] sm:$0xff] }
 0x20d   :  { %6409 = vmatpush1.bf16.msra.mxu0 %v6408_v52  ;;  %6505 = vmatpush1.bf16.msra.mxu1 %v6504_v53  ;;  %v683_v52 = vld [vmem:[#allocation10 + $0x30] sm:$0xff]  ;;  %v1082_v53 = vrot.slane %v874_v43, 1  ;;  %v6538_v43 = vpack.c.bf16 %v714_v38, %v710_v37  ;;  %v6634_v47 = vpack.c.bf16 %v716_v40, %v712_v39  ;;  %v6546_v9 = vpack.c.bf16 %v730_v5, %v726_v61  ;;  %v745_v37 = vld [vmem:[#allocation10 + $0x220] sm:$0xff] }
 0x20e   :  { %6411 = vmatprep.subr.bf16.mxu0 %v6410_v58  ;;  %6507 = vmatprep.subr.bf16.mxu1 %v6506_v1  ;;  %v688_v58 = vld [vmem:[#allocation10 + $0x58] sm:$0xff]  ;;  %v6620_v4 = vpack.c.bf16 %v683_v52, %v679_v51  ;;  %v743_v38 = vld [vmem:[#allocation10 + $0x210] sm:$0xff]  ;;  %v761_v61 = vld [vmem:[#allocation10 + $0x2a0] sm:$0xff] }
 0x20f   :  { %v692_v1 = vld [vmem:[#allocation10 + $0x78] sm:$0xff]  ;;  %v1083_v6 = vsel %vm1074_vm5, %v1081_v2, %v1082_v53  ;;  %v719_v2 = vld [vmem:[#allocation10 + $0x150] sm:$0xff] }
 0x210   :  { %v720_v51 = vld [vmem:[#allocation10 + $0x158] sm:$0xff]  ;;  %v747_v40 = vld [vmem:[#allocation10 + $0x230] sm:$0xff] }
 0x211   :  { %6413 = vmatpush1.bf16.msra.mxu0 %v6412_v7  ;;  %6509 = vmatpush1.bf16.msra.mxu1 %v6508_v0  ;;  %v6526_v7 = vpack.c.bf16 %v690_v57, %v686_v54  ;;  %v6622_v0 = vpack.c.bf16 %v692_v1, %v688_v58  ;;  %v724_v52 = vld [vmem:[#allocation10 + $0x178] sm:$0xff]  ;;  %v6636_v54 = vpack.c.bf16 %v715_v48, %v711_v46  ;;  %v717_v58 = vld [vmem:[#allocation10 + $0x140] sm:$0xff]  ;;  %v759_v5 = vld [vmem:[#allocation10 + $0x290] sm:$0xff] }
 0x212   :  { %6415 = vmatprep.subr.bf16.mxu0 %v6414_v10  ;;  %6511 = vmatprep.subr.bf16.mxu1 %v6510_v11  ;;  %v694_v10 = vld [vmem:[#allocation10 + $0x88] sm:$0xff]  ;;  %v721_v1 = vld [vmem:[#allocation10 + $0x160] sm:$0xff]  ;;  %v6652_v46 = vpack.c.bf16 %v747_v40, %v743_v38 }
 0x213   :  { %v698_v11 = vld [vmem:[#allocation10 + $0xa8] sm:$0xff]  ;;  %v749_v48 = vld [vmem:[#allocation10 + $0x240] sm:$0xff] }
 0x214   :  { %v6530_v20 = vpack.c.bf16 %v698_v11, %v694_v10  ;;  %v725_v10 = vld [vmem:[#allocation10 + $0x180] sm:$0xff] }
 0x215   :  { %6417 = vmatpush1.bf16.msra.mxu0 %v6416_v18  ;;  %6513 = vmatpush1.bf16.msra.mxu1 %v6512_v19  ;;  %v697_v18 = vld [vmem:[#allocation10 + $0xa0] sm:$0xff]  ;;  %v695_v19 = vld [vmem:[#allocation10 + $0x90] sm:$0xff] }
 0x216   :  { %6419 = vmatprep.subr.bf16.mxu0 %v6418_v23  ;;  %6515 = vmatprep.subr.bf16.mxu1 %v6514_v24  ;;  %v699_v23 = vld [vmem:[#allocation10 + $0xb0] sm:$0xff]  ;;  %v702_v24 = vld [vmem:[#allocation10 + $0xc8] sm:$0xff]  ;;  %v6532_v29 = vpack.c.bf16 %v697_v18, %v693_v17  ;;  %v729_v11 = vld [vmem:[#allocation10 + $0x1a0] sm:$0xff] }
 0x217   :  { %v6628_v30 = vpack.c.bf16 %v699_v23, %v695_v19  ;;  %v738_v17 = vld [vmem:[#allocation10 + $0x1e8] sm:$0xff]  ;;  %v736_v18 = vld [vmem:[#allocation10 + $0x1d8] sm:$0xff]  ;;  %v781_v40 = vld [vmem:[#allocation10 + $0x340] sm:$0xff] }
 0x218   :  { %v740_v19 = vld [vmem:[#allocation10 + $0x1f8] sm:$0xff] }
 0x219   :  { %6421 = vmatpush1.bf16.msra.mxu0 %v6420_v31  ;;  %6517 = vmatpush1.bf16.msra.mxu1 %v6516_v32  ;;  %v6534_v31 = vpack.c.bf16 %v706_v25, %v702_v24  ;;  %v701_v32 = vld [vmem:[#allocation10 + $0xc0] sm:$0xff] }
 0x21a   :  { %6423 = vmatprep.subr.bf16.mxu0 %v6422_v35  ;;  %6519 = vmatprep.subr.bf16.mxu1 %v6518_v36  ;;  %v6630_v35 = vpack.c.bf16 %v708_v28, %v704_v27  ;;  %v707_v36 = vld [vmem:[#allocation10 + $0xf0] sm:$0xff]  ;;  %v6536_v41 = vpack.c.bf16 %v705_v33, %v701_v32  ;;  %v733_v24 = vld [vmem:[#allocation10 + $0x1c0] sm:$0xff]  ;;  %v6646_v27 = vpack.c.bf16 %v740_v19, %v736_v18  ;;  %v748_v32 = vld [vmem:[#allocation10 + $0x238] sm:$0xff] }
 0x21b   :  { %v6632_v42 = vpack.c.bf16 %v707_v36, %v703_v34  ;;  %v737_v25 = vld [vmem:[#allocation10 + $0x1e0] sm:$0xff]  ;;  %v739_v28 = vld [vmem:[#allocation10 + $0x1f0] sm:$0xff] }
 0x21c   :  { %v6552_v33 = vpack.c.bf16 %v737_v25, %v733_v24  ;;  %v741_v36 = vld [vmem:[#allocation10 + $0x200] sm:$0xff]  ;;  %v771_v19 = vld [vmem:[#allocation10 + $0x2f0] sm:$0xff]  ;;  %v780_v24 = vld [vmem:[#allocation10 + $0x338] sm:$0xff] }
 0x21d   :  { %6425 = vmatpush1.bf16.msra.mxu0 %v6424_v44  ;;  %6521 = vmatpush1.bf16.msra.mxu1 %v6520_v45  ;;  %v709_v44 = vld [vmem:[#allocation10 + $0x100] sm:$0xff] }
 0x21e   :  { %6523 = vmatprep.subr.bf16.mxu0 %v6522_v49  ;;  %6619 = vmatprep.subr.bf16.mxu1 %v6618_v50  ;;  %v713_v45 = vld [vmem:[#allocation10 + $0x120] sm:$0xff]  ;;  %v718_v49 = vld [vmem:[#allocation10 + $0x148] sm:$0xff] }
 0x21f   :  { %v722_v50 = vld [vmem:[#allocation10 + $0x168] sm:$0xff] }
 0x220   :  { %1232 = vmatmul.mubr.f32.vlgmr.msra.gmra.mrb[4].mxu0 %v1083_v6  ;;  %1386 = vmatmul.mubr.f32.vlgmr.msra.gmra.mrb[4].mxu1 %v1083_v6  ;;  %v6542_v57 = vpack.c.bf16 %v722_v50, %v718_v49  ;;  %v728_v6 = vld [vmem:[#allocation10 + $0x198] sm:$0xff]  ;;  %v753_v49 = vld [vmem:[#allocation10 + $0x260] sm:$0xff]  ;;  %v751_v50 = vld [vmem:[#allocation10 + $0x250] sm:$0xff] }
 0x221   :  { %6525 = vmatpush1.bf16.msra.mxu0 %v6524_v3  ;;  %6621 = vmatpush1.bf16.msra.mxu1 %v6620_v4  ;;  %v6638_v3 = vpack.c.bf16 %v724_v52, %v720_v51  ;;  %v723_v4 = vld [vmem:[#allocation10 + $0x170] sm:$0xff] }
 0x222   :  { %1237 = vmatprep.mubr.f32.mxu0 %v8118_v15  ;;  %1391 = vmatprep.mubr.f32.mxu1 %v8118_v15  ;;  %v6640_v8 = vpack.c.bf16 %v723_v4, %v719_v2  ;;  %v755_v52 = vld [vmem:[#allocation10 + $0x270] sm:$0xff]  ;;  %v757_v4 = vld [vmem:[#allocation10 + $0x280] sm:$0xff] }
 0x223   :  { %6527 = vmatprep.subr.bf16.mxu0 %v6526_v7  ;;  %6623 = vmatprep.subr.bf16.mxu1 %v6622_v0  ;;  %v732_v7 = vld [vmem:[#allocation10 + $0x1b8] sm:$0xff]  ;;  %v6544_v0 = vpack.c.bf16 %v721_v1, %v717_v58  ;;  %v6560_v1 = vpack.c.bf16 %v753_v49, %v749_v48  ;;  %v6656_v2 = vpack.c.bf16 %v755_v52, %v751_v50  ;;  %v789_v52 = vld [vmem:[#allocation10 + $0x380] sm:$0xff] }
 0x224   :  { %1238 = vmatmul.mubr.f32.gmra.mrb[6].mxu0 %v1082_v53  ;;  %1392 = vmatmul.mubr.f32.gmra.mrb[6].mxu1 %v1082_v53  ;;  %v6540_v53 = vpack.c.bf16 %v713_v45, %v709_v44  ;;  %v6642_v13 = vpack.c.bf16 %v732_v7, %v728_v6  ;;  %v756_v44 = vld [vmem:[#allocation10 + $0x278] sm:$0xff]  ;;  %v6556_v45 = vpack.c.bf16 %v745_v37, %v741_v36  ;;  %v763_v7 = vld [vmem:[#allocation10 + $0x2b0] sm:$0xff] }
 0x225   :  { %6529 = vmatpush1.bf16.msra.mxu0 %v6528_v14  ;;  %1462 = vmatprep.mubr.f32.mxu0 %v672_v26  ;;  %v731_v14 = vld [vmem:[#allocation10 + $0x1b0] sm:$0xff]  ;;  %v764_v58 = vld [vmem:[#allocation10 + $0x2b8] sm:$0xff] }
 0x226   :  { %6625 = vmatpush1.bf16.msra.mxu1 %v6624_v16  ;;  %1616 = vmatprep.mubr.f32.mxu1 %v672_v26  ;;  %v734_v16 = vld [vmem:[#allocation10 + $0x1c8] sm:$0xff]  ;;  %v735_v26 = vld [vmem:[#allocation10 + $0x1d0] sm:$0xff]  ;;  %v788_v36 = vld [vmem:[#allocation10 + $0x378] sm:$0xff] }
 0x227   :  { %6531 = vmatprep.subr.bf16.mxu0 %v6530_v20  ;;  %6627 = vmatprep.subr.bf16.mxu1 %v6626_v21  ;;  %v6548_v20 = vpack.c.bf16 %v729_v11, %v725_v10  ;;  %v6644_v21 = vpack.c.bf16 %v731_v14, %v727_v12  ;;  %v6550_v23 = vpack.c.bf16 %v738_v17, %v734_v16  ;;  %v772_v10 = vld [vmem:[#allocation10 + $0x2f8] sm:$0xff]  ;;  %v765_v14 = vld [vmem:[#allocation10 + $0x2c0] sm:$0xff]  ;;  %v767_v17 = vld [vmem:[#allocation10 + $0x2d0] sm:$0xff] }
 0x228   :  { %v6648_v34 = vpack.c.bf16 %v739_v28, %v735_v26  ;;  %v6564_v11 = vpack.c.bf16 %v761_v61, %v757_v4  ;;  %v6660_v12 = vpack.c.bf16 %v763_v7, %v759_v5  ;;  %v769_v16 = vld [vmem:[#allocation10 + $0x2e0] sm:$0xff]  ;;  %v6664_v26 = vpack.c.bf16 %v771_v19, %v767_v17  ;;  %v796_v48 = vld [vmem:[#allocation10 + $0x3b8] sm:$0xff] }
 0x229   :  { %6533 = vmatpush1.bf16.msra.mxu0 %v6532_v29  ;;  %v742_v29 = vld [vmem:[#allocation10 + $0x208] sm:$0xff]  ;;  %v6568_v25 = vpack.c.bf16 %v769_v16, %v765_v14  ;;  %v773_v28 = vld [vmem:[#allocation10 + $0x300] sm:$0xff]  ;;  %v804_v4 = vld [vmem:[#allocation10 + $0x3f8] sm:$0xff] }
 0x22a   :  { %6629 = vmatpush1.bf16.msra.mxu1 %v6628_v30  ;;  %6535 = vmatprep.subr.bf16.mxu0 %v6534_v31  ;;  %v746_v30 = vld [vmem:[#allocation10 + $0x228] sm:$0xff]  ;;  %v744_v31 = vld [vmem:[#allocation10 + $0x218] sm:$0xff]  ;;  %v797_v7 = vld [vmem:[#allocation10 + $0x3c0] sm:$0xff] }
 0x22b   :  { %6631 = vmatprep.subr.bf16.mxu1 %v6630_v35  ;;  %v6554_v35 = vpack.c.bf16 %v746_v30, %v742_v29  ;;  %v6650_v39 = vpack.c.bf16 %v748_v32, %v744_v31  ;;  %v777_v29 = vld [vmem:[#allocation10 + $0x320] sm:$0xff]  ;;  %v775_v30 = vld [vmem:[#allocation10 + $0x310] sm:$0xff]  ;;  %v812_v14 = vld [vmem:[#allocation10 + $0x438] sm:$0xff] }
 0x22c   :  { %v779_v32 = vld [vmem:[#allocation10 + $0x330] sm:$0xff]  ;;  %v6572_v37 = vpack.c.bf16 %v777_v29, %v773_v28  ;;  %v820_v28 = vld [vmem:[#allocation10 + $0x478] sm:$0xff] }
 0x22d   :  { %6537 = vmatpush1.bf16.msra.mxu0 %v6536_v41  ;;  %v750_v41 = vld [vmem:[#allocation10 + $0x248] sm:$0xff]  ;;  %v6668_v38 = vpack.c.bf16 %v779_v32, %v775_v30  ;;  %v813_v30 = vld [vmem:[#allocation10 + $0x440] sm:$0xff] }
 0x22e   :  { %6633 = vmatpush1.bf16.msra.mxu1 %v6632_v42  ;;  %6539 = vmatprep.subr.bf16.mxu0 %v6538_v43  ;;  %v754_v42 = vld [vmem:[#allocation10 + $0x268] sm:$0xff]  ;;  %v752_v43 = vld [vmem:[#allocation10 + $0x258] sm:$0xff] }
 0x22f   :  { %6635 = vmatprep.subr.bf16.mxu1 %v6634_v47  ;;  %v6558_v47 = vpack.c.bf16 %v754_v42, %v750_v41  ;;  %v6654_v51 = vpack.c.bf16 %v756_v44, %v752_v43  ;;  %v785_v41 = vld [vmem:[#allocation10 + $0x360] sm:$0xff]  ;;  %v783_v42 = vld [vmem:[#allocation10 + $0x350] sm:$0xff] }
 0x230   :  { %v787_v44 = vld [vmem:[#allocation10 + $0x370] sm:$0xff]  ;;  %v6576_v49 = vpack.c.bf16 %v785_v41, %v781_v40  ;;  %v671_v32 = vld [vmem:[#allocation2] sm:$0xff]  ;;  %v824_v41 = vld [vmem:[#allocation10 + $0x498] sm:$0xff] }
 0x231   :  { %6541 = vmatpush1.bf16.msra.mxu0 %v6540_v53  ;;  %v758_v53 = vld [vmem:[#allocation10 + $0x288] sm:$0xff]  ;;  %v6672_v50 = vpack.c.bf16 %v787_v44, %v783_v42  ;;  %v828_v42 = vld [vmem:[#allocation10 + $0x4b8] sm:$0xff]  ;;  %v821_v44 = vld [vmem:[#allocation10 + $0x480] sm:$0xff] }
 0x232   :  { %6637 = vmatpush1.bf16.msra.mxu1 %v6636_v54  ;;  %6543 = vmatprep.subr.bf16.mxu0 %v6542_v57  ;;  %v762_v54 = vld [vmem:[#allocation10 + $0x2a8] sm:$0xff]  ;;  %v760_v57 = vld [vmem:[#allocation10 + $0x298] sm:$0xff] }
 0x233   :  { %6639 = vmatprep.subr.bf16.mxu1 %v6638_v3  ;;  %v6562_v3 = vpack.c.bf16 %v762_v54, %v758_v53  ;;  %v6658_v6 = vpack.c.bf16 %v764_v58, %v760_v57  ;;  %v793_v53 = vld [vmem:[#allocation10 + $0x3a0] sm:$0xff]  ;;  %v791_v54 = vld [vmem:[#allocation10 + $0x390] sm:$0xff]  ;;  %v826_v40 = vld [vmem:[#allocation10 + $0x4a8] sm:$0xff] }
 0x234   :  { %v795_v58 = vld [vmem:[#allocation10 + $0x3b0] sm:$0xff]  ;;  %v6580_v61 = vpack.c.bf16 %v793_v53, %v789_v52  ;;  %v830_v52 = vld [vmem:[#allocation10 + $0x4c8] sm:$0xff] }
 0x235   :  { %6545 = vmatpush1.bf16.msra.mxu0 %v6544_v0  ;;  %v766_v0 = vld [vmem:[#allocation10 + $0x2c8] sm:$0xff]  ;;  %v6676_v5 = vpack.c.bf16 %v795_v58, %v791_v54  ;;  %v832_v54 = vld [vmem:[#allocation10 + $0x4d8] sm:$0xff] }
 0x236   :  { %6641 = vmatpush1.bf16.msra.mxu1 %v6640_v8  ;;  %6547 = vmatprep.subr.bf16.mxu0 %v6546_v9  ;;  %v770_v8 = vld [vmem:[#allocation10 + $0x2e8] sm:$0xff]  ;;  %v768_v9 = vld [vmem:[#allocation10 + $0x2d8] sm:$0xff] }
 0x237   :  { %6643 = vmatprep.subr.bf16.mxu1 %v6642_v13  ;;  %v6566_v13 = vpack.c.bf16 %v770_v8, %v766_v0  ;;  %v6662_v18 = vpack.c.bf16 %v772_v10, %v768_v9  ;;  %v801_v0 = vld [vmem:[#allocation10 + $0x3e0] sm:$0xff]  ;;  %v799_v8 = vld [vmem:[#allocation10 + $0x3d0] sm:$0xff]  ;;  %v834_v53 = vld [vmem:[#allocation10 + $0x4e8] sm:$0xff] }
 0x238   :  { %v803_v10 = vld [vmem:[#allocation10 + $0x3f0] sm:$0xff]  ;;  %v6584_v16 = vpack.c.bf16 %v801_v0, %v797_v7  ;;  %v838_v7 = vld [vmem:[#allocation10 + $0x508] sm:$0xff] }
 0x239   :  { %6549 = vmatpush1.bf16.msra.mxu0 %v6548_v20  ;;  %v774_v20 = vld [vmem:[#allocation10 + $0x308] sm:$0xff]  ;;  %v6680_v17 = vpack.c.bf16 %v803_v10, %v799_v8  ;;  %v840_v8 = vld [vmem:[#allocation10 + $0x518] sm:$0xff] }
 0x23a   :  { %6645 = vmatpush1.bf16.msra.mxu1 %v6644_v21  ;;  %6551 = vmatprep.subr.bf16.mxu0 %v6550_v23  ;;  %v778_v21 = vld [vmem:[#allocation10 + $0x328] sm:$0xff]  ;;  %v776_v23 = vld [vmem:[#allocation10 + $0x318] sm:$0xff] }
 0x23b   :  { %6647 = vmatprep.subr.bf16.mxu1 %v6646_v27  ;;  %v6570_v27 = vpack.c.bf16 %v778_v21, %v774_v20  ;;  %v6666_v31 = vpack.c.bf16 %v780_v24, %v776_v23  ;;  %v805_v20 = vld [vmem:[#allocation10 + $0x400] sm:$0xff]  ;;  %v807_v23 = vld [vmem:[#allocation10 + $0x410] sm:$0xff]  ;;  %v842_v0 = vld [vmem:[#allocation10 + $0x528] sm:$0xff] }
 0x23c   :  { %v809_v21 = vld [vmem:[#allocation10 + $0x420] sm:$0xff]  ;;  %v811_v24 = vld [vmem:[#allocation10 + $0x430] sm:$0xff] }
 0x23d   :  { %6553 = vmatpush1.bf16.msra.mxu0 %v6552_v33  ;;  %v782_v33 = vld [vmem:[#allocation10 + $0x348] sm:$0xff]  ;;  %v6588_v29 = vpack.c.bf16 %v809_v21, %v805_v20  ;;  %v848_v21 = vld [vmem:[#allocation10 + $0x558] sm:$0xff] }
 0x23e   :  { %6649 = vmatpush1.bf16.msra.mxu1 %v6648_v34  ;;  %6555 = vmatprep.subr.bf16.mxu0 %v6554_v35  ;;  %v786_v34 = vld [vmem:[#allocation10 + $0x368] sm:$0xff]  ;;  %v784_v35 = vld [vmem:[#allocation10 + $0x358] sm:$0xff] }
 0x23f   :  { %6651 = vmatprep.subr.bf16.mxu1 %v6650_v39  ;;  %v6574_v39 = vpack.c.bf16 %v786_v34, %v782_v33  ;;  %v6670_v43 = vpack.c.bf16 %v788_v36, %v784_v35  ;;  %v6684_v33 = vpack.c.bf16 %v811_v24, %v807_v23  ;;  %v815_v35 = vld [vmem:[#allocation10 + $0x450] sm:$0xff]  ;;  %v850_v20 = vld [vmem:[#allocation10 + $0x568] sm:$0xff]  ;;  %v852_v23 = vld [vmem:[#allocation10 + $0x578] sm:$0xff] }
 0x240   :  { %v819_v36 = vld [vmem:[#allocation10 + $0x470] sm:$0xff] }
 0x241   :  { %6557 = vmatpush1.bf16.msra.mxu0 %v6556_v45  ;;  %v790_v45 = vld [vmem:[#allocation10 + $0x388] sm:$0xff] }
 0x242   :  { %6653 = vmatpush1.bf16.msra.mxu1 %v6652_v46  ;;  %6559 = vmatprep.subr.bf16.mxu0 %v6558_v47  ;;  %v794_v46 = vld [vmem:[#allocation10 + $0x3a8] sm:$0xff]  ;;  %v792_v47 = vld [vmem:[#allocation10 + $0x398] sm:$0xff] }
 0x243   :  { %6655 = vmatprep.subr.bf16.mxu1 %v6654_v51  ;;  %v6578_v51 = vpack.c.bf16 %v794_v46, %v790_v45  ;;  %v6674_v57 = vpack.c.bf16 %v796_v48, %v792_v47  ;;  %v674_v45 = vld [vmem:[#allocation2 + $0x18] sm:$0x3]  ;;  %v6688_v46 = vpack.c.bf16 %v819_v36, %v815_v35  ;;  %v825_v48 = vld [vmem:[#allocation10 + $0x4a0] sm:$0xff] }
 0x244   :  { %v6596_v58 = vpack.c.bf16 %v825_v48, %v821_v44  ;;  %v860_v35 = vld [vmem:[#allocation10 + $0x5b8] sm:$0xff]  ;;  %v862_v44 = vld [vmem:[#allocation10 + $0x5c8] sm:$0xff] }
 0x245   :  { %6561 = vmatpush1.bf16.msra.mxu0 %v6560_v1  ;;  %v798_v1 = vld [vmem:[#allocation10 + $0x3c8] sm:$0xff] }
 0x246   :  { %6657 = vmatpush1.bf16.msra.mxu1 %v6656_v2  ;;  %6563 = vmatprep.subr.bf16.mxu0 %v6562_v3  ;;  %v802_v2 = vld [vmem:[#allocation10 + $0x3e8] sm:$0xff]  ;;  %v800_v3 = vld [vmem:[#allocation10 + $0x3d8] sm:$0xff] }
 0x247   :  { %6659 = vmatprep.subr.bf16.mxu1 %v6658_v6  ;;  %v6582_v6 = vpack.c.bf16 %v802_v2, %v798_v1  ;;  %v6678_v9 = vpack.c.bf16 %v804_v4, %v800_v3  ;;  %v6598_v2 = vpack.c.bf16 %v834_v53, %v830_v52  ;;  %v829_v3 = vld [vmem:[#allocation10 + $0x4c0] sm:$0xff]  ;;  %v863_v53 = vld [vmem:[#allocation10 + $0x5d0] sm:$0xff] }
 0x248   :  { %v833_v4 = vld [vmem:[#allocation10 + $0x4e0] sm:$0xff] }
 0x249   :  { %6565 = vmatpush1.bf16.msra.mxu0 %v6564_v11  ;;  %v806_v11 = vld [vmem:[#allocation10 + $0x408] sm:$0xff]  ;;  %v6600_v10 = vpack.c.bf16 %v833_v4, %v829_v3  ;;  %v865_v52 = vld [vmem:[#allocation10 + $0x5e0] sm:$0xff]  ;;  %v1720_v3 = vld [vmem:[#allocation10 + $0xc38] sm:$0xff] }
 0x24a   :  { %6661 = vmatpush1.bf16.msra.mxu1 %v6660_v12  ;;  %6567 = vmatprep.subr.bf16.mxu0 %v6566_v13  ;;  %v810_v12 = vld [vmem:[#allocation10 + $0x428] sm:$0xff]  ;;  %v808_v13 = vld [vmem:[#allocation10 + $0x418] sm:$0xff] }
 0x24b   :  { %6663 = vmatprep.subr.bf16.mxu1 %v6662_v18  ;;  %v6586_v18 = vpack.c.bf16 %v810_v12, %v806_v11  ;;  %v6682_v19 = vpack.c.bf16 %v812_v14, %v808_v13  ;;  %v6602_v12 = vpack.c.bf16 %v842_v0, %v838_v7  ;;  %v837_v13 = vld [vmem:[#allocation10 + $0x500] sm:$0xff] }
 0x24c   :  { %v841_v14 = vld [vmem:[#allocation10 + $0x520] sm:$0xff] }
 0x24d   :  { %6569 = vmatpush1.bf16.msra.mxu0 %v6568_v25  ;;  %v814_v25 = vld [vmem:[#allocation10 + $0x448] sm:$0xff]  ;;  %v6604_v24 = vpack.c.bf16 %v841_v14, %v837_v13  ;;  %v1717_v7 = vld [vmem:[#allocation10 + $0xc20] sm:$0xff]  ;;  %v1724_v13 = vld [vmem:[#allocation10 + $0xc58] sm:$0xff] }
 0x24e   :  { %6665 = vmatpush1.bf16.msra.mxu1 %v6664_v26  ;;  %6571 = vmatprep.subr.bf16.mxu0 %v6570_v27  ;;  %v818_v26 = vld [vmem:[#allocation10 + $0x468] sm:$0xff]  ;;  %v816_v27 = vld [vmem:[#allocation10 + $0x458] sm:$0xff] }
 0x24f   :  { %6667 = vmatprep.subr.bf16.mxu1 %v6666_v31  ;;  %v817_v31 = vld [vmem:[#allocation10 + $0x460] sm:$0xff]  ;;  %v6590_v34 = vpack.c.bf16 %v818_v26, %v814_v25  ;;  %v1728_v14 = vld [vmem:[#allocation10 + $0xc78] sm:$0xff] }
 0x251   :  { %6573 = vmatpush1.bf16.msra.mxu0 %v6572_v37  ;;  %v675_v37 = vld [vmem:[#allocation2 + $0x20] sm:$0x3] }
 0x252   :  { %6669 = vmatpush1.bf16.msra.mxu1 %v6668_v38  ;;  %6575 = vmatprep.subr.bf16.mxu0 %v6574_v39  ;;  %v6686_v38 = vpack.c.bf16 %v820_v28, %v816_v27  ;;  %v822_v39 = vld [vmem:[#allocation10 + $0x488] sm:$0xff]  ;;  %v845_v27 = vld [vmem:[#allocation10 + $0x540] sm:$0xff] }
 0x253   :  { %6671 = vmatprep.subr.bf16.mxu1 %v6670_v43  ;;  %v6592_v43 = vpack.c.bf16 %v817_v31, %v813_v30  ;;  %v6594_v47 = vpack.c.bf16 %v826_v40, %v822_v39  ;;  %v849_v28 = vld [vmem:[#allocation10 + $0x560] sm:$0xff]  ;;  %v6702_v30 = vpack.c.bf16 %v852_v23, %v848_v21  ;;  %v851_v31 = vld [vmem:[#allocation10 + $0x570] sm:$0xff] }
 0x254   :  { %v6608_v36 = vpack.c.bf16 %v849_v28, %v845_v27  ;;  %v853_v39 = vld [vmem:[#allocation10 + $0x580] sm:$0xff]  ;;  %v1723_v23 = vld [vmem:[#allocation10 + $0xc50] sm:$0xff]  ;;  %v1730_v27 = vld [vmem:[#allocation10 + $0xc88] sm:$0xff] }
 0x255   :  { %6577 = vmatpush1.bf16.msra.mxu0 %v6576_v49  ;;  %v823_v49 = vld [vmem:[#allocation10 + $0x490] sm:$0xff]  ;;  %v857_v40 = vld [vmem:[#allocation10 + $0x5a0] sm:$0xff]  ;;  %v1734_v28 = vld [vmem:[#allocation10 + $0xca8] sm:$0xff] }
 0x256   :  { %6673 = vmatpush1.bf16.msra.mxu1 %v6672_v50  ;;  %6579 = vmatprep.subr.bf16.mxu0 %v6578_v51  ;;  %v6690_v50 = vpack.c.bf16 %v828_v42, %v824_v41  ;;  %v827_v51 = vld [vmem:[#allocation10 + $0x4b0] sm:$0xff]  ;;  %v6612_v48 = vpack.c.bf16 %v857_v40, %v853_v39  ;;  %v6722_v39 = vpack.c.bf16 %v1734_v28, %v1730_v27 }
 0x257   :  { %6675 = vmatprep.subr.bf16.mxu1 %v6674_v57  ;;  %v836_v57 = vld [vmem:[#allocation10 + $0x4f8] sm:$0xff]  ;;  %v6692_v1 = vpack.c.bf16 %v827_v51, %v823_v49  ;;  %v855_v41 = vld [vmem:[#allocation10 + $0x590] sm:$0xff]  ;;  %v861_v51 = vld [vmem:[#allocation10 + $0x5c0] sm:$0xff] }
 0x258   :  { %v6616_v4 = vpack.c.bf16 %v865_v52, %v861_v51  ;;  %v1735_v40 = vld [vmem:[#allocation10 + $0xcb0] sm:$0xff] }
 0x259   :  { %6581 = vmatpush1.bf16.msra.mxu0 %v6580_v61  ;;  %v831_v61 = vld [vmem:[#allocation10 + $0x4d0] sm:$0xff] }
 0x25a   :  { %6677 = vmatpush1.bf16.msra.mxu1 %v6676_v5  ;;  %6583 = vmatprep.subr.bf16.mxu0 %v6582_v6  ;;  %v6694_v5 = vpack.c.bf16 %v836_v57, %v832_v54  ;;  %v835_v6 = vld [vmem:[#allocation10 + $0x4f0] sm:$0xff] }
 0x25b   :  { %6679 = vmatprep.subr.bf16.mxu1 %v6678_v9  ;;  %v844_v9 = vld [vmem:[#allocation10 + $0x538] sm:$0xff]  ;;  %v6696_v11 = vpack.c.bf16 %v835_v6, %v831_v61  ;;  %v867_v57 = vld [vmem:[#allocation10 + $0x5f0] sm:$0xff]  ;;  %v1713_v6 = vld [vmem:[#allocation10 + $0xc00] sm:$0xff] }
 0x25c   :  { %v6712_v61 = vpack.c.bf16 %v867_v57, %v863_v53  ;;  %v1739_v51 = vld [vmem:[#allocation10 + $0xcd0] sm:$0xff]  ;;  %v1750_v57 = vld [vmem:[#allocation10 + $0xd28] sm:$0xff] }
 0x25d   :  { %6585 = vmatpush1.bf16.msra.mxu0 %v6584_v16  ;;  %v839_v16 = vld [vmem:[#allocation10 + $0x510] sm:$0xff] }
 0x25e   :  { %6681 = vmatpush1.bf16.msra.mxu1 %v6680_v17  ;;  %6587 = vmatprep.subr.bf16.mxu0 %v6586_v18  ;;  %v6698_v17 = vpack.c.bf16 %v844_v9, %v840_v8  ;;  %v843_v18 = vld [vmem:[#allocation10 + $0x530] sm:$0xff] }
 0x25f   :  { %6683 = vmatprep.subr.bf16.mxu1 %v6682_v19  ;;  %v846_v19 = vld [vmem:[#allocation10 + $0x548] sm:$0xff]  ;;  %v6700_v25 = vpack.c.bf16 %v843_v18, %v839_v16  ;;  %v1715_v8 = vld [vmem:[#allocation10 + $0xc10] sm:$0xff]  ;;  %v1725_v18 = vld [vmem:[#allocation10 + $0xc60] sm:$0xff] }
 0x260   :  { %1463 = vmatmul.mubr.f32.vlgmr.msra.gmra.mrb[4].mxu0 %v671_v32  ;;  %v6606_v26 = vpack.c.bf16 %v850_v20, %v846_v19  ;;  %v1719_v9 = vld [vmem:[#allocation10 + $0xc30] sm:$0xff]  ;;  %v1710_v19 = vld [vmem:[#allocation2 + $0x20] sm:$0xf] }
 0x261   :  { %1617 = vmatmul.mubr.f32.vlgmr.msra.gmra.mrb[4].mxu1 %v671_v32  ;;  %1468 = vmatprep.mubr.f32.mxu0 %v675_v37  ;;  %v854_v32 = vld [vmem:[#allocation10 + $0x588] sm:$0xff]  ;;  %v6812_v16 = vpack.c.bf16 %v1719_v9, %v1715_v8  ;;  %v673_v20 = vld [vmem:[#allocation2 + $0x10] sm:$0xff] }
 0x262   :  { %6589 = vmatpush1.bf16.msra.mxu0 %v6588_v29  ;;  %1622 = vmatprep.mubr.f32.mxu1 %v675_v37  ;;  %v847_v29 = vld [vmem:[#allocation10 + $0x550] sm:$0xff]  ;;  %v1754_v8 = vld [vmem:[#allocation10 + $0xd48] sm:$0xff] }
 0x263   :  { %6685 = vmatpush1.bf16.msra.mxu1 %v6684_v33  ;;  %6591 = vmatprep.subr.bf16.mxu0 %v6590_v34  ;;  %v858_v33 = vld [vmem:[#allocation10 + $0x5a8] sm:$0xff]  ;;  %v856_v34 = vld [vmem:[#allocation10 + $0x598] sm:$0xff]  ;;  %v6704_v37 = vpack.c.bf16 %v851_v31, %v847_v29  ;;  %v8124_v31 = vrot.slane %v1710_v19, 2  ;;  %v1743_v53 = vld [vmem:[#allocation10 + $0xcf0] sm:$0xff] }
 0x264   :  { %1469 = vmatmul.mubr.f32.gmra.mrb[6].mxu0 %v674_v45  ;;  %6687 = vmatprep.subr.bf16.mxu1 %v6686_v38  ;;  %v6610_v38 = vpack.c.bf16 %v858_v33, %v854_v32  ;;  %v6706_v42 = vpack.c.bf16 %v860_v35, %v856_v34  ;;  %v676_v29 = vld [vmem:[#allocation2 + $0x28] sm:$0x3]  ;;  %v1732_v32 = vld [vmem:[#allocation10 + $0xc98] sm:$0xff]  ;;  %v1729_v35 = vld [vmem:[#allocation10 + $0xc80] sm:$0xff] }
 0x265   :  { %1623 = vmatmul.mubr.f32.gmra.mrb[6].mxu1 %v674_v45  ;;  %1539 = vmatprep.mubr.f32.mxu0 %v8118_v15  ;;  %v866_v45 = vld [vmem:[#allocation10 + $0x5e8] sm:$0xff]  ;;  %v1736_v33 = vld [vmem:[#allocation10 + $0xcb8] sm:$0xff] }
 0x266   :  { %6593 = vmatpush1.bf16.msra.mxu0 %v6592_v43  ;;  %1693 = vmatprep.mubr.f32.mxu1 %v8118_v15  ;;  %v859_v43 = vld [vmem:[#allocation10 + $0x5b0] sm:$0xff]  ;;  %v1758_v9 = vld [vmem:[#allocation10 + $0xd68] sm:$0xff] }
 0x267   :  { %6689 = vmatpush1.bf16.msra.mxu1 %v6688_v46  ;;  %6595 = vmatprep.subr.bf16.mxu0 %v6594_v47  ;;  %v864_v46 = vld [vmem:[#allocation10 + $0x5d8] sm:$0xff]  ;;  %v6708_v49 = vpack.c.bf16 %v859_v43, %v855_v41  ;;  %v1738_v41 = vld [vmem:[#allocation10 + $0xcc8] sm:$0xff]  ;;  %v6818_v43 = vpack.c.bf16 %v1736_v33, %v1732_v32  ;;  %v1763_v32 = vld [vmem:[#allocation10 + $0xd90] sm:$0xff] }
 0x268   :  { %6691 = vmatprep.subr.bf16.mxu1 %v6690_v50  ;;  %v868_v47 = vld [vmem:[#allocation10 + $0x5f8] sm:$0xff]  ;;  %v6614_v50 = vpack.c.bf16 %v866_v45, %v862_v44 }
 0x269   :  { %v6710_v54 = vpack.c.bf16 %v868_v47, %v864_v46  ;;  %v1740_v44 = vld [vmem:[#allocation10 + $0xcd8] sm:$0xff] }
 0x26a   :  { %6597 = vmatpush1.bf16.msra.mxu0 %v6596_v58  ;;  %v1714_v58 = vld [vmem:[#allocation10 + $0xc08] sm:$0xff]  ;;  %v1744_v45 = vld [vmem:[#allocation10 + $0xcf8] sm:$0xff] }
 0x26b   :  { %6693 = vmatpush1.bf16.msra.mxu1 %v6692_v1  ;;  %6599 = vmatprep.subr.bf16.mxu0 %v6598_v2  ;;  %v1718_v1 = vld [vmem:[#allocation10 + $0xc28] sm:$0xff]  ;;  %v1716_v2 = vld [vmem:[#allocation10 + $0xc18] sm:$0xff]  ;;  %v6822_v52 = vpack.c.bf16 %v1744_v45, %v1740_v44  ;;  %v1771_v44 = vld [vmem:[#allocation10 + $0xdd0] sm:$0xff] }
 0x26c   :  { %6695 = vmatprep.subr.bf16.mxu1 %v6694_v5  ;;  %v6714_v5 = vpack.c.bf16 %v1718_v1, %v1714_v58  ;;  %v6810_v0 = vpack.c.bf16 %v1720_v3, %v1716_v2  ;;  %v1748_v58 = vld [vmem:[#allocation10 + $0xd18] sm:$0xff]  ;;  %v6824_v3 = vpack.c.bf16 %v1743_v53, %v1739_v51  ;;  %v1777_v53 = vld [vmem:[#allocation10 + $0xe00] sm:$0xff] }
 0x26d   :  { %v1752_v1 = vld [vmem:[#allocation10 + $0xd38] sm:$0xff] }
 0x26e   :  { %6601 = vmatpush1.bf16.msra.mxu0 %v6600_v10  ;;  %v1722_v10 = vld [vmem:[#allocation10 + $0xc48] sm:$0xff] }
 0x26f   :  { %6697 = vmatpush1.bf16.msra.mxu1 %v6696_v11  ;;  %6603 = vmatprep.subr.bf16.mxu0 %v6602_v12  ;;  %v1726_v11 = vld [vmem:[#allocation10 + $0xc68] sm:$0xff]  ;;  %v6716_v12 = vpack.c.bf16 %v1717_v7, %v1713_v6  ;;  %v1747_v6 = vld [vmem:[#allocation10 + $0xd10] sm:$0xff]  ;;  %v6826_v7 = vpack.c.bf16 %v1752_v1, %v1748_v58 }
 0x270   :  { %6699 = vmatprep.subr.bf16.mxu1 %v6698_v17  ;;  %v1721_v17 = vld [vmem:[#allocation10 + $0xc40] sm:$0xff]  ;;  %v6718_v21 = vpack.c.bf16 %v1726_v11, %v1722_v10  ;;  %v1756_v10 = vld [vmem:[#allocation10 + $0xd58] sm:$0xff]  ;;  %v1783_v1 = vld [vmem:[#allocation10 + $0xe30] sm:$0xff] }
 0x271   :  { %v1760_v11 = vld [vmem:[#allocation10 + $0xd78] sm:$0xff] }
 0x272   :  { %6605 = vmatpush1.bf16.msra.mxu0 %v6604_v24  ;;  %v1727_v24 = vld [vmem:[#allocation10 + $0xc70] sm:$0xff]  ;;  %v6830_v19 = vpack.c.bf16 %v1760_v11, %v1756_v10 }
 0x273   :  { %6701 = vmatpush1.bf16.msra.mxu1 %v6700_v25  ;;  %6607 = vmatprep.subr.bf16.mxu0 %v6606_v26  ;;  %v6814_v25 = vpack.c.bf16 %v1728_v14, %v1724_v13  ;;  %v1707_v26 = vld [vmem:[#allocation2 + $0x8] sm:$0xfc]  ;;  %v6816_v34 = vpack.c.bf16 %v1727_v24, %v1723_v23  ;;  %v6734_v14 = vpack.c.bf16 %v1758_v9, %v1754_v8  ;;  %v1766_v23 = vld [vmem:[#allocation10 + $0xda8] sm:$0xff]  ;;  %v1764_v24 = vld [vmem:[#allocation10 + $0xd98] sm:$0xff] }
 0x274   :  { %6703 = vmatprep.subr.bf16.mxu1 %v6702_v30  ;;  %v6720_v30 = vpack.c.bf16 %v1725_v18, %v1721_v17  ;;  %v1757_v17 = vld [vmem:[#allocation10 + $0xd60] sm:$0xff]  ;;  %v1755_v18 = vld [vmem:[#allocation10 + $0xd50] sm:$0xff] }
 0x275   :  { %v1789_v8 = vld [vmem:[#allocation10 + $0xe60] sm:$0xff]  ;;  %v1787_v9 = vld [vmem:[#allocation10 + $0xe50] sm:$0xff] }
 0x276   :  { %6609 = vmatpush1.bf16.msra.mxu0 %v6608_v36  ;;  %v1733_v36 = vld [vmem:[#allocation10 + $0xca0] sm:$0xff]  ;;  %v1791_v11 = vld [vmem:[#allocation10 + $0xe70] sm:$0xff] }
 0x277   :  { %6705 = vmatpush1.bf16.msra.mxu1 %v6704_v37  ;;  %6611 = vmatprep.subr.bf16.mxu0 %v6610_v38  ;;  %v1731_v37 = vld [vmem:[#allocation10 + $0xc90] sm:$0xff]  ;;  %v1915_v38 = vrot.slane %v1707_v26, 2  ;;  %v6724_v47 = vpack.c.bf16 %v1733_v36, %v1729_v35  ;;  %v1770_v35 = vld [vmem:[#allocation10 + $0xdc8] sm:$0xff] }
 0x278   :  { %6707 = vmatprep.subr.bf16.mxu1 %v6706_v42  ;;  %v1742_v42 = vld [vmem:[#allocation10 + $0xce8] sm:$0xff] }
 0x279   :  { %v1917_v46 = vsel %vm1911_vm6, %v1915_v38, %v8124_v31  ;;  %v1774_v36 = vld [vmem:[#allocation10 + $0xde8] sm:$0xff]  ;;  %v1776_v38 = vld [vmem:[#allocation10 + $0xdf8] sm:$0xff] }
 0x27a   :  { %6613 = vmatpush1.bf16.msra.mxu0 %v6612_v48  ;;  %v6726_v48 = vpack.c.bf16 %v1742_v42, %v1738_v41  ;;  %v6742_v41 = vpack.c.bf16 %v1774_v36, %v1770_v35  ;;  %v1769_v42 = vld [vmem:[#allocation10 + $0xdc0] sm:$0xff]  ;;  %v1803_v36 = vld [vmem:[#allocation10 + $0xed0] sm:$0xff] }
 0x27b   :  { %6709 = vmatpush1.bf16.msra.mxu1 %v6708_v49  ;;  %6615 = vmatprep.subr.bf16.mxu0 %v6614_v50  ;;  %v1737_v49 = vld [vmem:[#allocation10 + $0xcc0] sm:$0xff] }
 0x27c   :  { %6711 = vmatprep.subr.bf16.mxu1 %v6710_v54  ;;  %v1741_v50 = vld [vmem:[#allocation10 + $0xce0] sm:$0xff]  ;;  %v1746_v54 = vld [vmem:[#allocation10 + $0xd08] sm:$0xff] }
 0x27d   :  { %v6728_v2 = vpack.c.bf16 %v1741_v50, %v1737_v49  ;;  %v1784_v49 = vld [vmem:[#allocation10 + $0xe38] sm:$0xff]  ;;  %v1805_v35 = vld [vmem:[#allocation10 + $0xee0] sm:$0xff] }
 0x27e   :  { %6617 = vmatpush1.bf16.msra.mxu0 %v6616_v4  ;;  %v6730_v4 = vpack.c.bf16 %v1750_v57, %v1746_v54  ;;  %v1781_v54 = vld [vmem:[#allocation10 + $0xe20] sm:$0xff]  ;;  %v1779_v57 = vld [vmem:[#allocation10 + $0xe10] sm:$0xff] }
 0x27f   :  { %6713 = vmatpush1.bf16.msra.mxu1 %v6712_v61  ;;  %6715 = vmatprep.subr.bf16.mxu0 %v6714_v5  ;;  %v1745_v61 = vld [vmem:[#allocation10 + $0xd00] sm:$0xff] }
 0x280   :  { %6811 = vmatprep.subr.bf16.mxu1 %v6810_v0  ;;  %v1749_v5 = vld [vmem:[#allocation10 + $0xd20] sm:$0xff]  ;;  %v1751_v0 = vld [vmem:[#allocation10 + $0xd30] sm:$0xff] }
 0x281   :  { %1540 = vmatmul.mubr.f32.vlgmr.msra.gmra.mrb[4].mxu0 %v673_v20  ;;  %v6828_v13 = vpack.c.bf16 %v1751_v0, %v1747_v6  ;;  %v6844_v6 = vpack.c.bf16 %v1783_v1, %v1779_v57  ;;  %v1785_v0 = vld [vmem:[#allocation10 + $0xe40] sm:$0xff] }
 0x282   :  { %1694 = vmatmul.mubr.f32.vlgmr.msra.gmra.mrb[4].mxu1 %v673_v20  ;;  %6717 = vmatpush1.bf16.msra.mxu0 %v6716_v12  ;;  %v6732_v12 = vpack.c.bf16 %v1749_v5, %v1745_v61  ;;  %v1759_v20 = vld [vmem:[#allocation10 + $0xd70] sm:$0xff]  ;;  %v1792_v61 = vld [vmem:[#allocation10 + $0xe78] sm:$0xff]  ;;  %v6748_v5 = vpack.c.bf16 %v1781_v54, %v1777_v53  ;;  %v1817_v1 = vld [vmem:[#allocation10 + $0xf40] sm:$0xff] }
 0x283   :  { %6813 = vmatpush1.bf16.msra.mxu1 %v6812_v16  ;;  %1545 = vmatprep.mubr.f32.mxu0 %v8118_v15  ;;  %v1753_v16 = vld [vmem:[#allocation10 + $0xd40] sm:$0xff]  ;;  %v6832_v27 = vpack.c.bf16 %v1759_v20, %v1755_v18  ;;  %v6848_v18 = vpack.c.bf16 %v1791_v11, %v1787_v9  ;;  %v1824_v53 = vld [vmem:[#allocation10 + $0xf78] sm:$0xff] }
 0x284   :  { %1699 = vmatprep.mubr.f32.mxu1 %v8118_v15  ;;  %6719 = vmatprep.subr.bf16.mxu0 %v6718_v21  ;;  %v6820_v15 = vpack.c.bf16 %v1735_v40, %v1731_v37  ;;  %v1762_v21 = vld [vmem:[#allocation10 + $0xd88] sm:$0xff]  ;;  %v6736_v26 = vpack.c.bf16 %v1757_v17, %v1753_v16  ;;  %v1772_v37 = vld [vmem:[#allocation10 + $0xdd8] sm:$0xff]  ;;  %v6752_v17 = vpack.c.bf16 %v1789_v8, %v1785_v0  ;;  %v1793_v20 = vld [vmem:[#allocation10 + $0xe80] sm:$0xff] }
 0x285   :  { %1546 = vmatmul.mubr.f32.gmra.mrb[6].mxu0 %v676_v29  ;;  %6815 = vmatprep.subr.bf16.mxu1 %v6814_v25  ;;  %v1768_v25 = vld [vmem:[#allocation10 + $0xdb8] sm:$0xff]  ;;  %v6738_v28 = vpack.c.bf16 %v1766_v23, %v1762_v21  ;;  %v6838_v45 = vpack.c.bf16 %v1776_v38, %v1772_v37  ;;  %v1797_v21 = vld [vmem:[#allocation10 + $0xea0] sm:$0xff]  ;;  %v1795_v23 = vld [vmem:[#allocation10 + $0xe90] sm:$0xff] }
 0x286   :  { %1700 = vmatmul.mubr.f32.gmra.mrb[6].mxu1 %v676_v29  ;;  %6721 = vmatpush1.bf16.msra.mxu0 %v6720_v30  ;;  %v1761_v29 = vld [vmem:[#allocation10 + $0xd80] sm:$0xff]  ;;  %v6834_v33 = vpack.c.bf16 %v1768_v25, %v1764_v24  ;;  %v1800_v16 = vld [vmem:[#allocation10 + $0xeb8] sm:$0xff]  ;;  %v1799_v25 = vld [vmem:[#allocation10 + $0xeb0] sm:$0xff] }
 0x287   :  { %1991 = vmatprep.mubr.f32.mxu0 %v1917_v46  ;;  %6817 = vmatpush1.bf16.msra.mxu1 %v6816_v34  ;;  %v1765_v30 = vld [vmem:[#allocation10 + $0xda0] sm:$0xff]  ;;  %v1767_v34 = vld [vmem:[#allocation10 + $0xdb0] sm:$0xff]  ;;  %v1832_v0 = vld [vmem:[#allocation10 + $0xfb8] sm:$0xff] }
 0x288   :  { %2145 = vmatprep.mubr.f32.mxu1 %v1917_v46  ;;  %6723 = vmatprep.subr.bf16.mxu0 %v6722_v39  ;;  %v6740_v39 = vpack.c.bf16 %v1765_v30, %v1761_v29  ;;  %v6836_v40 = vpack.c.bf16 %v1767_v34, %v1763_v32  ;;  %v1775_v46 = vld [vmem:[#allocation10 + $0xdf0] sm:$0xff]  ;;  %v1808_v29 = vld [vmem:[#allocation10 + $0xef8] sm:$0xff]  ;;  %v6756_v30 = vpack.c.bf16 %v1797_v21, %v1793_v20  ;;  %v1801_v34 = vld [vmem:[#allocation10 + $0xec0] sm:$0xff] }
 0x289   :  { %6819 = vmatprep.subr.bf16.mxu1 %v6818_v43  ;;  %v1773_v43 = vld [vmem:[#allocation10 + $0xde0] sm:$0xff]  ;;  %v6840_v51 = vpack.c.bf16 %v1775_v46, %v1771_v44  ;;  %v6852_v32 = vpack.c.bf16 %v1799_v25, %v1795_v23  ;;  %v1807_v38 = vld [vmem:[#allocation10 + $0xef0] sm:$0xff]  ;;  %v1840_v20 = vld [vmem:[#allocation10 + $0xff8] sm:$0xff] }
 0x28a   :  { %6725 = vmatpush1.bf16.msra.mxu0 %v6724_v47  ;;  %v1778_v47 = vld [vmem:[#allocation10 + $0xe08] sm:$0xff]  ;;  %v6744_v50 = vpack.c.bf16 %v1773_v43, %v1769_v42  ;;  %v1816_v42 = vld [vmem:[#allocation10 + $0xf38] sm:$0xff]  ;;  %v6760_v43 = vpack.c.bf16 %v1805_v35, %v1801_v34  ;;  %v6856_v44 = vpack.c.bf16 %v1807_v38, %v1803_v36  ;;  %v1809_v46 = vld [vmem:[#allocation10 + $0xf00] sm:$0xff] }
 0x28b   :  { %6821 = vmatpush1.bf16.msra.mxu1 %v6820_v15  ;;  %6727 = vmatprep.subr.bf16.mxu0 %v6726_v48  ;;  %v1782_v15 = vld [vmem:[#allocation10 + $0xe28] sm:$0xff]  ;;  %v1780_v48 = vld [vmem:[#allocation10 + $0xe18] sm:$0xff]  ;;  %v1825_v11 = vld [vmem:[#allocation10 + $0xf80] sm:$0xff] }
 0x28c   :  { %6823 = vmatprep.subr.bf16.mxu1 %v6822_v52  ;;  %v6746_v52 = vpack.c.bf16 %v1782_v15, %v1778_v47  ;;  %v6842_v58 = vpack.c.bf16 %v1784_v49, %v1780_v48  ;;  %v1813_v47 = vld [vmem:[#allocation10 + $0xf20] sm:$0xff]  ;;  %v1811_v15 = vld [vmem:[#allocation10 + $0xf10] sm:$0xff]  ;;  %v1844_v34 = vld [vmem:[#allocation10 + $0x1018] sm:$0xff] }
 0x28d   :  { %v1815_v49 = vld [vmem:[#allocation10 + $0xf30] sm:$0xff]  ;;  %v6764_v54 = vpack.c.bf16 %v1813_v47, %v1809_v46  ;;  %v1833_v25 = vld [vmem:[#allocation10 + $0xfc0] sm:$0xff]  ;;  %v1848_v35 = vld [vmem:[#allocation10 + $0x1038] sm:$0xff] }
 0x28e   :  { %6729 = vmatpush1.bf16.msra.mxu0 %v6728_v2  ;;  %v1786_v2 = vld [vmem:[#allocation10 + $0xe48] sm:$0xff]  ;;  %v6860_v57 = vpack.c.bf16 %v1815_v49, %v1811_v15  ;;  %v1856_v49 = vld [vmem:[#allocation10 + $0x1078] sm:$0xff] }
 0x28f   :  { %6825 = vmatpush1.bf16.msra.mxu1 %v6824_v3  ;;  %6731 = vmatprep.subr.bf16.mxu0 %v6730_v4  ;;  %v1790_v3 = vld [vmem:[#allocation10 + $0xe68] sm:$0xff]  ;;  %v1788_v4 = vld [vmem:[#allocation10 + $0xe58] sm:$0xff] }
 0x290   :  { %6827 = vmatprep.subr.bf16.mxu1 %v6826_v7  ;;  %v6750_v7 = vpack.c.bf16 %v1790_v3, %v1786_v2  ;;  %v6846_v10 = vpack.c.bf16 %v1792_v61, %v1788_v4  ;;  %v1821_v2 = vld [vmem:[#allocation10 + $0xf60] sm:$0xff]  ;;  %v1819_v3 = vld [vmem:[#allocation10 + $0xf50] sm:$0xff]  ;;  %v1706_v38 = vld [vmem:[#allocation2] sm:$0xfc] }
 0x291   :  { %v1823_v61 = vld [vmem:[#allocation10 + $0xf70] sm:$0xff]  ;;  %v6768_v8 = vpack.c.bf16 %v1821_v2, %v1817_v1  ;;  %v1850_v46 = vld [vmem:[#allocation10 + $0x1048] sm:$0xff]  ;;  %v1912_v15 = vrot.slane %v1706_v38, 2 }
 0x292   :  { %6733 = vmatpush1.bf16.msra.mxu0 %v6732_v12  ;;  %v1794_v12 = vld [vmem:[#allocation10 + $0xe88] sm:$0xff]  ;;  %v6864_v9 = vpack.c.bf16 %v1823_v61, %v1819_v3  ;;  %v1855_v2 = vld [vmem:[#allocation10 + $0x1070] sm:$0xff]  ;;  %v1860_v61 = vld [vmem:[#allocation10 + $0x1098] sm:$0xff] }
 0x293   :  { %6829 = vmatpush1.bf16.msra.mxu1 %v6828_v13  ;;  %6735 = vmatprep.subr.bf16.mxu0 %v6734_v14  ;;  %v1798_v13 = vld [vmem:[#allocation10 + $0xea8] sm:$0xff]  ;;  %v1796_v14 = vld [vmem:[#allocation10 + $0xe98] sm:$0xff] }
 0x294   :  { %6831 = vmatprep.subr.bf16.mxu1 %v6830_v19  ;;  %v6754_v19 = vpack.c.bf16 %v1798_v13, %v1794_v12  ;;  %v6850_v24 = vpack.c.bf16 %v1800_v16, %v1796_v14  ;;  %v1829_v12 = vld [vmem:[#allocation10 + $0xfa0] sm:$0xff]  ;;  %v1827_v13 = vld [vmem:[#allocation10 + $0xf90] sm:$0xff]  ;;  %v1854_v47 = vld [vmem:[#allocation10 + $0x1068] sm:$0xff] }
 0x295   :  { %v1831_v16 = vld [vmem:[#allocation10 + $0xfb0] sm:$0xff]  ;;  %v6772_v21 = vpack.c.bf16 %v1829_v12, %v1825_v11  ;;  %v1858_v3 = vld [vmem:[#allocation10 + $0x1088] sm:$0xff] }
 0x296   :  { %6737 = vmatpush1.bf16.msra.mxu0 %v6736_v26  ;;  %v1802_v26 = vld [vmem:[#allocation10 + $0xec8] sm:$0xff]  ;;  %v6868_v23 = vpack.c.bf16 %v1831_v16, %v1827_v13  ;;  %v1863_v12 = vld [vmem:[#allocation10 + $0x10b0] sm:$0xff]  ;;  %v1868_v16 = vld [vmem:[#allocation10 + $0x10d8] sm:$0xff] }
 0x297   :  { %6833 = vmatpush1.bf16.msra.mxu1 %v6832_v27  ;;  %6739 = vmatprep.subr.bf16.mxu0 %v6738_v28  ;;  %v1806_v27 = vld [vmem:[#allocation10 + $0xee8] sm:$0xff]  ;;  %v1804_v28 = vld [vmem:[#allocation10 + $0xed8] sm:$0xff] }
 0x298   :  { %6835 = vmatprep.subr.bf16.mxu1 %v6834_v33  ;;  %v6758_v33 = vpack.c.bf16 %v1806_v27, %v1802_v26  ;;  %v6854_v37 = vpack.c.bf16 %v1808_v29, %v1804_v28  ;;  %v1837_v26 = vld [vmem:[#allocation10 + $0xfe0] sm:$0xff]  ;;  %v1835_v27 = vld [vmem:[#allocation10 + $0xfd0] sm:$0xff]  ;;  %v1866_v13 = vld [vmem:[#allocation10 + $0x10c8] sm:$0xff] }
 0x299   :  { %v1839_v29 = vld [vmem:[#allocation10 + $0xff0] sm:$0xff]  ;;  %v6776_v36 = vpack.c.bf16 %v1837_v26, %v1833_v25 }
 0x29a   :  { %6741 = vmatpush1.bf16.msra.mxu0 %v6740_v39  ;;  %v1810_v39 = vld [vmem:[#allocation10 + $0xf08] sm:$0xff]  ;;  %v1871_v26 = vld [vmem:[#allocation10 + $0x10f0] sm:$0xff] }
 0x29b   :  { %6837 = vmatpush1.bf16.msra.mxu1 %v6836_v40  ;;  %6743 = vmatprep.subr.bf16.mxu0 %v6742_v41  ;;  %v1814_v40 = vld [vmem:[#allocation10 + $0xf28] sm:$0xff]  ;;  %v1812_v41 = vld [vmem:[#allocation10 + $0xf18] sm:$0xff] }
 0x29c   :  { %6839 = vmatprep.subr.bf16.mxu1 %v6838_v45  ;;  %v6762_v45 = vpack.c.bf16 %v1814_v40, %v1810_v39  ;;  %v6858_v48 = vpack.c.bf16 %v1816_v42, %v1812_v41  ;;  %v6874_v41 = vpack.c.bf16 %v1848_v35, %v1844_v34  ;;  %v1841_v42 = vld [vmem:[#allocation10 + $0x1000] sm:$0xff] }
 0x29d   :  { %v1873_v35 = vld [vmem:[#allocation10 + $0x1100] sm:$0xff] }
 0x29e   :  { %6745 = vmatpush1.bf16.msra.mxu0 %v6744_v50  ;;  %v1818_v50 = vld [vmem:[#allocation10 + $0xf48] sm:$0xff] }
 0x29f   :  { %6841 = vmatpush1.bf16.msra.mxu1 %v6840_v51  ;;  %6747 = vmatprep.subr.bf16.mxu0 %v6746_v52  ;;  %v1822_v51 = vld [vmem:[#allocation10 + $0xf68] sm:$0xff]  ;;  %v1820_v52 = vld [vmem:[#allocation10 + $0xf58] sm:$0xff] }
 0x2a0   :  { %6843 = vmatprep.subr.bf16.mxu1 %v6842_v58  ;;  %v6766_v58 = vpack.c.bf16 %v1822_v51, %v1818_v50  ;;  %v6862_v4 = vpack.c.bf16 %v1824_v53, %v1820_v52  ;;  %v6782_v53 = vpack.c.bf16 %v1854_v47, %v1850_v46  ;;  %v1881_v47 = vld [vmem:[#allocation10 + $0x1140] sm:$0xff] }
 0x2a2   :  { %6749 = vmatpush1.bf16.msra.mxu0 %v6748_v5  ;;  %v1826_v5 = vld [vmem:[#allocation10 + $0xf88] sm:$0xff] }
 0x2a3   :  { %6845 = vmatpush1.bf16.msra.mxu1 %v6844_v6  ;;  %6751 = vmatprep.subr.bf16.mxu0 %v6750_v7  ;;  %v1830_v6 = vld [vmem:[#allocation10 + $0xfa8] sm:$0xff]  ;;  %v1828_v7 = vld [vmem:[#allocation10 + $0xf98] sm:$0xff] }
 0x2a4   :  { %6847 = vmatprep.subr.bf16.mxu1 %v6846_v10  ;;  %v6770_v10 = vpack.c.bf16 %v1830_v6, %v1826_v5  ;;  %v6866_v14 = vpack.c.bf16 %v1832_v0, %v1828_v7  ;;  %v1864_v5 = vld [vmem:[#allocation10 + $0x10b8] sm:$0xff] }
 0x2a5   :  { %v6882_v11 = vpack.c.bf16 %v1864_v5, %v1860_v61  ;;  %v1895_v5 = vld [vmem:[#allocation10 + $0x11b0] sm:$0xff] }
 0x2a6   :  { %6753 = vmatpush1.bf16.msra.mxu0 %v6752_v17  ;;  %v1834_v17 = vld [vmem:[#allocation10 + $0xfc8] sm:$0xff] }
 0x2a7   :  { %6849 = vmatpush1.bf16.msra.mxu1 %v6848_v18  ;;  %6755 = vmatprep.subr.bf16.mxu0 %v6754_v19  ;;  %v1838_v18 = vld [vmem:[#allocation10 + $0xfe8] sm:$0xff]  ;;  %v1836_v19 = vld [vmem:[#allocation10 + $0xfd8] sm:$0xff] }
 0x2a8   :  { %6851 = vmatprep.subr.bf16.mxu1 %v6850_v24  ;;  %v6774_v24 = vpack.c.bf16 %v1838_v18, %v1834_v17  ;;  %v6870_v28 = vpack.c.bf16 %v1840_v20, %v1836_v19  ;;  %v1872_v17 = vld [vmem:[#allocation10 + $0x10f8] sm:$0xff] }
 0x2a9   :  { %v8133_v18 = vld [vmem:[#allocation3] sm:$0xff]  ;;  %v6886_v25 = vpack.c.bf16 %v1872_v17, %v1868_v16 }
 0x2aa   :  { %6757 = vmatpush1.bf16.msra.mxu0 %v6756_v30  ;;  %v1842_v30 = vld [vmem:[#allocation10 + $0x1008] sm:$0xff]  ;;  %v1899_v16 = vld [vmem:[#allocation10 + $0x11d0] sm:$0xff]  ;;  %149 = vst.msk [vmem:[#allocation4 + $0x10] sm:$0xff] %vm148_vm0, %v8133_v18  ;;  %152 = vst.msk [vmem:[#allocation4 + $0x28] sm:$0xff] %vm148_vm0, %v8133_v18 }
 0x2ab   :  { %6853 = vmatpush1.bf16.msra.mxu1 %v6852_v32  ;;  %6759 = vmatprep.subr.bf16.mxu0 %v6758_v33  ;;  %v1846_v32 = vld [vmem:[#allocation10 + $0x1028] sm:$0xff]  ;;  %v1709_v33 = vld [vmem:[#allocation2 + $0x18] sm:$0xf]  ;;  %v1903_v17 = vld [vmem:[#allocation10 + $0x11f0] sm:$0xff]  ;;  %155 = vst.msk [vmem:[#allocation4 + $0x40] sm:$0xff] %vm148_vm0, %v8133_v18 }
 0x2ac   :  { %6855 = vmatprep.subr.bf16.mxu1 %v6854_v37  ;;  %v6872_v37 = vpack.c.bf16 %v1839_v29, %v1835_v27  ;;  %v6778_v39 = vpack.c.bf16 %v1846_v32, %v1842_v30  ;;  %v1913_v40 = vrot.slane %v1709_v33, 2  ;;  %v1874_v27 = vld [vmem:[#allocation10 + $0x1108] sm:$0xff]  ;;  %v1876_v29 = vld [vmem:[#allocation10 + $0x1118] sm:$0xff]  ;;  %158 = vst.msk [vmem:[#allocation4 + $0x58] sm:$0xff] %vm148_vm0, %v8133_v18 }
 0x2ad   :  { %v1880_v30 = vld [vmem:[#allocation10 + $0x1138] sm:$0xff]  ;;  %145 = vst.msk [vmem:[#allocation3 + $0x40] sm:$0xf] %vm144_vm2, %v8133_v18 }
 0x2ae   :  { %6761 = vmatpush1.bf16.msra.mxu0 %v6760_v43  ;;  %v1845_v43 = vld [vmem:[#allocation10 + $0x1020] sm:$0xff]  ;;  %v1914_v51 = vsel %vm1911_vm6, %v1912_v15, %v1913_v40  ;;  %v6890_v38 = vpack.c.bf16 %v1880_v30, %v1876_v29  ;;  %v8148_v29 = vmul.u32.u64.low 2863311531, %v8038_v56  ;;  %v8149_v30 = vmul.u32.u64.high 2863311531, %v8038_v56, %v8148_v29 }
 0x2af   :  { %6857 = vmatpush1.bf16.msra.mxu1 %v6856_v44  ;;  %6763 = vmatprep.subr.bf16.mxu0 %v6762_v45  ;;  %v1843_v44 = vld [vmem:[#allocation10 + $0x1010] sm:$0xff]  ;;  %v6780_v50 = vpack.c.bf16 %v1845_v43, %v1841_v42  ;;  %v1884_v42 = vld [vmem:[#allocation10 + $0x1158] sm:$0xff]  ;;  %v1885_v15 = vld [vmem:[#allocation10 + $0x1160] sm:$0xff] }
 0x2b0   :  { %6859 = vmatprep.subr.bf16.mxu1 %v6858_v48  ;;  %v1847_v45 = vld [vmem:[#allocation10 + $0x1030] sm:$0xff]  ;;  %v1852_v48 = vld [vmem:[#allocation10 + $0x1058] sm:$0xff] }
 0x2b1   :  { %v6876_v52 = vpack.c.bf16 %v1847_v45, %v1843_v44  ;;  %v6878_v1 = vpack.c.bf16 %v1856_v49, %v1852_v48  ;;  %v1888_v43 = vld [vmem:[#allocation10 + $0x1178] sm:$0xff]  ;;  %v1883_v48 = vld [vmem:[#allocation10 + $0x1150] sm:$0xff] }
 0x2b2   :  { %6765 = vmatpush1.bf16.msra.mxu0 %v6764_v54  ;;  %v1849_v54 = vld [vmem:[#allocation10 + $0x1040] sm:$0xff]  ;;  %v6894_v49 = vpack.c.bf16 %v1888_v43, %v1884_v42 }
 0x2b3   :  { %6861 = vmatpush1.bf16.msra.mxu1 %v6860_v57  ;;  %6767 = vmatprep.subr.bf16.mxu0 %v6766_v58  ;;  %v1853_v57 = vld [vmem:[#allocation10 + $0x1060] sm:$0xff]  ;;  %v1851_v58 = vld [vmem:[#allocation10 + $0x1050] sm:$0xff] }
 0x2b4   :  { %6863 = vmatprep.subr.bf16.mxu1 %v6862_v4  ;;  %v1862_v4 = vld [vmem:[#allocation10 + $0x10a8] sm:$0xff]  ;;  %v6784_v6 = vpack.c.bf16 %v1853_v57, %v1849_v54  ;;  %v6880_v7 = vpack.c.bf16 %v1855_v2, %v1851_v58  ;;  %v1896_v54 = vld [vmem:[#allocation10 + $0x11b8] sm:$0xff]  ;;  %v6800_v57 = vpack.c.bf16 %v1885_v15, %v1881_v47  ;;  %v1889_v2 = vld [vmem:[#allocation10 + $0x1180] sm:$0xff] }
 0x2b5   :  { %v6786_v0 = vpack.c.bf16 %v1862_v4, %v1858_v3  ;;  %v1893_v3 = vld [vmem:[#allocation10 + $0x11a0] sm:$0xff]  ;;  %v1891_v4 = vld [vmem:[#allocation10 + $0x1190] sm:$0xff] }
 0x2b6   :  { %6769 = vmatpush1.bf16.msra.mxu0 %v6768_v8  ;;  %v1857_v8 = vld [vmem:[#allocation10 + $0x1080] sm:$0xff] }
 0x2b7   :  { %6865 = vmatpush1.bf16.msra.mxu1 %v6864_v9  ;;  %6771 = vmatprep.subr.bf16.mxu0 %v6770_v10  ;;  %v1861_v9 = vld [vmem:[#allocation10 + $0x10a0] sm:$0xff]  ;;  %v1859_v10 = vld [vmem:[#allocation10 + $0x1090] sm:$0xff] }
 0x2b8   :  { %6867 = vmatprep.subr.bf16.mxu1 %v6866_v14  ;;  %v1870_v14 = vld [vmem:[#allocation10 + $0x10e8] sm:$0xff]  ;;  %v6884_v19 = vpack.c.bf16 %v1863_v12, %v1859_v10  ;;  %v6900_v10 = vpack.c.bf16 %v1895_v5, %v1891_v4  ;;  %v1897_v12 = vld [vmem:[#allocation10 + $0x11c0] sm:$0xff] }
 0x2b9   :  { %v6790_v20 = vpack.c.bf16 %v1870_v14, %v1866_v13  ;;  %v1901_v13 = vld [vmem:[#allocation10 + $0x11e0] sm:$0xff] }
 0x2ba   :  { %6773 = vmatpush1.bf16.msra.mxu0 %v6772_v21  ;;  %v1865_v21 = vld [vmem:[#allocation10 + $0x10c0] sm:$0xff] }
 0x2bb   :  { %6869 = vmatpush1.bf16.msra.mxu1 %v6868_v23  ;;  %6775 = vmatprep.subr.bf16.mxu0 %v6774_v24  ;;  %v1869_v23 = vld [vmem:[#allocation10 + $0x10e0] sm:$0xff]  ;;  %v1867_v24 = vld [vmem:[#allocation10 + $0x10d0] sm:$0xff] }
 0x2bc   :  { %6871 = vmatprep.subr.bf16.mxu1 %v6870_v28  ;;  %v1878_v28 = vld [vmem:[#allocation10 + $0x1128] sm:$0xff]  ;;  %v6792_v32 = vpack.c.bf16 %v1869_v23, %v1865_v21  ;;  %v6888_v33 = vpack.c.bf16 %v1871_v26, %v1867_v24  ;;  %v1708_v21 = vld [vmem:[#allocation2 + $0x10] sm:$0xfc]  ;;  %v8141_v26 = vadd.s32 8, %v8038_v56 }
 0x2bd   :  { %v6794_v34 = vpack.c.bf16 %v1878_v28, %v1874_v27  ;;  %v1918_v24 = vrot.slane %v1708_v21, 2 }
 0x2be   :  { %6777 = vmatpush1.bf16.msra.mxu0 %v6776_v36  ;;  %v1877_v36 = vld [vmem:[#allocation10 + $0x1120] sm:$0xff]  ;;  %v8144_v27 = vmul.u32.u64.low 2863311531, %v8141_v26  ;;  %v8145_v28 = vmul.u32.u64.high 2863311531, %v8141_v26, %v8144_v27 }
 0x2bf   :  { %6873 = vmatpush1.bf16.msra.mxu1 %v6872_v37  ;;  %6779 = vmatprep.subr.bf16.mxu0 %v6778_v39  ;;  %v1875_v37 = vld [vmem:[#allocation10 + $0x1110] sm:$0xff]  ;;  %v6796_v44 = vpack.c.bf16 %v1877_v36, %v1873_v35 }
 0x2c0   :  { %6875 = vmatprep.subr.bf16.mxu1 %v6874_v41  ;;  %v1879_v39 = vld [vmem:[#allocation10 + $0x1130] sm:$0xff]  ;;  %v1886_v41 = vld [vmem:[#allocation10 + $0x1168] sm:$0xff] }
 0x2c1   :  { %1992 = vmatmul.mubr.f32.vlgmr.msra.gmra.mrb[4].mxu0 %v1914_v51  ;;  %v6892_v45 = vpack.c.bf16 %v1879_v39, %v1875_v37 }
 0x2c2   :  { %2146 = vmatmul.mubr.f32.vlgmr.msra.gmra.mrb[4].mxu1 %v1914_v51  ;;  %1997 = vmatprep.mubr.f32.mxu0 %v8124_v31  ;;  %v1890_v51 = vld [vmem:[#allocation10 + $0x1188] sm:$0xff] }
 0x2c3   :  { %6781 = vmatpush1.bf16.msra.mxu0 %v6780_v50  ;;  %2151 = vmatprep.mubr.f32.mxu1 %v8124_v31  ;;  %v6788_v31 = vpack.c.bf16 %v1861_v9, %v1857_v8  ;;  %v1887_v50 = vld [vmem:[#allocation10 + $0x1170] sm:$0xff]  ;;  %v1904_v8 = vld [vmem:[#allocation10 + $0x11f8] sm:$0xff]  ;;  %v6804_v9 = vpack.c.bf16 %v1893_v3, %v1889_v2 }
 0x2c4   :  { %6877 = vmatpush1.bf16.msra.mxu1 %v6876_v52  ;;  %6783 = vmatprep.subr.bf16.mxu0 %v6782_v53  ;;  %v1894_v52 = vld [vmem:[#allocation10 + $0x11a8] sm:$0xff]  ;;  %v1892_v53 = vld [vmem:[#allocation10 + $0x1198] sm:$0xff]  ;;  %v6896_v58 = vpack.c.bf16 %v1887_v50, %v1883_v48 }
 0x2c5   :  { %1998 = vmatmul.mubr.f32.gmra.mrb[6].mxu0 %v1913_v40  ;;  %6879 = vmatprep.subr.bf16.mxu1 %v6878_v1  ;;  %v6802_v1 = vpack.c.bf16 %v1894_v52, %v1890_v51  ;;  %v6898_v61 = vpack.c.bf16 %v1896_v54, %v1892_v53 }
 0x2c6   :  { %2152 = vmatmul.mubr.f32.gmra.mrb[6].mxu1 %v1913_v40  ;;  %2068 = vmatprep.mubr.f32.mxu0 %v8133_v18  ;;  %v1882_v40 = vld [vmem:[#allocation10 + $0x1148] sm:$0xff] }
 0x2c7   :  { %6785 = vmatpush1.bf16.msra.mxu0 %v6784_v6  ;;  %2222 = vmatprep.mubr.f32.mxu1 %v8133_v18  ;;  %v6798_v46 = vpack.c.bf16 %v1886_v41, %v1882_v40  ;;  %v1898_v6 = vld [vmem:[#allocation10 + $0x11c8] sm:$0xff]  ;;  %v670_v40 = vld [vmem:[#allocation12] sm:$0xf] }
 0x2c8   :  { %6881 = vmatpush1.bf16.msra.mxu1 %v6880_v7  ;;  %6787 = vmatprep.subr.bf16.mxu0 %v6786_v0  ;;  %v1902_v7 = vld [vmem:[#allocation10 + $0x11e8] sm:$0xff]  ;;  %v1900_v0 = vld [vmem:[#allocation10 + $0x11d8] sm:$0xff]  ;;  %v2251_v15 = vrot.slane %v670_v40, %v8047_v62 }
 0x2c9   :  { %6883 = vmatprep.subr.bf16.mxu1 %v6882_v11  ;;  %v6806_v11 = vpack.c.bf16 %v1902_v7, %v1898_v6  ;;  %v6902_v14 = vpack.c.bf16 %v1904_v8, %v1900_v0 }
 0x2cb   :  { %6789 = vmatpush1.bf16.msra.mxu0 %v6788_v31  ;;  %v1711_v31 = vld [vmem:[#allocation2 + $0x28] sm:$0xf] }
 0x2cc   :  { %6885 = vmatpush1.bf16.msra.mxu1 %v6884_v19  ;;  %6791 = vmatprep.subr.bf16.mxu0 %v6790_v20  ;;  %v6808_v19 = vpack.c.bf16 %v1901_v13, %v1897_v12  ;;  %v6904_v20 = vpack.c.bf16 %v1903_v17, %v1899_v16  ;;  %v1919_v23 = vrot.slane %v1711_v31, 2 }
 0x2cd   :  { %6887 = vmatprep.subr.bf16.mxu1 %v6886_v25 }
 0x2ce   :  { %v1920_v25 = vsel %vm1911_vm6, %v1918_v24, %v1919_v23 }
 0x2cf   :  { %6793 = vmatpush1.bf16.msra.mxu0 %v6792_v32  ;;  %v2292_v32 = vshrl.u32 %v8145_v28, 2 }
 0x2d0   :  { %6889 = vmatpush1.bf16.msra.mxu1 %v6888_v33  ;;  %6795 = vmatprep.subr.bf16.mxu0 %v6794_v34  ;;  %v2281_v33 = vshrl.u32 %v8149_v30, 2 }
 0x2d1   :  { %6891 = vmatprep.subr.bf16.mxu1 %v6890_v38  ;;  %v2293_v34 = vmul.u32 6, %v2292_v32 }
 0x2d2   :  { %v2282_v35 = vmul.u32 6, %v2281_v33 }
 0x2d3   :  { %6797 = vmatpush1.bf16.msra.mxu0 %v6796_v44  ;;  %v2294_v36 = vsub.s32 %v8141_v26, %v2293_v34  ;;  %v2247_v44 = vrot.slane %v670_v40, %v8041_v59 }
 0x2d4   :  { %6893 = vmatpush1.bf16.msra.mxu1 %v6892_v45  ;;  %6799 = vmatprep.subr.bf16.mxu0 %v6798_v46  ;;  %v2283_v37 = vsub.s32 %v8038_v56, %v2282_v35  ;;  %v2255_v46 = vrot.slane %v670_v40, %v8044_v60 }
 0x2d5   :  { %6895 = vmatprep.subr.bf16.mxu1 %v6894_v49  ;;  %vm2298_vm7 = vcmp.ne.s32.totalorder %v2294_v36, 0  ;;  %vm2300_vm8 = vcmp.lt.s32.totalorder %v2294_v36, 0  ;;  %v2304_v38 = vadd.s32 6, %v2294_v36  ;;  %v2259_v49 = vrot.slane %v670_v40, %v8050_v63 }
 0x2d6   :  { %vm2297_vm9 = vcmp.ne.s32.totalorder %v2283_v37, 0  ;;  %vm2299_vm10 = vcmp.lt.s32.totalorder %v2283_v37, 0  ;;  %v2303_v39 = vadd.s32 6, %v2283_v37  ;;  %vm2302_vm11 = vmand %vm2300_vm8, %vm2298_vm7 }
 0x2d7   :  { %6801 = vmatpush1.bf16.msra.mxu0 %v6800_v57  ;;  %vm2301_vm12 = vmand %vm2299_vm10, %vm2297_vm9  ;;  %v2306_v41 = vsel %vm2302_vm11, %v2304_v38, %v2294_v36 }
 0x2d8   :  { %6897 = vmatpush1.bf16.msra.mxu1 %v6896_v58  ;;  %6803 = vmatprep.subr.bf16.mxu0 %v6802_v1  ;;  %v2305_v42 = vsel %vm2301_vm12, %v2303_v39, %v2283_v37  ;;  %vm2308_vm13 = vcmp.lt.s32.totalorder %v2306_v41, 4  ;;  %vm8328_vm7 = vmand %vm2480_vm3, %vm2481_vm4 }
 0x2d9   :  { %6899 = vmatprep.subr.bf16.mxu1 %v6898_v61  ;;  %vm2307_vm14 = vcmp.lt.s32.totalorder %v2305_v42, 4  ;;  %v8162_v52 = vsel %vm2308_vm13, 1.0, %v8133_v18 }
 0x2da   :  { %v8165_v53 = vsel %vm2307_vm14, 1.0, %v8133_v18 }
 0x2db   :  { %6805 = vmatpush1.bf16.msra.mxu0 %v6804_v9 }
 0x2dc   :  { %6901 = vmatpush1.bf16.msra.mxu1 %v6900_v10  ;;  %6807 = vmatprep.subr.bf16.mxu0 %v6806_v11 }
 0x2dd   :  { %6903 = vmatprep.subr.bf16.mxu1 %v6902_v14 }
 0x2df   :  { %6809 = vmatpush1.bf16.msra.mxu0 %v6808_v19 }
 0x2e0   :  { %6905 = vmatpush1.bf16.msra.mxu1 %v6904_v20 }
 0x2e2   :  { %2069 = vmatmul.mubr.f32.vlgmr.msra.gmra.mrb[4].mxu0 %v1920_v25 }
 0x2e3   :  { %2223 = vmatmul.mubr.f32.vlgmr.msra.gmra.mrb[4].mxu1 %v1920_v25  ;;  %2074 = vmatprep.mubr.f32.mxu0 %v8133_v18 }
 0x2e4   :  { %2228 = vmatprep.mubr.f32.mxu1 %v8133_v18 }
 0x2e6   :  { %2075 = vmatmul.mubr.f32.gmra.mrb[6].mxu0 %v1919_v23 }
 0x2e7   :  { %2229 = vmatmul.mubr.f32.gmra.mrb[6].mxu1 %v1919_v23 }
 0x3b5   :  { %v2070_v43 = vpop.f32.mrb[4].mxu0 }
 0x3b6   :  { %v2224_v45 = vpop.f32.mrb[4].mxu1  ;;  %v2072_v47 = vpop.f32.mrb[5].mxu0  ;;  %v8159_v50 = vadd.f32 %v2247_v44, %v2070_v43 }
 0x3b7   :  { %v2226_v48 = vpop.f32.mrb[5].mxu1  ;;  %v8167_v54 = vadd.f32 %v2255_v46, %v2224_v45  ;;  %v2265_v57 = vadd.f32 %v2251_v15, %v2072_v47 }
 0x3b8   :  { %v2267_v3 = vadd.f32 %v2259_v49, %v2226_v48  ;;  %v2313_v0 = vmul.f32 %v8165_v53, %v8159_v50 }
 0x3b9   :  { %v2076_v51 = vpop.f32.mrb[6].mxu0  ;;  %v2315_v10 = vmul.f32 %v8165_v53, %v8167_v54  ;;  %v2314_v11 = vmul.f32 %v8165_v53, %v2265_v57 }
 0x3ba   :  { %v8169_v58 = vadd.f32 %v2247_v44, %v2076_v51  ;;  %v2230_v1 = vpop.f32.mrb[6].mxu1  ;;  %v2078_v2 = vpop.f32.mrb[7].mxu0  ;;  %v2316_v14 = vmul.f32 %v8165_v53, %v2267_v3 }
 0x3bb   :  { %v2270_v4 = vadd.f32 %v2255_v46, %v2230_v1  ;;  %v2269_v61 = vadd.f32 %v2251_v15, %v2078_v2  ;;  %v2232_v5 = vpop.f32.mrb[7].mxu1 }
 0x3bc   :  { %v2317_v6 = vmul.f32 %v8162_v52, %v8169_v58  ;;  %v2271_v7 = vadd.f32 %v2259_v49, %v2232_v5 }
 0x3bd   :  { %v2319_v8 = vmul.f32 %v8162_v52, %v2270_v4  ;;  %v2318_v9 = vmul.f32 %v8162_v52, %v2269_v61 }
 0x3be   :  { %v2322_v12 = vsel %vm2321_vm15, %v2317_v6, 0.0  ;;  %v2320_v13 = vmul.f32 %v8162_v52, %v2271_v7 }
 0x3bf   :  { %v2323_v16 = vadd.f32 %v2322_v12, %v2313_v0  ;;  %v2338_v17 = vsel %vm2321_vm15, %v2319_v8, 0.0  ;;  %v2330_v31 = vsel %vm2321_vm15, %v2318_v9, 0.0 }
 0x3c0   :  { %v2339_v19 = vadd.f32 %v2338_v17, %v2315_v10  ;;  %v2331_v20 = vadd.f32 %v2330_v31, %v2314_v11  ;;  %v2346_v21 = vsel %vm2321_vm15, %v2320_v13, 0.0 }
 0x3c1   :  { %v2324_v23 = vrot.slane %v2323_v16, 4  ;;  %v2347_v24 = vadd.f32 %v2346_v21, %v2316_v14 }
 0x3c2   :  { %v2340_v25 = vrot.slane %v2339_v19, 4  ;;  %v2332_v27 = vrot.slane %v2331_v20, 4 }
 0x3c3   :  { %v2325_v28 = vadd.f32 %v2324_v23, %v2323_v16  ;;  %v2348_v29 = vrot.slane %v2347_v24, 4 }
 0x3c4   :  { %v2341_v30 = vadd.f32 %v2340_v25, %v2339_v19  ;;  %v2333_v32 = vadd.f32 %v2332_v27, %v2331_v20 }
 0x3c5   :  { %v2326_v33 = vrot.slane %v2325_v28, 2  ;;  %v2349_v34 = vadd.f32 %v2348_v29, %v2347_v24 }
 0x3c6   :  { %v2342_v35 = vrot.slane %v2341_v30, 2  ;;  %v2334_v36 = vrot.slane %v2333_v32, 2 }
 0x3c7   :  { %v2327_v37 = vadd.f32 %v2326_v33, %v2325_v28  ;;  %v2350_v38 = vrot.slane %v2349_v34, 2 }
 0x3c8   :  { %v2343_v39 = vadd.f32 %v2342_v35, %v2341_v30  ;;  %v2335_v40 = vadd.f32 %v2334_v36, %v2333_v32 }
 0x3c9   :  { %v2351_v41 = vadd.f32 %v2350_v38, %v2349_v34  ;;  %v2328_v42 = vrot.slane %v2327_v37, 1 }
 0x3ca   :  { %v2336_v43 = vrot.slane %v2335_v40, 1  ;;  %v2344_v44 = vrot.slane %v2343_v39, 1 }
 0x3cb   :  { %v2329_v45 = vadd.f32 %v2328_v42, %v2327_v37  ;;  %v2352_v46 = vrot.slane %v2351_v41, 1 }
 0x3cc   :  { %v2337_v47 = vadd.f32 %v2336_v43, %v2335_v40  ;;  %v2345_v15 = vadd.f32 %v2344_v44, %v2343_v39 }
 0x3cd   :  { %v2353_v48 = vadd.f32 %v2352_v46, %v2351_v41 }
 0x3ce   :  { %v2354_v49 = vadd.f32 %v2345_v15, %v2329_v45 }
 0x3cf   :  { %v2355_v51 = vadd.f32 %v2353_v48, %v2337_v47 }
 0x3d1   :  { %v2356_v1 = vadd.f32 %v2355_v51, %v2354_v49 }
 0x3d3   :  { %2357 = vrot.lane.b32.xlu0 %v2356_v1, %s7844_s8 }
 0x445   :  { %v2358_v2 = vpop.permute.xlu0 %2357 }
 0x446   :  { %v2361_v5 = vadd.f32 %v2358_v2, %v2356_v1 }
 0x448   :  { %2362 = vrot.lane.b32.xlu1 %v2361_v5, %s7835_s10 }
 0x4ba   :  { %v2363_v6 = vpop.permute.xlu1 %2362 }
 0x4bb   :  { %v2364_v0 = vadd.f32 %v2363_v6, %v2361_v5 }
 0x4bd   :  { %v2365_v8 = vmul.f32 0.0078125, %v2364_v0 }
 0x4bf   :  { %v2369_v9 = vrot.slane %v2365_v8, %v8041_v59 }
 0x4c1   :  { %v8190_v10 = vsub.f32 %v8159_v50, %v2369_v9  ;;  %v8192_v11 = vsub.f32 %v2265_v57, %v2369_v9  ;;  %v8195_v12 = vsub.f32 %v8167_v54, %v2369_v9  ;;  %v8197_v13 = vsub.f32 %v2267_v3, %v2369_v9 }
 0x4c2   :  { %v8200_v14 = vsub.f32 %v8169_v58, %v2369_v9  ;;  %v8202_v16 = vsub.f32 %v2269_v61, %v2369_v9  ;;  %v8204_v17 = vsub.f32 %v2270_v4, %v2369_v9  ;;  %v8206_v31 = vsub.f32 %v2271_v7, %v2369_v9 }
 0x4c3   :  { %v2378_v50 = vmul.f32 %v8190_v10, %v8190_v10  ;;  %v2379_v57 = vmul.f32 %v8192_v11, %v8192_v11  ;;  %v2380_v54 = vmul.f32 %v8195_v12, %v8195_v12  ;;  %v2381_v3 = vmul.f32 %v8197_v13, %v8197_v13 }
 0x4c4   :  { %v2382_v58 = vmul.f32 %v8200_v14, %v8200_v14  ;;  %v2383_v4 = vmul.f32 %v8202_v16, %v8202_v16  ;;  %v2384_v61 = vmul.f32 %v8204_v17, %v8204_v17  ;;  %v2385_v7 = vmul.f32 %v8206_v31, %v8206_v31 }
 0x4c5   :  { %v2386_v19 = vmul.f32 %v8165_v53, %v2378_v50  ;;  %v2387_v20 = vmul.f32 %v8165_v53, %v2379_v57  ;;  %v2388_v21 = vmul.f32 %v8165_v53, %v2380_v54  ;;  %v2389_v23 = vmul.f32 %v8165_v53, %v2381_v3 }
 0x4c6   :  { %v2390_v24 = vmul.f32 %v8162_v52, %v2382_v58  ;;  %v2391_v25 = vmul.f32 %v8162_v52, %v2383_v4  ;;  %v2392_v27 = vmul.f32 %v8162_v52, %v2384_v61  ;;  %v2393_v28 = vmul.f32 %v8162_v52, %v2385_v7  ;;  %v2921_v61 = vld [vmem:[#allocation13 + $0x508] sm:$0xff] }
 0x4c7   :  { %v2925_v7 = vld [vmem:[#allocation13 + $0x528] sm:$0xff] }
 0x4c8   :  { %v2394_v29 = vsel %vm2321_vm15, %v2390_v24, 0.0  ;;  %v2402_v30 = vsel %vm2321_vm15, %v2391_v25, 0.0  ;;  %v2410_v32 = vsel %vm2321_vm15, %v2392_v27, 0.0  ;;  %v2418_v33 = vsel %vm2321_vm15, %v2393_v28, 0.0  ;;  %v2924_v24 = vld [vmem:[#allocation13 + $0x520] sm:$0xff]  ;;  %v2922_v28 = vld [vmem:[#allocation13 + $0x510] sm:$0xff] }
 0x4c9   :  { %v2395_v34 = vadd.f32 %v2394_v29, %v2386_v19  ;;  %v2403_v35 = vadd.f32 %v2402_v30, %v2387_v20  ;;  %v2411_v36 = vadd.f32 %v2410_v32, %v2388_v21  ;;  %v2419_v53 = vadd.f32 %v2418_v33, %v2389_v23  ;;  %v2923_v19 = vld [vmem:[#allocation13 + $0x518] sm:$0xff]  ;;  %v2920_v23 = vld [vmem:[#allocation13 + $0x500] sm:$0xff]  ;;  %v2926_v29 = vld [vmem:[#allocation13 + $0x530] sm:$0xff] }
 0x4ca   :  { %v6906_v20 = vpack.c.bf16 %v2925_v7, %v2921_v61  ;;  %v2927_v21 = vld [vmem:[#allocation13 + $0x538] sm:$0xff]  ;;  %v6908_v27 = vpack.c.bf16 %v2924_v24, %v2920_v23  ;;  %v2929_v30 = vld [vmem:[#allocation13 + $0x548] sm:$0xff]  ;;  %v6988_v32 = vpack.c.bf16 %v2926_v29, %v2922_v28  ;;  %v2954_v28 = vld [vmem:[#allocation13 + $0x610] sm:$0xff] }
 0x4cb   :  { %v2396_v37 = vrot.slane %v2395_v34, 4  ;;  %v2404_v38 = vrot.slane %v2403_v35, 4  ;;  %v2412_v39 = vrot.slane %v2411_v36, 4  ;;  %v2420_v40 = vrot.slane %v2419_v53, 4  ;;  %v2933_v33 = vld [vmem:[#allocation13 + $0x568] sm:$0xff] }
 0x4cc   :  { %v6986_v25 = vpack.c.bf16 %v2927_v21, %v2923_v19  ;;  %6907 = vmatprep.subr.bf16.mxu0 %v6906_v20  ;;  %v2953_v61 = vld [vmem:[#allocation13 + $0x608] sm:$0xff]  ;;  %v2955_v19 = vld [vmem:[#allocation13 + $0x618] sm:$0xff] }
 0x4cd   :  { %v2397_v41 = vadd.f32 %v2396_v37, %v2395_v34  ;;  %v2405_v42 = vadd.f32 %v2404_v38, %v2403_v35  ;;  %v2413_v43 = vadd.f32 %v2412_v39, %v2411_v36  ;;  %v2421_v52 = vadd.f32 %v2420_v40, %v2419_v53  ;;  %v2931_v34 = vld [vmem:[#allocation13 + $0x558] sm:$0xff]  ;;  %6909 = vmatpush1.bf16.msra.mxu0 %v6908_v27  ;;  %v2928_v37 = vld [vmem:[#allocation13 + $0x540] sm:$0xff]  ;;  %v2930_v39 = vld [vmem:[#allocation13 + $0x550] sm:$0xff] }
 0x4ce   :  { %v2935_v35 = vld [vmem:[#allocation13 + $0x578] sm:$0xff]  ;;  %6987 = vmatprep.subr.bf16.mxu1 %v6986_v25  ;;  %v6910_v36 = vpack.c.bf16 %v2933_v33, %v2929_v30  ;;  %v2932_v38 = vld [vmem:[#allocation13 + $0x560] sm:$0xff]  ;;  %v2957_v7 = vld [vmem:[#allocation13 + $0x628] sm:$0xff] }
 0x4cf   :  { %v2398_v44 = vrot.slane %v2397_v41, 2  ;;  %v2406_v45 = vrot.slane %v2405_v42, 2  ;;  %v2414_v46 = vrot.slane %v2413_v43, 2  ;;  %v2422_v47 = vrot.slane %v2421_v52, 2  ;;  %6989 = vmatpush1.bf16.msra.mxu1 %v6988_v32  ;;  %v2959_v20 = vld [vmem:[#allocation13 + $0x638] sm:$0xff]  ;;  %v2952_v25 = vld [vmem:[#allocation13 + $0x600] sm:$0xff] }
 0x4d0   :  { %v6990_v53 = vpack.c.bf16 %v2935_v35, %v2931_v34  ;;  %v6912_v40 = vpack.c.bf16 %v2932_v38, %v2928_v37  ;;  %6911 = vmatprep.subr.bf16.mxu0 %v6910_v36  ;;  %v6922_v24 = vpack.c.bf16 %v2957_v7, %v2953_v61  ;;  %v2956_v27 = vld [vmem:[#allocation13 + $0x620] sm:$0xff]  ;;  %v7002_v29 = vpack.c.bf16 %v2959_v20, %v2955_v19  ;;  %v2958_v30 = vld [vmem:[#allocation13 + $0x630] sm:$0xff]  ;;  %v2961_v32 = vld [vmem:[#allocation13 + $0x648] sm:$0xff] }
 0x4d1   :  { %v2399_v15 = vadd.f32 %v2398_v44, %v2397_v41  ;;  %v2407_v48 = vadd.f32 %v2406_v45, %v2405_v42  ;;  %v2415_v49 = vadd.f32 %v2414_v46, %v2413_v43  ;;  %v2423_v51 = vadd.f32 %v2422_v47, %v2421_v52  ;;  %v2934_v41 = vld [vmem:[#allocation13 + $0x570] sm:$0xff]  ;;  %v2937_v42 = vld [vmem:[#allocation13 + $0x588] sm:$0xff]  ;;  %v2939_v45 = vld [vmem:[#allocation13 + $0x598] sm:$0xff] }
 0x4d2   :  { %v2941_v43 = vld [vmem:[#allocation13 + $0x5a8] sm:$0xff]  ;;  %6991 = vmatprep.subr.bf16.mxu1 %v6990_v53  ;;  %v6992_v52 = vpack.c.bf16 %v2934_v41, %v2930_v39  ;;  %v2943_v46 = vld [vmem:[#allocation13 + $0x5b8] sm:$0xff]  ;;  %v2936_v47 = vld [vmem:[#allocation13 + $0x580] sm:$0xff]  ;;  %6913 = vmatpush1.bf16.msra.mxu0 %v6912_v40  ;;  %v6924_v36 = vpack.c.bf16 %v2956_v27, %v2952_v25  ;;  %v7004_v53 = vpack.c.bf16 %v2958_v30, %v2954_v28 }
 0x4d3   :  { %v2400_v1 = vrot.slane %v2399_v15, 1  ;;  %v2408_v2 = vrot.slane %v2407_v48, 1  ;;  %v2416_v5 = vrot.slane %v2415_v49, 1  ;;  %v2424_v6 = vrot.slane %v2423_v51, 1  ;;  %v2965_v33 = vld [vmem:[#allocation13 + $0x668] sm:$0xff]  ;;  %v2963_v34 = vld [vmem:[#allocation13 + $0x658] sm:$0xff] }
 0x4d4   :  { %v6914_v44 = vpack.c.bf16 %v2941_v43, %v2937_v42  ;;  %6993 = vmatpush1.bf16.msra.mxu1 %v6992_v52  ;;  %v2967_v35 = vld [vmem:[#allocation13 + $0x678] sm:$0xff]  ;;  %v6926_v37 = vpack.c.bf16 %v2965_v33, %v2961_v32  ;;  %v2960_v38 = vld [vmem:[#allocation13 + $0x640] sm:$0xff]  ;;  %v2962_v40 = vld [vmem:[#allocation13 + $0x650] sm:$0xff] }
 0x4d5   :  { %v2401_v0 = vadd.f32 %v2400_v1, %v2399_v15  ;;  %v2409_v8 = vadd.f32 %v2408_v2, %v2407_v48  ;;  %v2417_v9 = vadd.f32 %v2416_v5, %v2415_v49  ;;  %v2425_v50 = vadd.f32 %v2424_v6, %v2423_v51  ;;  %v2940_v48 = vld [vmem:[#allocation13 + $0x5a0] sm:$0xff]  ;;  %v2938_v49 = vld [vmem:[#allocation13 + $0x590] sm:$0xff]  ;;  %v2945_v2 = vld [vmem:[#allocation13 + $0x5c8] sm:$0xff] }
 0x4d6   :  { %v6994_v15 = vpack.c.bf16 %v2943_v46, %v2939_v45  ;;  %v2942_v51 = vld [vmem:[#allocation13 + $0x5b0] sm:$0xff]  ;;  %v6916_v1 = vpack.c.bf16 %v2940_v48, %v2936_v47  ;;  %v2949_v5 = vld [vmem:[#allocation13 + $0x5e8] sm:$0xff]  ;;  %v2947_v6 = vld [vmem:[#allocation13 + $0x5d8] sm:$0xff]  ;;  %6915 = vmatprep.subr.bf16.mxu0 %v6914_v44  ;;  %v7006_v41 = vpack.c.bf16 %v2967_v35, %v2963_v34 }
 0x4d7   :  { %v2426_v57 = vadd.f32 %v2417_v9, %v2401_v0  ;;  %v2427_v54 = vadd.f32 %v2425_v50, %v2409_v8  ;;  %v6996_v0 = vpack.c.bf16 %v2942_v51, %v2938_v49  ;;  %v6918_v8 = vpack.c.bf16 %v2949_v5, %v2945_v2  ;;  %v2951_v9 = vld [vmem:[#allocation13 + $0x5f8] sm:$0xff]  ;;  %v2944_v50 = vld [vmem:[#allocation13 + $0x5c0] sm:$0xff]  ;;  %v2966_v42 = vld [vmem:[#allocation13 + $0x670] sm:$0xff] }
 0x4d8   :  { %6995 = vmatprep.subr.bf16.mxu1 %v6994_v15  ;;  %6917 = vmatpush1.bf16.msra.mxu0 %v6916_v1  ;;  %v2964_v39 = vld [vmem:[#allocation13 + $0x660] sm:$0xff]  ;;  %v2969_v43 = vld [vmem:[#allocation13 + $0x688] sm:$0xff]  ;;  %v2971_v44 = vld [vmem:[#allocation13 + $0x698] sm:$0xff]  ;;  %v7008_v47 = vpack.c.bf16 %v2966_v42, %v2962_v40 }
 0x4d9   :  { %v2428_v3 = vadd.f32 %v2427_v54, %v2426_v57  ;;  %v2948_v57 = vld [vmem:[#allocation13 + $0x5e0] sm:$0xff]  ;;  %v6998_v54 = vpack.c.bf16 %v2951_v9, %v2947_v6  ;;  %6997 = vmatpush1.bf16.msra.mxu1 %v6996_v0  ;;  %6919 = vmatprep.subr.bf16.mxu0 %v6918_v8  ;;  %v2973_v52 = vld [vmem:[#allocation13 + $0x6a8] sm:$0xff]  ;;  %v2975_v45 = vld [vmem:[#allocation13 + $0x6b8] sm:$0xff]  ;;  %v6928_v46 = vpack.c.bf16 %v2964_v39, %v2960_v38 }
 0x4da   :  { %v6920_v21 = vpack.c.bf16 %v2948_v57, %v2944_v50  ;;  %v6930_v15 = vpack.c.bf16 %v2973_v52, %v2969_v43  ;;  %v2968_v48 = vld [vmem:[#allocation13 + $0x680] sm:$0xff]  ;;  %v7010_v51 = vpack.c.bf16 %v2975_v45, %v2971_v44  ;;  %v2970_v1 = vld [vmem:[#allocation13 + $0x690] sm:$0xff]  ;;  %v2977_v19 = vld [vmem:[#allocation13 + $0x6c8] sm:$0xff] }
 0x4db   :  { %2429 = vrot.lane.b32.xlu0 %v2428_v3, %s7844_s8  ;;  %6999 = vmatprep.subr.bf16.mxu1 %v6998_v54  ;;  %v2972_v49 = vld [vmem:[#allocation13 + $0x6a0] sm:$0xff]  ;;  %v2974_v2 = vld [vmem:[#allocation13 + $0x6b0] sm:$0xff]  ;;  %v2981_v20 = vld [vmem:[#allocation13 + $0x6e8] sm:$0xff] }
 0x4dc   :  { %6921 = vmatpush1.bf16.msra.mxu0 %v6920_v21  ;;  %v6932_v5 = vpack.c.bf16 %v2972_v49, %v2968_v48  ;;  %v7012_v6 = vpack.c.bf16 %v2974_v2, %v2970_v1  ;;  %v2979_v25 = vld [vmem:[#allocation13 + $0x6d8] sm:$0xff]  ;;  %v2976_v30 = vld [vmem:[#allocation13 + $0x6c0] sm:$0xff]  ;;  %v6934_v33 = vpack.c.bf16 %v2981_v20, %v2977_v19  ;;  %v2978_v39 = vld [vmem:[#allocation13 + $0x6d0] sm:$0xff] }
 0x4dd   :  { %6923 = vmatprep.subr.bf16.mxu0 %v6922_v24  ;;  %v2983_v27 = vld [vmem:[#allocation13 + $0x6f8] sm:$0xff]  ;;  %v2980_v32 = vld [vmem:[#allocation13 + $0x6e0] sm:$0xff]  ;;  %v2985_v42 = vld [vmem:[#allocation13 + $0x708] sm:$0xff] }
 0x4de   :  { %v6936_v35 = vpack.c.bf16 %v2980_v32, %v2976_v30  ;;  %v2989_v43 = vld [vmem:[#allocation13 + $0x728] sm:$0xff]  ;;  %v2987_v44 = vld [vmem:[#allocation13 + $0x718] sm:$0xff]  ;;  %v2988_v48 = vld [vmem:[#allocation13 + $0x720] sm:$0xff] }
 0x4df   :  { %v2991_v45 = vld [vmem:[#allocation13 + $0x738] sm:$0xff]  ;;  %v2986_v49 = vld [vmem:[#allocation13 + $0x710] sm:$0xff] }
 0x4e0   :  { %6925 = vmatpush1.bf16.msra.mxu0 %v6924_v36 }
 0x4e1   :  { %6927 = vmatprep.subr.bf16.mxu0 %v6926_v37 }
 0x4e4   :  { %6929 = vmatpush1.bf16.msra.mxu0 %v6928_v46  ;;  %v2984_v46 = vld [vmem:[#allocation13 + $0x700] sm:$0xff] }
 0x4e5   :  { %6931 = vmatprep.subr.bf16.mxu0 %v6930_v15 }
 0x4e8   :  { %6933 = vmatpush1.bf16.msra.mxu0 %v6932_v5 }
 0x4e9   :  { %6935 = vmatprep.subr.bf16.mxu0 %v6934_v33  ;;  %v3007_v33 = vld [vmem:[#allocation13 + $0x7b8] sm:$0xff] }
 0x4ec   :  { %6937 = vmatpush1.bf16.msra.mxu0 %v6936_v35 }
 0x54d   :  { %v2430_v58 = vpop.permute.xlu0 %2429 }
 0x54e   :  { %v8237_v4 = vadd.f32 %v2430_v58, %v2428_v3  ;;  %v2946_v3 = vld [vmem:[#allocation13 + $0x5d0] sm:$0xff] }
 0x54f   :  { %v2950_v58 = vld [vmem:[#allocation13 + $0x5f0] sm:$0xff] }
 0x550   :  { %2432 = vrot.lane.b32.xlu1 %v8237_v4, %s7835_s10  ;;  %v7000_v23 = vpack.c.bf16 %v2950_v58, %v2946_v3 }
 0x552   :  { %7001 = vmatpush1.bf16.msra.mxu1 %v7000_v23 }
 0x553   :  { %7003 = vmatprep.subr.bf16.mxu1 %v7002_v29 }
 0x556   :  { %7005 = vmatpush1.bf16.msra.mxu1 %v7004_v53 }
 0x557   :  { %7007 = vmatprep.subr.bf16.mxu1 %v7006_v41  ;;  %v2982_v41 = vld [vmem:[#allocation13 + $0x6f0] sm:$0xff] }
 0x55a   :  { %7009 = vmatpush1.bf16.msra.mxu1 %v7008_v47 }
 0x55b   :  { %7011 = vmatprep.subr.bf16.mxu1 %v7010_v51  ;;  %v2990_v51 = vld [vmem:[#allocation13 + $0x730] sm:$0xff] }
 0x55c   :  { %v7020_v19 = vpack.c.bf16 %v2990_v51, %v2986_v49 }
 0x55e   :  { %7013 = vmatpush1.bf16.msra.mxu1 %v7012_v6 }
 0x5c2   :  { %v2433_v0 = vpop.permute.xlu1 %2432 }
 0x5c3   :  { %v2434_v8 = vadd.f32 %v2433_v0, %v8237_v4  ;;  %v2993_v0 = vld [vmem:[#allocation13 + $0x748] sm:$0xff] }
 0x5c5   :  { %v2435_v9 = vmul.f32 0.0078125, %v2434_v8  ;;  %v2997_v8 = vld [vmem:[#allocation13 + $0x768] sm:$0xff] }
 0x5c6   :  { %v6942_v20 = vpack.c.bf16 %v2997_v8, %v2993_v0  ;;  %v3017_v0 = vld [vmem:[#allocation13 + $0x808] sm:$0xff] }
 0x5c7   :  { %v2436_v50 = vadd.f32 1e-05, %v2435_v9  ;;  %v2995_v9 = vld [vmem:[#allocation13 + $0x758] sm:$0xff]  ;;  %v3021_v8 = vld [vmem:[#allocation13 + $0x828] sm:$0xff] }
 0x5c9   :  { %7626 = vrsqrt.f32 %v2436_v50  ;;  %v6938_v50 = vpack.c.bf16 %v2989_v43, %v2985_v42  ;;  %v3002_v43 = vld [vmem:[#allocation13 + $0x790] sm:$0xff] }
 0x5cb   :  { %6939 = vmatprep.subr.bf16.mxu0 %v6938_v50  ;;  %v3014_v50 = vld [vmem:[#allocation13 + $0x7f0] sm:$0xff] }
 0x5d3   :  { %v7627_v57 = vpop.eup %7626 }
 0x5d4   :  { %v2441_v54 = vrot.slane %v7627_v57, %v8041_v59  ;;  %v2999_v57 = vld [vmem:[#allocation13 + $0x778] sm:$0xff] }
 0x5d6   :  { %v2444_v3 = vmul.f32 %v2441_v54, %v8195_v12  ;;  %v2445_v58 = vmul.f32 %v2441_v54, %v8197_v13  ;;  %v2442_v61 = vmul.f32 %v2441_v54, %v8190_v10  ;;  %v2443_v7 = vmul.f32 %v2441_v54, %v8192_v11 }
 0x5d7   :  { %v7014_v12 = vpack.c.bf16 %v2983_v27, %v2979_v25  ;;  %v8274_v1 = vmul.f32 %v2441_v54, %v8204_v17  ;;  %v8277_v2 = vmul.f32 %v2441_v54, %v8206_v31  ;;  %v8280_v5 = vmul.f32 %v2441_v54, %v8200_v14  ;;  %v2992_v14 = vld [vmem:[#allocation13 + $0x740] sm:$0xff]  ;;  %v2994_v25 = vld [vmem:[#allocation13 + $0x750] sm:$0xff] }
 0x5d8   :  { %v2452_v21 = vmax.f32 %v2444_v3, 0.0  ;;  %v2453_v23 = vmax.f32 %v2445_v58, 0.0  ;;  %v2450_v24 = vmax.f32 %v2442_v61, 0.0  ;;  %v2451_v4 = vmax.f32 %v2443_v7, 0.0  ;;  %v2996_v3 = vld [vmem:[#allocation13 + $0x760] sm:$0xff]  ;;  %v2998_v27 = vld [vmem:[#allocation13 + $0x770] sm:$0xff] }
 0x5d9   :  { %7015 = vmatprep.subr.bf16.mxu1 %v7014_v12  ;;  %v8283_v6 = vmul.f32 %v2441_v54, %v8202_v16  ;;  %v7016_v31 = vpack.c.bf16 %v2982_v41, %v2978_v39  ;;  %v7018_v54 = vpack.c.bf16 %v2991_v45, %v2987_v44  ;;  %v6940_v61 = vpack.c.bf16 %v2988_v48, %v2984_v46  ;;  %v3000_v12 = vld [vmem:[#allocation13 + $0x780] sm:$0xff]  ;;  %v3013_v39 = vld [vmem:[#allocation13 + $0x7e8] sm:$0xff]  ;;  %v3011_v44 = vld [vmem:[#allocation13 + $0x7d8] sm:$0xff] }
 0x5da   :  { %v2488_v28 = vcombine.low %v2452_v21, %v2453_v23  ;;  %v2460_v29 = vcombine.low %v2450_v24, %v2451_v4  ;;  %v2603_v34 = vcombine.high %v2452_v21, %v2453_v23  ;;  %v2579_v11 = vcombine.high %v2450_v24, %v2451_v4  ;;  %v3001_v21 = vld [vmem:[#allocation13 + $0x788] sm:$0xff]  ;;  %v3008_v45 = vld [vmem:[#allocation13 + $0x7c0] sm:$0xff] }
 0x5db   :  { %7017 = vmatpush1.bf16.msra.mxu1 %v7016_v31  ;;  %v3005_v23 = vld [vmem:[#allocation13 + $0x7a8] sm:$0xff]  ;;  %6941 = vmatpush1.bf16.msra.mxu0 %v6940_v61  ;;  %v7022_v24 = vpack.c.bf16 %v2999_v57, %v2995_v9  ;;  %v6944_v4 = vpack.c.bf16 %v2996_v3, %v2992_v14  ;;  %v2457_v30 = vmax.f32 %v8277_v2, 0.0  ;;  %v2454_v32 = vmax.f32 %v8280_v5, 0.0  ;;  %v3012_v46 = vld [vmem:[#allocation13 + $0x7e0] sm:$0xff]  ;;  %v3010_v31 = vld [vmem:[#allocation13 + $0x7d0] sm:$0xff] }
 0x5dc   :  { %v2495_v13 = vrot.slane %v2488_v28, %v8061_v22  ;;  %v2467_v10 = vrot.slane %v2460_v29, %v8061_v22  ;;  %v8262_v40 = vrot.slane %v2603_v34, %v8061_v22  ;;  %v8265_v52 = vrot.slane %v2579_v11, %v8061_v22  ;;  %7019 = vmatprep.subr.bf16.mxu1 %v7018_v54  ;;  %v3003_v28 = vld [vmem:[#allocation13 + $0x798] sm:$0xff]  ;;  %v3016_v14 = vld [vmem:[#allocation13 + $0x800] sm:$0xff] }
 0x5dd   :  { %v2456_v29 = vmax.f32 %v8274_v1, 0.0  ;;  %v2455_v11 = vmax.f32 %v8283_v6, 0.0  ;;  %6943 = vmatprep.subr.bf16.mxu0 %v6942_v20  ;;  %v6946_v35 = vpack.c.bf16 %v3005_v23, %v3001_v21  ;;  %v7026_v41 = vpack.c.bf16 %v3007_v33, %v3003_v28  ;;  %v3019_v57 = vld [vmem:[#allocation13 + $0x818] sm:$0xff]  ;;  %v3029_v20 = vld [vmem:[#allocation13 + $0x868] sm:$0xff]  ;;  %v3024_v28 = vld [vmem:[#allocation13 + $0x840] sm:$0xff] }
 0x5de   :  { %v2502_v36 = vrot.slane %v2495_v13, %v8061_v22  ;;  %v2474_v53 = vrot.slane %v2467_v10, %v8061_v22  ;;  %v2527_v37 = vcombine.high %v2495_v13, %v2495_v13  ;;  %v2511_v38 = vcombine.high %v2467_v10, %v2467_v10  ;;  %v3004_v13 = vld [vmem:[#allocation13 + $0x7a0] sm:$0xff] }
 0x5df   :  { %v2617_v17 = vrot.slane %v8262_v40, %v8061_v22  ;;  %v2593_v16 = vrot.slane %v8265_v52, %v8061_v22  ;;  %v2644_v10 = vcombine.high %v8262_v40, %v8262_v40  ;;  %v2627_v34 = vcombine.high %v8265_v52, %v8265_v52  ;;  %7021 = vmatpush1.bf16.msra.mxu1 %v7020_v19  ;;  %v3006_v40 = vld [vmem:[#allocation13 + $0x7b0] sm:$0xff]  ;;  %v3015_v52 = vld [vmem:[#allocation13 + $0x7f8] sm:$0xff]  ;;  %v3025_v19 = vld [vmem:[#allocation13 + $0x848] sm:$0xff] }
 0x5e0   :  { %2503 = vrot.lane.b32.xlu1 %v2502_v36, %s7835_s10  ;;  %2475 = vrot.lane.b32.xlu0 %v2474_v53, %s7835_s10  ;;  %v8268_v47 = vrot.slane %v2527_v37, %v8061_v22  ;;  %v8271_v15 = vrot.slane %v2511_v38, %v8061_v22  ;;  %v2552_v58 = vcombine.high %v2502_v36, %v2502_v36  ;;  %v3009_v38 = vld [vmem:[#allocation13 + $0x7c8] sm:$0xff] }
 0x5e1   :  { %v2543_v7 = vcombine.high %v2474_v53, %v2474_v53  ;;  %v2618_v36 = vcombine.high %v2617_v17, %v2617_v17  ;;  %v2594_v53 = vcombine.high %v2593_v16, %v2593_v16  ;;  %v7024_v37 = vpack.c.bf16 %v2998_v27, %v2994_v25  ;;  %7023 = vmatprep.subr.bf16.mxu1 %v7022_v24  ;;  %v3018_v24 = vld [vmem:[#allocation13 + $0x810] sm:$0xff]  ;;  %v3027_v25 = vld [vmem:[#allocation13 + $0x858] sm:$0xff] }
 0x5e2   :  { %6945 = vmatpush1.bf16.msra.mxu0 %v6944_v4  ;;  %v6948_v42 = vpack.c.bf16 %v3004_v13, %v3000_v12  ;;  %v2651_v48 = vrot.slane %v2644_v10, %v8061_v22  ;;  %v2688_v49 = vcombine.low %v2456_v29, %v2457_v30  ;;  %v2663_v51 = vcombine.low %v2454_v32, %v2455_v11  ;;  %v3022_v4 = vld [vmem:[#allocation13 + $0x830] sm:$0xff]  ;;  %v3031_v27 = vld [vmem:[#allocation13 + $0x878] sm:$0xff]  ;;  %v3028_v29 = vld [vmem:[#allocation13 + $0x860] sm:$0xff] }
 0x5e3   :  { %6947 = vmatprep.subr.bf16.mxu0 %v6946_v35  ;;  %v6950_v1 = vpack.c.bf16 %v3013_v39, %v3009_v38  ;;  %v2570_v2 = vcombine.high %v8268_v47, %v8268_v47  ;;  %v2561_v5 = vcombine.high %v8271_v15, %v8271_v15  ;;  %v2634_v18 = vrot.slane %v2627_v34, %v8061_v22  ;;  %v3033_v34 = vld [vmem:[#allocation13 + $0x888] sm:$0xff]  ;;  %v3035_v38 = vld [vmem:[#allocation13 + $0x898] sm:$0xff] }
 0x5e4   :  { %2535 = vrot.lane.b32.xlu1 %v8268_v47, %s7835_s10  ;;  %2519 = vrot.lane.b32.xlu0 %v8271_v15, %s7835_s10  ;;  %v7028_v6 = vpack.c.bf16 %v3006_v40, %v3002_v43  ;;  %v7030_v9 = vpack.c.bf16 %v3015_v52, %v3011_v44  ;;  %v6952_v17 = vpack.c.bf16 %v3012_v46, %v3008_v45  ;;  %v3023_v47 = vld [vmem:[#allocation13 + $0x838] sm:$0xff]  ;;  %v3020_v15 = vld [vmem:[#allocation13 + $0x820] sm:$0xff]  ;;  %v3037_v11 = vld [vmem:[#allocation13 + $0x8a8] sm:$0xff] }
 0x5e5   :  { %7025 = vmatpush1.bf16.msra.mxu1 %v7024_v37  ;;  %v2695_v3 = vrot.slane %v2688_v49, %v8061_v22  ;;  %v2652_v16 = vcombine.high %v2651_v48, %v2651_v48  ;;  %v2635_v54 = vcombine.high %v2634_v18, %v2634_v18  ;;  %v2670_v61 = vrot.slane %v2663_v51, %v8061_v22  ;;  %v3030_v37 = vld [vmem:[#allocation13 + $0x870] sm:$0xff]  ;;  %v3039_v39 = vld [vmem:[#allocation13 + $0x8b8] sm:$0xff]  ;;  %v3041_v40 = vld [vmem:[#allocation13 + $0x8c8] sm:$0xff] }
 0x5e6   :  { %7027 = vmatprep.subr.bf16.mxu1 %v7026_v41  ;;  %6949 = vmatpush1.bf16.msra.mxu0 %v6948_v42  ;;  %v7034_v21 = vpack.c.bf16 %v3023_v47, %v3019_v57  ;;  %v6956_v23 = vpack.c.bf16 %v3020_v15, %v3016_v14  ;;  %v6958_v32 = vpack.c.bf16 %v3029_v20, %v3025_v19  ;;  %v3032_v41 = vld [vmem:[#allocation13 + $0x880] sm:$0xff]  ;;  %v3045_v44 = vld [vmem:[#allocation13 + $0x8e8] sm:$0xff]  ;;  %v3034_v51 = vld [vmem:[#allocation13 + $0x890] sm:$0xff] }
 0x5e7   :  { %6951 = vmatprep.subr.bf16.mxu0 %v6950_v1  ;;  %v2702_v30 = vrot.slane %v2695_v3, %v8061_v22  ;;  %v2677_v33 = vrot.slane %v2670_v61, %v8061_v22  ;;  %v2727_v12 = vcombine.high %v2695_v3, %v2695_v3  ;;  %v2711_v13 = vcombine.high %v2670_v61, %v2670_v61  ;;  %v3036_v42 = vld [vmem:[#allocation13 + $0x8a0] sm:$0xff]  ;;  %v3038_v1 = vld [vmem:[#allocation13 + $0x8b0] sm:$0xff]  ;;  %v3047_v18 = vld [vmem:[#allocation13 + $0x8f8] sm:$0xff] }
 0x5e8   :  { %2553 = vrot.lane.b32.xlu1 %v2552_v58, %s7835_s10  ;;  %2544 = vrot.lane.b32.xlu0 %v2543_v7, %s7835_s10  ;;  %v6954_v58 = vpack.c.bf16 %v3021_v8, %v3017_v0  ;;  %v7032_v7 = vpack.c.bf16 %v3014_v50, %v3010_v31  ;;  %v7036_v10 = vpack.c.bf16 %v3022_v4, %v3018_v24  ;;  %v3044_v0 = vld [vmem:[#allocation13 + $0x8e0] sm:$0xff]  ;;  %v3049_v8 = vld [vmem:[#allocation13 + $0x908] sm:$0xff]  ;;  %v3042_v57 = vld [vmem:[#allocation13 + $0x8d0] sm:$0xff] }
 0x5e9   :  { %7029 = vmatpush1.bf16.msra.mxu1 %v7028_v6  ;;  %v7038_v35 = vpack.c.bf16 %v3031_v27, %v3027_v25  ;;  %v6962_v43 = vpack.c.bf16 %v3037_v11, %v3033_v34  ;;  %v2734_v52 = vrot.slane %v2727_v12, %v8061_v22  ;;  %v2718_v45 = vrot.slane %v2711_v13, %v8061_v22  ;;  %v3040_v6 = vld [vmem:[#allocation13 + $0x8c0] sm:$0xff]  ;;  %v3046_v47 = vld [vmem:[#allocation13 + $0x8f0] sm:$0xff]  ;;  %v3051_v15 = vld [vmem:[#allocation13 + $0x918] sm:$0xff] }
 0x5ea   :  { %7031 = vmatprep.subr.bf16.mxu1 %v7030_v9  ;;  %6953 = vmatpush1.bf16.msra.mxu0 %v6952_v17  ;;  %v7042_v48 = vpack.c.bf16 %v3039_v39, %v3035_v38  ;;  %v6964_v49 = vpack.c.bf16 %v3036_v42, %v3032_v41  ;;  %v3053_v9 = vld [vmem:[#allocation13 + $0x928] sm:$0xff]  ;;  %v7044_v17 = vpack.c.bf16 %v3038_v1, %v3034_v51  ;;  %v3055_v3 = vld [vmem:[#allocation13 + $0x938] sm:$0xff] }
 0x5eb   :  { %6955 = vmatprep.subr.bf16.mxu0 %v6954_v58  ;;  %v6968_v50 = vpack.c.bf16 %v3044_v0, %v3040_v6  ;;  %v6970_v14 = vpack.c.bf16 %v3053_v9, %v3049_v8  ;;  %v7048_v58 = vpack.c.bf16 %v3046_v47, %v3042_v57  ;;  %v3048_v57 = vld [vmem:[#allocation13 + $0x900] sm:$0xff] }
 0x5ec   :  { %2619 = vrot.lane.b32.xlu1 %v2618_v36, %s7835_s10  ;;  %2595 = vrot.lane.b32.xlu0 %v2594_v53, %s7835_s10  ;;  %v6960_v36 = vpack.c.bf16 %v3028_v29, %v3024_v28  ;;  %v3026_v53 = vld [vmem:[#allocation13 + $0x850] sm:$0xff]  ;;  %v3052_v47 = vld [vmem:[#allocation13 + $0x920] sm:$0xff] }
 0x5ed   :  { %7033 = vmatpush1.bf16.msra.mxu1 %v7032_v7  ;;  %v7040_v46 = vpack.c.bf16 %v3030_v37, %v3026_v53 }
 0x5ee   :  { %7035 = vmatprep.subr.bf16.mxu1 %v7034_v21  ;;  %6957 = vmatpush1.bf16.msra.mxu0 %v6956_v23 }
 0x5ef   :  { %6959 = vmatprep.subr.bf16.mxu0 %v6958_v32 }
 0x5f0   :  { %2571 = vrot.lane.b32.xlu1 %v2570_v2, %s7835_s10  ;;  %2562 = vrot.lane.b32.xlu0 %v2561_v5, %s7835_s10  ;;  %v3043_v2 = vld [vmem:[#allocation13 + $0x8d8] sm:$0xff]  ;;  %v6966_v5 = vpack.c.bf16 %v3045_v44, %v3041_v40 }
 0x5f1   :  { %7037 = vmatpush1.bf16.msra.mxu1 %v7036_v10  ;;  %v7046_v31 = vpack.c.bf16 %v3047_v18, %v3043_v2 }
 0x5f2   :  { %7039 = vmatprep.subr.bf16.mxu1 %v7038_v35  ;;  %6961 = vmatpush1.bf16.msra.mxu0 %v6960_v36 }
 0x5f3   :  { %6963 = vmatprep.subr.bf16.mxu0 %v6962_v43 }
 0x5f4   :  { %2653 = vrot.lane.b32.xlu1 %v2652_v16, %s7835_s10  ;;  %2636 = vrot.lane.b32.xlu0 %v2635_v54, %s7835_s10  ;;  %v7050_v16 = vpack.c.bf16 %v3055_v3, %v3051_v15 }
 0x5f5   :  { %7041 = vmatpush1.bf16.msra.mxu1 %v7040_v46 }
 0x5f6   :  { %7043 = vmatprep.subr.bf16.mxu1 %v7042_v48  ;;  %6965 = vmatpush1.bf16.msra.mxu0 %v6964_v49 }
 0x5f7   :  { %6967 = vmatprep.subr.bf16.mxu0 %v6966_v5 }
 0x5f8   :  { %2703 = vrot.lane.b32.xlu1 %v2702_v30, %s7835_s10  ;;  %2678 = vrot.lane.b32.xlu0 %v2677_v33, %s7835_s10 }
 0x5f9   :  { %7045 = vmatpush1.bf16.msra.mxu1 %v7044_v17 }
 0x5fa   :  { %7047 = vmatprep.subr.bf16.mxu1 %v7046_v31  ;;  %6969 = vmatpush1.bf16.msra.mxu0 %v6968_v50 }
 0x5fb   :  { %6971 = vmatprep.subr.bf16.mxu0 %v6970_v14  ;;  %v3050_v14 = vld [vmem:[#allocation13 + $0x910] sm:$0xff] }
 0x5fc   :  { %2735 = vrot.lane.b32.xlu1 %v2734_v52, %s7835_s10  ;;  %2719 = vrot.lane.b32.xlu0 %v2718_v45, %s7835_s10 }
 0x5fd   :  { %7049 = vmatpush1.bf16.msra.mxu1 %v7048_v58  ;;  %v3054_v58 = vld [vmem:[#allocation13 + $0x930] sm:$0xff] }
 0x5fe   :  { %7051 = vmatprep.subr.bf16.mxu1 %v7050_v16  ;;  %v3057_v16 = vld [vmem:[#allocation13 + $0x948] sm:$0xff] }
 0x652   :  { %v2504_v54 = vpop.permute.xlu1 %2503  ;;  %v2476_v61 = vpop.permute.xlu0 %2475 }
 0x653   :  { %v2505_v19 = vrot.slane %v2504_v54, 7  ;;  %v2477_v20 = vrot.slane %v2476_v61, 7 }
 0x655   :  { %v2506_v21 = vsel %vm148_vm0, %v2505_v19, %v2504_v54  ;;  %v2478_v23 = vsel %vm148_vm0, %v2477_v20, %v2476_v61  ;;  %v3061_v54 = vld [vmem:[#allocation13 + $0x968] sm:$0xff]  ;;  %v3059_v61 = vld [vmem:[#allocation13 + $0x958] sm:$0xff] }
 0x656   :  { %2509 = vst.msk [vmem:[#allocation3 + $0x2] ss:$8 sm:$0x7] %vm8328_vm7, %v2506_v21  ;;  %2484 = vst.msk [vmem:[#allocation3 + $0x1] ss:$8 sm:$0x7] %vm8328_vm7, %v2478_v23  ;;  %v2536_v24 = vpop.permute.xlu1 %2535  ;;  %v2520_v4 = vpop.permute.xlu0 %2519 }
 0x657   :  { %v2537_v25 = vrot.slane %v2536_v24, 7  ;;  %v2521_v27 = vrot.slane %v2520_v4, 7  ;;  %v3063_v21 = vld [vmem:[#allocation13 + $0x978] sm:$0xff] }
 0x659   :  { %v2538_v28 = vsel %vm148_vm0, %v2537_v25, %v2536_v24  ;;  %v2522_v29 = vsel %vm148_vm0, %v2521_v27, %v2520_v4  ;;  %v6972_v25 = vpack.c.bf16 %v3052_v47, %v3048_v57  ;;  %v7052_v27 = vpack.c.bf16 %v3054_v58, %v3050_v14  ;;  %v2754_v57 = vld [vmem:[#allocation13 + $0x8] sm:$0xff]  ;;  %v2756_v14 = vld [vmem:[#allocation13 + $0x18] sm:$0xff] }
 0x65a   :  { %2541 = vst.msk [vmem:[#allocation3 + $0x4] ss:$8 sm:$0x7] %vm8328_vm7, %v2538_v28  ;;  %2525 = vst.msk [vmem:[#allocation3 + $0x3] ss:$8 sm:$0x7] %vm8328_vm7, %v2522_v29  ;;  %v2554_v30 = vpop.permute.xlu1 %2553  ;;  %v2545_v32 = vpop.permute.xlu0 %2544 }
 0x65b   :  { %v2555_v33 = vrot.slane %v2554_v30, 7  ;;  %v2546_v12 = vrot.slane %v2545_v32, 7  ;;  %v3056_v28 = vld [vmem:[#allocation13 + $0x940] sm:$0xff]  ;;  %v2758_v47 = vld [vmem:[#allocation13 + $0x28] sm:$0xff] }
 0x65d   :  { %v2556_v13 = vsel %vm148_vm0, %v2555_v33, %v2554_v30  ;;  %v2547_v10 = vsel %vm148_vm0, %v2546_v12, %v2545_v32  ;;  %v6974_v32 = vpack.c.bf16 %v3061_v54, %v3057_v16  ;;  %v7054_v33 = vpack.c.bf16 %v3063_v21, %v3059_v61  ;;  %v3060_v12 = vld [vmem:[#allocation13 + $0x960] sm:$0xff] }
 0x65e   :  { %2559 = vst.msk [vmem:[#allocation3 + $0x6] ss:$8 sm:$0x7] %vm8328_vm7, %v2556_v13  ;;  %2550 = vst.msk [vmem:[#allocation3 + $0x5] ss:$8 sm:$0x7] %vm8328_vm7, %v2547_v10  ;;  %v2620_v34 = vpop.permute.xlu1 %2619  ;;  %v2596_v11 = vpop.permute.xlu0 %2595 }
 0x65f   :  { %v2621_v35 = vrot.slane %v2620_v34, 7  ;;  %v2597_v36 = vrot.slane %v2596_v11, 7  ;;  %v3058_v13 = vld [vmem:[#allocation13 + $0x950] sm:$0xff]  ;;  %v2753_v54 = vld [vmem:[#allocation13] sm:$0xff] }
 0x660   :  { %v3062_v10 = vld [vmem:[#allocation13 + $0x970] sm:$0xff]  ;;  %v2757_v61 = vld [vmem:[#allocation13 + $0x20] sm:$0xff] }
 0x661   :  { %v2622_v53 = vsel %vm148_vm0, %v2621_v35, %v2620_v34  ;;  %v2598_v37 = vsel %vm148_vm0, %v2597_v36, %v2596_v11  ;;  %v3065_v35 = vld [vmem:[#allocation13 + $0x988] sm:$0xff] }
 0x662   :  { %2625 = vst.msk [vmem:[#allocation3 + $0x1c] ss:$8 sm:$0x7] %vm8328_vm7, %v2622_v53  ;;  %2601 = vst.msk [vmem:[#allocation3 + $0x1b] ss:$8 sm:$0x7] %vm8328_vm7, %v2598_v37  ;;  %v2572_v38 = vpop.permute.xlu1 %2571  ;;  %v2563_v39 = vpop.permute.xlu0 %2562 }
 0x663   :  { %v2573_v41 = vrot.slane %v2572_v38, 7  ;;  %v2564_v42 = vrot.slane %v2563_v39, 7  ;;  %v3069_v37 = vld [vmem:[#allocation13 + $0x9a8] sm:$0xff] }
 0x665   :  { %v2574_v43 = vsel %vm148_vm0, %v2573_v41, %v2572_v38  ;;  %v2565_v40 = vsel %vm148_vm0, %v2564_v42, %v2563_v39  ;;  %v3067_v38 = vld [vmem:[#allocation13 + $0x998] sm:$0xff]  ;;  %v6976_v41 = vpack.c.bf16 %v3060_v12, %v3056_v28  ;;  %v7056_v42 = vpack.c.bf16 %v3062_v10, %v3058_v13  ;;  %v2762_v28 = vld [vmem:[#allocation13 + $0x48] sm:$0xff] }
 0x666   :  { %2577 = vst.msk [vmem:[#allocation3 + $0x18] ss:$8 sm:$0x7] %vm8328_vm7, %v2574_v43  ;;  %2568 = vst.msk [vmem:[#allocation3 + $0x7] ss:$8 sm:$0x7] %vm8328_vm7, %v2565_v40  ;;  %v2654_v44 = vpop.permute.xlu1 %2653  ;;  %v2637_v52 = vpop.permute.xlu0 %2636  ;;  %v7068_v13 = vpack.c.bf16 %v2757_v61, %v2753_v54 }
 0x667   :  { %v2655_v45 = vrot.slane %v2654_v44, 7  ;;  %v2638_v46 = vrot.slane %v2637_v52, 7  ;;  %v3071_v39 = vld [vmem:[#allocation13 + $0x9b8] sm:$0xff]  ;;  %v3064_v43 = vld [vmem:[#allocation13 + $0x980] sm:$0xff] }
 0x668   :  { %v3068_v40 = vld [vmem:[#allocation13 + $0x9a0] sm:$0xff]  ;;  %v2788_v54 = vld [vmem:[#allocation13 + $0x118] sm:$0xff] }
 0x669   :  { %v2656_v48 = vsel %vm148_vm0, %v2655_v45, %v2654_v44  ;;  %v2639_v49 = vsel %vm148_vm0, %v2638_v46, %v2637_v52  ;;  %v3066_v45 = vld [vmem:[#allocation13 + $0x990] sm:$0xff]  ;;  %v2792_v61 = vld [vmem:[#allocation13 + $0x138] sm:$0xff] }
 0x66a   :  { %2659 = vst.msk [vmem:[#allocation3 + $0x1e] ss:$8 sm:$0x7] %vm8328_vm7, %v2656_v48  ;;  %2642 = vst.msk [vmem:[#allocation3 + $0x1d] ss:$8 sm:$0x7] %vm8328_vm7, %v2639_v49  ;;  %v2704_v51 = vpop.permute.xlu1 %2703  ;;  %v2679_v1 = vpop.permute.xlu0 %2678  ;;  %v6978_v49 = vpack.c.bf16 %v3069_v37, %v3065_v35 }
 0x66b   :  { %v2705_v2 = vrot.slane %v2704_v51, 7  ;;  %v2680_v5 = vrot.slane %v2679_v1, 7  ;;  %v3070_v46 = vld [vmem:[#allocation13 + $0x9b0] sm:$0xff]  ;;  %v3073_v48 = vld [vmem:[#allocation13 + $0x9c8] sm:$0xff] }
 0x66c   :  { %v2763_v35 = vld [vmem:[#allocation13 + $0x50] sm:$0xff] }
 0x66d   :  { %v2706_v18 = vsel %vm148_vm0, %v2705_v2, %v2704_v51  ;;  %v2681_v6 = vsel %vm148_vm0, %v2680_v5, %v2679_v1  ;;  %v2914_v15 = vld [vmem:[#allocation3 + $0x8] sm:$0xfe]  ;;  %v2913_v3 = vld [vmem:[#allocation3] sm:$0xfe]  ;;  %v7058_v51 = vpack.c.bf16 %v3071_v39, %v3067_v38  ;;  %v3077_v1 = vld [vmem:[#allocation13 + $0x9e8] sm:$0xff] }
 0x66e   :  { %2709 = vst.msk [vmem:[#allocation3 + $0x30] ss:$8 sm:$0x7] %vm8328_vm7, %v2706_v18  ;;  %2684 = vst.msk [vmem:[#allocation3 + $0x1f] ss:$8 sm:$0x7] %vm8328_vm7, %v2681_v6  ;;  %v2736_v0 = vpop.permute.xlu1 %2735  ;;  %v2720_v8 = vpop.permute.xlu0 %2719  ;;  %v6980_v18 = vpack.c.bf16 %v3068_v40, %v3064_v43  ;;  %v7060_v6 = vpack.c.bf16 %v3070_v46, %v3066_v45 }
 0x66f   :  { %v2737_v9 = vrot.slane %v2736_v0, 7  ;;  %v2721_v17 = vrot.slane %v2720_v8, 7  ;;  %v3092_v23 = vrot.slane %v2914_v15, 1  ;;  %v3089_v4 = vrot.slane %v2913_v3, 1  ;;  %v3075_v2 = vld [vmem:[#allocation13 + $0x9d8] sm:$0xff]  ;;  %v2769_v45 = vld [vmem:[#allocation13 + $0x80] sm:$0xff] }
 0x670   :  { %v3079_v5 = vld [vmem:[#allocation13 + $0x9f8] sm:$0xff]  ;;  %v2915_v21 = vld [vmem:[#allocation3 + $0x10] sm:$0xfe] }
 0x671   :  { %v2738_v31 = vsel %vm148_vm0, %v2737_v9, %v2736_v0  ;;  %v2722_v50 = vsel %vm148_vm0, %v2721_v17, %v2720_v8  ;;  %v3072_v0 = vld [vmem:[#allocation13 + $0x9c0] sm:$0xff]  ;;  %v6982_v9 = vpack.c.bf16 %v3077_v1, %v3073_v48  ;;  %v7062_v17 = vpack.c.bf16 %v3079_v5, %v3075_v2  ;;  %v2760_v15 = vld [vmem:[#allocation13 + $0x38] sm:$0xff]  ;;  %v2771_v1 = vld [vmem:[#allocation13 + $0x90] sm:$0xff] }
 0x672   :  { %2741 = vst.msk [vmem:[#allocation3 + $0x32] ss:$8 sm:$0x7] %vm8328_vm7, %v2738_v31  ;;  %2725 = vst.msk [vmem:[#allocation3 + $0x31] ss:$8 sm:$0x7] %vm8328_vm7, %v2722_v50 }
 0x673   :  { %v3076_v8 = vld [vmem:[#allocation13 + $0x9e0] sm:$0xff]  ;;  %v3074_v31 = vld [vmem:[#allocation13 + $0x9d0] sm:$0xff]  ;;  %v3095_v12 = vrot.slane %v2915_v21, 1  ;;  %v2772_v43 = vld [vmem:[#allocation13 + $0x98] sm:$0xff] }
 0x674   :  { %v3078_v50 = vld [vmem:[#allocation13 + $0x9f0] sm:$0xff]  ;;  %v6984_v58 = vpack.c.bf16 %v3076_v8, %v3072_v0  ;;  %v2776_v40 = vld [vmem:[#allocation13 + $0xb8] sm:$0xff]  ;;  %v2773_v46 = vld [vmem:[#allocation13 + $0xa0] sm:$0xff] }
 0x675   :  { %v8380_v19 = vld [vmem:[#allocation3 + $0x20] sm:$0xff]  ;;  %v8382_v20 = vld [vmem:[#allocation3 + $0x18] sm:$0xff]  ;;  %v8390_v3 = vld [vmem:[#allocation3 + $0x28] sm:$0xff]  ;;  %v7064_v16 = vpack.c.bf16 %v3078_v50, %v3074_v31  ;;  %v7076_v8 = vpack.c.bf16 %v2773_v46, %v2769_v45 }
 0x676   :  { %v3093_v24 = vrot.slane %v8380_v19, 1  ;;  %v3090_v7 = vrot.slane %v8382_v20, 1  ;;  %v2775_v2 = vld [vmem:[#allocation13 + $0xb0] sm:$0xff]  ;;  %v2778_v5 = vld [vmem:[#allocation13 + $0xc8] sm:$0xff]  ;;  %v2784_v0 = vld [vmem:[#allocation13 + $0xf8] sm:$0xff] }
 0x677   :  { %v2781_v31 = vld [vmem:[#allocation13 + $0xe0] sm:$0xff]  ;;  %v2779_v50 = vld [vmem:[#allocation13 + $0xd0] sm:$0xff] }
 0x678   :  { %v3094_v29 = vsel %vm1074_vm5, %v3092_v23, %v3093_v24  ;;  %v3091_v30 = vsel %vm1074_vm5, %v3089_v4, %v3090_v7  ;;  %v7066_v23 = vpack.c.bf16 %v2758_v47, %v2754_v57  ;;  %v2755_v4 = vld [vmem:[#allocation13 + $0x10] sm:$0xff]  ;;  %v2805_v45 = vld [vmem:[#allocation13 + $0x1a0] sm:$0xff] }
 0x679   :  { %3180 = vmatprep.mubr.f32.mxu0 %v3094_v29  ;;  %3346 = vmatprep.mubr.f32.mxu1 %v3094_v29  ;;  %v2917_v34 = vld [vmem:[#allocation3 + $0x38] sm:$0x7]  ;;  %v2916_v11 = vld [vmem:[#allocation3 + $0x30] sm:$0x7]  ;;  %v2803_v46 = vld [vmem:[#allocation13 + $0x190] sm:$0xff] }
 0x67a   :  { %3181 = vmatmul.mubr.f32.vlgmr.msra.gmra.mrb[8].mxu0 %v3091_v30  ;;  %3347 = vmatmul.mubr.f32.vlgmr.msra.gmra.mrb[8].mxu1 %v3091_v30  ;;  %v3100_v36 = vrot.slane %v2917_v34, 1  ;;  %v3098_v53 = vrot.slane %v2916_v11, 1  ;;  %v2766_v29 = vld [vmem:[#allocation13 + $0x68] sm:$0xff]  ;;  %v2918_v30 = vld [vmem:[#allocation3 + $0x40] sm:$0x7]  ;;  %v2761_v34 = vld [vmem:[#allocation13 + $0x40] sm:$0xff] }
 0x67b   :  { %6973 = vmatpush1.bf16.msra.mxu0 %v6972_v25  ;;  %7053 = vmatpush1.bf16.msra.mxu1 %v7052_v27  ;;  %v8392_v25 = vld [vmem:[#allocation4] sm:$0xff]  ;;  %v3096_v27 = vrot.slane %v8390_v3, 1  ;;  %v3102_v37 = vrot.slane %v2918_v30, 1  ;;  %v7070_v38 = vpack.c.bf16 %v2766_v29, %v2762_v28  ;;  %v7162_v28 = vpack.c.bf16 %v2792_v61, %v2788_v54  ;;  %v2791_v29 = vld [vmem:[#allocation13 + $0x130] sm:$0xff]  ;;  %v2794_v30 = vld [vmem:[#allocation13 + $0x148] sm:$0xff] }
 0x67c   :  { %v3101_v44 = vsel %vm1074_vm5, %v3093_v24, %v3100_v36  ;;  %6975 = vmatprep.subr.bf16.mxu0 %v6974_v32  ;;  %7055 = vmatprep.subr.bf16.mxu1 %v7054_v33  ;;  %v3099_v52 = vsel %vm1074_vm5, %v3090_v7, %v3098_v53  ;;  %v7146_v24 = vpack.c.bf16 %v2760_v15, %v2756_v14  ;;  %v2759_v7 = vld [vmem:[#allocation13 + $0x30] sm:$0xff]  ;;  %v2764_v32 = vld [vmem:[#allocation13 + $0x58] sm:$0xff]  ;;  %v2765_v11 = vld [vmem:[#allocation13 + $0x60] sm:$0xff] }
 0x67d   :  { %3186 = vmatprep.mubr.f32.mxu0 %v3101_v44  ;;  %3352 = vmatprep.mubr.f32.mxu1 %v3101_v44  ;;  %v2768_v33 = vld [vmem:[#allocation13 + $0x78] sm:$0xff]  ;;  %v7148_v10 = vpack.c.bf16 %v2759_v7, %v2755_v4  ;;  %v7072_v44 = vpack.c.bf16 %v2765_v11, %v2761_v34  ;;  %v3103_v48 = vsel %vm1074_vm5, %v3096_v27, %v3102_v37  ;;  %v2783_v14 = vld [vmem:[#allocation13 + $0xf0] sm:$0xff]  ;;  %v2786_v15 = vld [vmem:[#allocation13 + $0x108] sm:$0xff] }
 0x67e   :  { %3187 = vmatmul.mubr.f32.gmra.mrb[10].mxu0 %v3099_v52  ;;  %3353 = vmatmul.mubr.f32.gmra.mrb[10].mxu1 %v3099_v52  ;;  %v7150_v39 = vpack.c.bf16 %v2768_v33, %v2764_v32  ;;  %v2785_v4 = vld [vmem:[#allocation13 + $0x100] sm:$0xff]  ;;  %v2798_v32 = vld [vmem:[#allocation13 + $0x168] sm:$0xff]  ;;  %v2796_v33 = vld [vmem:[#allocation13 + $0x158] sm:$0xff] }
 0x67f   :  { %6977 = vmatpush1.bf16.msra.mxu0 %v6976_v41  ;;  %7057 = vmatpush1.bf16.msra.mxu1 %v7056_v42  ;;  %v2770_v41 = vld [vmem:[#allocation13 + $0x88] sm:$0xff]  ;;  %v2789_v7 = vld [vmem:[#allocation13 + $0x120] sm:$0xff]  ;;  %v7086_v34 = vpack.c.bf16 %v2798_v32, %v2794_v30 }
 0x680   :  { %3192 = vmatprep.mubr.f32.mxu0 %v3100_v36  ;;  %3358 = vmatprep.mubr.f32.mxu1 %v3100_v36  ;;  %v2767_v36 = vld [vmem:[#allocation13 + $0x70] sm:$0xff]  ;;  %v2774_v42 = vld [vmem:[#allocation13 + $0xa8] sm:$0xff]  ;;  %v2793_v11 = vld [vmem:[#allocation13 + $0x140] sm:$0xff] }
 0x681   :  { %6979 = vmatprep.subr.bf16.mxu0 %v6978_v49  ;;  %7059 = vmatprep.subr.bf16.mxu1 %v7058_v51  ;;  %v7152_v52 = vpack.c.bf16 %v2767_v36, %v2763_v35  ;;  %v7074_v49 = vpack.c.bf16 %v2774_v42, %v2770_v41  ;;  %v7154_v51 = vpack.c.bf16 %v2776_v40, %v2772_v43  ;;  %v2797_v35 = vld [vmem:[#allocation13 + $0x160] sm:$0xff]  ;;  %v2795_v36 = vld [vmem:[#allocation13 + $0x150] sm:$0xff]  ;;  %v2804_v41 = vld [vmem:[#allocation13 + $0x198] sm:$0xff] }
 0x682   :  { %3193 = vmatmul.mubr.f32.gmra.mrb[12].mxu0 %v3098_v53  ;;  %3359 = vmatmul.mubr.f32.gmra.mrb[12].mxu1 %v3098_v53  ;;  %v3097_v53 = vsel %vm1074_vm5, %v3095_v12, %v3096_v27  ;;  %v2787_v27 = vld [vmem:[#allocation13 + $0x110] sm:$0xff]  ;;  %v2800_v12 = vld [vmem:[#allocation13 + $0x178] sm:$0xff]  ;;  %v7088_v43 = vpack.c.bf16 %v2797_v35, %v2793_v11  ;;  %v2817_v61 = vld [vmem:[#allocation13 + $0x200] sm:$0xff] }
 0x683   :  { %6981 = vmatpush1.bf16.msra.mxu0 %v6980_v18  ;;  %7061 = vmatpush1.bf16.msra.mxu1 %v7060_v6  ;;  %v2782_v18 = vld [vmem:[#allocation13 + $0xe8] sm:$0xff]  ;;  %v2780_v6 = vld [vmem:[#allocation13 + $0xd8] sm:$0xff]  ;;  %v2831_v11 = vld [vmem:[#allocation13 + $0x270] sm:$0xff] }
 0x684   :  { %6983 = vmatprep.subr.bf16.mxu0 %v6982_v9  ;;  %7063 = vmatprep.subr.bf16.mxu1 %v7062_v17  ;;  %v7156_v9 = vpack.c.bf16 %v2775_v2, %v2771_v1  ;;  %v2777_v17 = vld [vmem:[#allocation13 + $0xc0] sm:$0xff]  ;;  %v7078_v57 = vpack.c.bf16 %v2782_v18, %v2778_v5  ;;  %v7158_v47 = vpack.c.bf16 %v2784_v0, %v2780_v6  ;;  %v2808_v42 = vld [vmem:[#allocation13 + $0x1b8] sm:$0xff]  ;;  %v2814_v1 = vld [vmem:[#allocation13 + $0x1e8] sm:$0xff] }
 0x685   :  { %3263 = vmatprep.mubr.f32.mxu0 %v8392_v25  ;;  %3429 = vmatprep.mubr.f32.mxu1 %v8392_v25  ;;  %v7080_v21 = vpack.c.bf16 %v2781_v31, %v2777_v17  ;;  %v2812_v2 = vld [vmem:[#allocation13 + $0x1d8] sm:$0xff]  ;;  %v2811_v17 = vld [vmem:[#allocation13 + $0x1d0] sm:$0xff]  ;;  %v2834_v35 = vld [vmem:[#allocation13 + $0x288] sm:$0xff] }
 0x686   :  { %v2816_v5 = vld [vmem:[#allocation13 + $0x1f8] sm:$0xff] }
 0x687   :  { %6985 = vmatpush1.bf16.msra.mxu0 %v6984_v58  ;;  %7065 = vmatpush1.bf16.msra.mxu1 %v7064_v16  ;;  %v2790_v58 = vld [vmem:[#allocation13 + $0x128] sm:$0xff]  ;;  %v2745_v16 = vld [vmem:[#allocation3 + $0x8] sm:$0xff]  ;;  %v7174_v31 = vpack.c.bf16 %v2816_v5, %v2812_v2 }
 0x688   :  { %7067 = vmatprep.subr.bf16.mxu0 %v7066_v23  ;;  %7147 = vmatprep.subr.bf16.mxu1 %v7146_v24  ;;  %v7160_v23 = vpack.c.bf16 %v2783_v14, %v2779_v50  ;;  %v7082_v24 = vpack.c.bf16 %v2790_v58, %v2786_v15  ;;  %v2815_v50 = vld [vmem:[#allocation13 + $0x1f0] sm:$0xff]  ;;  %v2820_v14 = vld [vmem:[#allocation13 + $0x218] sm:$0xff]  ;;  %v2841_v5 = vld [vmem:[#allocation13 + $0x2c0] sm:$0xff] }
 0x689   :  { %v2824_v15 = vld [vmem:[#allocation13 + $0x238] sm:$0xff] }
 0x68a   :  { %5984 = vmatmul.mubr.msk.f32.vlgmr.msra.gmra.mrb[8].mxu0 %vm137_vm1, %v3097_v53  ;;  %5987 = vmatmul.mubr.msk.f32.vlgmr.msra.gmra.mrb[8].mxu1 %vm137_vm1, %v3097_v53  ;;  %v7166_v53 = vpack.c.bf16 %v2800_v12, %v2796_v33  ;;  %v2825_v12 = vld [vmem:[#allocation13 + $0x240] sm:$0xff] }
 0x68b   :  { %7069 = vmatpush1.bf16.msra.mxu0 %v7068_v13  ;;  %7149 = vmatpush1.bf16.msra.mxu1 %v7148_v10  ;;  %v7084_v13 = vpack.c.bf16 %v2789_v7, %v2785_v4  ;;  %v7164_v10 = vpack.c.bf16 %v2791_v29, %v2787_v27  ;;  %v2823_v4 = vld [vmem:[#allocation13 + $0x230] sm:$0xff]  ;;  %v2826_v7 = vld [vmem:[#allocation13 + $0x248] sm:$0xff]  ;;  %v2832_v29 = vld [vmem:[#allocation13 + $0x278] sm:$0xff] }
 0x68c   :  { %3269 = vmatprep.mubr.f32.mxu0 %v8392_v25  ;;  %3435 = vmatprep.mubr.f32.mxu1 %v8392_v25  ;;  %v2830_v27 = vld [vmem:[#allocation13 + $0x268] sm:$0xff] }
 0x68d   :  { %7071 = vmatprep.subr.bf16.mxu0 %v7070_v38  ;;  %7151 = vmatprep.subr.bf16.mxu1 %v7150_v39  ;;  %v2802_v38 = vld [vmem:[#allocation13 + $0x188] sm:$0xff]  ;;  %v7102_v33 = vpack.c.bf16 %v2830_v27, %v2826_v7 }
 0x68e   :  { %5985 = vmatmul.mubr.msk.f32.gmra.mrb[10].mxu0 %vm137_vm1, %v3103_v48  ;;  %5988 = vmatmul.mubr.msk.f32.gmra.mrb[10].mxu1 %vm137_vm1, %v3103_v48  ;;  %v2806_v39 = vld [vmem:[#allocation13 + $0x1a8] sm:$0xff]  ;;  %v7170_v48 = vpack.c.bf16 %v2808_v42, %v2804_v41  ;;  %v2833_v42 = vld [vmem:[#allocation13 + $0x280] sm:$0xff] }
 0x68f   :  { %7073 = vmatpush1.bf16.msra.mxu0 %v7072_v44  ;;  %7153 = vmatpush1.bf16.msra.mxu1 %v7152_v52  ;;  %v7090_v44 = vpack.c.bf16 %v2806_v39, %v2802_v38  ;;  %v2801_v52 = vld [vmem:[#allocation13 + $0x180] sm:$0xff] }
 0x690   :  { %3275 = vmatprep.mubr.f32.mxu0 %v8392_v25  ;;  %3441 = vmatprep.mubr.f32.mxu1 %v8392_v25  ;;  %v7092_v18 = vpack.c.bf16 %v2805_v45, %v2801_v52  ;;  %v2839_v52 = vld [vmem:[#allocation13 + $0x2b0] sm:$0xff]  ;;  %v2842_v45 = vld [vmem:[#allocation13 + $0x2c8] sm:$0xff] }
 0x691   :  { %7075 = vmatprep.subr.bf16.mxu0 %v7074_v49  ;;  %7155 = vmatprep.subr.bf16.mxu1 %v7154_v51  ;;  %v2807_v49 = vld [vmem:[#allocation13 + $0x1b0] sm:$0xff]  ;;  %v2810_v51 = vld [vmem:[#allocation13 + $0x1c8] sm:$0xff] }
 0x692   :  { %5986 = vmatmul.mubr.msk.f32.gmra.mrb[12].mxu0 %vm137_vm1, %v3102_v37  ;;  %5989 = vmatmul.mubr.msk.f32.gmra.mrb[12].mxu1 %vm137_vm1, %v3102_v37  ;;  %v2799_v37 = vld [vmem:[#allocation13 + $0x170] sm:$0xff]  ;;  %v7172_v6 = vpack.c.bf16 %v2807_v49, %v2803_v46  ;;  %v7094_v0 = vpack.c.bf16 %v2814_v1, %v2810_v51  ;;  %v2846_v46 = vld [vmem:[#allocation13 + $0x2e8] sm:$0xff]  ;;  %v2848_v49 = vld [vmem:[#allocation13 + $0x2f8] sm:$0xff] }
 0x693   :  { %7077 = vmatpush1.bf16.msra.mxu0 %v7076_v8  ;;  %3520 = vmatprep.mubr.f32.mxu0 %v2745_v16  ;;  %v7168_v40 = vpack.c.bf16 %v2799_v37, %v2795_v36  ;;  %v2809_v8 = vld [vmem:[#allocation13 + $0x1c0] sm:$0xff]  ;;  %v2838_v36 = vld [vmem:[#allocation13 + $0x2a8] sm:$0xff]  ;;  %v2840_v37 = vld [vmem:[#allocation13 + $0x2b8] sm:$0xff]  ;;  %v7110_v2 = vpack.c.bf16 %v2846_v46, %v2842_v45 }
 0x694   :  { %7157 = vmatpush1.bf16.msra.mxu1 %v7156_v9  ;;  %3686 = vmatprep.mubr.f32.mxu1 %v2745_v16  ;;  %v2813_v9 = vld [vmem:[#allocation13 + $0x1e0] sm:$0xff]  ;;  %v7176_v16 = vpack.c.bf16 %v2815_v50, %v2811_v17  ;;  %v7106_v41 = vpack.c.bf16 %v2838_v36, %v2834_v35  ;;  %v2854_v17 = vld [vmem:[#allocation13 + $0x328] sm:$0xff]  ;;  %v2856_v50 = vld [vmem:[#allocation13 + $0x338] sm:$0xff] }
 0x695   :  { %7079 = vmatprep.subr.bf16.mxu0 %v7078_v57  ;;  %7159 = vmatprep.subr.bf16.mxu1 %v7158_v47  ;;  %v2818_v57 = vld [vmem:[#allocation13 + $0x208] sm:$0xff]  ;;  %v7096_v58 = vpack.c.bf16 %v2813_v9, %v2809_v8  ;;  %v2847_v8 = vld [vmem:[#allocation13 + $0x2f0] sm:$0xff] }
 0x696   :  { %v2822_v47 = vld [vmem:[#allocation13 + $0x228] sm:$0xff] }
 0x697   :  { %7081 = vmatpush1.bf16.msra.mxu0 %v7080_v21  ;;  %v7098_v54 = vpack.c.bf16 %v2822_v47, %v2818_v57  ;;  %v2821_v21 = vld [vmem:[#allocation13 + $0x220] sm:$0xff]  ;;  %v2850_v9 = vld [vmem:[#allocation13 + $0x308] sm:$0xff] }
 0x698   :  { %7161 = vmatpush1.bf16.msra.mxu1 %v7160_v23  ;;  %7083 = vmatprep.subr.bf16.mxu0 %v7082_v24  ;;  %v2819_v23 = vld [vmem:[#allocation13 + $0x210] sm:$0xff]  ;;  %v7178_v24 = vpack.c.bf16 %v2824_v15, %v2820_v14  ;;  %v7100_v30 = vpack.c.bf16 %v2821_v21, %v2817_v61  ;;  %v7114_v14 = vpack.c.bf16 %v2854_v17, %v2850_v9  ;;  %v2849_v15 = vld [vmem:[#allocation13 + $0x300] sm:$0xff]  ;;  %v2858_v21 = vld [vmem:[#allocation13 + $0x348] sm:$0xff] }
 0x699   :  { %7163 = vmatprep.subr.bf16.mxu1 %v7162_v28  ;;  %v2828_v28 = vld [vmem:[#allocation13 + $0x258] sm:$0xff]  ;;  %v7180_v32 = vpack.c.bf16 %v2823_v4, %v2819_v23  ;;  %v2855_v61 = vld [vmem:[#allocation13 + $0x330] sm:$0xff]  ;;  %v2862_v23 = vld [vmem:[#allocation13 + $0x368] sm:$0xff] }
 0x69a   :  { %v2864_v4 = vld [vmem:[#allocation13 + $0x378] sm:$0xff] }
 0x69b   :  { %7085 = vmatpush1.bf16.msra.mxu0 %v7084_v13  ;;  %v2829_v13 = vld [vmem:[#allocation13 + $0x260] sm:$0xff] }
 0x69c   :  { %7165 = vmatpush1.bf16.msra.mxu1 %v7164_v10  ;;  %7087 = vmatprep.subr.bf16.mxu0 %v7086_v34  ;;  %v2827_v10 = vld [vmem:[#allocation13 + $0x250] sm:$0xff]  ;;  %v7182_v34 = vpack.c.bf16 %v2832_v29, %v2828_v28  ;;  %v7104_v38 = vpack.c.bf16 %v2829_v13, %v2825_v12  ;;  %v7118_v28 = vpack.c.bf16 %v2862_v23, %v2858_v21  ;;  %v2857_v29 = vld [vmem:[#allocation13 + $0x340] sm:$0xff]  ;;  %v2866_v13 = vld [vmem:[#allocation13 + $0x388] sm:$0xff] }
 0x69d   :  { %7167 = vmatprep.subr.bf16.mxu1 %v7166_v53  ;;  %v2836_v53 = vld [vmem:[#allocation13 + $0x298] sm:$0xff]  ;;  %v7184_v39 = vpack.c.bf16 %v2831_v11, %v2827_v10  ;;  %v2863_v12 = vld [vmem:[#allocation13 + $0x370] sm:$0xff]  ;;  %v2870_v10 = vld [vmem:[#allocation13 + $0x3a8] sm:$0xff] }
 0x69e   :  { %v2872_v11 = vld [vmem:[#allocation13 + $0x3b8] sm:$0xff]  ;;  %v2889_v23 = vld [vmem:[#allocation13 + $0x440] sm:$0xff] }
 0x69f   :  { %7089 = vmatpush1.bf16.msra.mxu0 %v7088_v43  ;;  %v2837_v43 = vld [vmem:[#allocation13 + $0x2a0] sm:$0xff] }
 0x6a0   :  { %7169 = vmatpush1.bf16.msra.mxu1 %v7168_v40  ;;  %7091 = vmatprep.subr.bf16.mxu0 %v7090_v44  ;;  %v2835_v40 = vld [vmem:[#allocation13 + $0x290] sm:$0xff]  ;;  %v7186_v44 = vpack.c.bf16 %v2840_v37, %v2836_v53  ;;  %v7108_v51 = vpack.c.bf16 %v2837_v43, %v2833_v42  ;;  %v7122_v53 = vpack.c.bf16 %v2870_v10, %v2866_v13  ;;  %v2865_v37 = vld [vmem:[#allocation13 + $0x380] sm:$0xff]  ;;  %v2874_v43 = vld [vmem:[#allocation13 + $0x3c8] sm:$0xff] }
 0x6a1   :  { %7171 = vmatprep.subr.bf16.mxu1 %v7170_v48  ;;  %v2844_v48 = vld [vmem:[#allocation13 + $0x2d8] sm:$0xff]  ;;  %v7188_v1 = vpack.c.bf16 %v2839_v52, %v2835_v40  ;;  %v2871_v42 = vld [vmem:[#allocation13 + $0x3b0] sm:$0xff]  ;;  %v2878_v40 = vld [vmem:[#allocation13 + $0x3e8] sm:$0xff] }
 0x6a2   :  { %v2880_v52 = vld [vmem:[#allocation13 + $0x3f8] sm:$0xff] }
 0x6a3   :  { %7093 = vmatpush1.bf16.msra.mxu0 %v7092_v18  ;;  %v2845_v18 = vld [vmem:[#allocation13 + $0x2e0] sm:$0xff]  ;;  %v2904_v13 = vld [vmem:[#allocation13 + $0x4b8] sm:$0xff] }
 0x6a4   :  { %7173 = vmatpush1.bf16.msra.mxu1 %v7172_v6  ;;  %7095 = vmatprep.subr.bf16.mxu0 %v7094_v0  ;;  %v2843_v6 = vld [vmem:[#allocation13 + $0x2d0] sm:$0xff]  ;;  %v7190_v0 = vpack.c.bf16 %v2848_v49, %v2844_v48  ;;  %v7112_v57 = vpack.c.bf16 %v2845_v18, %v2841_v5  ;;  %v7126_v48 = vpack.c.bf16 %v2878_v40, %v2874_v43  ;;  %v2873_v49 = vld [vmem:[#allocation13 + $0x3c0] sm:$0xff]  ;;  %v2882_v18 = vld [vmem:[#allocation13 + $0x408] sm:$0xff] }
 0x6a5   :  { %7175 = vmatprep.subr.bf16.mxu1 %v7174_v31  ;;  %v2852_v31 = vld [vmem:[#allocation13 + $0x318] sm:$0xff]  ;;  %v7192_v47 = vpack.c.bf16 %v2847_v8, %v2843_v6  ;;  %v2879_v5 = vld [vmem:[#allocation13 + $0x3f0] sm:$0xff]  ;;  %v2886_v6 = vld [vmem:[#allocation13 + $0x428] sm:$0xff] }
 0x6a6   :  { %v2888_v8 = vld [vmem:[#allocation13 + $0x438] sm:$0xff] }
 0x6a7   :  { %7097 = vmatpush1.bf16.msra.mxu0 %v7096_v58  ;;  %v2853_v58 = vld [vmem:[#allocation13 + $0x320] sm:$0xff]  ;;  %v2908_v43 = vld [vmem:[#allocation13 + $0x4d8] sm:$0xff] }
 0x6a8   :  { %7177 = vmatpush1.bf16.msra.mxu1 %v7176_v16  ;;  %7099 = vmatprep.subr.bf16.mxu0 %v7098_v54  ;;  %v2851_v16 = vld [vmem:[#allocation13 + $0x310] sm:$0xff]  ;;  %v7194_v54 = vpack.c.bf16 %v2856_v50, %v2852_v31  ;;  %v7116_v7 = vpack.c.bf16 %v2853_v58, %v2849_v15  ;;  %v7130_v31 = vpack.c.bf16 %v2886_v6, %v2882_v18  ;;  %v2890_v58 = vld [vmem:[#allocation13 + $0x448] sm:$0xff]  ;;  %v2912_v40 = vld [vmem:[#allocation13 + $0x4f8] sm:$0xff] }
 0x6a9   :  { %7179 = vmatprep.subr.bf16.mxu1 %v7178_v24  ;;  %v2860_v24 = vld [vmem:[#allocation13 + $0x358] sm:$0xff]  ;;  %v7196_v27 = vpack.c.bf16 %v2855_v61, %v2851_v16  ;;  %v2887_v15 = vld [vmem:[#allocation13 + $0x430] sm:$0xff]  ;;  %v2894_v16 = vld [vmem:[#allocation13 + $0x468] sm:$0xff] }
 0x6aa   :  { %v2896_v61 = vld [vmem:[#allocation13 + $0x478] sm:$0xff] }
 0x6ab   :  { %7101 = vmatpush1.bf16.msra.mxu0 %v7100_v30  ;;  %v2861_v30 = vld [vmem:[#allocation13 + $0x360] sm:$0xff]  ;;  %v3798_v18 = vld [vmem:[#allocation13 + $0xa18] sm:$0xff] }
 0x6ac   :  { %7181 = vmatpush1.bf16.msra.mxu1 %v7180_v32  ;;  %7103 = vmatprep.subr.bf16.mxu0 %v7102_v33  ;;  %v2859_v32 = vld [vmem:[#allocation13 + $0x350] sm:$0xff]  ;;  %v7198_v33 = vpack.c.bf16 %v2864_v4, %v2860_v24  ;;  %v7120_v35 = vpack.c.bf16 %v2861_v30, %v2857_v29  ;;  %v3802_v6 = vld [vmem:[#allocation13 + $0xa38] sm:$0xff] }
 0x6ad   :  { %7183 = vmatprep.subr.bf16.mxu1 %v7182_v34  ;;  %v2868_v34 = vld [vmem:[#allocation13 + $0x398] sm:$0xff]  ;;  %v7200_v36 = vpack.c.bf16 %v2863_v12, %v2859_v32  ;;  %v2895_v30 = vld [vmem:[#allocation13 + $0x470] sm:$0xff]  ;;  %v2898_v32 = vld [vmem:[#allocation13 + $0x488] sm:$0xff] }
 0x6ae   :  { %v2744_v24 = vld [vmem:[#allocation3] sm:$0xff] }
 0x6af   :  { %7105 = vmatpush1.bf16.msra.mxu0 %v7104_v38  ;;  %v2869_v38 = vld [vmem:[#allocation13 + $0x3a0] sm:$0xff]  ;;  %v2900_v12 = vld [vmem:[#allocation13 + $0x498] sm:$0xff] }
 0x6b0   :  { %7185 = vmatpush1.bf16.msra.mxu1 %v7184_v39  ;;  %7107 = vmatprep.subr.bf16.mxu0 %v7106_v41  ;;  %v2867_v39 = vld [vmem:[#allocation13 + $0x390] sm:$0xff]  ;;  %v7202_v41 = vpack.c.bf16 %v2872_v11, %v2868_v34  ;;  %v7124_v45 = vpack.c.bf16 %v2869_v38, %v2865_v37  ;;  %v2897_v34 = vld [vmem:[#allocation13 + $0x480] sm:$0xff]  ;;  %v2751_v38 = vld [vmem:[#allocation3 + $0x38] sm:$0x3] }
 0x6b1   :  { %7187 = vmatprep.subr.bf16.mxu1 %v7186_v44  ;;  %v2876_v44 = vld [vmem:[#allocation13 + $0x3d8] sm:$0xff]  ;;  %v7204_v46 = vpack.c.bf16 %v2871_v42, %v2867_v39  ;;  %v2903_v37 = vld [vmem:[#allocation13 + $0x4b0] sm:$0xff]  ;;  %v7218_v39 = vpack.c.bf16 %v2904_v13, %v2900_v12  ;;  %v2910_v42 = vld [vmem:[#allocation13 + $0x4e8] sm:$0xff] }
 0x6b2   :  { %v3818_v12 = vld [vmem:[#allocation13 + $0xab8] sm:$0xff] }
 0x6b3   :  { %7109 = vmatpush1.bf16.msra.mxu0 %v7108_v51  ;;  %v2877_v51 = vld [vmem:[#allocation13 + $0x3e0] sm:$0xff] }
 0x6b4   :  { %7189 = vmatpush1.bf16.msra.mxu1 %v7188_v1  ;;  %7111 = vmatprep.subr.bf16.mxu0 %v7110_v2  ;;  %v2875_v1 = vld [vmem:[#allocation13 + $0x3d0] sm:$0xff]  ;;  %v7206_v2 = vpack.c.bf16 %v2880_v52, %v2876_v44  ;;  %v7128_v9 = vpack.c.bf16 %v2877_v51, %v2873_v49  ;;  %v2905_v52 = vld [vmem:[#allocation13 + $0x4c0] sm:$0xff] }
 0x6b5   :  { %7191 = vmatprep.subr.bf16.mxu1 %v7190_v0  ;;  %v2884_v0 = vld [vmem:[#allocation13 + $0x418] sm:$0xff]  ;;  %v7208_v17 = vpack.c.bf16 %v2879_v5, %v2875_v1  ;;  %v2909_v49 = vld [vmem:[#allocation13 + $0x4e0] sm:$0xff]  ;;  %v2907_v51 = vld [vmem:[#allocation13 + $0x4d0] sm:$0xff]  ;;  %v7222_v1 = vpack.c.bf16 %v2912_v40, %v2908_v43 }
 0x6b6   :  { %v7210_v50 = vpack.c.bf16 %v2888_v8, %v2884_v0  ;;  %v3796_v5 = vld [vmem:[#allocation13 + $0xa08] sm:$0xff]  ;;  %v7144_v0 = vpack.c.bf16 %v2909_v49, %v2905_v52  ;;  %v3822_v43 = vld [vmem:[#allocation13 + $0xad8] sm:$0xff]  ;;  %v2752_v49 = vld [vmem:[#allocation3 + $0x40] sm:$0x3] }
 0x6b7   :  { %7113 = vmatpush1.bf16.msra.mxu0 %v7112_v57  ;;  %v2881_v57 = vld [vmem:[#allocation13 + $0x400] sm:$0xff]  ;;  %v3826_v40 = vld [vmem:[#allocation13 + $0xaf8] sm:$0xff] }
 0x6b8   :  { %7193 = vmatpush1.bf16.msra.mxu1 %v7192_v47  ;;  %7115 = vmatprep.subr.bf16.mxu0 %v7114_v14  ;;  %v2885_v47 = vld [vmem:[#allocation13 + $0x420] sm:$0xff]  ;;  %v2883_v14 = vld [vmem:[#allocation13 + $0x410] sm:$0xff] }
 0x6b9   :  { %7195 = vmatprep.subr.bf16.mxu1 %v7194_v54  ;;  %v2892_v54 = vld [vmem:[#allocation13 + $0x458] sm:$0xff]  ;;  %v7132_v21 = vpack.c.bf16 %v2885_v47, %v2881_v57  ;;  %v7212_v4 = vpack.c.bf16 %v2887_v15, %v2883_v14  ;;  %v3797_v57 = vld [vmem:[#allocation13 + $0xa10] sm:$0xff]  ;;  %v3804_v14 = vld [vmem:[#allocation13 + $0xa48] sm:$0xff] }
 0x6ba   :  { %v7214_v29 = vpack.c.bf16 %v2896_v61, %v2892_v54  ;;  %v3801_v47 = vld [vmem:[#allocation13 + $0xa30] sm:$0xff]  ;;  %v3808_v15 = vld [vmem:[#allocation13 + $0xa68] sm:$0xff]  ;;  %v3810_v54 = vld [vmem:[#allocation13 + $0xa78] sm:$0xff] }
 0x6bb   :  { %7117 = vmatpush1.bf16.msra.mxu0 %v7116_v7  ;;  %v7134_v7 = vpack.c.bf16 %v2894_v16, %v2890_v58  ;;  %v3806_v16 = vld [vmem:[#allocation13 + $0xa58] sm:$0xff]  ;;  %v7308_v61 = vpack.c.bf16 %v3801_v47, %v3797_v57  ;;  %v3833_v57 = vld [vmem:[#allocation13 + $0xb30] sm:$0xff]  ;;  %v3836_v47 = vld [vmem:[#allocation13 + $0xb48] sm:$0xff] }
 0x6bc   :  { %7197 = vmatpush1.bf16.msra.mxu1 %v7196_v27  ;;  %7119 = vmatprep.subr.bf16.mxu0 %v7118_v28  ;;  %v2893_v27 = vld [vmem:[#allocation13 + $0x460] sm:$0xff]  ;;  %v2891_v28 = vld [vmem:[#allocation13 + $0x450] sm:$0xff] }
 0x6bd   :  { %7199 = vmatprep.subr.bf16.mxu1 %v7198_v33  ;;  %v2902_v33 = vld [vmem:[#allocation13 + $0x4a8] sm:$0xff]  ;;  %v7136_v10 = vpack.c.bf16 %v2893_v27, %v2889_v23  ;;  %v7216_v11 = vpack.c.bf16 %v2895_v30, %v2891_v28  ;;  %v3807_v23 = vld [vmem:[#allocation13 + $0xa60] sm:$0xff]  ;;  %v3809_v27 = vld [vmem:[#allocation13 + $0xa70] sm:$0xff]  ;;  %v7310_v28 = vpack.c.bf16 %v3810_v54, %v3806_v16 }
 0x6be   :  { %v3816_v30 = vld [vmem:[#allocation13 + $0xaa8] sm:$0xff] }
 0x6bf   :  { %7121 = vmatpush1.bf16.msra.mxu0 %v7120_v35  ;;  %v7138_v35 = vpack.c.bf16 %v2902_v33, %v2898_v32  ;;  %v3814_v33 = vld [vmem:[#allocation13 + $0xa98] sm:$0xff] }
 0x6c0   :  { %7201 = vmatpush1.bf16.msra.mxu1 %v7200_v36  ;;  %7123 = vmatprep.subr.bf16.mxu0 %v7122_v53  ;;  %v2901_v36 = vld [vmem:[#allocation13 + $0x4a0] sm:$0xff]  ;;  %v2899_v53 = vld [vmem:[#allocation13 + $0x490] sm:$0xff] }
 0x6c1   :  { %7203 = vmatprep.subr.bf16.mxu1 %v7202_v41  ;;  %v2906_v41 = vld [vmem:[#allocation13 + $0x4c8] sm:$0xff]  ;;  %v7140_v44 = vpack.c.bf16 %v2901_v36, %v2897_v34  ;;  %v3815_v34 = vld [vmem:[#allocation13 + $0xaa0] sm:$0xff]  ;;  %v3817_v36 = vld [vmem:[#allocation13 + $0xab0] sm:$0xff] }
 0x6c3   :  { %7125 = vmatpush1.bf16.msra.mxu0 %v7124_v45  ;;  %v2750_v45 = vld [vmem:[#allocation3 + $0x30] sm:$0x3] }
 0x6c4   :  { %7205 = vmatpush1.bf16.msra.mxu1 %v7204_v46  ;;  %7127 = vmatprep.subr.bf16.mxu0 %v7126_v48  ;;  %v7220_v46 = vpack.c.bf16 %v2903_v37, %v2899_v53  ;;  %v7142_v48 = vpack.c.bf16 %v2910_v42, %v2906_v41  ;;  %v7314_v53 = vpack.c.bf16 %v3818_v12, %v3814_v33  ;;  %v3789_v37 = vld [vmem:[#allocation3 + $0x8] sm:$0xfc]  ;;  %v3965_v42 = vrot.slane %v8380_v19, 2 }
 0x6c5   :  { %7207 = vmatprep.subr.bf16.mxu1 %v7206_v2  ;;  %v2911_v2 = vld [vmem:[#allocation13 + $0x4f0] sm:$0xff] }
 0x6c6   :  { %v7224_v8 = vpack.c.bf16 %v2911_v2, %v2907_v51  ;;  %v3964_v51 = vrot.slane %v3789_v37, 2  ;;  %v3832_v2 = vld [vmem:[#allocation13 + $0xb28] sm:$0xff]  ;;  %v3854_v37 = vld [vmem:[#allocation13 + $0xbd8] sm:$0xff] }
 0x6c7   :  { %7129 = vmatpush1.bf16.msra.mxu0 %v7128_v9 }
 0x6c8   :  { %7209 = vmatpush1.bf16.msra.mxu1 %v7208_v17  ;;  %7131 = vmatprep.subr.bf16.mxu0 %v7130_v31  ;;  %v3795_v17 = vld [vmem:[#allocation13 + $0xa00] sm:$0xff] }
 0x6c9   :  { %7211 = vmatprep.subr.bf16.mxu1 %v7210_v50  ;;  %v3799_v31 = vld [vmem:[#allocation13 + $0xa20] sm:$0xff]  ;;  %v7306_v50 = vpack.c.bf16 %v3802_v6, %v3798_v18  ;;  %v3834_v18 = vld [vmem:[#allocation13 + $0xb38] sm:$0xff]  ;;  %v3966_v6 = vsel %vm1911_vm6, %v3964_v51, %v3965_v42 }
 0x6ca   :  { %3521 = vmatmul.mubr.f32.vlgmr.msra.gmra.mrb[8].mxu0 %v2744_v24  ;;  %v7228_v58 = vpack.c.bf16 %v3799_v31, %v3795_v17  ;;  %v3831_v17 = vld [vmem:[#allocation13 + $0xb20] sm:$0xff]  ;;  %v3829_v31 = vld [vmem:[#allocation13 + $0xb10] sm:$0xff]  ;;  %v3862_v51 = vld [vmem:[#allocation13 + $0xc18] sm:$0xff] }
 0x6cb   :  { %3687 = vmatmul.mubr.f32.vlgmr.msra.gmra.mrb[8].mxu1 %v2744_v24  ;;  %3526 = vmatprep.mubr.f32.mxu0 %v8380_v19  ;;  %v2746_v24 = vld [vmem:[#allocation3 + $0x10] sm:$0xff]  ;;  %v7324_v54 = vpack.c.bf16 %v3833_v57, %v3829_v31  ;;  %v3874_v31 = vld [vmem:[#allocation13 + $0xc78] sm:$0xff] }
 0x6cc   :  { %7133 = vmatpush1.bf16.msra.mxu0 %v7132_v21  ;;  %3692 = vmatprep.mubr.f32.mxu1 %v8380_v19  ;;  %v3803_v21 = vld [vmem:[#allocation13 + $0xa40] sm:$0xff] }
 0x6cd   :  { %7213 = vmatpush1.bf16.msra.mxu1 %v7212_v4  ;;  %7135 = vmatprep.subr.bf16.mxu0 %v7134_v7  ;;  %v7230_v4 = vpack.c.bf16 %v3808_v15, %v3804_v14  ;;  %v3805_v7 = vld [vmem:[#allocation13 + $0xa50] sm:$0xff]  ;;  %v7232_v32 = vpack.c.bf16 %v3807_v23, %v3803_v21  ;;  %v3840_v14 = vld [vmem:[#allocation13 + $0xb68] sm:$0xff]  ;;  %v3838_v15 = vld [vmem:[#allocation13 + $0xb58] sm:$0xff] }
 0x6ce   :  { %3527 = vmatmul.mubr.f32.gmra.mrb[10].mxu0 %v8382_v20  ;;  %7215 = vmatprep.subr.bf16.mxu1 %v7214_v29  ;;  %v3812_v29 = vld [vmem:[#allocation13 + $0xa88] sm:$0xff]  ;;  %v7312_v13 = vpack.c.bf16 %v3809_v27, %v3805_v7  ;;  %v3835_v21 = vld [vmem:[#allocation13 + $0xb40] sm:$0xff]  ;;  %v3841_v7 = vld [vmem:[#allocation13 + $0xb70] sm:$0xff] }
 0x6cf   :  { %3693 = vmatmul.mubr.f32.gmra.mrb[10].mxu1 %v8382_v20  ;;  %3532 = vmatprep.mubr.f32.mxu0 %v2751_v38  ;;  %v3800_v20 = vld [vmem:[#allocation13 + $0xa28] sm:$0xff]  ;;  %v3839_v23 = vld [vmem:[#allocation13 + $0xb60] sm:$0xff] }
 0x6d0   :  { %7137 = vmatpush1.bf16.msra.mxu0 %v7136_v10  ;;  %3698 = vmatprep.mubr.f32.mxu1 %v2751_v38  ;;  %v7226_v9 = vpack.c.bf16 %v3800_v20, %v3796_v5  ;;  %v3811_v10 = vld [vmem:[#allocation13 + $0xa80] sm:$0xff]  ;;  %v3820_v38 = vld [vmem:[#allocation13 + $0xac8] sm:$0xff]  ;;  %v7318_v5 = vpack.c.bf16 %v3826_v40, %v3822_v43  ;;  %v3830_v20 = vld [vmem:[#allocation13 + $0xb18] sm:$0xff] }
 0x6d1   :  { %7217 = vmatpush1.bf16.msra.mxu1 %v7216_v11  ;;  %7139 = vmatprep.subr.bf16.mxu0 %v7138_v35  ;;  %v7234_v11 = vpack.c.bf16 %v3816_v30, %v3812_v29  ;;  %v3813_v35 = vld [vmem:[#allocation13 + $0xa90] sm:$0xff]  ;;  %v7236_v41 = vpack.c.bf16 %v3815_v34, %v3811_v10  ;;  %v3844_v27 = vld [vmem:[#allocation13 + $0xb88] sm:$0xff]  ;;  %v3846_v29 = vld [vmem:[#allocation13 + $0xb98] sm:$0xff] }
 0x6d2   :  { %3533 = vmatmul.mubr.f32.gmra.mrb[12].mxu0 %v2750_v45  ;;  %7219 = vmatprep.subr.bf16.mxu1 %v7218_v39  ;;  %v3824_v39 = vld [vmem:[#allocation13 + $0xae8] sm:$0xff]  ;;  %v7316_v52 = vpack.c.bf16 %v3817_v36, %v3813_v35  ;;  %v3850_v30 = vld [vmem:[#allocation13 + $0xbb8] sm:$0xff]  ;;  %v3847_v10 = vld [vmem:[#allocation13 + $0xba0] sm:$0xff] }
 0x6d3   :  { %3699 = vmatmul.mubr.f32.gmra.mrb[12].mxu1 %v2750_v45  ;;  %3603 = vmatprep.mubr.f32.mxu0 %v8392_v25  ;;  %v3823_v45 = vld [vmem:[#allocation13 + $0xae0] sm:$0xff]  ;;  %v3845_v34 = vld [vmem:[#allocation13 + $0xb90] sm:$0xff]  ;;  %v3852_v36 = vld [vmem:[#allocation13 + $0xbc8] sm:$0xff] }
 0x6d4   :  { %7141 = vmatpush1.bf16.msra.mxu0 %v7140_v44  ;;  %3769 = vmatprep.mubr.f32.mxu1 %v8392_v25  ;;  %v3819_v44 = vld [vmem:[#allocation13 + $0xac0] sm:$0xff]  ;;  %v3849_v35 = vld [vmem:[#allocation13 + $0xbb0] sm:$0xff] }
 0x6d5   :  { %7221 = vmatpush1.bf16.msra.mxu1 %v7220_v46  ;;  %7143 = vmatprep.subr.bf16.mxu0 %v7142_v48  ;;  %v3821_v46 = vld [vmem:[#allocation13 + $0xad0] sm:$0xff]  ;;  %v3851_v40 = vld [vmem:[#allocation13 + $0xbc0] sm:$0xff] }
 0x6d6   :  { %7223 = vmatprep.subr.bf16.mxu1 %v7222_v1  ;;  %v3825_v48 = vld [vmem:[#allocation13 + $0xaf0] sm:$0xff]  ;;  %v3828_v1 = vld [vmem:[#allocation13 + $0xb08] sm:$0xff]  ;;  %v3939_v19 = vld [vmem:[#allocation13 + $0xe80] sm:$0xff] }
 0x6d8   :  { %7145 = vmatpush1.bf16.msra.mxu0 %v7144_v0  ;;  %v7320_v0 = vpack.c.bf16 %v3825_v48, %v3821_v46  ;;  %v3857_v46 = vld [vmem:[#allocation13 + $0xbf0] sm:$0xff]  ;;  %v3860_v48 = vld [vmem:[#allocation13 + $0xc08] sm:$0xff] }
 0x6d9   :  { %7225 = vmatpush1.bf16.msra.mxu1 %v7224_v8  ;;  %7227 = vmatprep.subr.bf16.mxu0 %v7226_v9  ;;  %v7242_v8 = vpack.c.bf16 %v3832_v2, %v3828_v1  ;;  %v3827_v9 = vld [vmem:[#allocation13 + $0xb00] sm:$0xff] }
 0x6da   :  { %7307 = vmatprep.subr.bf16.mxu1 %v7306_v50  ;;  %v7322_v50 = vpack.c.bf16 %v3834_v18, %v3830_v20  ;;  %v7244_v16 = vpack.c.bf16 %v3831_v17, %v3827_v9  ;;  %v3859_v20 = vld [vmem:[#allocation13 + $0xc00] sm:$0xff]  ;;  %v3872_v9 = vld [vmem:[#allocation13 + $0xc68] sm:$0xff]  ;;  %v3870_v17 = vld [vmem:[#allocation13 + $0xc58] sm:$0xff] }
 0x6db   :  { %5990 = vmatmul.mubr.msk.f32.vlgmr.msra.gmra.mrb[8].mxu0 %vm137_vm1, %v2746_v24  ;;  %v3863_v18 = vld [vmem:[#allocation13 + $0xc20] sm:$0xff] }
 0x6dc   :  { %5993 = vmatmul.mubr.msk.f32.vlgmr.msra.gmra.mrb[8].mxu1 %vm137_vm1, %v2746_v24  ;;  %7229 = vmatpush1.bf16.msra.mxu0 %v7228_v58  ;;  %v3842_v58 = vld [vmem:[#allocation13 + $0xb78] sm:$0xff]  ;;  %v3837_v24 = vld [vmem:[#allocation13 + $0xb50] sm:$0xff] }
 0x6dd   :  { %7309 = vmatpush1.bf16.msra.mxu1 %v7308_v61  ;;  %3609 = vmatprep.mubr.f32.mxu0 %v8392_v25  ;;  %v7246_v61 = vpack.c.bf16 %v3840_v14, %v3836_v47  ;;  %v7328_v33 = vpack.c.bf16 %v3841_v7, %v3837_v24  ;;  %v3867_v14 = vld [vmem:[#allocation13 + $0xc40] sm:$0xff]  ;;  %v3882_v24 = vld [vmem:[#allocation13 + $0xcb8] sm:$0xff] }
 0x6de   :  { %3775 = vmatprep.mubr.f32.mxu1 %v8392_v25  ;;  %7231 = vmatprep.subr.bf16.mxu0 %v7230_v4  ;;  %v7326_v4 = vpack.c.bf16 %v3842_v58, %v3838_v15  ;;  %v3871_v15 = vld [vmem:[#allocation13 + $0xc60] sm:$0xff]  ;;  %v3869_v58 = vld [vmem:[#allocation13 + $0xc50] sm:$0xff] }
 0x6df   :  { %5991 = vmatmul.mubr.msk.f32.gmra.mrb[10].mxu0 %vm137_vm1, %v8390_v3  ;;  %7311 = vmatprep.subr.bf16.mxu1 %v7310_v28  ;;  %v3848_v28 = vld [vmem:[#allocation13 + $0xba8] sm:$0xff] }
 0x6e0   :  { %5994 = vmatmul.mubr.msk.f32.gmra.mrb[10].mxu1 %vm137_vm1, %v8390_v3  ;;  %7233 = vmatpush1.bf16.msra.mxu0 %v7232_v32  ;;  %v7238_v3 = vpack.c.bf16 %v3824_v39, %v3820_v38  ;;  %v7248_v32 = vpack.c.bf16 %v3839_v23, %v3835_v21  ;;  %v7250_v12 = vpack.c.bf16 %v3848_v28, %v3844_v27  ;;  %v3858_v38 = vld [vmem:[#allocation13 + $0xbf8] sm:$0xff]  ;;  %v3880_v21 = vld [vmem:[#allocation13 + $0xca8] sm:$0xff]  ;;  %v3875_v28 = vld [vmem:[#allocation13 + $0xc80] sm:$0xff] }
 0x6e1   :  { %7313 = vmatpush1.bf16.msra.mxu1 %v7312_v13  ;;  %3615 = vmatprep.mubr.f32.mxu0 %v8392_v25  ;;  %v3843_v13 = vld [vmem:[#allocation13 + $0xb80] sm:$0xff]  ;;  %v3878_v23 = vld [vmem:[#allocation13 + $0xc98] sm:$0xff] }
 0x6e2   :  { %3781 = vmatprep.mubr.f32.mxu1 %v8392_v25  ;;  %7235 = vmatprep.subr.bf16.mxu0 %v7234_v11  ;;  %v7240_v25 = vpack.c.bf16 %v3823_v45, %v3819_v44  ;;  %v7330_v11 = vpack.c.bf16 %v3850_v30, %v3846_v29  ;;  %v7252_v39 = vpack.c.bf16 %v3847_v10, %v3843_v13  ;;  %v3855_v44 = vld [vmem:[#allocation13 + $0xbe0] sm:$0xff]  ;;  %v3877_v30 = vld [vmem:[#allocation13 + $0xc90] sm:$0xff]  ;;  %v3888_v13 = vld [vmem:[#allocation13 + $0xce8] sm:$0xff] }
 0x6e3   :  { %5992 = vmatmul.mubr.msk.f32.gmra.mrb[12].mxu0 %vm137_vm1, %v2752_v49  ;;  %7315 = vmatprep.subr.bf16.mxu1 %v7314_v53  ;;  %v3856_v53 = vld [vmem:[#allocation13 + $0xbe8] sm:$0xff]  ;;  %v7334_v45 = vpack.c.bf16 %v3858_v38, %v3854_v37  ;;  %v7256_v1 = vpack.c.bf16 %v3855_v44, %v3851_v40  ;;  %v3879_v29 = vld [vmem:[#allocation13 + $0xca0] sm:$0xff]  ;;  %v3886_v10 = vld [vmem:[#allocation13 + $0xcd8] sm:$0xff] }
 0x6e4   :  { %5995 = vmatmul.mubr.msk.f32.gmra.mrb[12].mxu1 %vm137_vm1, %v2752_v49  ;;  %7237 = vmatpush1.bf16.msra.mxu0 %v7236_v41  ;;  %v7332_v41 = vpack.c.bf16 %v3849_v35, %v3845_v34  ;;  %v7254_v43 = vpack.c.bf16 %v3856_v53, %v3852_v36  ;;  %v3864_v49 = vld [vmem:[#allocation13 + $0xc28] sm:$0xff]  ;;  %v3890_v34 = vld [vmem:[#allocation13 + $0xcf8] sm:$0xff]  ;;  %v3883_v53 = vld [vmem:[#allocation13 + $0xcc0] sm:$0xff] }
 0x6e5   :  { %4052 = vmatprep.mubr.f32.mxu0 %v3966_v6  ;;  %7317 = vmatpush1.bf16.msra.mxu1 %v7316_v52  ;;  %v3853_v52 = vld [vmem:[#allocation13 + $0xbd0] sm:$0xff]  ;;  %v3887_v37 = vld [vmem:[#allocation13 + $0xce0] sm:$0xff]  ;;  %v3896_v40 = vld [vmem:[#allocation13 + $0xd28] sm:$0xff] }
 0x6e6   :  { %4218 = vmatprep.mubr.f32.mxu1 %v3966_v6  ;;  %7239 = vmatprep.subr.bf16.mxu0 %v7238_v3  ;;  %v3866_v3 = vld [vmem:[#allocation13 + $0xc38] sm:$0xff]  ;;  %v7336_v2 = vpack.c.bf16 %v3857_v46, %v3853_v52  ;;  %v3861_v6 = vld [vmem:[#allocation13 + $0xc10] sm:$0xff] }
 0x6e7   :  { %7319 = vmatprep.subr.bf16.mxu1 %v7318_v5  ;;  %v7258_v5 = vpack.c.bf16 %v3864_v49, %v3860_v48  ;;  %v3885_v38 = vld [vmem:[#allocation13 + $0xcd0] sm:$0xff]  ;;  %v3894_v44 = vld [vmem:[#allocation13 + $0xd18] sm:$0xff]  ;;  %v3891_v49 = vld [vmem:[#allocation13 + $0xd00] sm:$0xff] }
 0x6e8   :  { %7241 = vmatpush1.bf16.msra.mxu0 %v7240_v25  ;;  %v7338_v25 = vpack.c.bf16 %v3866_v3, %v3862_v51  ;;  %v3898_v52 = vld [vmem:[#allocation13 + $0xd38] sm:$0xff]  ;;  %v3895_v51 = vld [vmem:[#allocation13 + $0xd20] sm:$0xff]  ;;  %v3893_v3 = vld [vmem:[#allocation13 + $0xd10] sm:$0xff] }
 0x6e9   :  { %7321 = vmatpush1.bf16.msra.mxu1 %v7320_v0  ;;  %7243 = vmatprep.subr.bf16.mxu0 %v7242_v8  ;;  %v3865_v0 = vld [vmem:[#allocation13 + $0xc30] sm:$0xff]  ;;  %v3868_v8 = vld [vmem:[#allocation13 + $0xc48] sm:$0xff] }
 0x6ea   :  { %7323 = vmatprep.subr.bf16.mxu1 %v7322_v50  ;;  %v7260_v50 = vpack.c.bf16 %v3863_v18, %v3859_v20  ;;  %v7340_v57 = vpack.c.bf16 %v3865_v0, %v3861_v6  ;;  %v7262_v47 = vpack.c.bf16 %v3872_v9, %v3868_v8  ;;  %v3904_v20 = vld [vmem:[#allocation13 + $0xd68] sm:$0xff]  ;;  %v3902_v18 = vld [vmem:[#allocation13 + $0xd58] sm:$0xff]  ;;  %v3899_v9 = vld [vmem:[#allocation13 + $0xd40] sm:$0xff] }
 0x6eb   :  { %v3906_v6 = vld [vmem:[#allocation13 + $0xd78] sm:$0xff] }
 0x6ec   :  { %7245 = vmatpush1.bf16.msra.mxu0 %v7244_v16  ;;  %v7342_v16 = vpack.c.bf16 %v3874_v31, %v3870_v17  ;;  %v3903_v17 = vld [vmem:[#allocation13 + $0xd60] sm:$0xff]  ;;  %v3901_v31 = vld [vmem:[#allocation13 + $0xd50] sm:$0xff] }
 0x6ed   :  { %7325 = vmatpush1.bf16.msra.mxu1 %v7324_v54  ;;  %7247 = vmatprep.subr.bf16.mxu0 %v7246_v61  ;;  %v3873_v54 = vld [vmem:[#allocation13 + $0xc70] sm:$0xff]  ;;  %v3876_v61 = vld [vmem:[#allocation13 + $0xc88] sm:$0xff] }
 0x6ee   :  { %7327 = vmatprep.subr.bf16.mxu1 %v7326_v4  ;;  %v7264_v4 = vpack.c.bf16 %v3871_v15, %v3867_v14  ;;  %v7344_v7 = vpack.c.bf16 %v3873_v54, %v3869_v58  ;;  %v7266_v27 = vpack.c.bf16 %v3880_v21, %v3876_v61  ;;  %v3912_v14 = vld [vmem:[#allocation13 + $0xda8] sm:$0xff]  ;;  %v3910_v15 = vld [vmem:[#allocation13 + $0xd98] sm:$0xff]  ;;  %v3907_v21 = vld [vmem:[#allocation13 + $0xd80] sm:$0xff] }
 0x6ef   :  { %v3914_v58 = vld [vmem:[#allocation13 + $0xdb8] sm:$0xff] }
 0x6f0   :  { %7249 = vmatpush1.bf16.msra.mxu0 %v7248_v32  ;;  %v7346_v32 = vpack.c.bf16 %v3882_v24, %v3878_v23  ;;  %v3911_v23 = vld [vmem:[#allocation13 + $0xda0] sm:$0xff]  ;;  %v3909_v24 = vld [vmem:[#allocation13 + $0xd90] sm:$0xff] }
 0x6f1   :  { %7329 = vmatpush1.bf16.msra.mxu1 %v7328_v33  ;;  %7251 = vmatprep.subr.bf16.mxu0 %v7250_v12  ;;  %v3881_v33 = vld [vmem:[#allocation13 + $0xcb0] sm:$0xff]  ;;  %v3884_v12 = vld [vmem:[#allocation13 + $0xcc8] sm:$0xff] }
 0x6f2   :  { %7331 = vmatprep.subr.bf16.mxu1 %v7330_v11  ;;  %v7268_v11 = vpack.c.bf16 %v3879_v29, %v3875_v28  ;;  %v7348_v35 = vpack.c.bf16 %v3881_v33, %v3877_v30  ;;  %v7270_v36 = vpack.c.bf16 %v3888_v13, %v3884_v12  ;;  %v3920_v28 = vld [vmem:[#allocation13 + $0xde8] sm:$0xff]  ;;  %v3918_v29 = vld [vmem:[#allocation13 + $0xdd8] sm:$0xff]  ;;  %v3915_v13 = vld [vmem:[#allocation13 + $0xdc0] sm:$0xff] }
 0x6f3   :  { %v3922_v30 = vld [vmem:[#allocation13 + $0xdf8] sm:$0xff] }
 0x6f4   :  { %7253 = vmatpush1.bf16.msra.mxu0 %v7252_v39  ;;  %v7350_v39 = vpack.c.bf16 %v3890_v34, %v3886_v10  ;;  %v3919_v10 = vld [vmem:[#allocation13 + $0xde0] sm:$0xff]  ;;  %v3917_v34 = vld [vmem:[#allocation13 + $0xdd0] sm:$0xff] }
 0x6f5   :  { %7333 = vmatpush1.bf16.msra.mxu1 %v7332_v41  ;;  %7255 = vmatprep.subr.bf16.mxu0 %v7254_v43  ;;  %v3889_v41 = vld [vmem:[#allocation13 + $0xcf0] sm:$0xff]  ;;  %v3892_v43 = vld [vmem:[#allocation13 + $0xd08] sm:$0xff] }
 0x6f6   :  { %7335 = vmatprep.subr.bf16.mxu1 %v7334_v45  ;;  %v7272_v45 = vpack.c.bf16 %v3887_v37, %v3883_v53  ;;  %v7352_v46 = vpack.c.bf16 %v3889_v41, %v3885_v38  ;;  %v7274_v48 = vpack.c.bf16 %v3896_v40, %v3892_v43  ;;  %v3928_v53 = vld [vmem:[#allocation13 + $0xe28] sm:$0xff]  ;;  %v3926_v37 = vld [vmem:[#allocation13 + $0xe18] sm:$0xff] }
 0x6f7   :  { %v3930_v38 = vld [vmem:[#allocation13 + $0xe38] sm:$0xff]  ;;  %v3792_v41 = vld [vmem:[#allocation3 + $0x38] sm:$0xf] }
 0x6f8   :  { %7257 = vmatpush1.bf16.msra.mxu0 %v7256_v1  ;;  %v7354_v1 = vpack.c.bf16 %v3898_v52, %v3894_v44  ;;  %v3788_v40 = vld [vmem:[#allocation3] sm:$0xfc]  ;;  %v3791_v52 = vld [vmem:[#allocation3 + $0x30] sm:$0xf] }
 0x6f9   :  { %7337 = vmatpush1.bf16.msra.mxu1 %v7336_v2  ;;  %7259 = vmatprep.subr.bf16.mxu0 %v7258_v5  ;;  %v3897_v2 = vld [vmem:[#allocation13 + $0xd30] sm:$0xff]  ;;  %v3900_v5 = vld [vmem:[#allocation13 + $0xd48] sm:$0xff] }
 0x6fa   :  { %7339 = vmatprep.subr.bf16.mxu1 %v7338_v25  ;;  %v7276_v25 = vpack.c.bf16 %v3895_v51, %v3891_v49  ;;  %v7356_v0 = vpack.c.bf16 %v3897_v2, %v3893_v3  ;;  %v7278_v8 = vpack.c.bf16 %v3904_v20, %v3900_v5  ;;  %v3923_v49 = vld [vmem:[#allocation13 + $0xe00] sm:$0xff]  ;;  %v3925_v3 = vld [vmem:[#allocation13 + $0xe10] sm:$0xff]  ;;  %v3932_v5 = vld [vmem:[#allocation13 + $0xe48] sm:$0xff] }
 0x6fb   :  { %v3927_v51 = vld [vmem:[#allocation13 + $0xe20] sm:$0xff]  ;;  %v3929_v2 = vld [vmem:[#allocation13 + $0xe30] sm:$0xff]  ;;  %v3936_v20 = vld [vmem:[#allocation13 + $0xe68] sm:$0xff] }
 0x6fc   :  { %7261 = vmatpush1.bf16.msra.mxu0 %v7260_v50  ;;  %v7358_v50 = vpack.c.bf16 %v3906_v6, %v3902_v18  ;;  %v3961_v18 = vrot.slane %v3788_v40, 2  ;;  %v3934_v6 = vld [vmem:[#allocation13 + $0xe58] sm:$0xff] }
 0x6fd   :  { %7341 = vmatpush1.bf16.msra.mxu1 %v7340_v57  ;;  %7263 = vmatprep.subr.bf16.mxu0 %v7262_v47  ;;  %v3905_v57 = vld [vmem:[#allocation13 + $0xd70] sm:$0xff]  ;;  %v3908_v47 = vld [vmem:[#allocation13 + $0xd88] sm:$0xff]  ;;  %v7645_v40 = vld [vmem:[#allocation3 + $0x28] sm:$0xff] }
 0x6fe   :  { %7343 = vmatprep.subr.bf16.mxu1 %v7342_v16  ;;  %v7280_v16 = vpack.c.bf16 %v3903_v17, %v3899_v9  ;;  %v7360_v54 = vpack.c.bf16 %v3905_v57, %v3901_v31  ;;  %v7282_v61 = vpack.c.bf16 %v3912_v14, %v3908_v47  ;;  %v7372_v9 = vpack.c.bf16 %v3929_v2, %v3925_v3  ;;  %v3935_v57 = vld [vmem:[#allocation13 + $0xe60] sm:$0xff]  ;;  %v3933_v47 = vld [vmem:[#allocation13 + $0xe50] sm:$0xff] }
 0x6ff   :  { %v3970_v17 = vrot.slane %v3791_v52, 2  ;;  %v7294_v31 = vpack.c.bf16 %v3936_v20, %v3932_v5  ;;  %v3793_v52 = vld [vmem:[#allocation3 + $0x40] sm:$0xf]  ;;  %v8458_v2 = vmul.u32.u64.low 3435973837, %v8038_v56  ;;  %v8459_v5 = vmul.u32.u64.high 3435973837, %v8038_v56, %v8458_v2 }
 0x700   :  { %7265 = vmatpush1.bf16.msra.mxu0 %v7264_v4  ;;  %v7362_v4 = vpack.c.bf16 %v3914_v58, %v3910_v15  ;;  %v3937_v58 = vld [vmem:[#allocation13 + $0xe70] sm:$0xff] }
 0x701   :  { %7345 = vmatpush1.bf16.msra.mxu1 %v7344_v7  ;;  %7267 = vmatprep.subr.bf16.mxu0 %v7266_v27  ;;  %v3913_v7 = vld [vmem:[#allocation13 + $0xdb0] sm:$0xff]  ;;  %v3916_v27 = vld [vmem:[#allocation13 + $0xdc8] sm:$0xff] }
 0x702   :  { %7347 = vmatprep.subr.bf16.mxu1 %v7346_v32  ;;  %v7284_v32 = vpack.c.bf16 %v3911_v23, %v3907_v21  ;;  %v7364_v33 = vpack.c.bf16 %v3913_v7, %v3909_v24  ;;  %v7286_v12 = vpack.c.bf16 %v3920_v28, %v3916_v27  ;;  %v3946_v21 = vld [vmem:[#allocation13 + $0xeb8] sm:$0xff]  ;;  %v3943_v27 = vld [vmem:[#allocation13 + $0xea0] sm:$0xff] }
 0x704   :  { %7269 = vmatpush1.bf16.msra.mxu0 %v7268_v11  ;;  %v7366_v11 = vpack.c.bf16 %v3922_v30, %v3918_v29  ;;  %v3945_v29 = vld [vmem:[#allocation13 + $0xeb0] sm:$0xff]  ;;  %v3948_v30 = vld [vmem:[#allocation13 + $0xec8] sm:$0xff] }
 0x705   :  { %7349 = vmatpush1.bf16.msra.mxu1 %v7348_v35  ;;  %7271 = vmatprep.subr.bf16.mxu0 %v7270_v36  ;;  %v3921_v35 = vld [vmem:[#allocation13 + $0xdf0] sm:$0xff]  ;;  %v3924_v36 = vld [vmem:[#allocation13 + $0xe08] sm:$0xff] }
 0x706   :  { %7351 = vmatprep.subr.bf16.mxu1 %v7350_v39  ;;  %v7288_v39 = vpack.c.bf16 %v3919_v10, %v3915_v13  ;;  %v7368_v43 = vpack.c.bf16 %v3921_v35, %v3917_v34  ;;  %v7290_v44 = vpack.c.bf16 %v3928_v53, %v3924_v36  ;;  %v7300_v13 = vpack.c.bf16 %v3943_v27, %v3939_v19  ;;  %v3951_v35 = vld [vmem:[#allocation13 + $0xee0] sm:$0xff]  ;;  %v3949_v53 = vld [vmem:[#allocation13 + $0xed0] sm:$0xff] }
 0x708   :  { %7273 = vmatpush1.bf16.msra.mxu0 %v7272_v45  ;;  %v7643_v45 = vld [vmem:[#allocation3 + $0x18] sm:$0xff] }
 0x709   :  { %7353 = vmatpush1.bf16.msra.mxu1 %v7352_v46  ;;  %7275 = vmatprep.subr.bf16.mxu0 %v7274_v48  ;;  %v3962_v46 = vrot.slane %v7643_v45, 2  ;;  %v7370_v48 = vpack.c.bf16 %v3930_v38, %v3926_v37  ;;  %v3953_v37 = vld [vmem:[#allocation13 + $0xef0] sm:$0xff]  ;;  %v8436_v38 = vld [vmem:[#allocation4] sm:$0xff] }
 0x70a   :  { %7355 = vmatprep.subr.bf16.mxu1 %v7354_v1  ;;  %v3972_v1 = vrot.slane %v3792_v41, 2  ;;  %v7384_v41 = vpack.c.bf16 %v3953_v37, %v3949_v53 }
 0x70b   :  { %v3971_v24 = vsel %vm1911_vm6, %v3962_v46, %v3970_v17 }
 0x70c   :  { %7277 = vmatpush1.bf16.msra.mxu0 %v7276_v25  ;;  %v3938_v25 = vld [vmem:[#allocation13 + $0xe78] sm:$0xff]  ;;  %v3973_v14 = vsel %vm1911_vm6, %v3965_v42, %v3972_v1  ;;  %v3941_v42 = vld [vmem:[#allocation13 + $0xe90] sm:$0xff] }
 0x70d   :  { %7357 = vmatpush1.bf16.msra.mxu1 %v7356_v0  ;;  %7279 = vmatprep.subr.bf16.mxu0 %v7278_v8  ;;  %v7292_v0 = vpack.c.bf16 %v3927_v51, %v3923_v49  ;;  %v3963_v8 = vsel %vm1911_vm6, %v3961_v18, %v3962_v46  ;;  %v7374_v15 = vpack.c.bf16 %v3938_v25, %v3934_v6  ;;  %v4365_v51 = vadd.s32 16, %v8038_v56 }
 0x70e   :  { %7359 = vmatprep.subr.bf16.mxu1 %v7358_v50  ;;  %v3931_v50 = vld [vmem:[#allocation13 + $0xe40] sm:$0xff]  ;;  %v7380_v10 = vpack.c.bf16 %v3945_v29, %v3941_v42  ;;  %v4372_v25 = vshrl.u32 %v8459_v5, 3 }
 0x70f   :  { %v7296_v23 = vpack.c.bf16 %v3935_v57, %v3931_v50  ;;  %v8461_v20 = vmul.u32.u64.low 3435973837, %v4365_v51  ;;  %v8462_v18 = vmul.u32.u64.high 3435973837, %v4365_v51, %v8461_v20 }
 0x710   :  { %7281 = vmatpush1.bf16.msra.mxu0 %v7280_v16  ;;  %v3940_v16 = vld [vmem:[#allocation13 + $0xe88] sm:$0xff] }
 0x711   :  { %7361 = vmatpush1.bf16.msra.mxu1 %v7360_v54  ;;  %7283 = vmatprep.subr.bf16.mxu0 %v7282_v61  ;;  %v3944_v54 = vld [vmem:[#allocation13 + $0xea8] sm:$0xff]  ;;  %v3942_v61 = vld [vmem:[#allocation13 + $0xe98] sm:$0xff] }
 0x712   :  { %7363 = vmatprep.subr.bf16.mxu1 %v7362_v4  ;;  %v7376_v4 = vpack.c.bf16 %v3937_v58, %v3933_v47  ;;  %v7298_v7 = vpack.c.bf16 %v3944_v54, %v3940_v16  ;;  %v7378_v28 = vpack.c.bf16 %v3946_v21, %v3942_v61  ;;  %v2743_v58 = vld [vmem:[#allocation15] sm:$0xf] }
 0x713   :  { %v4340_v19 = vrot.slane %v2743_v58, %v8047_v62  ;;  %v4348_v27 = vrot.slane %v2743_v58, %v8050_v63 }
 0x714   :  { %7285 = vmatpush1.bf16.msra.mxu0 %v7284_v32  ;;  %v3952_v32 = vld [vmem:[#allocation13 + $0xee8] sm:$0xff] }
 0x715   :  { %7365 = vmatpush1.bf16.msra.mxu1 %v7364_v33  ;;  %7287 = vmatprep.subr.bf16.mxu0 %v7286_v12  ;;  %v3950_v33 = vld [vmem:[#allocation13 + $0xed8] sm:$0xff]  ;;  %v7302_v34 = vpack.c.bf16 %v3952_v32, %v3948_v30 }
 0x716   :  { %7367 = vmatprep.subr.bf16.mxu1 %v7366_v11  ;;  %v3954_v12 = vld [vmem:[#allocation13 + $0xef8] sm:$0xff]  ;;  %v3947_v11 = vld [vmem:[#allocation13 + $0xec0] sm:$0xff] }
 0x717   :  { %v7382_v36 = vpack.c.bf16 %v3954_v12, %v3950_v33 }
 0x718   :  { %7289 = vmatpush1.bf16.msra.mxu0 %v7288_v39  ;;  %v7304_v39 = vpack.c.bf16 %v3951_v35, %v3947_v11 }
 0x719   :  { %7369 = vmatpush1.bf16.msra.mxu1 %v7368_v43  ;;  %7291 = vmatprep.subr.bf16.mxu0 %v7290_v44  ;;  %v3790_v43 = vld [vmem:[#allocation3 + $0x10] sm:$0xfc]  ;;  %v3968_v44 = vrot.slane %v7645_v40, 2 }
 0x71a   :  { %7371 = vmatprep.subr.bf16.mxu1 %v7370_v48  ;;  %v3967_v45 = vrot.slane %v3790_v43, 2  ;;  %v3974_v48 = vrot.slane %v3793_v52, 2 }
 0x71b   :  { %4053 = vmatmul.mubr.f32.vlgmr.msra.gmra.mrb[8].mxu0 %v3963_v8 }
 0x71c   :  { %4219 = vmatmul.mubr.f32.vlgmr.msra.gmra.mrb[8].mxu1 %v3963_v8  ;;  %4058 = vmatprep.mubr.f32.mxu0 %v3973_v14  ;;  %v3969_v46 = vsel %vm1911_vm6, %v3967_v45, %v3968_v44  ;;  %v3975_v49 = vsel %vm1911_vm6, %v3968_v44, %v3974_v48 }
 0x71d   :  { %7293 = vmatpush1.bf16.msra.mxu0 %v7292_v0  ;;  %4224 = vmatprep.mubr.f32.mxu1 %v3973_v14  ;;  %v4394_v0 = vshrl.u32 %v8462_v18, 3 }
 0x71e   :  { %7373 = vmatpush1.bf16.msra.mxu1 %v7372_v9  ;;  %7295 = vmatprep.subr.bf16.mxu0 %v7294_v31  ;;  %v4373_v9 = vmul.u32 10, %v4372_v25 }
 0x71f   :  { %4059 = vmatmul.mubr.f32.gmra.mrb[10].mxu0 %v3971_v24  ;;  %7375 = vmatprep.subr.bf16.mxu1 %v7374_v15 }
 0x720   :  { %4225 = vmatmul.mubr.f32.gmra.mrb[10].mxu1 %v3971_v24  ;;  %4064 = vmatprep.mubr.f32.mxu0 %v3972_v1  ;;  %v4374_v50 = vsub.s32 %v8038_v56, %v4373_v9 }
 0x721   :  { %7297 = vmatpush1.bf16.msra.mxu0 %v7296_v23  ;;  %4230 = vmatprep.mubr.f32.mxu1 %v3972_v1  ;;  %v8454_v3 = vmul.u32.u64.low 3435973837, %v8141_v26  ;;  %v8455_v1 = vmul.u32.u64.high 3435973837, %v8141_v26, %v8454_v3  ;;  %v4336_v23 = vrot.slane %v2743_v58, %v8041_v59 }
 0x722   :  { %7377 = vmatpush1.bf16.msra.mxu1 %v7376_v4  ;;  %7299 = vmatprep.subr.bf16.mxu0 %v7298_v7  ;;  %vm4399_vm10 = vcmp.ne.s32.totalorder %v4374_v50, 0  ;;  %vm4402_vm11 = vcmp.lt.s32.totalorder %v4374_v50, 0  ;;  %v4408_v14 = vadd.s32 10, %v4374_v50  ;;  %v4344_v7 = vrot.slane %v2743_v58, %v8044_v60 }
 0x723   :  { %4065 = vmatmul.mubr.f32.gmra.mrb[12].mxu0 %v3970_v17  ;;  %7379 = vmatprep.subr.bf16.mxu1 %v7378_v28  ;;  %v4383_v6 = vshrl.u32 %v8455_v1, 3  ;;  %vm4405_vm2 = vmand %vm4402_vm11, %vm4399_vm10  ;;  %vm4626_vm10 = vcmp.ge.s32.totalorder %v174_v55, 16  ;;  %vm4627_vm11 = vcmp.lt.s32.totalorder %v174_v55, 272 }
 0x724   :  { %4231 = vmatmul.mubr.f32.gmra.mrb[12].mxu1 %v3970_v17  ;;  %4135 = vmatprep.mubr.f32.mxu0 %v8436_v38  ;;  %v4395_v17 = vmul.u32 10, %v4394_v0  ;;  %v4411_v56 = vsel %vm4405_vm2, %v4408_v14, %v4374_v50 }
 0x725   :  { %7301 = vmatpush1.bf16.msra.mxu0 %v7300_v13  ;;  %4301 = vmatprep.mubr.f32.mxu1 %v8436_v38  ;;  %v4384_v8 = vmul.u32 10, %v4383_v6  ;;  %vm4414_vm7 = vcmp.lt.s32.totalorder %v4411_v56, 8 }
 0x726   :  { %7381 = vmatpush1.bf16.msra.mxu1 %v7380_v10  ;;  %7303 = vmatprep.subr.bf16.mxu0 %v7302_v34  ;;  %v4396_v57 = vsub.s32 %v4365_v51, %v4395_v17  ;;  %v8491_v62 = vsel %vm4414_vm7, 1.0, %v8436_v38 }
 0x727   :  { %7383 = vmatprep.subr.bf16.mxu1 %v7382_v36  ;;  %v4385_v31 = vsub.s32 %v8141_v26, %v4384_v8 }
 0x728   :  { %vm4401_vm13 = vcmp.ne.s32.totalorder %v4396_v57, 0  ;;  %vm4404_vm14 = vcmp.lt.s32.totalorder %v4396_v57, 0  ;;  %v4410_v15 = vadd.s32 10, %v4396_v57 }
 0x729   :  { %7305 = vmatpush1.bf16.msra.mxu0 %v7304_v39  ;;  %vm4400_vm8 = vcmp.ne.s32.totalorder %v4385_v31, 0  ;;  %vm4403_vm9 = vcmp.lt.s32.totalorder %v4385_v31, 0  ;;  %v4409_v47 = vadd.s32 10, %v4385_v31  ;;  %vm8469_vm3 = vmand %vm4404_vm14, %vm4401_vm13 }
 0x72a   :  { %7385 = vmatpush1.bf16.msra.mxu1 %v7384_v41  ;;  %vm4406_vm12 = vmand %vm4403_vm9, %vm4400_vm8  ;;  %v4413_v4 = vsel %vm8469_vm3, %v4410_v15, %v4396_v57  ;;  %vm7847_vm9 = vmmov 0  }
 0x72b   :  { %v4412_v16 = vsel %vm4406_vm12, %v4409_v47, %v4385_v31  ;;  %vm4416_vm8 = vcmp.lt.s32.totalorder %v4413_v4, 8  ;;  %vm4623_vm12 = vcmask 130048   ;;  %vm8894_vm13 = vmand %vm4626_vm10, %vm4627_vm11 }
 0x72c   :  { %5996 = vmatmul.mubr.msk.f32.vlgmr.msra.gmra.mrb[8].mxu0 %vm137_vm1, %v3969_v46  ;;  %vm4415_vm4 = vcmp.lt.s32.totalorder %v4412_v16, 8  ;;  %v8504_v53 = vsel %vm4416_vm8, 1.0, %v8436_v38 }
 0x72d   :  { %5999 = vmatmul.mubr.msk.f32.vlgmr.msra.gmra.mrb[8].mxu1 %vm137_vm1, %v3969_v46  ;;  %4141 = vmatprep.mubr.f32.mxu0 %v8436_v38  ;;  %v8482_v29 = vsel %vm4415_vm4, 1.0, %v8436_v38 }
 0x72e   :  { %4307 = vmatprep.mubr.f32.mxu1 %v8436_v38 }
 0x730   :  { %5997 = vmatmul.mubr.msk.f32.gmra.mrb[10].mxu0 %vm137_vm1, %v3975_v49 }
 0x731   :  { %6000 = vmatmul.mubr.msk.f32.gmra.mrb[10].mxu1 %vm137_vm1, %v3975_v49  ;;  %4147 = vmatprep.mubr.f32.mxu0 %v8436_v38 }
 0x732   :  { %4313 = vmatprep.mubr.f32.mxu1 %v8436_v38 }
 0x734   :  { %5998 = vmatmul.mubr.msk.f32.gmra.mrb[12].mxu0 %vm137_vm1, %v3974_v48 }
 0x735   :  { %6001 = vmatmul.mubr.msk.f32.gmra.mrb[12].mxu1 %vm137_vm1, %v3974_v48 }
 0x736   :  { %6269 = vmatprep.mubr.msk.f32.mxu1 %vm7847_vm9, %v8436_v38 }
 0x7ff   :  { %v4137_v26 = vpop.f32.mrb[8].mxu0 }
 0x800   :  { %v4303_v61 = vpop.f32.mrb[8].mxu1  ;;  %v4139_v21 = vpop.f32.mrb[9].mxu0  ;;  %v8484_v33 = vadd.f32 %v4336_v23, %v4137_v26 }
 0x801   :  { %v4305_v24 = vpop.f32.mrb[9].mxu1  ;;  %v8493_v63 = vadd.f32 %v4344_v7, %v4303_v61  ;;  %v8495_v10 = vadd.f32 %v4340_v19, %v4139_v21 }
 0x802   :  { %v8499_v11 = vadd.f32 %v4348_v27, %v4305_v24  ;;  %v4423_v44 = vmul.f32 %v8491_v62, %v8484_v33 }
 0x803   :  { %v4143_v42 = vpop.f32.mrb[10].mxu0  ;;  %v4425_v49 = vmul.f32 %v8491_v62, %v8493_v63  ;;  %v4424_v51 = vmul.f32 %v8491_v62, %v8495_v10 }
 0x804   :  { %v8479_v28 = vadd.f32 %v4336_v23, %v4143_v42  ;;  %v4309_v30 = vpop.f32.mrb[10].mxu1  ;;  %v4145_v32 = vpop.f32.mrb[11].mxu0  ;;  %v4426_v2 = vmul.f32 %v8491_v62, %v8499_v11 }
 0x805   :  { %v8486_v12 = vadd.f32 %v4344_v7, %v4309_v30  ;;  %v8488_v13 = vadd.f32 %v4340_v19, %v4145_v32  ;;  %v4311_v60 = vpop.f32.mrb[11].mxu1 }
 0x806   :  { %v8497_v34 = vadd.f32 %v4348_v27, %v4311_v60  ;;  %v4427_v35 = vmul.f32 %v8482_v29, %v8479_v28 }
 0x807   :  { %v4149_v36 = vpop.f32.mrb[12].mxu0  ;;  %v4429_v37 = vmul.f32 %v8482_v29, %v8486_v12  ;;  %v4428_v39 = vmul.f32 %v8482_v29, %v8488_v13 }
 0x808   :  { %v8510_v41 = vadd.f32 %v4336_v23, %v4149_v36  ;;  %v4315_v43 = vpop.f32.mrb[12].mxu1  ;;  %v4151_v40 = vpop.f32.mrb[13].mxu0  ;;  %v4430_v52 = vmul.f32 %v8482_v29, %v8497_v34  ;;  %v4435_v5 = vadd.f32 %v4427_v35, %v4423_v44 }
 0x809   :  { %v8516_v45 = vadd.f32 %v4344_v7, %v4315_v43  ;;  %v8518_v46 = vadd.f32 %v4340_v19, %v4151_v40  ;;  %v4317_v48 = vpop.f32.mrb[13].mxu1  ;;  %v4453_v6 = vadd.f32 %v4429_v37, %v4425_v49  ;;  %v4444_v25 = vadd.f32 %v4428_v39, %v4424_v51 }
 0x80a   :  { %v4431_v3 = vmul.f32 %v8504_v53, %v8510_v41  ;;  %v8526_v1 = vadd.f32 %v4348_v27, %v4317_v48  ;;  %v4462_v9 = vadd.f32 %v4430_v52, %v4426_v2 }
 0x80b   :  { %v4433_v20 = vmul.f32 %v8504_v53, %v8516_v45  ;;  %v4432_v18 = vmul.f32 %v8504_v53, %v8518_v46 }
 0x80c   :  { %v4436_v0 = vsel %vm2321_vm15, %v4431_v3, 0.0  ;;  %v4434_v8 = vmul.f32 %v8504_v53, %v8526_v1 }
 0x80d   :  { %v4437_v17 = vadd.f32 %v4436_v0, %v4435_v5  ;;  %v4454_v31 = vsel %vm2321_vm15, %v4433_v20, 0.0  ;;  %v4445_v50 = vsel %vm2321_vm15, %v4432_v18, 0.0 }
 0x80e   :  { %v4455_v57 = vadd.f32 %v4454_v31, %v4453_v6  ;;  %v4446_v47 = vadd.f32 %v4445_v50, %v4444_v25  ;;  %v4463_v14 = vsel %vm2321_vm15, %v4434_v8, 0.0 }
 0x80f   :  { %v4438_v15 = vrot.slane %v4437_v17, 4  ;;  %v4464_v58 = vadd.f32 %v4463_v14, %v4462_v9 }
 0x810   :  { %v4456_v16 = vrot.slane %v4455_v57, 4  ;;  %v4447_v54 = vrot.slane %v4446_v47, 4 }
 0x811   :  { %v4439_v26 = vadd.f32 %v4438_v15, %v4437_v17  ;;  %v4465_v56 = vrot.slane %v4464_v58, 4 }
 0x812   :  { %v4457_v61 = vadd.f32 %v4456_v16, %v4455_v57  ;;  %v4448_v21 = vadd.f32 %v4447_v54, %v4446_v47 }
 0x813   :  { %v4440_v23 = vrot.slane %v4439_v26, 2  ;;  %v4466_v24 = vadd.f32 %v4465_v56, %v4464_v58 }
 0x814   :  { %v4458_v4 = vrot.slane %v4457_v61, 2  ;;  %v4449_v7 = vrot.slane %v4448_v21, 2 }
 0x815   :  { %v4441_v19 = vadd.f32 %v4440_v23, %v4439_v26  ;;  %v4467_v27 = vrot.slane %v4466_v24, 2 }
 0x816   :  { %v4459_v42 = vadd.f32 %v4458_v4, %v4457_v61  ;;  %v4450_v30 = vadd.f32 %v4449_v7, %v4448_v21 }
 0x817   :  { %v4468_v32 = vadd.f32 %v4467_v27, %v4466_v24  ;;  %v4442_v60 = vrot.slane %v4441_v19, 1 }
 0x818   :  { %v4451_v35 = vrot.slane %v4450_v30, 1  ;;  %v4460_v36 = vrot.slane %v4459_v42, 1 }
 0x819   :  { %v4443_v37 = vadd.f32 %v4442_v60, %v4441_v19  ;;  %v4469_v39 = vrot.slane %v4468_v32, 1 }
 0x81a   :  { %v4452_v43 = vadd.f32 %v4451_v35, %v4450_v30  ;;  %v4461_v40 = vadd.f32 %v4460_v36, %v4459_v42 }
 0x81b   :  { %v4470_v44 = vadd.f32 %v4469_v39, %v4468_v32 }
 0x81c   :  { %v4471_v52 = vadd.f32 %v4461_v40, %v4443_v37 }
 0x81d   :  { %v4472_v48 = vadd.f32 %v4470_v44, %v4452_v43 }
 0x81f   :  { %v4473_v49 = vadd.f32 %v4472_v48, %v4471_v52 }
 0x821   :  { %4474 = vrot.lane.b32.xlu0 %v4473_v49, %s7844_s8 }
 0x893   :  { %v4475_v51 = vpop.permute.xlu0 %4474 }
 0x894   :  { %v4476_v3 = vadd.f32 %v4475_v51, %v4473_v49 }
 0x896   :  { %4477 = vrot.lane.b32.xlu1 %v4476_v3, %s7835_s10 }
 0x908   :  { %v4478_v2 = vpop.permute.xlu1 %4477 }
 0x909   :  { %v4479_v5 = vadd.f32 %v4478_v2, %v4476_v3 }
 0x90b   :  { %4480 = vrot.lane.b32.xlu0 %v4479_v5, %s7845_s2 }
 0x97d   :  { %v4481_v20 = vpop.permute.xlu0 %4480 }
 0x97e   :  { %v4482_v18 = vadd.f32 %v4481_v20, %v4479_v5 }
 0x980   :  { %v4483_v6 = vmul.f32 0.001953125, %v4482_v18 }
 0x982   :  { %v4487_v25 = vrot.slane %v4483_v6, %v8041_v59 }
 0x984   :  { %v8545_v0 = vsub.f32 %v8484_v33, %v4487_v25  ;;  %v8548_v8 = vsub.f32 %v8495_v10, %v4487_v25  ;;  %v8551_v9 = vsub.f32 %v8493_v63, %v4487_v25  ;;  %v8554_v17 = vsub.f32 %v8499_v11, %v4487_v25 }
 0x985   :  { %v8557_v31 = vsub.f32 %v8479_v28, %v4487_v25  ;;  %v8560_v50 = vsub.f32 %v8488_v13, %v4487_v25  ;;  %v8563_v57 = vsub.f32 %v8486_v12, %v4487_v25  ;;  %v8566_v33 = vsub.f32 %v8497_v34, %v4487_v25 }
 0x986   :  { %v8569_v10 = vsub.f32 %v8510_v41, %v4487_v25  ;;  %v8572_v63 = vsub.f32 %v8518_v46, %v4487_v25  ;;  %v8575_v11 = vsub.f32 %v8516_v45, %v4487_v25  ;;  %v8578_v28 = vsub.f32 %v8526_v1, %v4487_v25 }
 0x987   :  { %v4500_v13 = vmul.f32 %v8545_v0, %v8545_v0  ;;  %v4501_v12 = vmul.f32 %v8548_v8, %v8548_v8  ;;  %v4502_v34 = vmul.f32 %v8551_v9, %v8551_v9  ;;  %v4503_v41 = vmul.f32 %v8554_v17, %v8554_v17 }
 0x988   :  { %v4504_v46 = vmul.f32 %v8557_v31, %v8557_v31  ;;  %v4505_v45 = vmul.f32 %v8560_v50, %v8560_v50  ;;  %v4506_v1 = vmul.f32 %v8563_v57, %v8563_v57  ;;  %v4507_v47 = vmul.f32 %v8566_v33, %v8566_v33 }
 0x989   :  { %v4508_v14 = vmul.f32 %v8569_v10, %v8569_v10  ;;  %v4509_v15 = vmul.f32 %v8572_v63, %v8572_v63  ;;  %v4510_v58 = vmul.f32 %v8575_v11, %v8575_v11  ;;  %v4511_v16 = vmul.f32 %v8578_v28, %v8578_v28 }
 0x98a   :  { %v4512_v54 = vmul.f32 %v8491_v62, %v4500_v13  ;;  %v4513_v26 = vmul.f32 %v8491_v62, %v4501_v12  ;;  %v4514_v56 = vmul.f32 %v8491_v62, %v4502_v34  ;;  %v4515_v61 = vmul.f32 %v8491_v62, %v4503_v41 }
 0x98b   :  { %v4516_v21 = vmul.f32 %v8482_v29, %v4504_v46  ;;  %v4517_v23 = vmul.f32 %v8482_v29, %v4505_v45  ;;  %v4518_v24 = vmul.f32 %v8482_v29, %v4506_v1  ;;  %v4519_v4 = vmul.f32 %v8482_v29, %v4507_v47 }
 0x98c   :  { %v4520_v7 = vmul.f32 %v8504_v53, %v4508_v14  ;;  %v4521_v19 = vmul.f32 %v8504_v53, %v4509_v15  ;;  %v4522_v27 = vmul.f32 %v8504_v53, %v4510_v58  ;;  %v4523_v42 = vmul.f32 %v8504_v53, %v4511_v16 }
 0x98d   :  { %v4524_v30 = vadd.f32 %v4516_v21, %v4512_v54  ;;  %v4533_v32 = vadd.f32 %v4517_v23, %v4513_v26  ;;  %v4542_v60 = vadd.f32 %v4518_v24, %v4514_v56  ;;  %v4551_v62 = vadd.f32 %v4519_v4, %v4515_v61 }
 0x98e   :  { %v4525_v35 = vsel %vm2321_vm15, %v4520_v7, 0.0  ;;  %v4534_v36 = vsel %vm2321_vm15, %v4521_v19, 0.0  ;;  %v4543_v37 = vsel %vm2321_vm15, %v4522_v27, 0.0  ;;  %v4552_v29 = vsel %vm2321_vm15, %v4523_v42, 0.0 }
 0x98f   :  { %v4526_v39 = vadd.f32 %v4525_v35, %v4524_v30  ;;  %v4535_v43 = vadd.f32 %v4534_v36, %v4533_v32  ;;  %v4544_v40 = vadd.f32 %v4543_v37, %v4542_v60  ;;  %v4553_v44 = vadd.f32 %v4552_v29, %v4551_v62 }
 0x990   :  { %vm161_vm15 = vcmask 257024  }
 0x991   :  { %v4527_v52 = vrot.slane %v4526_v39, 4  ;;  %v4536_v48 = vrot.slane %v4535_v43, 4  ;;  %v4545_v49 = vrot.slane %v4544_v40, 4  ;;  %v4554_v53 = vrot.slane %v4553_v44, 4  ;;  %162 = vst.msk [vmem:[#allocation4 + $0x70] sm:$0xf] %vm161_vm15, %v8436_v38 }
 0x993   :  { %v4528_v51 = vadd.f32 %v4527_v52, %v4526_v39  ;;  %v4537_v3 = vadd.f32 %v4536_v48, %v4535_v43  ;;  %v4546_v2 = vadd.f32 %v4545_v49, %v4544_v40  ;;  %v4555_v5 = vadd.f32 %v4554_v53, %v4553_v44 }
 0x995   :  { %v4529_v20 = vrot.slane %v4528_v51, 2  ;;  %v4538_v18 = vrot.slane %v4537_v3, 2  ;;  %v4547_v6 = vrot.slane %v4546_v2, 2  ;;  %v4556_v25 = vrot.slane %v4555_v5, 2 }
 0x997   :  { %v4530_v13 = vadd.f32 %v4529_v20, %v4528_v51  ;;  %v4539_v12 = vadd.f32 %v4538_v18, %v4537_v3  ;;  %v4548_v34 = vadd.f32 %v4547_v6, %v4546_v2  ;;  %v4557_v41 = vadd.f32 %v4556_v25, %v4555_v5 }
 0x999   :  { %v4531_v46 = vrot.slane %v4530_v13, 1  ;;  %v4540_v45 = vrot.slane %v4539_v12, 1  ;;  %v4549_v1 = vrot.slane %v4548_v34, 1  ;;  %v4558_v47 = vrot.slane %v4557_v41, 1 }
 0x99b   :  { %v4532_v14 = vadd.f32 %v4531_v46, %v4530_v13  ;;  %v4541_v15 = vadd.f32 %v4540_v45, %v4539_v12  ;;  %v4550_v58 = vadd.f32 %v4549_v1, %v4548_v34  ;;  %v4559_v16 = vadd.f32 %v4558_v47, %v4557_v41  ;;  %v6021_v46 = vld [vmem:[%s9356_s7 + $0x1a0] sm:$0xff]  ;;  %v6022_v45 = vld [vmem:[%s9356_s7 + $0x1a8] sm:$0xff] }
 0x99c   :  { %v7386_v1 = vpack.c.bf16 %v6022_v45, %v6021_v46  ;;  %v6032_v46 = vld [vmem:[%s9356_s7 + $0x1f8] sm:$0xff] }
 0x99d   :  { %v4560_v54 = vadd.f32 %v4550_v58, %v4532_v14  ;;  %v4561_v26 = vadd.f32 %v4559_v16, %v4541_v15  ;;  %v6005_v15 = vld [vmem:[%s9356_s7 + $0x120] sm:$0xff]  ;;  %v6006_v58 = vld [vmem:[%s9356_s7 + $0x128] sm:$0xff]  ;;  %v6023_v16 = vld [vmem:[%s9356_s7 + $0x1b0] sm:$0xff] }
 0x99e   :  { %7387 = vmatprep.subr.bf16.mxu0 %v7386_v1 }
 0x99f   :  { %v4562_v56 = vadd.f32 %v4561_v26, %v4560_v54  ;;  %v7388_v54 = vpack.c.bf16 %v6006_v58, %v6005_v15  ;;  %v6024_v26 = vld [vmem:[%s9356_s7 + $0x1b8] sm:$0xff] }
 0x9a1   :  { %4563 = vrot.lane.b32.xlu1 %v4562_v56, %s7844_s8  ;;  %7389 = vmatpush3.bf16.msra.mxu0 %v7388_v54 }
 0xa13   :  { %v4564_v61 = vpop.permute.xlu1 %4563 }
 0xa14   :  { %v4565_v21 = vadd.f32 %v4564_v61, %v4562_v56  ;;  %v7390_v56 = vpack.c.bf16 %v6024_v26, %v6023_v16 }
 0xa16   :  { %4566 = vrot.lane.b32.xlu0 %v4565_v21, %s7835_s10  ;;  %7391 = vmatprep.subr.bf16.mxu0 %v7390_v56 }
 0xa88   :  { %v4567_v23 = vpop.permute.xlu0 %4566 }
 0xa89   :  { %v4568_v24 = vadd.f32 %v4567_v23, %v4565_v21 }
 0xa8b   :  { %4569 = vrot.lane.b32.xlu1 %v4568_v24, %s7845_s2 }
 0xafd   :  { %v4570_v4 = vpop.permute.xlu1 %4569 }
 0xafe   :  { %v4571_v7 = vadd.f32 %v4570_v4, %v4568_v24 }
 0xb00   :  { %v4572_v19 = vmul.f32 0.001953125, %v4571_v7 }
 0xb02   :  { %v4573_v27 = vadd.f32 1e-05, %v4572_v19  ;;  %v6007_v19 = vld [vmem:[%s9356_s7 + $0x130] sm:$0xff] }
 0xb04   :  { %7628 = vrsqrt.f32 %v4573_v27  ;;  %v6008_v27 = vld [vmem:[%s9356_s7 + $0x138] sm:$0xff] }
 0xb0e   :  { %v7629_v42 = vpop.eup %7628 }
 0xb0f   :  { %v8624_v30 = vrot.slane %v7629_v42, %v8041_v59  ;;  %v6025_v42 = vld [vmem:[%s9356_s7 + $0x1c0] sm:$0xff] }
 0xb11   :  { %v4581_v32 = vmul.f32 %v8624_v30, %v8551_v9  ;;  %v4582_v60 = vmul.f32 %v8624_v30, %v8554_v17  ;;  %v4579_v62 = vmul.f32 %v8624_v30, %v8545_v0  ;;  %v4580_v35 = vmul.f32 %v8624_v30, %v8548_v8 }
 0xb12   :  { %v4585_v36 = vmul.f32 %v8624_v30, %v8563_v57  ;;  %v4586_v37 = vmul.f32 %v8624_v30, %v8566_v33  ;;  %v4583_v59 = vmul.f32 %v8624_v30, %v8557_v31  ;;  %v4584_v9 = vmul.f32 %v8624_v30, %v8560_v50 }
 0xb13   :  { %v4593_v29 = vmax.f32 %v4581_v32, 0.0  ;;  %v4594_v17 = vmax.f32 %v4582_v60, 0.0  ;;  %v4591_v39 = vmax.f32 %v4579_v62, 0.0  ;;  %v4592_v43 = vmax.f32 %v4580_v35, 0.0  ;;  %v6026_v60 = vld [vmem:[%s9356_s7 + $0x1c8] sm:$0xff] }
 0xb14   :  { %v4597_v0 = vmax.f32 %v4585_v36, 0.0  ;;  %v4598_v40 = vmax.f32 %v4586_v37, 0.0  ;;  %v4595_v44 = vmax.f32 %v4583_v59, 0.0  ;;  %v4596_v8 = vmax.f32 %v4584_v9, 0.0  ;;  %v6009_v9 = vld [vmem:[%s9356_s7 + $0x140] sm:$0xff] }
 0xb15   :  { %v4634_v52 = vcombine.low %v4593_v29, %v4594_v17  ;;  %v4605_v48 = vcombine.low %v4591_v39, %v4592_v43  ;;  %v4748_v57 = vcombine.high %v4593_v29, %v4594_v17  ;;  %v4725_v49 = vcombine.high %v4591_v39, %v4592_v43  ;;  %v6010_v29 = vld [vmem:[%s9356_s7 + $0x148] sm:$0xff]  ;;  %v6027_v17 = vld [vmem:[%s9356_s7 + $0x1d0] sm:$0xff]  ;;  %v6028_v43 = vld [vmem:[%s9356_s7 + $0x1d8] sm:$0xff] }
 0xb16   :  { %v4948_v31 = vcombine.high %v4597_v0, %v4598_v40  ;;  %v4925_v51 = vcombine.high %v4595_v44, %v4596_v8  ;;  %v4867_v61 = vcombine.low %v4597_v0, %v4598_v40  ;;  %v4841_v21 = vcombine.low %v4595_v44, %v4596_v8 }
 0xb17   :  { %v4641_v33 = vrot.slane %v4634_v52, %v8061_v22  ;;  %v4612_v53 = vrot.slane %v4605_v48, %v8061_v22  ;;  %v4755_v2 = vrot.slane %v4748_v57, %v8061_v22  ;;  %v4732_v5 = vrot.slane %v4725_v49, %v8061_v22  ;;  %v6011_v48 = vld [vmem:[%s9356_s7 + $0x150] sm:$0xff]  ;;  %v6012_v57 = vld [vmem:[%s9356_s7 + $0x158] sm:$0xff]  ;;  %v6029_v49 = vld [vmem:[%s9356_s7 + $0x1e0] sm:$0xff] }
 0xb18   :  { %v8657_v6 = vrot.slane %v4948_v31, %v8061_v22  ;;  %v8660_v25 = vrot.slane %v4925_v51, %v8061_v22  ;;  %v7392_v32 = vpack.c.bf16 %v6008_v27, %v6007_v19  ;;  %v7394_v62 = vpack.c.bf16 %v6026_v60, %v6025_v42  ;;  %v6017_v27 = vld [vmem:[%s9356_s7 + $0x180] sm:$0xff]  ;;  %v6018_v42 = vld [vmem:[%s9356_s7 + $0x188] sm:$0xff] }
 0xb19   :  { %v4648_v50 = vrot.slane %v4641_v33, %v8061_v22  ;;  %v4619_v3 = vrot.slane %v4612_v53, %v8061_v22  ;;  %v8651_v20 = vrot.slane %v4755_v2, %v8061_v22  ;;  %v8654_v18 = vrot.slane %v4732_v5, %v8061_v22 }
 0xb1a   :  { %v8668_v13 = vrot.slane %v8657_v6, %v8061_v22  ;;  %v8672_v12 = vrot.slane %v8660_v25, %v8061_v22  ;;  %v4673_v34 = vcombine.high %v4641_v33, %v4641_v33  ;;  %v4657_v41 = vcombine.high %v4612_v53, %v4612_v53  ;;  %7393 = vmatpush3.bf16.msra.mxu0 %v7392_v32  ;;  %v6030_v53 = vld [vmem:[%s9356_s7 + $0x1e8] sm:$0xff]  ;;  %v6039_v32 = vld [vmem:[%s9356_s7 + $0x230] sm:$0xff] }
 0xb1b   :  { %4649 = vrot.lane.b32.xlu1 %v4648_v50, %s7845_s2  ;;  %4620 = vrot.lane.b32.xlu0 %v4619_v3, %s7845_s2  ;;  %v4698_v23 = vcombine.high %v4648_v50, %v4648_v50  ;;  %v4689_v24 = vcombine.high %v4619_v3, %v4619_v3  ;;  %v4787_v4 = vcombine.high %v4755_v2, %v4755_v2 }
 0xb1c   :  { %v8685_v47 = vrot.slane %v4673_v34, %v8061_v22  ;;  %v8688_v14 = vrot.slane %v4657_v41, %v8061_v22  ;;  %v4771_v7 = vcombine.high %v4732_v5, %v4732_v5  ;;  %v8721_v35 = vrot.slane %v4867_v61, %v8061_v22  ;;  %7395 = vmatprep.subr.bf16.mxu0 %v7394_v62  ;;  %v6013_v5 = vld [vmem:[%s9356_s7 + $0x160] sm:$0xff]  ;;  %v6035_v62 = vld [vmem:[%s9356_s7 + $0x210] sm:$0xff] }
 0xb1d   :  { %v8724_v36 = vrot.slane %v4787_v4, %v8061_v22  ;;  %v8730_v59 = vrot.slane %v4841_v21, %v8061_v22  ;;  %v7396_v39 = vpack.c.bf16 %v6010_v29, %v6009_v9  ;;  %v7398_v0 = vpack.c.bf16 %v6028_v43, %v6027_v17 }
 0xb1e   :  { %v8727_v37 = vrot.slane %v4771_v7, %v8061_v22  ;;  %v4881_v40 = vrot.slane %v8721_v35, %v8061_v22  ;;  %v4812_v44 = vcombine.high %v8651_v20, %v8651_v20  ;;  %v4803_v8 = vcombine.high %v8654_v18, %v8654_v18 }
 0xb1f   :  { %4763 = vrot.lane.b32.xlu1 %v8651_v20, %s7845_s2  ;;  %4740 = vrot.lane.b32.xlu0 %v8654_v18, %s7845_s2  ;;  %v4855_v52 = vrot.slane %v8730_v59, %v8061_v22  ;;  %v7400_v33 = vpack.c.bf16 %v6012_v57, %v6011_v48  ;;  %v7402_v31 = vpack.c.bf16 %v6030_v53, %v6029_v49  ;;  %v6014_v20 = vld [vmem:[%s9356_s7 + $0x168] sm:$0xff]  ;;  %v6037_v18 = vld [vmem:[%s9356_s7 + $0x220] sm:$0xff]  ;;  %v7846_v41 = vmov 0.0|0.0  }
 0xb20   :  { %7397 = vmatpush3.bf16.msra.mxu0 %v7396_v39  ;;  %v4882_v51 = vcombine.high %v4881_v40, %v4881_v40  ;;  %v4589_v3 = vmul.f32 %v8624_v30, %v8575_v11  ;;  %v4590_v2 = vmul.f32 %v8624_v30, %v8578_v28  ;;  %v7404_v34 = vpack.c.bf16 %v6014_v20, %v6013_v5  ;;  %v6038_v11 = vld [vmem:[%s9356_s7 + $0x228] sm:$0xff]  ;;  %v6031_v28 = vld [vmem:[%s9356_s7 + $0x1f0] sm:$0xff] }
 0xb21   :  { %7399 = vmatprep.subr.bf16.mxu0 %v7398_v0  ;;  %v4856_v50 = vcombine.high %v4855_v52, %v4855_v52  ;;  %7418 = vmatprep.subr.bf16.mxu1 %v7846_v41  ;;  %v7419_v45 = vpack.c.bf16 %v6038_v11, %v6037_v18  ;;  %v7406_v1 = vpack.c.bf16 %v6032_v46, %v6031_v28  ;;  %v6019_v40 = vld [vmem:[%s9356_s7 + $0x190] sm:$0xff]  ;;  %v5154_v52 = vld [vmem:[%s9356_s7 + $0x88] sm:$0xff] }
 0xb22   :  { %v4716_v15 = vcombine.high %v8685_v47, %v8685_v47  ;;  %v4707_v58 = vcombine.high %v8688_v14, %v8688_v14  ;;  %v4987_v16 = vcombine.high %v8657_v6, %v8657_v6  ;;  %v4587_v54 = vmul.f32 %v8624_v30, %v8569_v10  ;;  %v6033_v10 = vld [vmem:[%s9356_s7 + $0x200] sm:$0xff] }
 0xb23   :  { %4963 = vrot.lane.b32.xlu1 %v8668_v13, %s7845_s2  ;;  %4940 = vrot.lane.b32.xlu0 %v8672_v12, %s7845_s2  ;;  %v4601_v26 = vmax.f32 %v4589_v3, 0.0  ;;  %v4602_v56 = vmax.f32 %v4590_v2, 0.0  ;;  %v4588_v61 = vmul.f32 %v8624_v30, %v8572_v63  ;;  %v6034_v63 = vld [vmem:[%s9356_s7 + $0x208] sm:$0xff]  ;;  %v7412_v60 = vpack.c.bf16 %v6018_v42, %v6017_v27 }
 0xb24   :  { %7401 = vmatpush3.bf16.msra.mxu0 %v7400_v33  ;;  %7420 = vmatpush3.bf16.msra.mxu1 %v7419_v45  ;;  %v7410_v30 = vpack.c.bf16 %v6034_v63, %v6033_v10  ;;  %v4994_v21 = vrot.slane %v4987_v16, %v8061_v22  ;;  %v4599_v7 = vmax.f32 %v4587_v54, 0.0  ;;  %v5012_v17 = vcombine.high %v8668_v13, %v8668_v13  ;;  %v5153_v13 = vld [vmem:[%s9356_s7 + $0x80] sm:$0xff] }
 0xb25   :  { %7403 = vmatprep.subr.bf16.mxu0 %v7402_v31  ;;  %7421 = vmatprep.subr.bf16.mxu1 %v7846_v41  ;;  %v5066_v4 = vcombine.low %v4601_v26, %v4602_v56  ;;  %v4600_v19 = vmax.f32 %v4588_v61, 0.0  ;;  %v7424_v48 = vpack.c.bf16 %v5154_v52, %v5153_v13  ;;  %v5003_v57 = vcombine.high %v8672_v12, %v8672_v12 }
 0xb26   :  { %v4908_v49 = vcombine.high %v8721_v35, %v8721_v35  ;;  %v4891_v31 = vcombine.high %v8730_v59, %v8730_v59  ;;  %v4830_v12 = vcombine.high %v8724_v36, %v8724_v36  ;;  %v5030_v2 = vcombine.high %v4994_v21, %v4994_v21 }
 0xb27   :  { %4681 = vrot.lane.b32.xlu1 %v8685_v47, %s7845_s2  ;;  %4665 = vrot.lane.b32.xlu0 %v8688_v14, %s7845_s2  ;;  %v6015_v47 = vld [vmem:[%s9356_s7 + $0x170] sm:$0xff]  ;;  %v6016_v14 = vld [vmem:[%s9356_s7 + $0x178] sm:$0xff]  ;;  %v5073_v43 = vrot.slane %v5066_v4, %v8061_v22  ;;  %v5041_v0 = vcombine.low %v4599_v7, %v4600_v19 }
 0xb28   :  { %7405 = vmatpush3.bf16.msra.mxu0 %v7404_v34  ;;  %v7408_v6 = vpack.c.bf16 %v6016_v14, %v6015_v47 }
 0xb29   :  { %7407 = vmatprep.subr.bf16.mxu0 %v7406_v1  ;;  %v5080_v33 = vrot.slane %v5073_v43, %v8061_v22  ;;  %v5048_v53 = vrot.slane %v5041_v0, %v8061_v22  ;;  %v5105_v20 = vcombine.high %v5073_v43, %v5073_v43 }
 0xb2b   :  { %4699 = vrot.lane.b32.xlu1 %v4698_v23, %s7845_s2  ;;  %4690 = vrot.lane.b32.xlu0 %v4689_v24, %s7845_s2  ;;  %v4821_v23 = vcombine.high %v8727_v37, %v8727_v37  ;;  %v4971_v24 = vcombine.high %v8660_v25, %v8660_v25  ;;  %v6040_v25 = vld [vmem:[%s9356_s7 + $0x238] sm:$0xff]  ;;  %v5055_v35 = vrot.slane %v5048_v53, %v8061_v22 }
 0xb2c   :  { %7409 = vmatpush3.bf16.msra.mxu0 %v7408_v6  ;;  %v7422_v9 = vpack.c.bf16 %v6040_v25, %v6039_v32  ;;  %v5112_v18 = vrot.slane %v5105_v20, %v8061_v22 }
 0xb2d   :  { %7411 = vmatprep.subr.bf16.mxu0 %v7410_v30  ;;  %v4978_v39 = vrot.slane %v4971_v24, %v8061_v22 }
 0xb2e   :  { %7423 = vmatpush3.bf16.msra.mxu1 %v7422_v9 }
 0xb2f   :  { %4795 = vrot.lane.b32.xlu1 %v8724_v36, %s7845_s2  ;;  %4779 = vrot.lane.b32.xlu0 %v8727_v37, %s7845_s2  ;;  %v6036_v37 = vld [vmem:[%s9356_s7 + $0x218] sm:$0xff]  ;;  %v5021_v5 = vcombine.high %v4978_v39, %v4978_v39  ;;  %v5089_v36 = vcombine.high %v5048_v53, %v5048_v53 }
 0xb30   :  { %v7414_v29 = vpack.c.bf16 %v6036_v37, %v6035_v62  ;;  %7413 = vmatpush3.bf16.msra.mxu0 %v7412_v60  ;;  %7425 = vmatprep.subr.bf16.mxu1 %v7424_v48 }
 0xb31   :  { %v5096_v34 = vrot.slane %v5089_v36, %v8061_v22 }
 0xb32   :  { %7415 = vmatprep.subr.bf16.mxu0 %v7414_v29 }
 0xb33   :  { %4813 = vrot.lane.b32.xlu1 %v4812_v44, %s7845_s2  ;;  %4804 = vrot.lane.b32.xlu0 %v4803_v8, %s7845_s2  ;;  %v6020_v44 = vld [vmem:[%s9356_s7 + $0x198] sm:$0xff] }
 0xb34   :  { %v7416_v8 = vpack.c.bf16 %v6020_v44, %v6019_v40 }
 0xb36   :  { %7417 = vmatpush3.bf16.msra.mxu0 %v7416_v8 }
 0xb37   :  { %4883 = vrot.lane.b32.xlu1 %v4882_v51, %s7845_s2  ;;  %4857 = vrot.lane.b32.xlu0 %v4856_v50, %s7845_s2  ;;  %v4915_v51 = vrot.slane %v4908_v49, %v8061_v22  ;;  %v4898_v50 = vrot.slane %v4891_v31, %v8061_v22 }
 0xb38   :  { %7456 = vmatprep.subr.bf16.mxu0 %v7846_v41 }
 0xb39   :  { %v4916_v59 = vcombine.high %v4915_v51, %v4915_v51  ;;  %v4899_v3 = vcombine.high %v4898_v50, %v4898_v50 }
 0xb3b   :  { %4717 = vrot.lane.b32.xlu1 %v4716_v15, %s7845_s2  ;;  %4708 = vrot.lane.b32.xlu0 %v4707_v58, %s7845_s2 }
 0xb3f   :  { %4995 = vrot.lane.b32.xlu1 %v4994_v21, %s7845_s2  ;;  %4822 = vrot.lane.b32.xlu0 %v4821_v23, %s7845_s2 }
 0xb43   :  { %5013 = vrot.lane.b32.xlu1 %v5012_v17, %s7845_s2  ;;  %4979 = vrot.lane.b32.xlu0 %v4978_v39, %s7845_s2 }
 0xb47   :  { %5081 = vrot.lane.b32.xlu1 %v5080_v33, %s7845_s2  ;;  %5004 = vrot.lane.b32.xlu0 %v5003_v57, %s7845_s2 }
 0xb4b   :  { %4831 = vrot.lane.b32.xlu1 %v4830_v12, %s7845_s2  ;;  %5056 = vrot.lane.b32.xlu0 %v5055_v35, %s7845_s2 }
 0xb4f   :  { %4917 = vrot.lane.b32.xlu1 %v4916_v59, %s7845_s2  ;;  %4900 = vrot.lane.b32.xlu0 %v4899_v3, %s7845_s2 }
 0xb53   :  { %5031 = vrot.lane.b32.xlu1 %v5030_v2, %s7845_s2  ;;  %5022 = vrot.lane.b32.xlu0 %v5021_v5, %s7845_s2 }
 0xb57   :  { %5113 = vrot.lane.b32.xlu1 %v5112_v18, %s7845_s2  ;;  %5097 = vrot.lane.b32.xlu0 %v5096_v34, %s7845_s2 }
 0xb8d   :  { %v4650_v11 = vpop.permute.xlu1 %4649  ;;  %v4621_v28 = vpop.permute.xlu0 %4620 }
 0xb8e   :  { %v4651_v45 = vrot.slane %v4650_v11, 7  ;;  %v4622_v1 = vrot.slane %v4621_v28, 7 }
 0xb90   :  { %v4652_v15 = vsel %vm4623_vm12, %v4651_v45, %v4650_v11  ;;  %v4624_v22 = vsel %vm4623_vm12, %v4622_v1, %v4621_v28 }
 0xb91   :  { %4655 = vst.msk [vmem:[#allocation4 + $0x2] ss:$8 sm:$0x7] %vm8894_vm13, %v4652_v15  ;;  %4630 = vst.msk [vmem:[#allocation4 + $0x1] ss:$8 sm:$0x7] %vm8894_vm13, %v4624_v22  ;;  %v4764_v55 = vpop.permute.xlu1 %4763  ;;  %v4741_v58 = vpop.permute.xlu0 %4740 }
 0xb92   :  { %v4765_v16 = vrot.slane %v4764_v55, 7  ;;  %v4742_v54 = vrot.slane %v4741_v58, 7  ;;  %v5137_v22 = vld [vmem:[%s9356_s7] sm:$0xff] }
 0xb94   :  { %v4766_v26 = vsel %vm4623_vm12, %v4765_v16, %v4764_v55  ;;  %v4743_v56 = vsel %vm4623_vm12, %v4742_v54, %v4741_v58  ;;  %v5138_v55 = vld [vmem:[%s9356_s7 + $0x8] sm:$0xff] }
 0xb95   :  { %4769 = vst.msk [vmem:[#allocation4 + $0x1a] ss:$8 sm:$0x7] %vm8894_vm13, %v4766_v26  ;;  %4746 = vst.msk [vmem:[#allocation4 + $0x19] ss:$8 sm:$0x7] %vm8894_vm13, %v4743_v56  ;;  %v4964_v61 = vpop.permute.xlu1 %4963  ;;  %v4941_v47 = vpop.permute.xlu0 %4940 }
 0xb96   :  { %v4965_v14 = vrot.slane %v4964_v61, 7  ;;  %v4942_v10 = vrot.slane %v4941_v47, 7 }
 0xb98   :  { %v4966_v6 = vsel %vm4623_vm12, %v4965_v14, %v4964_v61  ;;  %v4943_v63 = vsel %vm4623_vm12, %v4942_v10, %v4941_v47  ;;  %v5155_v14 = vld [vmem:[%s9356_s7 + $0x90] sm:$0xff]  ;;  %v7426_v10 = vpack.c.bf16 %v5138_v55, %v5137_v22  ;;  %v5144_v55 = vld [vmem:[%s9356_s7 + $0x38] sm:$0xff] }
 0xb99   :  { %4969 = vst.msk [vmem:[#allocation4 + $0x48] ss:$8 sm:$0x7] %vm8894_vm13, %v4966_v6  ;;  %4946 = vst.msk [vmem:[#allocation4 + $0x37] ss:$8 sm:$0x7] %vm8894_vm13, %v4943_v63  ;;  %v4682_v30 = vpop.permute.xlu1 %4681  ;;  %v4666_v21 = vpop.permute.xlu0 %4665 }
 0xb9a   :  { %v4683_v23 = vrot.slane %v4682_v30, 7  ;;  %v4667_v24 = vrot.slane %v4666_v21, 7  ;;  %v5156_v6 = vld [vmem:[%s9356_s7 + $0x98] sm:$0xff]  ;;  %v5169_v63 = vld [vmem:[%s9356_s7 + $0x100] sm:$0xff]  ;;  %v5143_v22 = vld [vmem:[%s9356_s7 + $0x30] sm:$0xff] }
 0xb9c   :  { %v4684_v4 = vsel %vm4623_vm12, %v4683_v23, %v4682_v30  ;;  %v4668_v7 = vsel %vm4623_vm12, %v4667_v24, %v4666_v21  ;;  %v5170_v30 = vld [vmem:[%s9356_s7 + $0x108] sm:$0xff] }
 0xb9d   :  { %4687 = vst.msk [vmem:[#allocation4 + $0x4] ss:$8 sm:$0x7] %vm8894_vm13, %v4684_v4  ;;  %4671 = vst.msk [vmem:[#allocation4 + $0x3] ss:$8 sm:$0x7] %vm8894_vm13, %v4668_v7  ;;  %v4700_v19 = vpop.permute.xlu1 %4699  ;;  %v4691_v27 = vpop.permute.xlu0 %4690 }
 0xb9e   :  { %v4701_v42 = vrot.slane %v4700_v19, 7  ;;  %v4692_v32 = vrot.slane %v4691_v27, 7 }
 0xba0   :  { %v4702_v60 = vsel %vm4623_vm12, %v4701_v42, %v4700_v19  ;;  %v4693_v25 = vsel %vm4623_vm12, %v4692_v32, %v4691_v27 }
 0xba1   :  { %4705 = vst.msk [vmem:[#allocation4 + $0x6] ss:$8 sm:$0x7] %vm8894_vm13, %v4702_v60  ;;  %4696 = vst.msk [vmem:[#allocation4 + $0x5] ss:$8 sm:$0x7] %vm8894_vm13, %v4693_v25  ;;  %v4796_v62 = vpop.permute.xlu1 %4795  ;;  %v4780_v37 = vpop.permute.xlu0 %4779 }
 0xba2   :  { %v4797_v9 = vrot.slane %v4796_v62, 7  ;;  %v4781_v29 = vrot.slane %v4780_v37, 7 }
 0xba4   :  { %v4798_v17 = vsel %vm4623_vm12, %v4797_v9, %v4796_v62  ;;  %v4782_v39 = vsel %vm4623_vm12, %v4781_v29, %v4780_v37 }
 0xba5   :  { %4801 = vst.msk [vmem:[#allocation4 + $0x1c] ss:$8 sm:$0x7] %vm8894_vm13, %v4798_v17  ;;  %4785 = vst.msk [vmem:[#allocation4 + $0x1b] ss:$8 sm:$0x7] %vm8894_vm13, %v4782_v39  ;;  %v4814_v43 = vpop.permute.xlu1 %4813  ;;  %v4805_v0 = vpop.permute.xlu0 %4804  ;;  %v7428_v17 = vpack.c.bf16 %v5156_v6, %v5155_v14 }
 0xba6   :  { %v4815_v40 = vrot.slane %v4814_v43, 7  ;;  %v4806_v44 = vrot.slane %v4805_v0, 7  ;;  %v5139_v39 = vld [vmem:[%s9356_s7 + $0x10] sm:$0xff] }
 0xba8   :  { %v4816_v13 = vsel %vm4623_vm12, %v4815_v40, %v4814_v43  ;;  %v4807_v8 = vsel %vm4623_vm12, %v4806_v44, %v4805_v0  ;;  %v5140_v43 = vld [vmem:[%s9356_s7 + $0x18] sm:$0xff] }
 0xba9   :  { %4819 = vst.msk [vmem:[#allocation4 + $0x1e] ss:$8 sm:$0x7] %vm8894_vm13, %v4816_v13  ;;  %4810 = vst.msk [vmem:[#allocation4 + $0x1d] ss:$8 sm:$0x7] %vm8894_vm13, %v4807_v8  ;;  %v4884_v52 = vpop.permute.xlu1 %4883  ;;  %v4858_v48 = vpop.permute.xlu0 %4857 }
 0xbaa   :  { %v4885_v57 = vrot.slane %v4884_v52, 7  ;;  %v4859_v49 = vrot.slane %v4858_v48, 7  ;;  %v5157_v13 = vld [vmem:[%s9356_s7 + $0xa0] sm:$0xff]  ;;  %v5158_v8 = vld [vmem:[%s9356_s7 + $0xa8] sm:$0xff] }
 0xbac   :  { %v4886_v33 = vsel %vm4623_vm12, %v4885_v57, %v4884_v52  ;;  %v4860_v53 = vsel %vm4623_vm12, %v4859_v49, %v4858_v48  ;;  %v7457_v52 = vpack.c.bf16 %v5170_v30, %v5169_v63  ;;  %v5171_v49 = vld [vmem:[%s9356_s7 + $0x110] sm:$0xff]  ;;  %v5145_v63 = vld [vmem:[%s9356_s7 + $0x40] sm:$0xff]  ;;  %v5146_v30 = vld [vmem:[%s9356_s7 + $0x48] sm:$0xff] }
 0xbad   :  { %4889 = vst.msk [vmem:[#allocation4 + $0x34] ss:$8 sm:$0x7] %vm8894_vm13, %v4886_v33  ;;  %4863 = vst.msk [vmem:[#allocation4 + $0x33] ss:$8 sm:$0x7] %vm8894_vm13, %v4860_v53  ;;  %v4718_v31 = vpop.permute.xlu1 %4717  ;;  %v4709_v12 = vpop.permute.xlu0 %4708 }
 0xbae   :  { %v4719_v35 = vrot.slane %v4718_v31, 7  ;;  %v4710_v51 = vrot.slane %v4709_v12, 7  ;;  %v5172_v33 = vld [vmem:[%s9356_s7 + $0x118] sm:$0xff] }
 0xbb0   :  { %v4720_v50 = vsel %vm4623_vm12, %v4719_v35, %v4718_v31  ;;  %v4711_v59 = vsel %vm4623_vm12, %v4710_v51, %v4709_v12  ;;  %v7430_v12 = vpack.c.bf16 %v5140_v43, %v5139_v39 }
 0xbb1   :  { %4723 = vst.msk [vmem:[#allocation4 + $0x18] ss:$8 sm:$0x7] %vm8894_vm13, %v4720_v50  ;;  %4714 = vst.msk [vmem:[#allocation4 + $0x7] ss:$8 sm:$0x7] %vm8894_vm13, %v4711_v59  ;;  %v4996_v3 = vpop.permute.xlu1 %4995  ;;  %v4823_v2 = vpop.permute.xlu0 %4822  ;;  %v7432_v50 = vpack.c.bf16 %v5158_v8, %v5157_v13 }
 0xbb2   :  { %v4997_v5 = vrot.slane %v4996_v3, 7  ;;  %v4824_v20 = vrot.slane %v4823_v2, 7  ;;  %v5141_v59 = vld [vmem:[%s9356_s7 + $0x20] sm:$0xff] }
 0xbb3   :  { %v5165_v8 = vld [vmem:[%s9356_s7 + $0xe0] sm:$0xff] }
 0xbb4   :  { %v4998_v36 = vsel %vm4623_vm12, %v4997_v5, %v4996_v3  ;;  %v4825_v18 = vsel %vm4623_vm12, %v4824_v20, %v4823_v2  ;;  %v5142_v3 = vld [vmem:[%s9356_s7 + $0x28] sm:$0xff]  ;;  %v5159_v2 = vld [vmem:[%s9356_s7 + $0xb0] sm:$0xff]  ;;  %v5160_v5 = vld [vmem:[%s9356_s7 + $0xb8] sm:$0xff]  ;;  %v7460_v20 = vpack.c.bf16 %v5172_v33, %v5171_v49 }
 0xbb5   :  { %5001 = vst.msk [vmem:[#allocation4 + $0x4a] ss:$8 sm:$0x7] %vm8894_vm13, %v4998_v36  ;;  %4828 = vst.msk [vmem:[#allocation4 + $0x1f] ss:$8 sm:$0x7] %vm8894_vm13, %v4825_v18  ;;  %v5014_v34 = vpop.permute.xlu1 %5013  ;;  %v4980_v11 = vpop.permute.xlu0 %4979 }
 0xbb6   :  { %v5015_v28 = vrot.slane %v5014_v34, 7  ;;  %v4981_v45 = vrot.slane %v4980_v11, 7 }
 0xbb8   :  { %v5016_v1 = vsel %vm4623_vm12, %v5015_v28, %v5014_v34  ;;  %v4982_v15 = vsel %vm4623_vm12, %v4981_v45, %v4980_v11  ;;  %v5174_v54 = vld [vmem:[#allocation4 + $0x8] sm:$0xfe]  ;;  %v5175_v26 = vld [vmem:[#allocation4 + $0x10] sm:$0xfe]  ;;  %v5173_v47 = vld [vmem:[#allocation4] sm:$0xfe]  ;;  %v7434_v28 = vpack.c.bf16 %v5142_v3, %v5141_v59 }
 0xbb9   :  { %5019 = vst.msk [vmem:[#allocation4 + $0x4c] ss:$8 sm:$0x7] %vm8894_vm13, %v5016_v1  ;;  %4985 = vst.msk [vmem:[#allocation4 + $0x49] ss:$8 sm:$0x7] %vm8894_vm13, %v4982_v15  ;;  %v5082_v58 = vpop.permute.xlu1 %5081  ;;  %v5005_v16 = vpop.permute.xlu0 %5004  ;;  %v7436_v15 = vpack.c.bf16 %v5160_v5, %v5159_v2 }
 0xbba   :  { %v5083_v56 = vrot.slane %v5082_v58, 7  ;;  %v5006_v61 = vrot.slane %v5005_v16, 7  ;;  %v5234_v4 = vrot.slane %v5174_v54, 1  ;;  %v5237_v19 = vrot.slane %v5175_v26, 1  ;;  %v5167_v59 = vld [vmem:[%s9356_s7 + $0xf0] sm:$0xff]  ;;  %v5168_v3 = vld [vmem:[%s9356_s7 + $0xf8] sm:$0xff] }
 0xbbb   :  { %v5231_v62 = vrot.slane %v5173_v47, 1  ;;  %v7438_v47 = vpack.c.bf16 %v5144_v55, %v5143_v22  ;;  %v7452_v55 = vpack.c.bf16 %v5168_v3, %v5167_v59  ;;  %v5651_v59 = vld [vmem:[#allocation4 + $0x8] sm:$0xfc]  ;;  %v6077_v3 = vld [vmem:[%s9356_s7 + $0x310] sm:$0xff] }
 0xbbc   :  { %v5084_v21 = vsel %vm4623_vm12, %v5083_v56, %v5082_v58  ;;  %v5007_v23 = vsel %vm4623_vm12, %v5006_v61, %v5005_v16  ;;  %v8984_v24 = vld [vmem:[#allocation4 + $0x20] sm:$0xff]  ;;  %v8986_v7 = vld [vmem:[#allocation4 + $0x28] sm:$0xff]  ;;  %v8988_v27 = vld [vmem:[#allocation4 + $0x18] sm:$0xff] }
 0xbbd   :  { %5087 = vst.msk [vmem:[#allocation4 + $0x60] ss:$8 sm:$0x7] %vm8894_vm13, %v5084_v21  ;;  %5010 = vst.msk [vmem:[#allocation4 + $0x4b] ss:$8 sm:$0x7] %vm8894_vm13, %v5007_v23  ;;  %v4832_v42 = vpop.permute.xlu1 %4831  ;;  %v5057_v32 = vpop.permute.xlu0 %5056 }
 0xbbe   :  { %v5235_v60 = vrot.slane %v8984_v24, 1  ;;  %v5238_v25 = vrot.slane %v8986_v7, 1  ;;  %v5232_v37 = vrot.slane %v8988_v27, 1  ;;  %v4833_v9 = vrot.slane %v4832_v42, 7  ;;  %v5161_v58 = vld [vmem:[%s9356_s7 + $0xc0] sm:$0xff]  ;;  %v5162_v16 = vld [vmem:[%s9356_s7 + $0xc8] sm:$0xff] }
 0xbbf   :  { %v5058_v29 = vrot.slane %v5057_v32, 7  ;;  %v7440_v6 = vpack.c.bf16 %v5162_v16, %v5161_v58  ;;  %v5163_v21 = vld [vmem:[%s9356_s7 + $0xd0] sm:$0xff]  ;;  %v5164_v23 = vld [vmem:[%s9356_s7 + $0xd8] sm:$0xff]  ;;  %v6067_v58 = vld [vmem:[%s9356_s7 + $0x2c0] sm:$0xff] }
 0xbc0   :  { %v5236_v0 = vsel %vm1074_vm5, %v5234_v4, %v5235_v60  ;;  %v5239_v40 = vsel %vm1074_vm5, %v5237_v19, %v5238_v25  ;;  %v5233_v44 = vsel %vm1074_vm5, %v5231_v62, %v5232_v37  ;;  %v4834_v48 = vsel %vm4623_vm12, %v4833_v9, %v4832_v42  ;;  %v6068_v16 = vld [vmem:[%s9356_s7 + $0x2c8] sm:$0xff] }
 0xbc1   :  { %v5059_v57 = vsel %vm4623_vm12, %v5058_v29, %v5057_v32  ;;  %5342 = vmatprep.mubr.f32.mxu0 %v5236_v0  ;;  %6270 = vmatmul.mubr.msk.f32.vlgmr.msra.gmra.mrb[14].mxu1 %vm148_vm0, %v5239_v40  ;;  %4837 = vst.msk [vmem:[#allocation4 + $0x30] ss:$8 sm:$0x7] %vm8894_vm13, %v4834_v48  ;;  %v4918_v53 = vpop.permute.xlu1 %4917  ;;  %v4901_v31 = vpop.permute.xlu0 %4900  ;;  %v7444_v43 = vpack.c.bf16 %v5164_v23, %v5163_v21  ;;  %v5147_v0 = vld [vmem:[%s9356_s7 + $0x50] sm:$0xff]  ;;  %v5148_v40 = vld [vmem:[%s9356_s7 + $0x58] sm:$0xff] }
 0xbc2   :  { %5062 = vst.msk [vmem:[#allocation4 + $0x4f] ss:$8 sm:$0x7] %vm8894_vm13, %v5059_v57  ;;  %7427 = vmatpush3.bf16.msra.mxu1 %v7426_v10  ;;  %5343 = vmatmul.mubr.f32.vlgmr.msra.gmra.mrb[14].mxu0 %v5233_v44  ;;  %v4919_v35 = vrot.slane %v4918_v53, 7  ;;  %v4902_v51 = vrot.slane %v4901_v31, 7  ;;  %v7446_v49 = vpack.c.bf16 %v5148_v40, %v5147_v0  ;;  %v6053_v23 = vld [vmem:[%s9356_s7 + $0x250] sm:$0xff] }
 0xbc3   :  { %7429 = vmatprep.subr.bf16.mxu1 %v7428_v17  ;;  %6272 = vmatprep.mubr.msk.f32.mxu1 %vm7847_vm9, %v8436_v38  ;;  %v7442_v17 = vpack.c.bf16 %v5146_v30, %v5145_v63  ;;  %v5123_v63 = vld [vmem:[#allocation4 + $0x8] sm:$0xff]  ;;  %v5124_v0 = vld [vmem:[#allocation4 + $0x10] sm:$0xff] }
 0xbc4   :  { %7458 = vmatpush3.bf16.msra.mxu0 %v7457_v52  ;;  %v4920_v36 = vsel %vm4623_vm12, %v4919_v35, %v4918_v53  ;;  %v4903_v18 = vsel %vm4623_vm12, %v4902_v51, %v4901_v31  ;;  %v5166_v52 = vld [vmem:[%s9356_s7 + $0xe8] sm:$0xff]  ;;  %v5149_v31 = vld [vmem:[%s9356_s7 + $0x60] sm:$0xff] }
 0xbc5   :  { %7459 = vmatprep.subr.bf16.mxu0 %v7846_v41  ;;  %4923 = vst.msk [vmem:[#allocation4 + $0x36] ss:$8 sm:$0x7] %vm8894_vm13, %v4920_v36  ;;  %4906 = vst.msk [vmem:[#allocation4 + $0x35] ss:$8 sm:$0x7] %vm8894_vm13, %v4903_v18  ;;  %v5032_v34 = vpop.permute.xlu1 %5031  ;;  %v5023_v11 = vpop.permute.xlu0 %5022  ;;  %v7448_v53 = vpack.c.bf16 %v5166_v52, %v5165_v8 }
 0xbc6   :  { %7431 = vmatpush3.bf16.msra.mxu1 %v7430_v12  ;;  %v5033_v45 = vrot.slane %v5032_v34, 7  ;;  %v5024_v1 = vrot.slane %v5023_v11, 7  ;;  %v5150_v12 = vld [vmem:[%s9356_s7 + $0x68] sm:$0xff]  ;;  %v6073_v8 = vld [vmem:[%s9356_s7 + $0x2f0] sm:$0xff]  ;;  %v6074_v52 = vld [vmem:[%s9356_s7 + $0x2f8] sm:$0xff] }
 0xbc7   :  { %7433 = vmatprep.subr.bf16.mxu1 %v7432_v50 }
 0xbc8   :  { %7461 = vmatpush3.bf16.msra.mxu0 %v7460_v20  ;;  %v5034_v54 = vsel %vm4623_vm12, %v5033_v45, %v5032_v34  ;;  %v5025_v26 = vsel %vm4623_vm12, %v5024_v1, %v5023_v11  ;;  %v7450_v34 = vpack.c.bf16 %v5150_v12, %v5149_v31  ;;  %v5152_v45 = vld [vmem:[%s9356_s7 + $0x78] sm:$0xff]  ;;  %v6076_v31 = vld [vmem:[%s9356_s7 + $0x308] sm:$0xff] }
 0xbc9   :  { %7494 = vmatprep.subr.bf16.mxu0 %v7846_v41  ;;  %5037 = vst.msk [vmem:[#allocation4 + $0x4e] ss:$8 sm:$0x7] %vm8894_vm13, %v5034_v54  ;;  %5028 = vst.msk [vmem:[#allocation4 + $0x4d] ss:$8 sm:$0x7] %vm8894_vm13, %v5025_v26  ;;  %v5114_v56 = vpop.permute.xlu1 %5113  ;;  %v5098_v61 = vpop.permute.xlu0 %5097  ;;  %v7462_v26 = vpack.c.bf16 %v6068_v16, %v6067_v58 }
 0xbca   :  { %7435 = vmatpush3.bf16.msra.mxu1 %v7434_v28  ;;  %v5115_v14 = vrot.slane %v5114_v56, 7  ;;  %v5099_v10 = vrot.slane %v5098_v61, 7  ;;  %v5151_v28 = vld [vmem:[%s9356_s7 + $0x70] sm:$0xff]  ;;  %v5706_v16 = vrot.slane %v8986_v7, 2 }
 0xbcb   :  { %7437 = vmatprep.subr.bf16.mxu1 %v7436_v15  ;;  %v7454_v54 = vpack.c.bf16 %v5152_v45, %v5151_v28  ;;  %v6062_v28 = vld [vmem:[%s9356_s7 + $0x298] sm:$0xff] }
 0xbcc   :  { %v5116_v4 = vsel %vm4623_vm12, %v5115_v14, %v5114_v56  ;;  %v5100_v19 = vsel %vm4623_vm12, %v5099_v10, %v5098_v61  ;;  %v9085_v42 = vld [vmem:[#allocation4 + $0x38] sm:$0xff]  ;;  %v9087_v32 = vld [vmem:[#allocation4 + $0x40] sm:$0xff]  ;;  %v9089_v62 = vld [vmem:[#allocation4 + $0x30] sm:$0xff] }
 0xbcd   :  { %5119 = vst.msk [vmem:[#allocation4 + $0x62] ss:$8 sm:$0x7] %vm8894_vm13, %v5116_v4  ;;  %5103 = vst.msk [vmem:[#allocation4 + $0x61] ss:$8 sm:$0x7] %vm8894_vm13, %v5100_v19 }
 0xbce   :  { %7439 = vmatpush3.bf16.msra.mxu1 %v7438_v47  ;;  %v5242_v9 = vrot.slane %v9085_v42, 1  ;;  %v5244_v29 = vrot.slane %v9087_v32, 1  ;;  %v5240_v39 = vrot.slane %v9089_v62, 1  ;;  %v6051_v56 = vld [vmem:[%s9356_s7 + $0x240] sm:$0xff]  ;;  %v6052_v61 = vld [vmem:[%s9356_s7 + $0x248] sm:$0xff]  ;;  %v6069_v47 = vld [vmem:[%s9356_s7 + $0x2d0] sm:$0xff] }
 0xbcf   :  { %7441 = vmatprep.subr.bf16.mxu1 %v7440_v6  ;;  %v6070_v14 = vld [vmem:[%s9356_s7 + $0x2d8] sm:$0xff]  ;;  %v6083_v10 = vld [vmem:[%s9356_s7 + $0x340] sm:$0xff]  ;;  %v6084_v6 = vld [vmem:[%s9356_s7 + $0x348] sm:$0xff]  ;;  %v7464_v30 = vpack.c.bf16 %v6052_v61, %v6051_v56 }
 0xbd0   :  { %v5243_v46 = vsel %vm1074_vm5, %v5235_v60, %v5242_v9  ;;  %v5245_v44 = vsel %vm1074_vm5, %v5238_v25, %v5244_v29  ;;  %v5241_v13 = vsel %vm1074_vm5, %v5232_v37, %v5240_v39  ;;  %v9120_v60 = vld [vmem:[#allocation4 + $0x50] sm:$0xff]  ;;  %v9122_v48 = vld [vmem:[#allocation4 + $0x58] sm:$0xff]  ;;  %v9124_v25 = vld [vmem:[#allocation4 + $0x48] sm:$0xff]  ;;  %v7466_v21 = vpack.c.bf16 %v6070_v14, %v6069_v47 }
 0xbd1   :  { %5347 = vmatprep.mubr.f32.mxu0 %v5243_v46  ;;  %6273 = vmatmul.mubr.msk.f32.gmra.mrb[16].mxu1 %vm148_vm0, %v5245_v44  ;;  %v5248_v37 = vrot.slane %v9120_v60, 1  ;;  %v5250_v57 = vrot.slane %v9122_v48, 1  ;;  %v5246_v33 = vrot.slane %v9124_v25, 1  ;;  %v6054_v4 = vld [vmem:[%s9356_s7 + $0x258] sm:$0xff]  ;;  %v6055_v44 = vld [vmem:[%s9356_s7 + $0x260] sm:$0xff]  ;;  %v6064_v56 = vld [vmem:[%s9356_s7 + $0x2a8] sm:$0xff] }
 0xbd2   :  { %7443 = vmatpush3.bf16.msra.mxu1 %v7442_v17  ;;  %5348 = vmatmul.mubr.f32.gmra.mrb[16].mxu0 %v5241_v13  ;;  %v5122_v19 = vld [vmem:[#allocation4] sm:$0xff]  ;;  %v7495_v17 = vpack.c.bf16 %v6084_v6, %v6083_v10  ;;  %v7468_v40 = vpack.c.bf16 %v6054_v4, %v6053_v23  ;;  %v6056_v13 = vld [vmem:[%s9356_s7 + $0x268] sm:$0xff]  ;;  %v5712_v6 = vrot.slane %v9087_v32, 2 }
 0xbd3   :  { %6275 = vmatprep.mubr.msk.f32.mxu1 %vm7847_vm9, %v8436_v38  ;;  %7445 = vmatprep.subr.bf16.mxu1 %v7444_v43  ;;  %v5249_v35 = vsel %vm1074_vm5, %v5242_v9, %v5248_v37  ;;  %v5251_v51 = vsel %vm1074_vm5, %v5244_v29, %v5250_v57  ;;  %v5247_v50 = vsel %vm1074_vm5, %v5240_v39, %v5246_v33  ;;  %v6071_v9 = vld [vmem:[%s9356_s7 + $0x2e0] sm:$0xff]  ;;  %v6072_v29 = vld [vmem:[%s9356_s7 + $0x2e8] sm:$0xff]  ;;  %v6085_v39 = vld [vmem:[%s9356_s7 + $0x350] sm:$0xff] }
 0xbd4   :  { %5352 = vmatprep.mubr.f32.mxu0 %v5249_v35  ;;  %v5177_v2 = vld [vmem:[#allocation4 + $0x68] sm:$0x7]  ;;  %v5178_v5 = vld [vmem:[#allocation4 + $0x70] sm:$0x7]  ;;  %v5176_v20 = vld [vmem:[#allocation4 + $0x60] sm:$0x7]  ;;  %v7470_v46 = vpack.c.bf16 %v6072_v29, %v6071_v9  ;;  %v5713_v23 = vsel %vm1911_vm6, %v5706_v16, %v5712_v6 }
 0xbd5   :  { %6276 = vmatmul.mubr.msk.f32.gmra.mrb[18].mxu1 %vm148_vm0, %v5251_v51  ;;  %v5254_v36 = vrot.slane %v5177_v2, 1  ;;  %v5256_v18 = vrot.slane %v5178_v5, 1  ;;  %v5252_v11 = vrot.slane %v5176_v20, 1  ;;  %v6086_v43 = vld [vmem:[%s9356_s7 + $0x358] sm:$0xff]  ;;  %v6059_v51 = vld [vmem:[%s9356_s7 + $0x280] sm:$0xff]  ;;  %v5703_v20 = vrot.slane %v8984_v24, 2 }
 0xbd6   :  { %7447 = vmatpush3.bf16.msra.mxu1 %v7446_v49  ;;  %5353 = vmatmul.mubr.f32.gmra.mrb[18].mxu0 %v5247_v50  ;;  %v7474_v49 = vpack.c.bf16 %v6074_v52, %v6073_v8  ;;  %v6060_v50 = vld [vmem:[%s9356_s7 + $0x288] sm:$0xff]  ;;  %v6078_v2 = vld [vmem:[%s9356_s7 + $0x318] sm:$0xff]  ;;  %v5135_v5 = vld [vmem:[#allocation4 + $0x68] sm:$0x3]  ;;  %v5700_v29 = vrot.slane %v8988_v27, 2  ;;  %v5714_v8 = vrot.slane %v9124_v25, 2 }
 0xbd7   :  { %6278 = vmatprep.mubr.msk.f32.mxu1 %vm7847_vm9, %v8436_v38  ;;  %7449 = vmatprep.subr.bf16.mxu1 %v7448_v53  ;;  %v5255_v1 = vsel %vm1074_vm5, %v5248_v37, %v5254_v36  ;;  %v5257_v15 = vsel %vm1074_vm5, %v5250_v57, %v5256_v18  ;;  %v5253_v22 = vsel %vm1074_vm5, %v5246_v33, %v5252_v11  ;;  %v6057_v33 = vld [vmem:[%s9356_s7 + $0x270] sm:$0xff]  ;;  %v6058_v53 = vld [vmem:[%s9356_s7 + $0x278] sm:$0xff]  ;;  %v5655_v9 = vld [vmem:[#allocation4 + $0x70] sm:$0xf]  ;;  %vm5964_vm5 = vcmask 523266  }
 0xbd8   :  { %5357 = vmatprep.mubr.f32.mxu0 %v5255_v1  ;;  %v7498_v37 = vpack.c.bf16 %v6086_v43, %v6085_v39  ;;  %v7472_v57 = vpack.c.bf16 %v6056_v13, %v6055_v44  ;;  %v7476_v12 = vpack.c.bf16 %v6058_v53, %v6057_v33  ;;  %v5134_v45 = vld [vmem:[#allocation4 + $0x60] sm:$0x3]  ;;  %v6080_v1 = vld [vmem:[%s9356_s7 + $0x328] sm:$0xff]  ;;  %v5654_v44 = vld [vmem:[#allocation4 + $0x68] sm:$0xf] }
 0xbd9   :  { %6279 = vmatmul.mubr.msk.f32.gmra.mrb[20].mxu1 %vm148_vm0, %v5257_v15  ;;  %v6082_v47 = vld [vmem:[%s9356_s7 + $0x338] sm:$0xff]  ;;  %v5722_v52 = vrot.slane %v5654_v44, 2 }
 0xbda   :  { %7451 = vmatpush3.bf16.msra.mxu1 %v7450_v34  ;;  %5358 = vmatmul.mubr.f32.gmra.mrb[20].mxu0 %v5253_v22  ;;  %v7482_v34 = vpack.c.bf16 %v6078_v2, %v6077_v3  ;;  %v5652_v22 = vld [vmem:[#allocation4 + $0x10] sm:$0xfc] }
 0xbdb   :  { %5362 = vmatprep.mubr.f32.mxu0 %v5254_v36  ;;  %6281 = vmatprep.mubr.msk.f32.mxu1 %vm7847_vm9, %v8436_v38  ;;  %v7480_v36 = vpack.c.bf16 %v6060_v50, %v6059_v51  ;;  %v5705_v61 = vrot.slane %v5652_v22, 2 }
 0xbdc   :  { %7453 = vmatprep.subr.bf16.mxu1 %v7452_v55  ;;  %v5136_v55 = vld [vmem:[#allocation4 + $0x70] sm:$0x3] }
 0xbdd   :  { %6282 = vmatmul.mubr.msk.f32.gmra.mrb[22].mxu1 %vm148_vm0, %v5256_v18  ;;  %v5702_v18 = vrot.slane %v5651_v59, 2  ;;  %v5707_v14 = vsel %vm1911_vm6, %v5705_v61, %v5706_v16 }
 0xbde   :  { %7455 = vmatpush3.bf16.msra.mxu1 %v7454_v54  ;;  %5363 = vmatmul.mubr.f32.gmra.mrb[22].mxu0 %v5252_v11  ;;  %v6061_v11 = vld [vmem:[%s9356_s7 + $0x290] sm:$0xff] }
 0xbdf   :  { %5534 = vmatprep.mubr.f32.mxu1 %v5123_v63  ;;  %7463 = vmatprep.subr.bf16.mxu1 %v7462_v26  ;;  %v5704_v15 = vsel %vm1911_vm6, %v5702_v18, %v5703_v20  ;;  %v7484_v58 = vpack.c.bf16 %v6062_v28, %v6061_v11  ;;  %v6063_v26 = vld [vmem:[%s9356_s7 + $0x2a0] sm:$0xff] }
 0xbe0   :  { %6292 = vmatprep.mubr.msk.f32.mxu0 %vm7847_vm9, %v8436_v38  ;;  %v7488_v10 = vpack.c.bf16 %v6064_v56, %v6063_v26 }
 0xbe1   :  { %5535 = vmatmul.mubr.f32.vlgmr.msra.gmra.mrb[24].mxu1 %v5122_v19  ;;  %v5650_v19 = vld [vmem:[#allocation4] sm:$0xfc] }
 0xbe2   :  { %7465 = vmatpush3.bf16.msra.mxu1 %v7464_v30  ;;  %5539 = vmatprep.mubr.f32.mxu1 %v8984_v24  ;;  %v6079_v24 = vld [vmem:[%s9356_s7 + $0x320] sm:$0xff]  ;;  %v6065_v30 = vld [vmem:[%s9356_s7 + $0x2b0] sm:$0xff]  ;;  %v5699_v43 = vrot.slane %v5650_v19, 2 }
 0xbe3   :  { %6293 = vmatmul.mubr.msk.f32.vlgmr.msra.gmra.mrb[24].mxu0 %vm148_vm0, %v5124_v0  ;;  %7467 = vmatprep.subr.bf16.mxu1 %v7466_v21  ;;  %v7486_v54 = vpack.c.bf16 %v6080_v1, %v6079_v24  ;;  %v6066_v21 = vld [vmem:[%s9356_s7 + $0x2b8] sm:$0xff]  ;;  %v5724_v0 = vrot.slane %v5655_v9, 2 }
 0xbe4   :  { %6295 = vmatprep.mubr.msk.f32.mxu0 %vm7847_vm9, %v8436_v38  ;;  %7496 = vmatpush3.bf16.msra.mxu0 %v7495_v17  ;;  %v7492_v4 = vpack.c.bf16 %v6066_v21, %v6065_v30  ;;  %v5710_v17 = vrot.slane %v9085_v42, 2 }
 0xbe5   :  { %5540 = vmatmul.mubr.f32.gmra.mrb[26].mxu1 %v8988_v27  ;;  %7497 = vmatprep.subr.bf16.mxu0 %v7846_v41  ;;  %v6075_v41 = vld [vmem:[%s9356_s7 + $0x300] sm:$0xff]  ;;  %v5716_v27 = vrot.slane %v9120_v60, 2 }
 0xbe6   :  { %7469 = vmatpush3.bf16.msra.mxu1 %v7468_v40  ;;  %5544 = vmatprep.mubr.f32.mxu1 %v9085_v42  ;;  %v7478_v35 = vpack.c.bf16 %v6076_v31, %v6075_v41  ;;  %v5708_v40 = vrot.slane %v9089_v62, 2 }
 0xbe7   :  { %6296 = vmatmul.mubr.msk.f32.gmra.mrb[26].mxu0 %vm148_vm0, %v8986_v7  ;;  %7471 = vmatprep.subr.bf16.mxu1 %v7470_v46  ;;  %v6081_v7 = vld [vmem:[%s9356_s7 + $0x330] sm:$0xff]  ;;  %v5711_v46 = vsel %vm1911_vm6, %v5703_v20, %v5710_v17 }
 0xbe8   :  { %6298 = vmatprep.mubr.msk.f32.mxu0 %vm7847_vm9, %v8436_v38  ;;  %7499 = vmatpush3.bf16.msra.mxu0 %v7498_v37  ;;  %v7490_v63 = vpack.c.bf16 %v6082_v47, %v6081_v7  ;;  %v5709_v13 = vsel %vm1911_vm6, %v5700_v29, %v5708_v40  ;;  %v5653_v37 = vld [vmem:[#allocation4 + $0x60] sm:$0xf] }
 0xbe9   :  { %5545 = vmatmul.mubr.f32.gmra.mrb[28].mxu1 %v9089_v62  ;;  %v5717_v62 = vsel %vm1911_vm6, %v5710_v17, %v5716_v27 }
 0xbea   :  { %7473 = vmatpush3.bf16.msra.mxu1 %v7472_v57  ;;  %5549 = vmatprep.mubr.f32.mxu1 %v9120_v60  ;;  %v5715_v60 = vsel %vm1911_vm6, %v5708_v40, %v5714_v8  ;;  %v5720_v57 = vrot.slane %v5653_v37, 2 }
 0xbeb   :  { %6299 = vmatmul.mubr.msk.f32.gmra.mrb[28].mxu0 %vm148_vm0, %v9087_v32  ;;  %7475 = vmatprep.subr.bf16.mxu1 %v7474_v49  ;;  %v5718_v32 = vrot.slane %v9122_v48, 2  ;;  %v5723_v49 = vsel %vm1911_vm6, %v5716_v27, %v5722_v52 }
 0xbec   :  { %6301 = vmatprep.mubr.msk.f32.mxu0 %vm7847_vm9, %v8436_v38  ;;  %v5721_v33 = vsel %vm1911_vm6, %v5714_v8, %v5720_v57 }
 0xbed   :  { %5550 = vmatmul.mubr.f32.gmra.mrb[30].mxu1 %v9124_v25  ;;  %v5719_v39 = vsel %vm1911_vm6, %v5712_v6, %v5718_v32  ;;  %v5725_v42 = vsel %vm1911_vm6, %v5718_v32, %v5724_v0 }
 0xbee   :  { %7477 = vmatpush3.bf16.msra.mxu1 %v7476_v12  ;;  %5554 = vmatprep.mubr.f32.mxu1 %v5135_v5 }
 0xbef   :  { %6302 = vmatmul.mubr.msk.f32.gmra.mrb[30].mxu0 %vm148_vm0, %v9122_v48  ;;  %7479 = vmatprep.subr.bf16.mxu1 %v7478_v35  ;;  %v5701_v48 = vsel %vm1911_vm6, %v5699_v43, %v5700_v29  ;;  %vm5967_vm6 = vcmask 517120  }
 0xbf0   :  { %6304 = vmatprep.mubr.msk.f32.mxu0 %vm7847_vm9, %v8436_v38 }
 0xbf1   :  { %5555 = vmatmul.mubr.f32.gmra.mrb[32].mxu1 %v5134_v45 }
 0xbf2   :  { %7481 = vmatpush3.bf16.msra.mxu1 %v7480_v36  ;;  %5810 = vmatprep.mubr.f32.mxu1 %v5704_v15 }
 0xbf3   :  { %6305 = vmatmul.mubr.msk.f32.gmra.mrb[32].mxu0 %vm148_vm0, %v5136_v55  ;;  %7483 = vmatprep.subr.bf16.mxu1 %v7482_v34 }
 0xbf4   :  { %6315 = vmatprep.mubr.msk.f32.mxu0 %vm7847_vm9, %v8436_v38 }
 0xbf6   :  { %7485 = vmatpush3.bf16.msra.mxu1 %v7484_v58 }
 0xbf7   :  { %6316 = vmatmul.mubr.msk.f32.vlgmr.msra.gmra.mrb[34].mxu0 %vm148_vm0, %v5707_v14  ;;  %7487 = vmatprep.subr.bf16.mxu1 %v7486_v54 }
 0xbf8   :  { %6318 = vmatprep.mubr.msk.f32.mxu0 %vm7847_vm9, %v8436_v38 }
 0xbfa   :  { %7489 = vmatpush3.bf16.msra.mxu1 %v7488_v10 }
 0xbfb   :  { %6319 = vmatmul.mubr.msk.f32.gmra.mrb[36].mxu0 %vm148_vm0, %v5713_v23  ;;  %7491 = vmatprep.subr.bf16.mxu1 %v7490_v63 }
 0xbfc   :  { %6321 = vmatprep.mubr.msk.f32.mxu0 %vm7847_vm9, %v8436_v38 }
 0xbfe   :  { %7493 = vmatpush3.bf16.msra.mxu1 %v7492_v4 }
 0xbff   :  { %6322 = vmatmul.mubr.msk.f32.gmra.mrb[38].mxu0 %vm148_vm0, %v5719_v39 }
 0xc00   :  { %6324 = vmatprep.mubr.msk.f32.mxu0 %vm7847_vm9, %v8436_v38 }
 0xc01   :  { %5811 = vmatmul.mubr.f32.vlgmr.msra.gmra.mrb[34].mxu1 %v5701_v48 }
 0xc02   :  { %5815 = vmatprep.mubr.f32.mxu1 %v5711_v46 }
 0xc03   :  { %6325 = vmatmul.mubr.msk.f32.gmra.mrb[40].mxu0 %vm148_vm0, %v5725_v42 }
 0xc04   :  { %6327 = vmatprep.mubr.msk.f32.mxu0 %vm7847_vm9, %v8436_v38 }
 0xc05   :  { %5816 = vmatmul.mubr.f32.gmra.mrb[36].mxu1 %v5709_v13 }
 0xc06   :  { %5820 = vmatprep.mubr.f32.mxu1 %v5717_v62 }
 0xc07   :  { %6328 = vmatmul.mubr.msk.f32.gmra.mrb[42].mxu0 %vm148_vm0, %v5724_v0 }
 0xc09   :  { %5821 = vmatmul.mubr.f32.gmra.mrb[38].mxu1 %v5715_v60 }
 0xc0a   :  { %5825 = vmatprep.mubr.f32.mxu1 %v5723_v49 }
 0xc0d   :  { %5826 = vmatmul.mubr.f32.gmra.mrb[40].mxu1 %v5721_v33 }
 0xc0e   :  { %5830 = vmatprep.mubr.f32.mxu1 %v5722_v52 }
 0xc11   :  { %5831 = vmatmul.mubr.f32.gmra.mrb[42].mxu1 %v5720_v57 }
 0xc94   :  { %v5434_v38 = vpop.f32.mrb[14].mxu1 }
 0xc95   :  { %v6125_v25 = vpop.f32.mrb[14].mxu0  ;;  %v6271_v53 = vpop.f32.mrb[15].mxu1 }
 0xc96   :  { %v6126_v41 = vpop.f32.mrb[15].mxu0 }
 0xc97   :  { %v6127_v31 = vadd.f32 %v6126_v41, %v6125_v25 }
 0xc99   :  { %v5435_v12 = vadd.f32 %v6127_v31, %v5434_v38 }
 0xca4   :  { %v5439_v35 = vpop.f32.mrb[16].mxu1 }
 0xca5   :  { %v6128_v51 = vpop.f32.mrb[16].mxu0  ;;  %v6274_v50 = vpop.f32.mrb[17].mxu1 }
 0xca6   :  { %v6129_v59 = vpop.f32.mrb[17].mxu0 }
 0xca7   :  { %v6130_v3 = vadd.f32 %v6129_v59, %v6128_v51 }
 0xca8   :  { %v5444_v2 = vpop.f32.mrb[18].mxu1 }
 0xca9   :  { %v5440_v5 = vadd.f32 %v6130_v3, %v5439_v35  ;;  %v6131_v20 = vpop.f32.mrb[18].mxu0  ;;  %v6277_v36 = vpop.f32.mrb[19].mxu1 }
 0xcaa   :  { %v6132_v18 = vpop.f32.mrb[19].mxu0  ;;  %v6092_v36 = vld [vmem:[#allocation16] ss:$0 sm:$0xff] }
 0xcab   :  { %v6133_v34 = vadd.f32 %v6132_v18, %v6131_v20 }
 0xcac   :  { %v5449_v11 = vpop.f32.mrb[20].mxu1 }
 0xcad   :  { %v5445_v28 = vadd.f32 %v6133_v34, %v5444_v2  ;;  %v6134_v45 = vpop.f32.mrb[20].mxu0  ;;  %v6280_v24 = vpop.f32.mrb[21].mxu1 }
 0xcae   :  { %v6135_v1 = vpop.f32.mrb[21].mxu0 }
 0xcaf   :  { %v6136_v15 = vadd.f32 %v6135_v1, %v6134_v45 }
 0xcb0   :  { %v5454_v22 = vpop.f32.mrb[22].mxu1 }
 0xcb1   :  { %v5450_v55 = vadd.f32 %v6136_v15, %v5449_v11  ;;  %v6137_v58 = vpop.f32.mrb[22].mxu0  ;;  %v6283_v16 = vpop.f32.mrb[23].mxu1 }
 0xcb2   :  { %v6138_v54 = vpop.f32.mrb[23].mxu0 }
 0xcb3   :  { %v6139_v26 = vadd.f32 %v6138_v54, %v6137_v58 }
 0xcb4   :  { %v6181_v56 = vpop.f32.mrb[24].mxu1 }
 0xcb5   :  { %v5455_v61 = vadd.f32 %v6139_v26, %v5454_v22  ;;  %v6182_v7 = vpop.f32.mrb[25].mxu1 }
 0xcb6   :  { %v6183_v47 = vadd.f32 %v6182_v7, %v6181_v56  ;;  %v5626_v14 = vpop.f32.mrb[24].mxu0 }
 0xcb7   :  { %v6294_v10 = vpop.f32.mrb[25].mxu0 }
 0xcb8   :  { %v5537_v6 = vadd.f32 %v6183_v47, %v5435_v12  ;;  %v6184_v63 = vpop.f32.mrb[26].mxu1 }
 0xcb9   :  { %v6185_v30 = vpop.f32.mrb[27].mxu1 }
 0xcba   :  { %v5627_v21 = vadd.f32 %v5626_v14, %v5537_v6  ;;  %v6186_v23 = vadd.f32 %v6185_v30, %v6184_v63  ;;  %v5631_v4 = vpop.f32.mrb[26].mxu0 }
 0xcbb   :  { %v6297_v32 = vpop.f32.mrb[27].mxu0 }
 0xcbc   :  { %v5542_v19 = vadd.f32 %v6186_v23, %v5440_v5  ;;  %v6187_v9 = vpop.f32.mrb[28].mxu1 }
 0xcbd   :  { %v6188_v29 = vpop.f32.mrb[29].mxu1 }
 0xcbe   :  { %v5632_v17 = vadd.f32 %v5631_v4, %v5542_v19  ;;  %v6189_v39 = vadd.f32 %v6188_v29, %v6187_v9  ;;  %v5636_v43 = vpop.f32.mrb[28].mxu0 }
 0xcbf   :  { %v6300_v0 = vpop.f32.mrb[29].mxu0 }
 0xcc0   :  { %v5547_v48 = vadd.f32 %v6189_v39, %v5445_v28  ;;  %v6190_v40 = vpop.f32.mrb[30].mxu1 }
 0xcc1   :  { %v6191_v46 = vpop.f32.mrb[31].mxu1 }
 0xcc2   :  { %v5637_v27 = vadd.f32 %v5636_v43, %v5547_v48  ;;  %v6192_v42 = vadd.f32 %v6191_v46, %v6190_v40  ;;  %v5641_v44 = vpop.f32.mrb[30].mxu0 }
 0xcc3   :  { %v6303_v13 = vpop.f32.mrb[31].mxu0 }
 0xcc4   :  { %v5552_v8 = vadd.f32 %v6192_v42, %v5450_v55  ;;  %v6193_v62 = vpop.f32.mrb[32].mxu1 }
 0xcc5   :  { %v6194_v52 = vpop.f32.mrb[33].mxu1 }
 0xcc6   :  { %v5642_v37 = vadd.f32 %v5641_v44, %v5552_v8  ;;  %v6195_v60 = vadd.f32 %v6194_v52, %v6193_v62  ;;  %v5646_v57 = vpop.f32.mrb[32].mxu0 }
 0xcc7   :  { %v6306_v49 = vpop.f32.mrb[33].mxu0 }
 0xcc8   :  { %v5557_v33 = vadd.f32 %v6195_v60, %v5455_v61 }
 0xcca   :  { %v5647_v38 = vadd.f32 %v5646_v57, %v5557_v33  ;;  %v5902_v25 = vpop.f32.mrb[34].mxu0 }
 0xccb   :  { %v6317_v53 = vpop.f32.mrb[35].mxu0 }
 0xcce   :  { %v5907_v41 = vpop.f32.mrb[36].mxu0 }
 0xccf   :  { %v6320_v31 = vpop.f32.mrb[37].mxu0 }
 0xcd2   :  { %v5912_v12 = vpop.f32.mrb[38].mxu0 }
 0xcd3   :  { %v6323_v35 = vpop.f32.mrb[39].mxu0 }
 0xcd4   :  { %v6237_v51 = vpop.f32.mrb[34].mxu1 }
 0xcd5   :  { %v6238_v50 = vpop.f32.mrb[35].mxu1 }
 0xcd6   :  { %v6239_v59 = vadd.f32 %v6238_v50, %v6237_v51  ;;  %v5917_v3 = vpop.f32.mrb[40].mxu0 }
 0xcd7   :  { %v6326_v2 = vpop.f32.mrb[41].mxu0 }
 0xcd8   :  { %v5903_v5 = vadd.f32 %v6239_v59, %v5902_v25  ;;  %v6240_v20 = vpop.f32.mrb[36].mxu1 }
 0xcd9   :  { %v6241_v18 = vpop.f32.mrb[37].mxu1 }
 0xcda   :  { %v5926_v34 = vadd.f32 %v5903_v5, %v5627_v21  ;;  %v6242_v11 = vadd.f32 %v6241_v18, %v6240_v20  ;;  %v5922_v28 = vpop.f32.mrb[42].mxu0 }
 0xcdb   :  { %v6329_v45 = vpop.f32.mrb[43].mxu0 }
 0xcdc   :  { %v5937_v24 = vadd.f32 %v6092_v36, %v5926_v34  ;;  %v5908_v1 = vadd.f32 %v6242_v11, %v5907_v41  ;;  %v6243_v15 = vpop.f32.mrb[38].mxu1 }
 0xcdd   :  { %v6244_v22 = vpop.f32.mrb[39].mxu1 }
 0xcde   :  { %v5942_v55 = vmul.f32 0.5, %v5937_v24  ;;  %v5927_v58 = vadd.f32 %v5908_v1, %v5632_v17  ;;  %v6245_v16 = vadd.f32 %v6244_v22, %v6243_v15 }
 0xce0   :  { %7630 = vtanh.f32 %v5942_v55  ;;  %v5938_v54 = vadd.f32 %v6092_v36, %v5927_v58  ;;  %v5913_v26 = vadd.f32 %v6245_v16, %v5912_v12  ;;  %v6246_v56 = vpop.f32.mrb[40].mxu1 }
 0xce1   :  { %v6247_v61 = vpop.f32.mrb[41].mxu1 }
 0xce2   :  { %v5943_v7 = vmul.f32 0.5, %v5938_v54  ;;  %v5928_v47 = vadd.f32 %v5913_v26, %v5637_v27  ;;  %v6248_v14 = vadd.f32 %v6247_v61, %v6246_v56 }
 0xce4   :  { %7632 = vtanh.f32 %v5943_v7  ;;  %v5939_v10 = vadd.f32 %v6092_v36, %v5928_v47  ;;  %v5918_v6 = vadd.f32 %v6248_v14, %v5917_v3  ;;  %v6249_v63 = vpop.f32.mrb[42].mxu1 }
 0xce5   :  { %v6250_v30 = vpop.f32.mrb[43].mxu1 }
 0xce6   :  { %v5944_v21 = vmul.f32 0.5, %v5939_v10  ;;  %v5929_v23 = vadd.f32 %v5918_v6, %v5642_v37  ;;  %v6251_v4 = vadd.f32 %v6250_v30, %v6249_v63 }
 0xce8   :  { %7634 = vtanh.f32 %v5944_v21  ;;  %v5940_v32 = vadd.f32 %v6092_v36, %v5929_v23  ;;  %v5923_v19 = vadd.f32 %v6251_v4, %v5922_v28 }
 0xcea   :  { %v7631_v9 = vpop.eup %7630  ;;  %v5945_v29 = vmul.f32 0.5, %v5940_v32  ;;  %v5930_v17 = vadd.f32 %v5923_v19, %v5647_v38 }
 0xceb   :  { %v5952_v39 = vadd.f32 1.0, %v7631_v9 }
 0xcec   :  { %7636 = vtanh.f32 %v5945_v29  ;;  %v5941_v43 = vadd.f32 %v6092_v36, %v5930_v17 }
 0xced   :  { %v5957_v0 = vmul.f32 0.5, %v5952_v39 }
 0xcee   :  { %v7633_v48 = vpop.eup %7632  ;;  %v5946_v40 = vmul.f32 0.5, %v5941_v43 }
 0xcef   :  { %5962 = vst.msk [vmem:[%s9358_s9] sm:$0xff] %vm137_vm1, %v5957_v0  ;;  %v5953_v46 = vadd.f32 1.0, %v7633_v48 }
 0xcf0   :  { %7638 = vtanh.f32 %v5946_v40 }
 0xcf1   :  { %v5958_v27 = vmul.f32 0.5, %v5953_v46 }
 0xcf2   :  { %v7635_v42 = vpop.eup %7634 }
 0xcf3   :  { %5963 = vst.msk [vmem:[%s9358_s9 + $0x8] sm:$0xff] %vm137_vm1, %v5958_v27  ;;  %v5954_v44 = vadd.f32 1.0, %v7635_v42 }
 0xcf5   :  { %v5959_v13 = vmul.f32 0.5, %v5954_v44 }
 0xcf6   :  { %v7637_v8 = vpop.eup %7636 }
 0xcf7   :  { %5965 = vst.msk [vmem:[%s9358_s9 + $0xe] sm:$0xfc] %vm5964_vm5, %v5959_v13  ;;  %v5955_v62 = vadd.f32 1.0, %v7637_v8 }
 0xcf9   :  { %v5960_v52 = vmul.f32 0.5, %v5955_v62 }
 0xcfa   :  { %v7639_v37 = vpop.eup %7638 }
 0xcfb   :  { %5966 = vst.msk [vmem:[%s9358_s9 + $0x16] sm:$0xff] %vm137_vm1, %v5960_v52  ;;  %v5956_v60 = vadd.f32 1.0, %v7639_v37 }
 0xcfd   :  { %v5961_v57 = vmul.f32 0.5, %v5956_v60 }
 0xcff   :  { %5968 = vst.msk [vmem:[%s9358_s9 + $0x1e] sm:$0x3] %vm5967_vm6, %v5961_v57 }
 0xd00   :  { %5973 = vsyncpa [#allocation6], 1 }
 0xd01   :  { %5974 = vsyncpa [#allocation8], 1 }
 0xd02   :  { %5975 = vsyncpa [#allocation11], 1 }
 0xd03   :  { %5976 = vsyncpa [#allocation14], 1 }
 0xd04   :  { %5977 = vsyncpa [#allocation17], 1 }

</bundles_post_ra>
